<compile_context>
chip_gen: v5e
topology: v5e:2x2
jax: 0.10.0
libtpu: 0.0.40
codegen_flags: <defaults>
</compile_context>

<pallas_src>
import functools
import math

import jax
import jax.numpy as jnp
from jax.experimental import pallas as pl
from jax.experimental.pallas import tpu as pltpu


_VMEM = pl.BlockSpec(memory_space=pltpu.MemorySpace.VMEM)


# --------------------------------------------------------------------------------------
# In-kernel helpers (operate on VALUES, everything stays rank-3 and f32; no reshapes,
# no transposes, no concatenates inside the kernel).
# --------------------------------------------------------------------------------------
def _bdot(a, b, ca, cb):
    """Batched matmul: contract a-dim `ca` with b-dim `cb`, batch over dim 0 of both."""
    return jax.lax.dot_general(
        a, b, (((ca,), (cb,)), ((0,), (0,))), preferred_element_type=jnp.float32)


def _linear3(x, w, b, relu=False):
    """x:(B,N,D) @ w:(D,H) + b:(1,1,H); weight broadcast over the batch dim (stays in VMEM)."""
    B = x.shape[0]
    y = _bdot(x, jnp.broadcast_to(w, (B,) + w.shape), 2, 1) + b
    if relu:
        y = jnp.maximum(y, 0.0)
    return y


def _layernorm3(x, g, b, eps=1e-5):
    mu = jnp.mean(x, axis=-1, keepdims=True)
    var = jnp.mean(jnp.square(x - mu), axis=-1, keepdims=True)   # biased var == torch LN
    return (x - mu) * jax.lax.rsqrt(var + eps) * g + b


def _mean_tokens(x):
    """Mean over the token axis (B, n, d) -> (B, 1, d), as a tiny matmul (MXU slot)."""
    B, n, d = x.shape
    ones = jnp.full((B, 1, n), 1.0 / n, jnp.float32)
    return _bdot(ones, x, 2, 1)


def _mab(p, q_in, kv_in, n_head):
    """MAB(q, kv) = LN(q + MHA(q, kv, kv)) ; LN(h + ReLU(Linear(h)))."""
    B, nq, d = q_in.shape
    dh = d // n_head
    scale = 1.0 / math.sqrt(dh)

    # Fused Q|K|V projection: one (d, 3d) matmul.  (use_attention_scaling == False)
    kv_proj = _linear3(kv_in, p["wqkv"]["w"], p["wqkv"]["b"])            # (B, nk, 3d)
    q_proj = kv_proj if (q_in is kv_in) else _linear3(q_in, p["wqkv"]["w"], p["wqkv"]["b"])

    q_all = q_proj[:, :, 0:d]
    k_all = kv_proj[:, :, d:2 * d]
    v_all = kv_proj[:, :, 2 * d:3 * d]

    # Per-head attention via static lane slices; output projection folded per-head:
    #   concat_h(o_h) @ Wo == sum_h o_h @ Wo[h*dh:(h+1)*dh, :]
    att = jnp.zeros((B, nq, d), jnp.float32)
    for h in range(n_head):                                              # unrolled (tiny)
        sl = slice(h * dh, (h + 1) * dh)
        qh, kh, vh = q_all[:, :, sl], k_all[:, :, sl], v_all[:, :, sl]
        s = _bdot(qh, kh, 2, 2) * scale                                  # (B, nq, nk)
        m = jnp.max(s, axis=-1, keepdims=True)
        e = jnp.exp(s - m)
        pr = e * pl.reciprocal(jnp.sum(e, axis=-1, keepdims=True), approx=True)
        o = _bdot(pr, vh, 2, 1)                                          # (B, nq, dh)
        wo_h = p["wo"]["w"][sl, :]                                       # (dh, d)
        att = att + _bdot(o, jnp.broadcast_to(wo_h, (B, dh, d)), 2, 1)
    att = att + p["wo"]["b"]

    h1 = _layernorm3(q_in + att, p["ln1"]["g"], p["ln1"]["b"])
    ff = _linear3(h1, p["rff"]["w"], p["rff"]["b"], relu=True)
    return _layernorm3(h1 + ff, p["ln2"]["g"], p["ln2"]["b"])


def _pma(p, z, n_head):
    B = z.shape[0]
    zp = _linear3(z, p["rff_pre"]["w"], p["rff_pre"]["b"], relu=True)
    seed = jnp.broadcast_to(p["seed"], (B,) + p["seed"].shape)           # (B, k_seed, d)
    return _mab(p["mab"], seed, zp, n_head)


def _mlp_base(p, x):
    h = _layernorm3(x, p["feature_norm"]["g"], p["feature_norm"]["b"])
    h = _layernorm3(_linear3(h, p["fc1"]["w"], p["fc1"]["b"], relu=True),
                    p["ln1"]["g"], p["ln1"]["b"])
    h = _layernorm3(_linear3(h, p["fc2"]["w"], p["fc2"]["b"], relu=True),
                    p["ln2"]["g"], p["ln2"]["b"])
    return h


# --------------------------------------------------------------------------------------
# Fused Pallas kernels (single invocation, no grid; all operands VMEM-resident)
# --------------------------------------------------------------------------------------
def _feature_kernel(*refs, treedef, n_head):
    x_ref, out_ref = refs[0], refs[-1]
    p = jax.tree_util.tree_map(lambda r: r[...],
                               jax.tree_util.tree_unflatten(treedef, refs[1:-1]))
    x = x_ref[...]                                   # (B, num_objects, input_dim) f32
    h = _mlp_base(p["base"], x)                      # (B, num_objects, H)
    h = _mab(p["sab"], h, h, n_head)                 # SetAttentionBlock
    h = _pma(p["pma_feat"], h, n_head)               # (B, k_seed, H)
    out_ref[...] = _mean_tokens(h)                   # (B, 1, H)


def _agent_kernel(*refs, treedef, n_head):
    z_ref, out_ref = refs[0], refs[-1]
    p = jax.tree_util.tree_map(lambda r: r[...],
                               jax.tree_util.tree_unflatten(treedef, refs[1:-1]))
    z = z_ref[...]                                   # (R, num_agents, H)
    h = _pma(p["pma_agent"], z, n_head)              # (R, k_seed, H)
    pooled = _mean_tokens(h)                         # (R, 1, H)
    R = pooled.shape[0]
    wv = jnp.broadcast_to(p["v_net"]["w"], (R,) + p["v_net"]["w"].shape)   # (R, H, 1)
    out_ref[...] = _bdot(pooled, wv, 2, 1) + p["v_net"]["b"]               # (R, 1, 1)


def _fused_call(kernel_body, x, params, out_shape, *, n_head, flops, transcendentals):
    leaves, treedef = jax.tree_util.tree_flatten(params)
    bytes_accessed = 4 * (x.size + sum(int(l.size) for l in leaves)
                          + int(math.prod(out_shape.shape)))
    return pl.pallas_call(
        functools.partial(kernel_body, treedef=treedef, n_head=n_head),
        out_shape=out_shape,
        in_specs=[_VMEM] * (1 + len(leaves)),
        out_specs=_VMEM,
        compiler_params=pltpu.CompilerParams(vmem_limit_bytes=16 * 1024 * 1024),
        cost_estimate=pl.CostEstimate(flops=flops, transcendentals=transcendentals,
                                      bytes_accessed=bytes_accessed),
    )(x, *leaves)


# --------------------------------------------------------------------------------------
# Parameter init (deterministic, synthetic)
# --------------------------------------------------------------------------------------
def _init_linear(key, din, dout):
    w = jax.random.normal(key, (din, dout), jnp.float32) * (1.0 / math.sqrt(din))
    b = jnp.zeros((1, 1, dout), jnp.float32)
    return {"w": w, "b": b}


def _init_ln(d):
    return {"g": jnp.ones((1, 1, d), jnp.float32), "b": jnp.zeros((1, 1, d), jnp.float32)}


def _init_mab(key, d):
    ks = jax.random.split(key, 3)
    # wq|wk|wv stored pre-fused as a single (d, 3d) weight (equivalent random init,
    # one matmul in-kernel instead of three).
    return {
        "wqkv": _init_linear(ks[0], d, 3 * d),
        "wo": _init_linear(ks[1], d, d),
        "rff": _init_linear(ks[2], d, d),
        "ln1": _init_ln(d),
        "ln2": _init_ln(d),
    }


def _init_pma(key, d, k):
    k0, k1, k2 = jax.random.split(key, 3)
    return {
        "seed": jax.random.normal(k0, (k, d), jnp.float32),
        "rff_pre": _init_linear(k1, d, d),
        "mab": _init_mab(k2, d),
    }


def init_critic_params(key, input_dim, hidden, n_seed):
    ks = jax.random.split(key, 6)
    return {
        "base": {
            "feature_norm": _init_ln(input_dim),
            "fc1": _init_linear(ks[0], input_dim, hidden),
            "ln1": _init_ln(hidden),
            "fc2": _init_linear(ks[1], hidden, hidden),
            "ln2": _init_ln(hidden),
        },
        "sab": _init_mab(ks[2], hidden),
        "pma_feat": _init_pma(ks[3], hidden, n_seed),
        "pma_agent": _init_pma(ks[4], hidden, n_seed),
        "v_net": _init_linear(ks[5], hidden, 1),
    }


# --------------------------------------------------------------------------------------
# Model forward: 2 fused pallas_calls + free XLA reshapes
# --------------------------------------------------------------------------------------
def critic_forward(params, share_obs, rnn_states_critic, masks, *,
                   num_agents, num_objects, input_dim, hidden_size, n_head):
    B = share_obs.shape[0]
    x3d = share_obs.reshape(B, num_objects, input_dim)          # metadata-only reshape

    feat_params = {"base": params["base"], "sab": params["sab"],
                   "pma_feat": params["pma_feat"]}
    feat = _fused_call(
        _feature_kernel, x3d, feat_params,
        jax.ShapeDtypeStruct((B, 1, hidden_size), jnp.float32),
        n_head=n_head, flops=1_500_000, transcendentals=4_000)  # (B, 1, H)

    # use_recurrent_policy == False -> RNNLayer branch skipped
    za = feat.reshape(-1, num_agents, hidden_size)              # (R, num_agents, H), free

    agent_params = {"pma_agent": params["pma_agent"], "v_net": params["v_net"]}
    v = _fused_call(
        _agent_kernel, za, agent_params,
        jax.ShapeDtypeStruct((za.shape[0], 1, 1), jnp.float32),
        n_head=n_head, flops=200_000, transcendentals=1_000)    # (R, 1, 1)

    v = v.reshape(-1, 1)                                        # (R, 1)
    values = jnp.repeat(v[:, None, :], num_agents, axis=1).reshape(-1, 1)
    return values, rnn_states_critic


# --------------------------------------------------------------------------------------
# Main
# --------------------------------------------------------------------------------------
if __name__ == "__main__":
    # args (synthetic, small)
    num_agents = 3
    num_objects = 8
    input_dim = 12
    obs_space = num_objects * input_dim        # 96
    hidden_size = 32
    n_head = 4
    n_seed_vector = 4
    recurrent_N = 1
    rollouts = 2
    B = rollouts * num_agents                  # 6

    key = jax.random.PRNGKey(0)
    kp, kx = jax.random.split(key)
    params = init_critic_params(kp, input_dim, hidden_size, n_seed_vector)

    share_obs = jax.random.normal(kx, (B, obs_space), jnp.float32)
    rnn_states_critic = jnp.zeros((B, recurrent_N, hidden_size), jnp.float32)
    masks = jnp.ones((B, 1), jnp.float32)

    fwd = jax.jit(functools.partial(
        critic_forward,
        num_agents=num_agents, num_objects=num_objects, input_dim=input_dim,
        hidden_size=hidden_size, n_head=n_head))

    values, rnn_out = fwd(params, share_obs, rnn_states_critic, masks)
    values = jax.block_until_ready(values)
    rnn_out = jax.block_until_ready(rnn_out)

    assert values.shape == (B, 1), values.shape
    assert rnn_out.shape == rnn_states_critic.shape
    assert bool(jnp.all(jnp.isfinite(values)))
    print("KERNEL_OK")
</pallas_src>

<mosaic_0001>
module attributes {stable_mosaic.version = 11 : i64} {
  func.func @_feature_kernel(%arg0: memref<6x8x12xf32, #tpu.memory_space<vmem>>, %arg1: memref<1x1x32xf32, #tpu.memory_space<vmem>>, %arg2: memref<12x32xf32, #tpu.memory_space<vmem>>, %arg3: memref<1x1x32xf32, #tpu.memory_space<vmem>>, %arg4: memref<32x32xf32, #tpu.memory_space<vmem>>, %arg5: memref<1x1x12xf32, #tpu.memory_space<vmem>>, %arg6: memref<1x1x12xf32, #tpu.memory_space<vmem>>, %arg7: memref<1x1x32xf32, #tpu.memory_space<vmem>>, %arg8: memref<1x1x32xf32, #tpu.memory_space<vmem>>, %arg9: memref<1x1x32xf32, #tpu.memory_space<vmem>>, %arg10: memref<1x1x32xf32, #tpu.memory_space<vmem>>, %arg11: memref<1x1x32xf32, #tpu.memory_space<vmem>>, %arg12: memref<1x1x32xf32, #tpu.memory_space<vmem>>, %arg13: memref<1x1x32xf32, #tpu.memory_space<vmem>>, %arg14: memref<1x1x32xf32, #tpu.memory_space<vmem>>, %arg15: memref<1x1x32xf32, #tpu.memory_space<vmem>>, %arg16: memref<32x32xf32, #tpu.memory_space<vmem>>, %arg17: memref<1x1x32xf32, #tpu.memory_space<vmem>>, %arg18: memref<32x32xf32, #tpu.memory_space<vmem>>, %arg19: memref<1x1x96xf32, #tpu.memory_space<vmem>>, %arg20: memref<32x96xf32, #tpu.memory_space<vmem>>, %arg21: memref<1x1x32xf32, #tpu.memory_space<vmem>>, %arg22: memref<32x32xf32, #tpu.memory_space<vmem>>, %arg23: memref<4x32xf32, #tpu.memory_space<vmem>>, %arg24: memref<1x1x32xf32, #tpu.memory_space<vmem>>, %arg25: memref<1x1x32xf32, #tpu.memory_space<vmem>>, %arg26: memref<1x1x32xf32, #tpu.memory_space<vmem>>, %arg27: memref<1x1x32xf32, #tpu.memory_space<vmem>>, %arg28: memref<1x1x32xf32, #tpu.memory_space<vmem>>, %arg29: memref<32x32xf32, #tpu.memory_space<vmem>>, %arg30: memref<1x1x32xf32, #tpu.memory_space<vmem>>, %arg31: memref<32x32xf32, #tpu.memory_space<vmem>>, %arg32: memref<1x1x96xf32, #tpu.memory_space<vmem>>, %arg33: memref<32x96xf32, #tpu.memory_space<vmem>>, %arg34: memref<6x1x32xf32, #tpu.memory_space<vmem>>) attributes {dimension_semantics = [], scalar_prefetch = 0 : i64, scratch_operands = 0 : i64, tpu.core_type = #tpu.core_type<tc>} {
    %c0 = arith.constant 0 : index
    %c0_0 = arith.constant 0 : index
    %c0_1 = arith.constant 0 : index
    %0 = vector.load %arg1[%c0, %c0_0, %c0_1] : memref<1x1x32xf32, #tpu.memory_space<vmem>>, vector<1x1x32xf32>
    %c0_2 = arith.constant 0 : index
    %c0_3 = arith.constant 0 : index
    %1 = vector.load %arg2[%c0_2, %c0_3] : memref<12x32xf32, #tpu.memory_space<vmem>>, vector<12x32xf32>
    %c0_4 = arith.constant 0 : index
    %c0_5 = arith.constant 0 : index
    %c0_6 = arith.constant 0 : index
    %2 = vector.load %arg3[%c0_4, %c0_5, %c0_6] : memref<1x1x32xf32, #tpu.memory_space<vmem>>, vector<1x1x32xf32>
    %c0_7 = arith.constant 0 : index
    %c0_8 = arith.constant 0 : index
    %3 = vector.load %arg4[%c0_7, %c0_8] : memref<32x32xf32, #tpu.memory_space<vmem>>, vector<32x32xf32>
    %c0_9 = arith.constant 0 : index
    %c0_10 = arith.constant 0 : index
    %c0_11 = arith.constant 0 : index
    %4 = vector.load %arg5[%c0_9, %c0_10, %c0_11] : memref<1x1x12xf32, #tpu.memory_space<vmem>>, vector<1x1x12xf32>
    %c0_12 = arith.constant 0 : index
    %c0_13 = arith.constant 0 : index
    %c0_14 = arith.constant 0 : index
    %5 = vector.load %arg6[%c0_12, %c0_13, %c0_14] : memref<1x1x12xf32, #tpu.memory_space<vmem>>, vector<1x1x12xf32>
    %c0_15 = arith.constant 0 : index
    %c0_16 = arith.constant 0 : index
    %c0_17 = arith.constant 0 : index
    %6 = vector.load %arg7[%c0_15, %c0_16, %c0_17] : memref<1x1x32xf32, #tpu.memory_space<vmem>>, vector<1x1x32xf32>
    %c0_18 = arith.constant 0 : index
    %c0_19 = arith.constant 0 : index
    %c0_20 = arith.constant 0 : index
    %7 = vector.load %arg8[%c0_18, %c0_19, %c0_20] : memref<1x1x32xf32, #tpu.memory_space<vmem>>, vector<1x1x32xf32>
    %c0_21 = arith.constant 0 : index
    %c0_22 = arith.constant 0 : index
    %c0_23 = arith.constant 0 : index
    %8 = vector.load %arg9[%c0_21, %c0_22, %c0_23] : memref<1x1x32xf32, #tpu.memory_space<vmem>>, vector<1x1x32xf32>
    %c0_24 = arith.constant 0 : index
    %c0_25 = arith.constant 0 : index
    %c0_26 = arith.constant 0 : index
    %9 = vector.load %arg10[%c0_24, %c0_25, %c0_26] : memref<1x1x32xf32, #tpu.memory_space<vmem>>, vector<1x1x32xf32>
    %c0_27 = arith.constant 0 : index
    %c0_28 = arith.constant 0 : index
    %c0_29 = arith.constant 0 : index
    %10 = vector.load %arg11[%c0_27, %c0_28, %c0_29] : memref<1x1x32xf32, #tpu.memory_space<vmem>>, vector<1x1x32xf32>
    %c0_30 = arith.constant 0 : index
    %c0_31 = arith.constant 0 : index
    %c0_32 = arith.constant 0 : index
    %11 = vector.load %arg12[%c0_30, %c0_31, %c0_32] : memref<1x1x32xf32, #tpu.memory_space<vmem>>, vector<1x1x32xf32>
    %c0_33 = arith.constant 0 : index
    %c0_34 = arith.constant 0 : index
    %c0_35 = arith.constant 0 : index
    %12 = vector.load %arg13[%c0_33, %c0_34, %c0_35] : memref<1x1x32xf32, #tpu.memory_space<vmem>>, vector<1x1x32xf32>
    %c0_36 = arith.constant 0 : index
    %c0_37 = arith.constant 0 : index
    %c0_38 = arith.constant 0 : index
    %13 = vector.load %arg14[%c0_36, %c0_37, %c0_38] : memref<1x1x32xf32, #tpu.memory_space<vmem>>, vector<1x1x32xf32>
    %c0_39 = arith.constant 0 : index
    %c0_40 = arith.constant 0 : index
    %c0_41 = arith.constant 0 : index
    %14 = vector.load %arg15[%c0_39, %c0_40, %c0_41] : memref<1x1x32xf32, #tpu.memory_space<vmem>>, vector<1x1x32xf32>
    %c0_42 = arith.constant 0 : index
    %c0_43 = arith.constant 0 : index
    %15 = vector.load %arg16[%c0_42, %c0_43] : memref<32x32xf32, #tpu.memory_space<vmem>>, vector<32x32xf32>
    %c0_44 = arith.constant 0 : index
    %c0_45 = arith.constant 0 : index
    %c0_46 = arith.constant 0 : index
    %16 = vector.load %arg17[%c0_44, %c0_45, %c0_46] : memref<1x1x32xf32, #tpu.memory_space<vmem>>, vector<1x1x32xf32>
    %c0_47 = arith.constant 0 : index
    %c0_48 = arith.constant 0 : index
    %17 = vector.load %arg18[%c0_47, %c0_48] : memref<32x32xf32, #tpu.memory_space<vmem>>, vector<32x32xf32>
    %c0_49 = arith.constant 0 : index
    %c0_50 = arith.constant 0 : index
    %c0_51 = arith.constant 0 : index
    %18 = vector.load %arg19[%c0_49, %c0_50, %c0_51] : memref<1x1x96xf32, #tpu.memory_space<vmem>>, vector<1x1x96xf32>
    %c0_52 = arith.constant 0 : index
    %c0_53 = arith.constant 0 : index
    %19 = vector.load %arg20[%c0_52, %c0_53] : memref<32x96xf32, #tpu.memory_space<vmem>>, vector<32x96xf32>
    %c0_54 = arith.constant 0 : index
    %c0_55 = arith.constant 0 : index
    %c0_56 = arith.constant 0 : index
    %20 = vector.load %arg21[%c0_54, %c0_55, %c0_56] : memref<1x1x32xf32, #tpu.memory_space<vmem>>, vector<1x1x32xf32>
    %c0_57 = arith.constant 0 : index
    %c0_58 = arith.constant 0 : index
    %21 = vector.load %arg22[%c0_57, %c0_58] : memref<32x32xf32, #tpu.memory_space<vmem>>, vector<32x32xf32>
    %c0_59 = arith.constant 0 : index
    %c0_60 = arith.constant 0 : index
    %22 = vector.load %arg23[%c0_59, %c0_60] : memref<4x32xf32, #tpu.memory_space<vmem>>, vector<4x32xf32>
    %c0_61 = arith.constant 0 : index
    %c0_62 = arith.constant 0 : index
    %c0_63 = arith.constant 0 : index
    %23 = vector.load %arg24[%c0_61, %c0_62, %c0_63] : memref<1x1x32xf32, #tpu.memory_space<vmem>>, vector<1x1x32xf32>
    %c0_64 = arith.constant 0 : index
    %c0_65 = arith.constant 0 : index
    %c0_66 = arith.constant 0 : index
    %24 = vector.load %arg25[%c0_64, %c0_65, %c0_66] : memref<1x1x32xf32, #tpu.memory_space<vmem>>, vector<1x1x32xf32>
    %c0_67 = arith.constant 0 : index
    %c0_68 = arith.constant 0 : index
    %c0_69 = arith.constant 0 : index
    %25 = vector.load %arg26[%c0_67, %c0_68, %c0_69] : memref<1x1x32xf32, #tpu.memory_space<vmem>>, vector<1x1x32xf32>
    %c0_70 = arith.constant 0 : index
    %c0_71 = arith.constant 0 : index
    %c0_72 = arith.constant 0 : index
    %26 = vector.load %arg27[%c0_70, %c0_71, %c0_72] : memref<1x1x32xf32, #tpu.memory_space<vmem>>, vector<1x1x32xf32>
    %c0_73 = arith.constant 0 : index
    %c0_74 = arith.constant 0 : index
    %c0_75 = arith.constant 0 : index
    %27 = vector.load %arg28[%c0_73, %c0_74, %c0_75] : memref<1x1x32xf32, #tpu.memory_space<vmem>>, vector<1x1x32xf32>
    %c0_76 = arith.constant 0 : index
    %c0_77 = arith.constant 0 : index
    %28 = vector.load %arg29[%c0_76, %c0_77] : memref<32x32xf32, #tpu.memory_space<vmem>>, vector<32x32xf32>
    %c0_78 = arith.constant 0 : index
    %c0_79 = arith.constant 0 : index
    %c0_80 = arith.constant 0 : index
    %29 = vector.load %arg30[%c0_78, %c0_79, %c0_80] : memref<1x1x32xf32, #tpu.memory_space<vmem>>, vector<1x1x32xf32>
    %c0_81 = arith.constant 0 : index
    %c0_82 = arith.constant 0 : index
    %30 = vector.load %arg31[%c0_81, %c0_82] : memref<32x32xf32, #tpu.memory_space<vmem>>, vector<32x32xf32>
    %c0_83 = arith.constant 0 : index
    %c0_84 = arith.constant 0 : index
    %c0_85 = arith.constant 0 : index
    %31 = vector.load %arg32[%c0_83, %c0_84, %c0_85] : memref<1x1x96xf32, #tpu.memory_space<vmem>>, vector<1x1x96xf32>
    %c0_86 = arith.constant 0 : index
    %c0_87 = arith.constant 0 : index
    %32 = vector.load %arg33[%c0_86, %c0_87] : memref<32x96xf32, #tpu.memory_space<vmem>>, vector<32x96xf32>
    %c0_88 = arith.constant 0 : index
    %c0_89 = arith.constant 0 : index
    %c0_90 = arith.constant 0 : index
    %33 = vector.load %arg0[%c0_88, %c0_89, %c0_90] : memref<6x8x12xf32, #tpu.memory_space<vmem>>, vector<6x8x12xf32>
    %cst = arith.constant dense<0.000000e+00> : vector<6x8xf32>
    %34 = vector.multi_reduction <add>, %33, %cst [2] : vector<6x8x12xf32> to vector<6x8xf32>
    %35 = vector.shape_cast %34 : vector<6x8xf32> to vector<6x8x1xf32>
    %cst_91 = arith.constant 1.200000e+01 : f32
    %36 = vector.broadcast %cst_91 : f32 to vector<6x8x1xf32>
    %37 = arith.divf %35, %36 : vector<6x8x1xf32>
    %38 = vector.broadcast %37 : vector<6x8x1xf32> to vector<6x8x12xf32>
    %39 = arith.subf %33, %38 : vector<6x8x12xf32>
    %40 = arith.mulf %39, %39 : vector<6x8x12xf32>
    %cst_92 = arith.constant dense<0.000000e+00> : vector<6x8xf32>
    %41 = vector.multi_reduction <add>, %40, %cst_92 [2] : vector<6x8x12xf32> to vector<6x8xf32>
    %42 = vector.shape_cast %41 : vector<6x8xf32> to vector<6x8x1xf32>
    %cst_93 = arith.constant 1.200000e+01 : f32
    %43 = vector.broadcast %cst_93 : f32 to vector<6x8x1xf32>
    %44 = arith.divf %42, %43 : vector<6x8x1xf32>
    %45 = vector.broadcast %37 : vector<6x8x1xf32> to vector<6x8x12xf32>
    %46 = arith.subf %33, %45 : vector<6x8x12xf32>
    %cst_94 = arith.constant 9.99999974E-6 : f32
    %47 = vector.broadcast %cst_94 : f32 to vector<6x8x1xf32>
    %48 = arith.addf %44, %47 : vector<6x8x1xf32>
    %49 = math.rsqrt %48 : vector<6x8x1xf32>
    %50 = vector.broadcast %49 : vector<6x8x1xf32> to vector<6x8x12xf32>
    %51 = arith.mulf %46, %50 : vector<6x8x12xf32>
    %52 = vector.broadcast %5 : vector<1x1x12xf32> to vector<6x8x12xf32>
    %53 = arith.mulf %51, %52 : vector<6x8x12xf32>
    %54 = vector.broadcast %4 : vector<1x1x12xf32> to vector<6x8x12xf32>
    %55 = arith.addf %53, %54 : vector<6x8x12xf32>
    %56 = vector.shape_cast %1 : vector<12x32xf32> to vector<1x12x32xf32>
    %57 = vector.broadcast %56 : vector<1x12x32xf32> to vector<6x12x32xf32>
    %cst_95 = arith.constant dense<0.000000e+00> : vector<6x8x32xf32>
    %58 = tpu.matmul %55, %57, %cst_95 {dimension_numbers = #tpu.dot_dimension_numbers<[2], [1], [1], [2], [0, 0, 0, 1, 1, 2], [0], [0]>} : vector<6x8x12xf32>, vector<6x12x32xf32>, vector<6x8x32xf32> -> vector<6x8x32xf32>
    %59 = vector.broadcast %0 : vector<1x1x32xf32> to vector<6x8x32xf32>
    %60 = arith.addf %58, %59 : vector<6x8x32xf32>
    %cst_96 = arith.constant 0.000000e+00 : f32
    %61 = vector.broadcast %cst_96 : f32 to vector<6x8x32xf32>
    %62 = arith.maximumf %60, %61 : vector<6x8x32xf32>
    %cst_97 = arith.constant dense<0.000000e+00> : vector<6x8xf32>
    %63 = vector.multi_reduction <add>, %62, %cst_97 [2] : vector<6x8x32xf32> to vector<6x8xf32>
    %64 = vector.shape_cast %63 : vector<6x8xf32> to vector<6x8x1xf32>
    %cst_98 = arith.constant 3.200000e+01 : f32
    %65 = vector.broadcast %cst_98 : f32 to vector<6x8x1xf32>
    %66 = arith.divf %64, %65 : vector<6x8x1xf32>
    %67 = vector.broadcast %66 : vector<6x8x1xf32> to vector<6x8x32xf32>
    %68 = arith.subf %62, %67 : vector<6x8x32xf32>
    %69 = arith.mulf %68, %68 : vector<6x8x32xf32>
    %cst_99 = arith.constant dense<0.000000e+00> : vector<6x8xf32>
    %70 = vector.multi_reduction <add>, %69, %cst_99 [2] : vector<6x8x32xf32> to vector<6x8xf32>
    %71 = vector.shape_cast %70 : vector<6x8xf32> to vector<6x8x1xf32>
    %cst_100 = arith.constant 3.200000e+01 : f32
    %72 = vector.broadcast %cst_100 : f32 to vector<6x8x1xf32>
    %73 = arith.divf %71, %72 : vector<6x8x1xf32>
    %74 = vector.broadcast %66 : vector<6x8x1xf32> to vector<6x8x32xf32>
    %75 = arith.subf %62, %74 : vector<6x8x32xf32>
    %cst_101 = arith.constant 9.99999974E-6 : f32
    %76 = vector.broadcast %cst_101 : f32 to vector<6x8x1xf32>
    %77 = arith.addf %73, %76 : vector<6x8x1xf32>
    %78 = math.rsqrt %77 : vector<6x8x1xf32>
    %79 = vector.broadcast %78 : vector<6x8x1xf32> to vector<6x8x32xf32>
    %80 = arith.mulf %75, %79 : vector<6x8x32xf32>
    %81 = vector.broadcast %7 : vector<1x1x32xf32> to vector<6x8x32xf32>
    %82 = arith.mulf %80, %81 : vector<6x8x32xf32>
    %83 = vector.broadcast %6 : vector<1x1x32xf32> to vector<6x8x32xf32>
    %84 = arith.addf %82, %83 : vector<6x8x32xf32>
    %85 = vector.shape_cast %3 : vector<32x32xf32> to vector<1x32x32xf32>
    %86 = vector.broadcast %85 : vector<1x32x32xf32> to vector<6x32x32xf32>
    %cst_102 = arith.constant dense<0.000000e+00> : vector<6x8x32xf32>
    %87 = tpu.matmul %84, %86, %cst_102 {dimension_numbers = #tpu.dot_dimension_numbers<[2], [1], [1], [2], [0, 0, 0, 1, 1, 2], [0], [0]>} : vector<6x8x32xf32>, vector<6x32x32xf32>, vector<6x8x32xf32> -> vector<6x8x32xf32>
    %88 = vector.broadcast %2 : vector<1x1x32xf32> to vector<6x8x32xf32>
    %89 = arith.addf %87, %88 : vector<6x8x32xf32>
    %cst_103 = arith.constant 0.000000e+00 : f32
    %90 = vector.broadcast %cst_103 : f32 to vector<6x8x32xf32>
    %91 = arith.maximumf %89, %90 : vector<6x8x32xf32>
    %cst_104 = arith.constant dense<0.000000e+00> : vector<6x8xf32>
    %92 = vector.multi_reduction <add>, %91, %cst_104 [2] : vector<6x8x32xf32> to vector<6x8xf32>
    %93 = vector.shape_cast %92 : vector<6x8xf32> to vector<6x8x1xf32>
    %cst_105 = arith.constant 3.200000e+01 : f32
    %94 = vector.broadcast %cst_105 : f32 to vector<6x8x1xf32>
    %95 = arith.divf %93, %94 : vector<6x8x1xf32>
    %96 = vector.broadcast %95 : vector<6x8x1xf32> to vector<6x8x32xf32>
    %97 = arith.subf %91, %96 : vector<6x8x32xf32>
    %98 = arith.mulf %97, %97 : vector<6x8x32xf32>
    %cst_106 = arith.constant dense<0.000000e+00> : vector<6x8xf32>
    %99 = vector.multi_reduction <add>, %98, %cst_106 [2] : vector<6x8x32xf32> to vector<6x8xf32>
    %100 = vector.shape_cast %99 : vector<6x8xf32> to vector<6x8x1xf32>
    %cst_107 = arith.constant 3.200000e+01 : f32
    %101 = vector.broadcast %cst_107 : f32 to vector<6x8x1xf32>
    %102 = arith.divf %100, %101 : vector<6x8x1xf32>
    %103 = vector.broadcast %95 : vector<6x8x1xf32> to vector<6x8x32xf32>
    %104 = arith.subf %91, %103 : vector<6x8x32xf32>
    %cst_108 = arith.constant 9.99999974E-6 : f32
    %105 = vector.broadcast %cst_108 : f32 to vector<6x8x1xf32>
    %106 = arith.addf %102, %105 : vector<6x8x1xf32>
    %107 = math.rsqrt %106 : vector<6x8x1xf32>
    %108 = vector.broadcast %107 : vector<6x8x1xf32> to vector<6x8x32xf32>
    %109 = arith.mulf %104, %108 : vector<6x8x32xf32>
    %110 = vector.broadcast %9 : vector<1x1x32xf32> to vector<6x8x32xf32>
    %111 = arith.mulf %109, %110 : vector<6x8x32xf32>
    %112 = vector.broadcast %8 : vector<1x1x32xf32> to vector<6x8x32xf32>
    %113 = arith.addf %111, %112 : vector<6x8x32xf32>
    %114 = vector.shape_cast %32 : vector<32x96xf32> to vector<1x32x96xf32>
    %115 = vector.broadcast %114 : vector<1x32x96xf32> to vector<6x32x96xf32>
    %cst_109 = arith.constant dense<0.000000e+00> : vector<6x8x96xf32>
    %116 = tpu.matmul %113, %115, %cst_109 {dimension_numbers = #tpu.dot_dimension_numbers<[2], [1], [1], [2], [0, 0, 0, 1, 1, 2], [0], [0]>} : vector<6x8x32xf32>, vector<6x32x96xf32>, vector<6x8x96xf32> -> vector<6x8x96xf32>
    %117 = vector.broadcast %31 : vector<1x1x96xf32> to vector<6x8x96xf32>
    %118 = arith.addf %116, %117 : vector<6x8x96xf32>
    %119 = vector.extract_strided_slice %118 {offsets = [0, 0, 0], sizes = [6, 8, 32], strides = [1, 1, 1]} : vector<6x8x96xf32> to vector<6x8x32xf32>
    %120 = vector.extract_strided_slice %118 {offsets = [0, 0, 32], sizes = [6, 8, 32], strides = [1, 1, 1]} : vector<6x8x96xf32> to vector<6x8x32xf32>
    %121 = vector.extract_strided_slice %118 {offsets = [0, 0, 64], sizes = [6, 8, 32], strides = [1, 1, 1]} : vector<6x8x96xf32> to vector<6x8x32xf32>
    %cst_110 = arith.constant 0.000000e+00 : f32
    %122 = vector.broadcast %cst_110 : f32 to vector<6x8x32xf32>
    %123 = vector.extract_strided_slice %119 {offsets = [0, 0, 0], sizes = [6, 8, 8], strides = [1, 1, 1]} : vector<6x8x32xf32> to vector<6x8x8xf32>
    %124 = vector.extract_strided_slice %120 {offsets = [0, 0, 0], sizes = [6, 8, 8], strides = [1, 1, 1]} : vector<6x8x32xf32> to vector<6x8x8xf32>
    %125 = vector.extract_strided_slice %121 {offsets = [0, 0, 0], sizes = [6, 8, 8], strides = [1, 1, 1]} : vector<6x8x32xf32> to vector<6x8x8xf32>
    %cst_111 = arith.constant dense<0.000000e+00> : vector<6x8x8xf32>
    %126 = tpu.matmul %123, %124, %cst_111 {dimension_numbers = #tpu.dot_dimension_numbers<[2], [2], [1], [1], [0, 0, 0, 1, 1, 1], [0], [0]>} : vector<6x8x8xf32>, vector<6x8x8xf32>, vector<6x8x8xf32> -> vector<6x8x8xf32>
    %cst_112 = arith.constant 0.353553385 : f32
    %127 = vector.broadcast %cst_112 : f32 to vector<6x8x8xf32>
    %128 = arith.mulf %126, %127 : vector<6x8x8xf32>
    %cst_113 = arith.constant dense<0xFF800000> : vector<6x8xf32>
    %129 = vector.multi_reduction <maximumf>, %128, %cst_113 [2] : vector<6x8x8xf32> to vector<6x8xf32>
    %130 = vector.shape_cast %129 : vector<6x8xf32> to vector<6x8x1xf32>
    %131 = vector.broadcast %130 : vector<6x8x1xf32> to vector<6x8x8xf32>
    %132 = arith.subf %128, %131 : vector<6x8x8xf32>
    %133 = math.exp %132 : vector<6x8x8xf32>
    %cst_114 = arith.constant dense<0.000000e+00> : vector<6x8xf32>
    %134 = vector.multi_reduction <add>, %133, %cst_114 [2] : vector<6x8x8xf32> to vector<6x8xf32>
    %135 = vector.shape_cast %134 : vector<6x8xf32> to vector<6x8x1xf32>
    %136 = tpu.reciprocal %135 {approx = true} : vector<6x8x1xf32> -> vector<6x8x1xf32>
    %137 = vector.broadcast %136 : vector<6x8x1xf32> to vector<6x8x8xf32>
    %138 = arith.mulf %133, %137 : vector<6x8x8xf32>
    %cst_115 = arith.constant dense<0.000000e+00> : vector<6x8x8xf32>
    %139 = tpu.matmul %138, %125, %cst_115 {dimension_numbers = #tpu.dot_dimension_numbers<[2], [1], [1], [2], [0, 0, 0, 1, 1, 2], [0], [0]>} : vector<6x8x8xf32>, vector<6x8x8xf32>, vector<6x8x8xf32> -> vector<6x8x8xf32>
    %140 = vector.extract_strided_slice %30 {offsets = [0, 0], sizes = [8, 32], strides = [1, 1]} : vector<32x32xf32> to vector<8x32xf32>
    %141 = vector.shape_cast %140 : vector<8x32xf32> to vector<1x8x32xf32>
    %142 = vector.broadcast %141 : vector<1x8x32xf32> to vector<6x8x32xf32>
    %cst_116 = arith.constant dense<0.000000e+00> : vector<6x8x32xf32>
    %143 = tpu.matmul %139, %142, %cst_116 {dimension_numbers = #tpu.dot_dimension_numbers<[2], [1], [1], [2], [0, 0, 0, 1, 1, 2], [0], [0]>} : vector<6x8x8xf32>, vector<6x8x32xf32>, vector<6x8x32xf32> -> vector<6x8x32xf32>
    %144 = arith.addf %122, %143 : vector<6x8x32xf32>
    %145 = vector.extract_strided_slice %119 {offsets = [0, 0, 8], sizes = [6, 8, 8], strides = [1, 1, 1]} : vector<6x8x32xf32> to vector<6x8x8xf32>
    %146 = vector.extract_strided_slice %120 {offsets = [0, 0, 8], sizes = [6, 8, 8], strides = [1, 1, 1]} : vector<6x8x32xf32> to vector<6x8x8xf32>
    %147 = vector.extract_strided_slice %121 {offsets = [0, 0, 8], sizes = [6, 8, 8], strides = [1, 1, 1]} : vector<6x8x32xf32> to vector<6x8x8xf32>
    %cst_117 = arith.constant dense<0.000000e+00> : vector<6x8x8xf32>
    %148 = tpu.matmul %145, %146, %cst_117 {dimension_numbers = #tpu.dot_dimension_numbers<[2], [2], [1], [1], [0, 0, 0, 1, 1, 1], [0], [0]>} : vector<6x8x8xf32>, vector<6x8x8xf32>, vector<6x8x8xf32> -> vector<6x8x8xf32>
    %cst_118 = arith.constant 0.353553385 : f32
    %149 = vector.broadcast %cst_118 : f32 to vector<6x8x8xf32>
    %150 = arith.mulf %148, %149 : vector<6x8x8xf32>
    %cst_119 = arith.constant dense<0xFF800000> : vector<6x8xf32>
    %151 = vector.multi_reduction <maximumf>, %150, %cst_119 [2] : vector<6x8x8xf32> to vector<6x8xf32>
    %152 = vector.shape_cast %151 : vector<6x8xf32> to vector<6x8x1xf32>
    %153 = vector.broadcast %152 : vector<6x8x1xf32> to vector<6x8x8xf32>
    %154 = arith.subf %150, %153 : vector<6x8x8xf32>
    %155 = math.exp %154 : vector<6x8x8xf32>
    %cst_120 = arith.constant dense<0.000000e+00> : vector<6x8xf32>
    %156 = vector.multi_reduction <add>, %155, %cst_120 [2] : vector<6x8x8xf32> to vector<6x8xf32>
    %157 = vector.shape_cast %156 : vector<6x8xf32> to vector<6x8x1xf32>
    %158 = tpu.reciprocal %157 {approx = true} : vector<6x8x1xf32> -> vector<6x8x1xf32>
    %159 = vector.broadcast %158 : vector<6x8x1xf32> to vector<6x8x8xf32>
    %160 = arith.mulf %155, %159 : vector<6x8x8xf32>
    %cst_121 = arith.constant dense<0.000000e+00> : vector<6x8x8xf32>
    %161 = tpu.matmul %160, %147, %cst_121 {dimension_numbers = #tpu.dot_dimension_numbers<[2], [1], [1], [2], [0, 0, 0, 1, 1, 2], [0], [0]>} : vector<6x8x8xf32>, vector<6x8x8xf32>, vector<6x8x8xf32> -> vector<6x8x8xf32>
    %162 = vector.extract_strided_slice %30 {offsets = [8, 0], sizes = [8, 32], strides = [1, 1]} : vector<32x32xf32> to vector<8x32xf32>
    %163 = vector.shape_cast %162 : vector<8x32xf32> to vector<1x8x32xf32>
    %164 = vector.broadcast %163 : vector<1x8x32xf32> to vector<6x8x32xf32>
    %cst_122 = arith.constant dense<0.000000e+00> : vector<6x8x32xf32>
    %165 = tpu.matmul %161, %164, %cst_122 {dimension_numbers = #tpu.dot_dimension_numbers<[2], [1], [1], [2], [0, 0, 0, 1, 1, 2], [0], [0]>} : vector<6x8x8xf32>, vector<6x8x32xf32>, vector<6x8x32xf32> -> vector<6x8x32xf32>
    %166 = arith.addf %144, %165 : vector<6x8x32xf32>
    %167 = vector.extract_strided_slice %119 {offsets = [0, 0, 16], sizes = [6, 8, 8], strides = [1, 1, 1]} : vector<6x8x32xf32> to vector<6x8x8xf32>
    %168 = vector.extract_strided_slice %120 {offsets = [0, 0, 16], sizes = [6, 8, 8], strides = [1, 1, 1]} : vector<6x8x32xf32> to vector<6x8x8xf32>
    %169 = vector.extract_strided_slice %121 {offsets = [0, 0, 16], sizes = [6, 8, 8], strides = [1, 1, 1]} : vector<6x8x32xf32> to vector<6x8x8xf32>
    %cst_123 = arith.constant dense<0.000000e+00> : vector<6x8x8xf32>
    %170 = tpu.matmul %167, %168, %cst_123 {dimension_numbers = #tpu.dot_dimension_numbers<[2], [2], [1], [1], [0, 0, 0, 1, 1, 1], [0], [0]>} : vector<6x8x8xf32>, vector<6x8x8xf32>, vector<6x8x8xf32> -> vector<6x8x8xf32>
    %cst_124 = arith.constant 0.353553385 : f32
    %171 = vector.broadcast %cst_124 : f32 to vector<6x8x8xf32>
    %172 = arith.mulf %170, %171 : vector<6x8x8xf32>
    %cst_125 = arith.constant dense<0xFF800000> : vector<6x8xf32>
    %173 = vector.multi_reduction <maximumf>, %172, %cst_125 [2] : vector<6x8x8xf32> to vector<6x8xf32>
    %174 = vector.shape_cast %173 : vector<6x8xf32> to vector<6x8x1xf32>
    %175 = vector.broadcast %174 : vector<6x8x1xf32> to vector<6x8x8xf32>
    %176 = arith.subf %172, %175 : vector<6x8x8xf32>
    %177 = math.exp %176 : vector<6x8x8xf32>
    %cst_126 = arith.constant dense<0.000000e+00> : vector<6x8xf32>
    %178 = vector.multi_reduction <add>, %177, %cst_126 [2] : vector<6x8x8xf32> to vector<6x8xf32>
    %179 = vector.shape_cast %178 : vector<6x8xf32> to vector<6x8x1xf32>
    %180 = tpu.reciprocal %179 {approx = true} : vector<6x8x1xf32> -> vector<6x8x1xf32>
    %181 = vector.broadcast %180 : vector<6x8x1xf32> to vector<6x8x8xf32>
    %182 = arith.mulf %177, %181 : vector<6x8x8xf32>
    %cst_127 = arith.constant dense<0.000000e+00> : vector<6x8x8xf32>
    %183 = tpu.matmul %182, %169, %cst_127 {dimension_numbers = #tpu.dot_dimension_numbers<[2], [1], [1], [2], [0, 0, 0, 1, 1, 2], [0], [0]>} : vector<6x8x8xf32>, vector<6x8x8xf32>, vector<6x8x8xf32> -> vector<6x8x8xf32>
    %184 = vector.extract_strided_slice %30 {offsets = [16, 0], sizes = [8, 32], strides = [1, 1]} : vector<32x32xf32> to vector<8x32xf32>
    %185 = vector.shape_cast %184 : vector<8x32xf32> to vector<1x8x32xf32>
    %186 = vector.broadcast %185 : vector<1x8x32xf32> to vector<6x8x32xf32>
    %cst_128 = arith.constant dense<0.000000e+00> : vector<6x8x32xf32>
    %187 = tpu.matmul %183, %186, %cst_128 {dimension_numbers = #tpu.dot_dimension_numbers<[2], [1], [1], [2], [0, 0, 0, 1, 1, 2], [0], [0]>} : vector<6x8x8xf32>, vector<6x8x32xf32>, vector<6x8x32xf32> -> vector<6x8x32xf32>
    %188 = arith.addf %166, %187 : vector<6x8x32xf32>
    %189 = vector.extract_strided_slice %119 {offsets = [0, 0, 24], sizes = [6, 8, 8], strides = [1, 1, 1]} : vector<6x8x32xf32> to vector<6x8x8xf32>
    %190 = vector.extract_strided_slice %120 {offsets = [0, 0, 24], sizes = [6, 8, 8], strides = [1, 1, 1]} : vector<6x8x32xf32> to vector<6x8x8xf32>
    %191 = vector.extract_strided_slice %121 {offsets = [0, 0, 24], sizes = [6, 8, 8], strides = [1, 1, 1]} : vector<6x8x32xf32> to vector<6x8x8xf32>
    %cst_129 = arith.constant dense<0.000000e+00> : vector<6x8x8xf32>
    %192 = tpu.matmul %189, %190, %cst_129 {dimension_numbers = #tpu.dot_dimension_numbers<[2], [2], [1], [1], [0, 0, 0, 1, 1, 1], [0], [0]>} : vector<6x8x8xf32>, vector<6x8x8xf32>, vector<6x8x8xf32> -> vector<6x8x8xf32>
    %cst_130 = arith.constant 0.353553385 : f32
    %193 = vector.broadcast %cst_130 : f32 to vector<6x8x8xf32>
    %194 = arith.mulf %192, %193 : vector<6x8x8xf32>
    %cst_131 = arith.constant dense<0xFF800000> : vector<6x8xf32>
    %195 = vector.multi_reduction <maximumf>, %194, %cst_131 [2] : vector<6x8x8xf32> to vector<6x8xf32>
    %196 = vector.shape_cast %195 : vector<6x8xf32> to vector<6x8x1xf32>
    %197 = vector.broadcast %196 : vector<6x8x1xf32> to vector<6x8x8xf32>
    %198 = arith.subf %194, %197 : vector<6x8x8xf32>
    %199 = math.exp %198 : vector<6x8x8xf32>
    %cst_132 = arith.constant dense<0.000000e+00> : vector<6x8xf32>
    %200 = vector.multi_reduction <add>, %199, %cst_132 [2] : vector<6x8x8xf32> to vector<6x8xf32>
    %201 = vector.shape_cast %200 : vector<6x8xf32> to vector<6x8x1xf32>
    %202 = tpu.reciprocal %201 {approx = true} : vector<6x8x1xf32> -> vector<6x8x1xf32>
    %203 = vector.broadcast %202 : vector<6x8x1xf32> to vector<6x8x8xf32>
    %204 = arith.mulf %199, %203 : vector<6x8x8xf32>
    %cst_133 = arith.constant dense<0.000000e+00> : vector<6x8x8xf32>
    %205 = tpu.matmul %204, %191, %cst_133 {dimension_numbers = #tpu.dot_dimension_numbers<[2], [1], [1], [2], [0, 0, 0, 1, 1, 2], [0], [0]>} : vector<6x8x8xf32>, vector<6x8x8xf32>, vector<6x8x8xf32> -> vector<6x8x8xf32>
    %206 = vector.extract_strided_slice %30 {offsets = [24, 0], sizes = [8, 32], strides = [1, 1]} : vector<32x32xf32> to vector<8x32xf32>
    %207 = vector.shape_cast %206 : vector<8x32xf32> to vector<1x8x32xf32>
    %208 = vector.broadcast %207 : vector<1x8x32xf32> to vector<6x8x32xf32>
    %cst_134 = arith.constant dense<0.000000e+00> : vector<6x8x32xf32>
    %209 = tpu.matmul %205, %208, %cst_134 {dimension_numbers = #tpu.dot_dimension_numbers<[2], [1], [1], [2], [0, 0, 0, 1, 1, 2], [0], [0]>} : vector<6x8x8xf32>, vector<6x8x32xf32>, vector<6x8x32xf32> -> vector<6x8x32xf32>
    %210 = arith.addf %188, %209 : vector<6x8x32xf32>
    %211 = vector.broadcast %29 : vector<1x1x32xf32> to vector<6x8x32xf32>
    %212 = arith.addf %210, %211 : vector<6x8x32xf32>
    %213 = arith.addf %113, %212 : vector<6x8x32xf32>
    %cst_135 = arith.constant dense<0.000000e+00> : vector<6x8xf32>
    %214 = vector.multi_reduction <add>, %213, %cst_135 [2] : vector<6x8x32xf32> to vector<6x8xf32>
    %215 = vector.shape_cast %214 : vector<6x8xf32> to vector<6x8x1xf32>
    %cst_136 = arith.constant 3.200000e+01 : f32
    %216 = vector.broadcast %cst_136 : f32 to vector<6x8x1xf32>
    %217 = arith.divf %215, %216 : vector<6x8x1xf32>
    %218 = vector.broadcast %217 : vector<6x8x1xf32> to vector<6x8x32xf32>
    %219 = arith.subf %213, %218 : vector<6x8x32xf32>
    %220 = arith.mulf %219, %219 : vector<6x8x32xf32>
    %cst_137 = arith.constant dense<0.000000e+00> : vector<6x8xf32>
    %221 = vector.multi_reduction <add>, %220, %cst_137 [2] : vector<6x8x32xf32> to vector<6x8xf32>
    %222 = vector.shape_cast %221 : vector<6x8xf32> to vector<6x8x1xf32>
    %cst_138 = arith.constant 3.200000e+01 : f32
    %223 = vector.broadcast %cst_138 : f32 to vector<6x8x1xf32>
    %224 = arith.divf %222, %223 : vector<6x8x1xf32>
    %225 = vector.broadcast %217 : vector<6x8x1xf32> to vector<6x8x32xf32>
    %226 = arith.subf %213, %225 : vector<6x8x32xf32>
    %cst_139 = arith.constant 9.99999974E-6 : f32
    %227 = vector.broadcast %cst_139 : f32 to vector<6x8x1xf32>
    %228 = arith.addf %224, %227 : vector<6x8x1xf32>
    %229 = math.rsqrt %228 : vector<6x8x1xf32>
    %230 = vector.broadcast %229 : vector<6x8x1xf32> to vector<6x8x32xf32>
    %231 = arith.mulf %226, %230 : vector<6x8x32xf32>
    %232 = vector.broadcast %24 : vector<1x1x32xf32> to vector<6x8x32xf32>
    %233 = arith.mulf %231, %232 : vector<6x8x32xf32>
    %234 = vector.broadcast %23 : vector<1x1x32xf32> to vector<6x8x32xf32>
    %235 = arith.addf %233, %234 : vector<6x8x32xf32>
    %236 = vector.shape_cast %28 : vector<32x32xf32> to vector<1x32x32xf32>
    %237 = vector.broadcast %236 : vector<1x32x32xf32> to vector<6x32x32xf32>
    %cst_140 = arith.constant dense<0.000000e+00> : vector<6x8x32xf32>
    %238 = tpu.matmul %235, %237, %cst_140 {dimension_numbers = #tpu.dot_dimension_numbers<[2], [1], [1], [2], [0, 0, 0, 1, 1, 2], [0], [0]>} : vector<6x8x32xf32>, vector<6x32x32xf32>, vector<6x8x32xf32> -> vector<6x8x32xf32>
    %239 = vector.broadcast %27 : vector<1x1x32xf32> to vector<6x8x32xf32>
    %240 = arith.addf %238, %239 : vector<6x8x32xf32>
    %cst_141 = arith.constant 0.000000e+00 : f32
    %241 = vector.broadcast %cst_141 : f32 to vector<6x8x32xf32>
    %242 = arith.maximumf %240, %241 : vector<6x8x32xf32>
    %243 = arith.addf %235, %242 : vector<6x8x32xf32>
    %cst_142 = arith.constant dense<0.000000e+00> : vector<6x8xf32>
    %244 = vector.multi_reduction <add>, %243, %cst_142 [2] : vector<6x8x32xf32> to vector<6x8xf32>
    %245 = vector.shape_cast %244 : vector<6x8xf32> to vector<6x8x1xf32>
    %cst_143 = arith.constant 3.200000e+01 : f32
    %246 = vector.broadcast %cst_143 : f32 to vector<6x8x1xf32>
    %247 = arith.divf %245, %246 : vector<6x8x1xf32>
    %248 = vector.broadcast %247 : vector<6x8x1xf32> to vector<6x8x32xf32>
    %249 = arith.subf %243, %248 : vector<6x8x32xf32>
    %250 = arith.mulf %249, %249 : vector<6x8x32xf32>
    %cst_144 = arith.constant dense<0.000000e+00> : vector<6x8xf32>
    %251 = vector.multi_reduction <add>, %250, %cst_144 [2] : vector<6x8x32xf32> to vector<6x8xf32>
    %252 = vector.shape_cast %251 : vector<6x8xf32> to vector<6x8x1xf32>
    %cst_145 = arith.constant 3.200000e+01 : f32
    %253 = vector.broadcast %cst_145 : f32 to vector<6x8x1xf32>
    %254 = arith.divf %252, %253 : vector<6x8x1xf32>
    %255 = vector.broadcast %247 : vector<6x8x1xf32> to vector<6x8x32xf32>
    %256 = arith.subf %243, %255 : vector<6x8x32xf32>
    %cst_146 = arith.constant 9.99999974E-6 : f32
    %257 = vector.broadcast %cst_146 : f32 to vector<6x8x1xf32>
    %258 = arith.addf %254, %257 : vector<6x8x1xf32>
    %259 = math.rsqrt %258 : vector<6x8x1xf32>
    %260 = vector.broadcast %259 : vector<6x8x1xf32> to vector<6x8x32xf32>
    %261 = arith.mulf %256, %260 : vector<6x8x32xf32>
    %262 = vector.broadcast %26 : vector<1x1x32xf32> to vector<6x8x32xf32>
    %263 = arith.mulf %261, %262 : vector<6x8x32xf32>
    %264 = vector.broadcast %25 : vector<1x1x32xf32> to vector<6x8x32xf32>
    %265 = arith.addf %263, %264 : vector<6x8x32xf32>
    %266 = vector.shape_cast %21 : vector<32x32xf32> to vector<1x32x32xf32>
    %267 = vector.broadcast %266 : vector<1x32x32xf32> to vector<6x32x32xf32>
    %cst_147 = arith.constant dense<0.000000e+00> : vector<6x8x32xf32>
    %268 = tpu.matmul %265, %267, %cst_147 {dimension_numbers = #tpu.dot_dimension_numbers<[2], [1], [1], [2], [0, 0, 0, 1, 1, 2], [0], [0]>} : vector<6x8x32xf32>, vector<6x32x32xf32>, vector<6x8x32xf32> -> vector<6x8x32xf32>
    %269 = vector.broadcast %20 : vector<1x1x32xf32> to vector<6x8x32xf32>
    %270 = arith.addf %268, %269 : vector<6x8x32xf32>
    %cst_148 = arith.constant 0.000000e+00 : f32
    %271 = vector.broadcast %cst_148 : f32 to vector<6x8x32xf32>
    %272 = arith.maximumf %270, %271 : vector<6x8x32xf32>
    %273 = vector.shape_cast %22 : vector<4x32xf32> to vector<1x4x32xf32>
    %274 = vector.broadcast %273 : vector<1x4x32xf32> to vector<6x4x32xf32>
    %275 = vector.shape_cast %19 : vector<32x96xf32> to vector<1x32x96xf32>
    %276 = vector.broadcast %275 : vector<1x32x96xf32> to vector<6x32x96xf32>
    %cst_149 = arith.constant dense<0.000000e+00> : vector<6x8x96xf32>
    %277 = tpu.matmul %272, %276, %cst_149 {dimension_numbers = #tpu.dot_dimension_numbers<[2], [1], [1], [2], [0, 0, 0, 1, 1, 2], [0], [0]>} : vector<6x8x32xf32>, vector<6x32x96xf32>, vector<6x8x96xf32> -> vector<6x8x96xf32>
    %278 = vector.broadcast %18 : vector<1x1x96xf32> to vector<6x8x96xf32>
    %279 = arith.addf %277, %278 : vector<6x8x96xf32>
    %280 = vector.shape_cast %19 : vector<32x96xf32> to vector<1x32x96xf32>
    %281 = vector.broadcast %280 : vector<1x32x96xf32> to vector<6x32x96xf32>
    %cst_150 = arith.constant dense<0.000000e+00> : vector<6x4x96xf32>
    %282 = tpu.matmul %274, %281, %cst_150 {dimension_numbers = #tpu.dot_dimension_numbers<[2], [1], [1], [2], [0, 0, 0, 1, 1, 2], [0], [0]>} : vector<6x4x32xf32>, vector<6x32x96xf32>, vector<6x4x96xf32> -> vector<6x4x96xf32>
    %283 = vector.broadcast %18 : vector<1x1x96xf32> to vector<6x4x96xf32>
    %284 = arith.addf %282, %283 : vector<6x4x96xf32>
    %285 = vector.extract_strided_slice %284 {offsets = [0, 0, 0], sizes = [6, 4, 32], strides = [1, 1, 1]} : vector<6x4x96xf32> to vector<6x4x32xf32>
    %286 = vector.extract_strided_slice %279 {offsets = [0, 0, 32], sizes = [6, 8, 32], strides = [1, 1, 1]} : vector<6x8x96xf32> to vector<6x8x32xf32>
    %287 = vector.extract_strided_slice %279 {offsets = [0, 0, 64], sizes = [6, 8, 32], strides = [1, 1, 1]} : vector<6x8x96xf32> to vector<6x8x32xf32>
    %cst_151 = arith.constant 0.000000e+00 : f32
    %288 = vector.broadcast %cst_151 : f32 to vector<6x4x32xf32>
    %289 = vector.extract_strided_slice %285 {offsets = [0, 0, 0], sizes = [6, 4, 8], strides = [1, 1, 1]} : vector<6x4x32xf32> to vector<6x4x8xf32>
    %290 = vector.extract_strided_slice %286 {offsets = [0, 0, 0], sizes = [6, 8, 8], strides = [1, 1, 1]} : vector<6x8x32xf32> to vector<6x8x8xf32>
    %291 = vector.extract_strided_slice %287 {offsets = [0, 0, 0], sizes = [6, 8, 8], strides = [1, 1, 1]} : vector<6x8x32xf32> to vector<6x8x8xf32>
    %cst_152 = arith.constant dense<0.000000e+00> : vector<6x4x8xf32>
    %292 = tpu.matmul %289, %290, %cst_152 {dimension_numbers = #tpu.dot_dimension_numbers<[2], [2], [1], [1], [0, 0, 0, 1, 1, 1], [0], [0]>} : vector<6x4x8xf32>, vector<6x8x8xf32>, vector<6x4x8xf32> -> vector<6x4x8xf32>
    %cst_153 = arith.constant 0.353553385 : f32
    %293 = vector.broadcast %cst_153 : f32 to vector<6x4x8xf32>
    %294 = arith.mulf %292, %293 : vector<6x4x8xf32>
    %cst_154 = arith.constant dense<0xFF800000> : vector<6x4xf32>
    %295 = vector.multi_reduction <maximumf>, %294, %cst_154 [2] : vector<6x4x8xf32> to vector<6x4xf32>
    %296 = vector.shape_cast %295 : vector<6x4xf32> to vector<6x4x1xf32>
    %297 = vector.broadcast %296 : vector<6x4x1xf32> to vector<6x4x8xf32>
    %298 = arith.subf %294, %297 : vector<6x4x8xf32>
    %299 = math.exp %298 : vector<6x4x8xf32>
    %cst_155 = arith.constant dense<0.000000e+00> : vector<6x4xf32>
    %300 = vector.multi_reduction <add>, %299, %cst_155 [2] : vector<6x4x8xf32> to vector<6x4xf32>
    %301 = vector.shape_cast %300 : vector<6x4xf32> to vector<6x4x1xf32>
    %302 = tpu.reciprocal %301 {approx = true} : vector<6x4x1xf32> -> vector<6x4x1xf32>
    %303 = vector.broadcast %302 : vector<6x4x1xf32> to vector<6x4x8xf32>
    %304 = arith.mulf %299, %303 : vector<6x4x8xf32>
    %cst_156 = arith.constant dense<0.000000e+00> : vector<6x4x8xf32>
    %305 = tpu.matmul %304, %291, %cst_156 {dimension_numbers = #tpu.dot_dimension_numbers<[2], [1], [1], [2], [0, 0, 0, 1, 1, 2], [0], [0]>} : vector<6x4x8xf32>, vector<6x8x8xf32>, vector<6x4x8xf32> -> vector<6x4x8xf32>
    %306 = vector.extract_strided_slice %17 {offsets = [0, 0], sizes = [8, 32], strides = [1, 1]} : vector<32x32xf32> to vector<8x32xf32>
    %307 = vector.shape_cast %306 : vector<8x32xf32> to vector<1x8x32xf32>
    %308 = vector.broadcast %307 : vector<1x8x32xf32> to vector<6x8x32xf32>
    %cst_157 = arith.constant dense<0.000000e+00> : vector<6x4x32xf32>
    %309 = tpu.matmul %305, %308, %cst_157 {dimension_numbers = #tpu.dot_dimension_numbers<[2], [1], [1], [2], [0, 0, 0, 1, 1, 2], [0], [0]>} : vector<6x4x8xf32>, vector<6x8x32xf32>, vector<6x4x32xf32> -> vector<6x4x32xf32>
    %310 = arith.addf %288, %309 : vector<6x4x32xf32>
    %311 = vector.extract_strided_slice %285 {offsets = [0, 0, 8], sizes = [6, 4, 8], strides = [1, 1, 1]} : vector<6x4x32xf32> to vector<6x4x8xf32>
    %312 = vector.extract_strided_slice %286 {offsets = [0, 0, 8], sizes = [6, 8, 8], strides = [1, 1, 1]} : vector<6x8x32xf32> to vector<6x8x8xf32>
    %313 = vector.extract_strided_slice %287 {offsets = [0, 0, 8], sizes = [6, 8, 8], strides = [1, 1, 1]} : vector<6x8x32xf32> to vector<6x8x8xf32>
    %cst_158 = arith.constant dense<0.000000e+00> : vector<6x4x8xf32>
    %314 = tpu.matmul %311, %312, %cst_158 {dimension_numbers = #tpu.dot_dimension_numbers<[2], [2], [1], [1], [0, 0, 0, 1, 1, 1], [0], [0]>} : vector<6x4x8xf32>, vector<6x8x8xf32>, vector<6x4x8xf32> -> vector<6x4x8xf32>
    %cst_159 = arith.constant 0.353553385 : f32
    %315 = vector.broadcast %cst_159 : f32 to vector<6x4x8xf32>
    %316 = arith.mulf %314, %315 : vector<6x4x8xf32>
    %cst_160 = arith.constant dense<0xFF800000> : vector<6x4xf32>
    %317 = vector.multi_reduction <maximumf>, %316, %cst_160 [2] : vector<6x4x8xf32> to vector<6x4xf32>
    %318 = vector.shape_cast %317 : vector<6x4xf32> to vector<6x4x1xf32>
    %319 = vector.broadcast %318 : vector<6x4x1xf32> to vector<6x4x8xf32>
    %320 = arith.subf %316, %319 : vector<6x4x8xf32>
    %321 = math.exp %320 : vector<6x4x8xf32>
    %cst_161 = arith.constant dense<0.000000e+00> : vector<6x4xf32>
    %322 = vector.multi_reduction <add>, %321, %cst_161 [2] : vector<6x4x8xf32> to vector<6x4xf32>
    %323 = vector.shape_cast %322 : vector<6x4xf32> to vector<6x4x1xf32>
    %324 = tpu.reciprocal %323 {approx = true} : vector<6x4x1xf32> -> vector<6x4x1xf32>
    %325 = vector.broadcast %324 : vector<6x4x1xf32> to vector<6x4x8xf32>
    %326 = arith.mulf %321, %325 : vector<6x4x8xf32>
    %cst_162 = arith.constant dense<0.000000e+00> : vector<6x4x8xf32>
    %327 = tpu.matmul %326, %313, %cst_162 {dimension_numbers = #tpu.dot_dimension_numbers<[2], [1], [1], [2], [0, 0, 0, 1, 1, 2], [0], [0]>} : vector<6x4x8xf32>, vector<6x8x8xf32>, vector<6x4x8xf32> -> vector<6x4x8xf32>
    %328 = vector.extract_strided_slice %17 {offsets = [8, 0], sizes = [8, 32], strides = [1, 1]} : vector<32x32xf32> to vector<8x32xf32>
    %329 = vector.shape_cast %328 : vector<8x32xf32> to vector<1x8x32xf32>
    %330 = vector.broadcast %329 : vector<1x8x32xf32> to vector<6x8x32xf32>
    %cst_163 = arith.constant dense<0.000000e+00> : vector<6x4x32xf32>
    %331 = tpu.matmul %327, %330, %cst_163 {dimension_numbers = #tpu.dot_dimension_numbers<[2], [1], [1], [2], [0, 0, 0, 1, 1, 2], [0], [0]>} : vector<6x4x8xf32>, vector<6x8x32xf32>, vector<6x4x32xf32> -> vector<6x4x32xf32>
    %332 = arith.addf %310, %331 : vector<6x4x32xf32>
    %333 = vector.extract_strided_slice %285 {offsets = [0, 0, 16], sizes = [6, 4, 8], strides = [1, 1, 1]} : vector<6x4x32xf32> to vector<6x4x8xf32>
    %334 = vector.extract_strided_slice %286 {offsets = [0, 0, 16], sizes = [6, 8, 8], strides = [1, 1, 1]} : vector<6x8x32xf32> to vector<6x8x8xf32>
    %335 = vector.extract_strided_slice %287 {offsets = [0, 0, 16], sizes = [6, 8, 8], strides = [1, 1, 1]} : vector<6x8x32xf32> to vector<6x8x8xf32>
    %cst_164 = arith.constant dense<0.000000e+00> : vector<6x4x8xf32>
    %336 = tpu.matmul %333, %334, %cst_164 {dimension_numbers = #tpu.dot_dimension_numbers<[2], [2], [1], [1], [0, 0, 0, 1, 1, 1], [0], [0]>} : vector<6x4x8xf32>, vector<6x8x8xf32>, vector<6x4x8xf32> -> vector<6x4x8xf32>
    %cst_165 = arith.constant 0.353553385 : f32
    %337 = vector.broadcast %cst_165 : f32 to vector<6x4x8xf32>
    %338 = arith.mulf %336, %337 : vector<6x4x8xf32>
    %cst_166 = arith.constant dense<0xFF800000> : vector<6x4xf32>
    %339 = vector.multi_reduction <maximumf>, %338, %cst_166 [2] : vector<6x4x8xf32> to vector<6x4xf32>
    %340 = vector.shape_cast %339 : vector<6x4xf32> to vector<6x4x1xf32>
    %341 = vector.broadcast %340 : vector<6x4x1xf32> to vector<6x4x8xf32>
    %342 = arith.subf %338, %341 : vector<6x4x8xf32>
    %343 = math.exp %342 : vector<6x4x8xf32>
    %cst_167 = arith.constant dense<0.000000e+00> : vector<6x4xf32>
    %344 = vector.multi_reduction <add>, %343, %cst_167 [2] : vector<6x4x8xf32> to vector<6x4xf32>
    %345 = vector.shape_cast %344 : vector<6x4xf32> to vector<6x4x1xf32>
    %346 = tpu.reciprocal %345 {approx = true} : vector<6x4x1xf32> -> vector<6x4x1xf32>
    %347 = vector.broadcast %346 : vector<6x4x1xf32> to vector<6x4x8xf32>
    %348 = arith.mulf %343, %347 : vector<6x4x8xf32>
    %cst_168 = arith.constant dense<0.000000e+00> : vector<6x4x8xf32>
    %349 = tpu.matmul %348, %335, %cst_168 {dimension_numbers = #tpu.dot_dimension_numbers<[2], [1], [1], [2], [0, 0, 0, 1, 1, 2], [0], [0]>} : vector<6x4x8xf32>, vector<6x8x8xf32>, vector<6x4x8xf32> -> vector<6x4x8xf32>
    %350 = vector.extract_strided_slice %17 {offsets = [16, 0], sizes = [8, 32], strides = [1, 1]} : vector<32x32xf32> to vector<8x32xf32>
    %351 = vector.shape_cast %350 : vector<8x32xf32> to vector<1x8x32xf32>
    %352 = vector.broadcast %351 : vector<1x8x32xf32> to vector<6x8x32xf32>
    %cst_169 = arith.constant dense<0.000000e+00> : vector<6x4x32xf32>
    %353 = tpu.matmul %349, %352, %cst_169 {dimension_numbers = #tpu.dot_dimension_numbers<[2], [1], [1], [2], [0, 0, 0, 1, 1, 2], [0], [0]>} : vector<6x4x8xf32>, vector<6x8x32xf32>, vector<6x4x32xf32> -> vector<6x4x32xf32>
    %354 = arith.addf %332, %353 : vector<6x4x32xf32>
    %355 = vector.extract_strided_slice %285 {offsets = [0, 0, 24], sizes = [6, 4, 8], strides = [1, 1, 1]} : vector<6x4x32xf32> to vector<6x4x8xf32>
    %356 = vector.extract_strided_slice %286 {offsets = [0, 0, 24], sizes = [6, 8, 8], strides = [1, 1, 1]} : vector<6x8x32xf32> to vector<6x8x8xf32>
    %357 = vector.extract_strided_slice %287 {offsets = [0, 0, 24], sizes = [6, 8, 8], strides = [1, 1, 1]} : vector<6x8x32xf32> to vector<6x8x8xf32>
    %cst_170 = arith.constant dense<0.000000e+00> : vector<6x4x8xf32>
    %358 = tpu.matmul %355, %356, %cst_170 {dimension_numbers = #tpu.dot_dimension_numbers<[2], [2], [1], [1], [0, 0, 0, 1, 1, 1], [0], [0]>} : vector<6x4x8xf32>, vector<6x8x8xf32>, vector<6x4x8xf32> -> vector<6x4x8xf32>
    %cst_171 = arith.constant 0.353553385 : f32
    %359 = vector.broadcast %cst_171 : f32 to vector<6x4x8xf32>
    %360 = arith.mulf %358, %359 : vector<6x4x8xf32>
    %cst_172 = arith.constant dense<0xFF800000> : vector<6x4xf32>
    %361 = vector.multi_reduction <maximumf>, %360, %cst_172 [2] : vector<6x4x8xf32> to vector<6x4xf32>
    %362 = vector.shape_cast %361 : vector<6x4xf32> to vector<6x4x1xf32>
    %363 = vector.broadcast %362 : vector<6x4x1xf32> to vector<6x4x8xf32>
    %364 = arith.subf %360, %363 : vector<6x4x8xf32>
    %365 = math.exp %364 : vector<6x4x8xf32>
    %cst_173 = arith.constant dense<0.000000e+00> : vector<6x4xf32>
    %366 = vector.multi_reduction <add>, %365, %cst_173 [2] : vector<6x4x8xf32> to vector<6x4xf32>
    %367 = vector.shape_cast %366 : vector<6x4xf32> to vector<6x4x1xf32>
    %368 = tpu.reciprocal %367 {approx = true} : vector<6x4x1xf32> -> vector<6x4x1xf32>
    %369 = vector.broadcast %368 : vector<6x4x1xf32> to vector<6x4x8xf32>
    %370 = arith.mulf %365, %369 : vector<6x4x8xf32>
    %cst_174 = arith.constant dense<0.000000e+00> : vector<6x4x8xf32>
    %371 = tpu.matmul %370, %357, %cst_174 {dimension_numbers = #tpu.dot_dimension_numbers<[2], [1], [1], [2], [0, 0, 0, 1, 1, 2], [0], [0]>} : vector<6x4x8xf32>, vector<6x8x8xf32>, vector<6x4x8xf32> -> vector<6x4x8xf32>
    %372 = vector.extract_strided_slice %17 {offsets = [24, 0], sizes = [8, 32], strides = [1, 1]} : vector<32x32xf32> to vector<8x32xf32>
    %373 = vector.shape_cast %372 : vector<8x32xf32> to vector<1x8x32xf32>
    %374 = vector.broadcast %373 : vector<1x8x32xf32> to vector<6x8x32xf32>
    %cst_175 = arith.constant dense<0.000000e+00> : vector<6x4x32xf32>
    %375 = tpu.matmul %371, %374, %cst_175 {dimension_numbers = #tpu.dot_dimension_numbers<[2], [1], [1], [2], [0, 0, 0, 1, 1, 2], [0], [0]>} : vector<6x4x8xf32>, vector<6x8x32xf32>, vector<6x4x32xf32> -> vector<6x4x32xf32>
    %376 = arith.addf %354, %375 : vector<6x4x32xf32>
    %377 = vector.broadcast %16 : vector<1x1x32xf32> to vector<6x4x32xf32>
    %378 = arith.addf %376, %377 : vector<6x4x32xf32>
    %379 = arith.addf %274, %378 : vector<6x4x32xf32>
    %cst_176 = arith.constant dense<0.000000e+00> : vector<6x4xf32>
    %380 = vector.multi_reduction <add>, %379, %cst_176 [2] : vector<6x4x32xf32> to vector<6x4xf32>
    %381 = vector.shape_cast %380 : vector<6x4xf32> to vector<6x4x1xf32>
    %cst_177 = arith.constant 3.200000e+01 : f32
    %382 = vector.broadcast %cst_177 : f32 to vector<6x4x1xf32>
    %383 = arith.divf %381, %382 : vector<6x4x1xf32>
    %384 = vector.broadcast %383 : vector<6x4x1xf32> to vector<6x4x32xf32>
    %385 = arith.subf %379, %384 : vector<6x4x32xf32>
    %386 = arith.mulf %385, %385 : vector<6x4x32xf32>
    %cst_178 = arith.constant dense<0.000000e+00> : vector<6x4xf32>
    %387 = vector.multi_reduction <add>, %386, %cst_178 [2] : vector<6x4x32xf32> to vector<6x4xf32>
    %388 = vector.shape_cast %387 : vector<6x4xf32> to vector<6x4x1xf32>
    %cst_179 = arith.constant 3.200000e+01 : f32
    %389 = vector.broadcast %cst_179 : f32 to vector<6x4x1xf32>
    %390 = arith.divf %388, %389 : vector<6x4x1xf32>
    %391 = vector.broadcast %383 : vector<6x4x1xf32> to vector<6x4x32xf32>
    %392 = arith.subf %379, %391 : vector<6x4x32xf32>
    %cst_180 = arith.constant 9.99999974E-6 : f32
    %393 = vector.broadcast %cst_180 : f32 to vector<6x4x1xf32>
    %394 = arith.addf %390, %393 : vector<6x4x1xf32>
    %395 = math.rsqrt %394 : vector<6x4x1xf32>
    %396 = vector.broadcast %395 : vector<6x4x1xf32> to vector<6x4x32xf32>
    %397 = arith.mulf %392, %396 : vector<6x4x32xf32>
    %398 = vector.broadcast %11 : vector<1x1x32xf32> to vector<6x4x32xf32>
    %399 = arith.mulf %397, %398 : vector<6x4x32xf32>
    %400 = vector.broadcast %10 : vector<1x1x32xf32> to vector<6x4x32xf32>
    %401 = arith.addf %399, %400 : vector<6x4x32xf32>
    %402 = vector.shape_cast %15 : vector<32x32xf32> to vector<1x32x32xf32>
    %403 = vector.broadcast %402 : vector<1x32x32xf32> to vector<6x32x32xf32>
    %cst_181 = arith.constant dense<0.000000e+00> : vector<6x4x32xf32>
    %404 = tpu.matmul %401, %403, %cst_181 {dimension_numbers = #tpu.dot_dimension_numbers<[2], [1], [1], [2], [0, 0, 0, 1, 1, 2], [0], [0]>} : vector<6x4x32xf32>, vector<6x32x32xf32>, vector<6x4x32xf32> -> vector<6x4x32xf32>
    %405 = vector.broadcast %14 : vector<1x1x32xf32> to vector<6x4x32xf32>
    %406 = arith.addf %404, %405 : vector<6x4x32xf32>
    %cst_182 = arith.constant 0.000000e+00 : f32
    %407 = vector.broadcast %cst_182 : f32 to vector<6x4x32xf32>
    %408 = arith.maximumf %406, %407 : vector<6x4x32xf32>
    %409 = arith.addf %401, %408 : vector<6x4x32xf32>
    %cst_183 = arith.constant dense<0.000000e+00> : vector<6x4xf32>
    %410 = vector.multi_reduction <add>, %409, %cst_183 [2] : vector<6x4x32xf32> to vector<6x4xf32>
    %411 = vector.shape_cast %410 : vector<6x4xf32> to vector<6x4x1xf32>
    %cst_184 = arith.constant 3.200000e+01 : f32
    %412 = vector.broadcast %cst_184 : f32 to vector<6x4x1xf32>
    %413 = arith.divf %411, %412 : vector<6x4x1xf32>
    %414 = vector.broadcast %413 : vector<6x4x1xf32> to vector<6x4x32xf32>
    %415 = arith.subf %409, %414 : vector<6x4x32xf32>
    %416 = arith.mulf %415, %415 : vector<6x4x32xf32>
    %cst_185 = arith.constant dense<0.000000e+00> : vector<6x4xf32>
    %417 = vector.multi_reduction <add>, %416, %cst_185 [2] : vector<6x4x32xf32> to vector<6x4xf32>
    %418 = vector.shape_cast %417 : vector<6x4xf32> to vector<6x4x1xf32>
    %cst_186 = arith.constant 3.200000e+01 : f32
    %419 = vector.broadcast %cst_186 : f32 to vector<6x4x1xf32>
    %420 = arith.divf %418, %419 : vector<6x4x1xf32>
    %421 = vector.broadcast %413 : vector<6x4x1xf32> to vector<6x4x32xf32>
    %422 = arith.subf %409, %421 : vector<6x4x32xf32>
    %cst_187 = arith.constant 9.99999974E-6 : f32
    %423 = vector.broadcast %cst_187 : f32 to vector<6x4x1xf32>
    %424 = arith.addf %420, %423 : vector<6x4x1xf32>
    %425 = math.rsqrt %424 : vector<6x4x1xf32>
    %426 = vector.broadcast %425 : vector<6x4x1xf32> to vector<6x4x32xf32>
    %427 = arith.mulf %422, %426 : vector<6x4x32xf32>
    %428 = vector.broadcast %13 : vector<1x1x32xf32> to vector<6x4x32xf32>
    %429 = arith.mulf %427, %428 : vector<6x4x32xf32>
    %430 = vector.broadcast %12 : vector<1x1x32xf32> to vector<6x4x32xf32>
    %431 = arith.addf %429, %430 : vector<6x4x32xf32>
    %cst_188 = arith.constant 2.500000e-01 : f32
    %432 = vector.broadcast %cst_188 : f32 to vector<6x1x4xf32>
    %cst_189 = arith.constant dense<0.000000e+00> : vector<6x1x32xf32>
    %433 = tpu.matmul %432, %431, %cst_189 {dimension_numbers = #tpu.dot_dimension_numbers<[2], [1], [1], [2], [0, 0, 0, 1, 1, 2], [0], [0]>} : vector<6x1x4xf32>, vector<6x4x32xf32>, vector<6x1x32xf32> -> vector<6x1x32xf32>
    %c0_190 = arith.constant 0 : index
    %c0_191 = arith.constant 0 : index
    %c0_192 = arith.constant 0 : index
    %434 = vector.load %arg34[%c0_190, %c0_191, %c0_192] : memref<6x1x32xf32, #tpu.memory_space<vmem>>, vector<6x1x32xf32>
    tpu.vector_store %arg34[%c0_190, %c0_191, %c0_192], %433 {strides = array<i32>} : memref<6x1x32xf32, #tpu.memory_space<vmem>>, vector<6x1x32xf32>,
    return
  }
}

module attributes {stable_mosaic.version = 11 : i64} {
  func.func @_agent_kernel(%arg0: memref<2x3x32xf32, #tpu.memory_space<vmem>>, %arg1: memref<1x1x32xf32, #tpu.memory_space<vmem>>, %arg2: memref<1x1x32xf32, #tpu.memory_space<vmem>>, %arg3: memref<1x1x32xf32, #tpu.memory_space<vmem>>, %arg4: memref<1x1x32xf32, #tpu.memory_space<vmem>>, %arg5: memref<1x1x32xf32, #tpu.memory_space<vmem>>, %arg6: memref<32x32xf32, #tpu.memory_space<vmem>>, %arg7: memref<1x1x32xf32, #tpu.memory_space<vmem>>, %arg8: memref<32x32xf32, #tpu.memory_space<vmem>>, %arg9: memref<1x1x96xf32, #tpu.memory_space<vmem>>, %arg10: memref<32x96xf32, #tpu.memory_space<vmem>>, %arg11: memref<1x1x32xf32, #tpu.memory_space<vmem>>, %arg12: memref<32x32xf32, #tpu.memory_space<vmem>>, %arg13: memref<4x32xf32, #tpu.memory_space<vmem>>, %arg14: memref<1x1x1xf32, #tpu.memory_space<vmem>>, %arg15: memref<32x1xf32, #tpu.memory_space<vmem>>, %arg16: memref<2x1x1xf32, #tpu.memory_space<vmem>>) attributes {dimension_semantics = [], scalar_prefetch = 0 : i64, scratch_operands = 0 : i64, tpu.core_type = #tpu.core_type<tc>} {
    %c0 = arith.constant 0 : index
    %c0_0 = arith.constant 0 : index
    %c0_1 = arith.constant 0 : index
    %0 = vector.load %arg1[%c0, %c0_0, %c0_1] : memref<1x1x32xf32, #tpu.memory_space<vmem>>, vector<1x1x32xf32>
    %c0_2 = arith.constant 0 : index
    %c0_3 = arith.constant 0 : index
    %c0_4 = arith.constant 0 : index
    %1 = vector.load %arg2[%c0_2, %c0_3, %c0_4] : memref<1x1x32xf32, #tpu.memory_space<vmem>>, vector<1x1x32xf32>
    %c0_5 = arith.constant 0 : index
    %c0_6 = arith.constant 0 : index
    %c0_7 = arith.constant 0 : index
    %2 = vector.load %arg3[%c0_5, %c0_6, %c0_7] : memref<1x1x32xf32, #tpu.memory_space<vmem>>, vector<1x1x32xf32>
    %c0_8 = arith.constant 0 : index
    %c0_9 = arith.constant 0 : index
    %c0_10 = arith.constant 0 : index
    %3 = vector.load %arg4[%c0_8, %c0_9, %c0_10] : memref<1x1x32xf32, #tpu.memory_space<vmem>>, vector<1x1x32xf32>
    %c0_11 = arith.constant 0 : index
    %c0_12 = arith.constant 0 : index
    %c0_13 = arith.constant 0 : index
    %4 = vector.load %arg5[%c0_11, %c0_12, %c0_13] : memref<1x1x32xf32, #tpu.memory_space<vmem>>, vector<1x1x32xf32>
    %c0_14 = arith.constant 0 : index
    %c0_15 = arith.constant 0 : index
    %5 = vector.load %arg6[%c0_14, %c0_15] : memref<32x32xf32, #tpu.memory_space<vmem>>, vector<32x32xf32>
    %c0_16 = arith.constant 0 : index
    %c0_17 = arith.constant 0 : index
    %c0_18 = arith.constant 0 : index
    %6 = vector.load %arg7[%c0_16, %c0_17, %c0_18] : memref<1x1x32xf32, #tpu.memory_space<vmem>>, vector<1x1x32xf32>
    %c0_19 = arith.constant 0 : index
    %c0_20 = arith.constant 0 : index
    %7 = vector.load %arg8[%c0_19, %c0_20] : memref<32x32xf32, #tpu.memory_space<vmem>>, vector<32x32xf32>
    %c0_21 = arith.constant 0 : index
    %c0_22 = arith.constant 0 : index
    %c0_23 = arith.constant 0 : index
    %8 = vector.load %arg9[%c0_21, %c0_22, %c0_23] : memref<1x1x96xf32, #tpu.memory_space<vmem>>, vector<1x1x96xf32>
    %c0_24 = arith.constant 0 : index
    %c0_25 = arith.constant 0 : index
    %9 = vector.load %arg10[%c0_24, %c0_25] : memref<32x96xf32, #tpu.memory_space<vmem>>, vector<32x96xf32>
    %c0_26 = arith.constant 0 : index
    %c0_27 = arith.constant 0 : index
    %c0_28 = arith.constant 0 : index
    %10 = vector.load %arg11[%c0_26, %c0_27, %c0_28] : memref<1x1x32xf32, #tpu.memory_space<vmem>>, vector<1x1x32xf32>
    %c0_29 = arith.constant 0 : index
    %c0_30 = arith.constant 0 : index
    %11 = vector.load %arg12[%c0_29, %c0_30] : memref<32x32xf32, #tpu.memory_space<vmem>>, vector<32x32xf32>
    %c0_31 = arith.constant 0 : index
    %c0_32 = arith.constant 0 : index
    %12 = vector.load %arg13[%c0_31, %c0_32] : memref<4x32xf32, #tpu.memory_space<vmem>>, vector<4x32xf32>
    %c0_33 = arith.constant 0 : index
    %c0_34 = arith.constant 0 : index
    %c0_35 = arith.constant 0 : index
    %13 = vector.load %arg14[%c0_33, %c0_34, %c0_35] : memref<1x1x1xf32, #tpu.memory_space<vmem>>, vector<1x1x1xf32>
    %c0_36 = arith.constant 0 : index
    %c0_37 = arith.constant 0 : index
    %14 = vector.load %arg15[%c0_36, %c0_37] : memref<32x1xf32, #tpu.memory_space<vmem>>, vector<32x1xf32>
    %c0_38 = arith.constant 0 : index
    %c0_39 = arith.constant 0 : index
    %c0_40 = arith.constant 0 : index
    %15 = vector.load %arg0[%c0_38, %c0_39, %c0_40] : memref<2x3x32xf32, #tpu.memory_space<vmem>>, vector<2x3x32xf32>
    %16 = vector.shape_cast %11 : vector<32x32xf32> to vector<1x32x32xf32>
    %17 = vector.broadcast %16 : vector<1x32x32xf32> to vector<2x32x32xf32>
    %cst = arith.constant dense<0.000000e+00> : vector<2x3x32xf32>
    %18 = tpu.matmul %15, %17, %cst {dimension_numbers = #tpu.dot_dimension_numbers<[2], [1], [1], [2], [0, 0, 0, 1, 1, 2], [0], [0]>} : vector<2x3x32xf32>, vector<2x32x32xf32>, vector<2x3x32xf32> -> vector<2x3x32xf32>
    %19 = vector.broadcast %10 : vector<1x1x32xf32> to vector<2x3x32xf32>
    %20 = arith.addf %18, %19 : vector<2x3x32xf32>
    %cst_41 = arith.constant 0.000000e+00 : f32
    %21 = vector.broadcast %cst_41 : f32 to vector<2x3x32xf32>
    %22 = arith.maximumf %20, %21 : vector<2x3x32xf32>
    %23 = vector.shape_cast %12 : vector<4x32xf32> to vector<1x4x32xf32>
    %24 = vector.broadcast %23 : vector<1x4x32xf32> to vector<2x4x32xf32>
    %25 = vector.shape_cast %9 : vector<32x96xf32> to vector<1x32x96xf32>
    %26 = vector.broadcast %25 : vector<1x32x96xf32> to vector<2x32x96xf32>
    %cst_42 = arith.constant dense<0.000000e+00> : vector<2x3x96xf32>
    %27 = tpu.matmul %22, %26, %cst_42 {dimension_numbers = #tpu.dot_dimension_numbers<[2], [1], [1], [2], [0, 0, 0, 1, 1, 2], [0], [0]>} : vector<2x3x32xf32>, vector<2x32x96xf32>, vector<2x3x96xf32> -> vector<2x3x96xf32>
    %28 = vector.broadcast %8 : vector<1x1x96xf32> to vector<2x3x96xf32>
    %29 = arith.addf %27, %28 : vector<2x3x96xf32>
    %30 = vector.shape_cast %9 : vector<32x96xf32> to vector<1x32x96xf32>
    %31 = vector.broadcast %30 : vector<1x32x96xf32> to vector<2x32x96xf32>
    %cst_43 = arith.constant dense<0.000000e+00> : vector<2x4x96xf32>
    %32 = tpu.matmul %24, %31, %cst_43 {dimension_numbers = #tpu.dot_dimension_numbers<[2], [1], [1], [2], [0, 0, 0, 1, 1, 2], [0], [0]>} : vector<2x4x32xf32>, vector<2x32x96xf32>, vector<2x4x96xf32> -> vector<2x4x96xf32>
    %33 = vector.broadcast %8 : vector<1x1x96xf32> to vector<2x4x96xf32>
    %34 = arith.addf %32, %33 : vector<2x4x96xf32>
    %35 = vector.extract_strided_slice %34 {offsets = [0, 0, 0], sizes = [2, 4, 32], strides = [1, 1, 1]} : vector<2x4x96xf32> to vector<2x4x32xf32>
    %36 = vector.extract_strided_slice %29 {offsets = [0, 0, 32], sizes = [2, 3, 32], strides = [1, 1, 1]} : vector<2x3x96xf32> to vector<2x3x32xf32>
    %37 = vector.extract_strided_slice %29 {offsets = [0, 0, 64], sizes = [2, 3, 32], strides = [1, 1, 1]} : vector<2x3x96xf32> to vector<2x3x32xf32>
    %cst_44 = arith.constant 0.000000e+00 : f32
    %38 = vector.broadcast %cst_44 : f32 to vector<2x4x32xf32>
    %39 = vector.extract_strided_slice %35 {offsets = [0, 0, 0], sizes = [2, 4, 8], strides = [1, 1, 1]} : vector<2x4x32xf32> to vector<2x4x8xf32>
    %40 = vector.extract_strided_slice %36 {offsets = [0, 0, 0], sizes = [2, 3, 8], strides = [1, 1, 1]} : vector<2x3x32xf32> to vector<2x3x8xf32>
    %41 = vector.extract_strided_slice %37 {offsets = [0, 0, 0], sizes = [2, 3, 8], strides = [1, 1, 1]} : vector<2x3x32xf32> to vector<2x3x8xf32>
    %cst_45 = arith.constant dense<0.000000e+00> : vector<2x4x3xf32>
    %42 = tpu.matmul %39, %40, %cst_45 {dimension_numbers = #tpu.dot_dimension_numbers<[2], [2], [1], [1], [0, 0, 0, 1, 1, 1], [0], [0]>} : vector<2x4x8xf32>, vector<2x3x8xf32>, vector<2x4x3xf32> -> vector<2x4x3xf32>
    %cst_46 = arith.constant 0.353553385 : f32
    %43 = vector.broadcast %cst_46 : f32 to vector<2x4x3xf32>
    %44 = arith.mulf %42, %43 : vector<2x4x3xf32>
    %cst_47 = arith.constant dense<0xFF800000> : vector<2x4xf32>
    %45 = vector.multi_reduction <maximumf>, %44, %cst_47 [2] : vector<2x4x3xf32> to vector<2x4xf32>
    %46 = vector.shape_cast %45 : vector<2x4xf32> to vector<2x4x1xf32>
    %47 = vector.broadcast %46 : vector<2x4x1xf32> to vector<2x4x3xf32>
    %48 = arith.subf %44, %47 : vector<2x4x3xf32>
    %49 = math.exp %48 : vector<2x4x3xf32>
    %cst_48 = arith.constant dense<0.000000e+00> : vector<2x4xf32>
    %50 = vector.multi_reduction <add>, %49, %cst_48 [2] : vector<2x4x3xf32> to vector<2x4xf32>
    %51 = vector.shape_cast %50 : vector<2x4xf32> to vector<2x4x1xf32>
    %52 = tpu.reciprocal %51 {approx = true} : vector<2x4x1xf32> -> vector<2x4x1xf32>
    %53 = vector.broadcast %52 : vector<2x4x1xf32> to vector<2x4x3xf32>
    %54 = arith.mulf %49, %53 : vector<2x4x3xf32>
    %cst_49 = arith.constant dense<0.000000e+00> : vector<2x4x8xf32>
    %55 = tpu.matmul %54, %41, %cst_49 {dimension_numbers = #tpu.dot_dimension_numbers<[2], [1], [1], [2], [0, 0, 0, 1, 1, 2], [0], [0]>} : vector<2x4x3xf32>, vector<2x3x8xf32>, vector<2x4x8xf32> -> vector<2x4x8xf32>
    %56 = vector.extract_strided_slice %7 {offsets = [0, 0], sizes = [8, 32], strides = [1, 1]} : vector<32x32xf32> to vector<8x32xf32>
    %57 = vector.shape_cast %56 : vector<8x32xf32> to vector<1x8x32xf32>
    %58 = vector.broadcast %57 : vector<1x8x32xf32> to vector<2x8x32xf32>
    %cst_50 = arith.constant dense<0.000000e+00> : vector<2x4x32xf32>
    %59 = tpu.matmul %55, %58, %cst_50 {dimension_numbers = #tpu.dot_dimension_numbers<[2], [1], [1], [2], [0, 0, 0, 1, 1, 2], [0], [0]>} : vector<2x4x8xf32>, vector<2x8x32xf32>, vector<2x4x32xf32> -> vector<2x4x32xf32>
    %60 = arith.addf %38, %59 : vector<2x4x32xf32>
    %61 = vector.extract_strided_slice %35 {offsets = [0, 0, 8], sizes = [2, 4, 8], strides = [1, 1, 1]} : vector<2x4x32xf32> to vector<2x4x8xf32>
    %62 = vector.extract_strided_slice %36 {offsets = [0, 0, 8], sizes = [2, 3, 8], strides = [1, 1, 1]} : vector<2x3x32xf32> to vector<2x3x8xf32>
    %63 = vector.extract_strided_slice %37 {offsets = [0, 0, 8], sizes = [2, 3, 8], strides = [1, 1, 1]} : vector<2x3x32xf32> to vector<2x3x8xf32>
    %cst_51 = arith.constant dense<0.000000e+00> : vector<2x4x3xf32>
    %64 = tpu.matmul %61, %62, %cst_51 {dimension_numbers = #tpu.dot_dimension_numbers<[2], [2], [1], [1], [0, 0, 0, 1, 1, 1], [0], [0]>} : vector<2x4x8xf32>, vector<2x3x8xf32>, vector<2x4x3xf32> -> vector<2x4x3xf32>
    %cst_52 = arith.constant 0.353553385 : f32
    %65 = vector.broadcast %cst_52 : f32 to vector<2x4x3xf32>
    %66 = arith.mulf %64, %65 : vector<2x4x3xf32>
    %cst_53 = arith.constant dense<0xFF800000> : vector<2x4xf32>
    %67 = vector.multi_reduction <maximumf>, %66, %cst_53 [2] : vector<2x4x3xf32> to vector<2x4xf32>
    %68 = vector.shape_cast %67 : vector<2x4xf32> to vector<2x4x1xf32>
    %69 = vector.broadcast %68 : vector<2x4x1xf32> to vector<2x4x3xf32>
    %70 = arith.subf %66, %69 : vector<2x4x3xf32>
    %71 = math.exp %70 : vector<2x4x3xf32>
    %cst_54 = arith.constant dense<0.000000e+00> : vector<2x4xf32>
    %72 = vector.multi_reduction <add>, %71, %cst_54 [2] : vector<2x4x3xf32> to vector<2x4xf32>
    %73 = vector.shape_cast %72 : vector<2x4xf32> to vector<2x4x1xf32>
    %74 = tpu.reciprocal %73 {approx = true} : vector<2x4x1xf32> -> vector<2x4x1xf32>
    %75 = vector.broadcast %74 : vector<2x4x1xf32> to vector<2x4x3xf32>
    %76 = arith.mulf %71, %75 : vector<2x4x3xf32>
    %cst_55 = arith.constant dense<0.000000e+00> : vector<2x4x8xf32>
    %77 = tpu.matmul %76, %63, %cst_55 {dimension_numbers = #tpu.dot_dimension_numbers<[2], [1], [1], [2], [0, 0, 0, 1, 1, 2], [0], [0]>} : vector<2x4x3xf32>, vector<2x3x8xf32>, vector<2x4x8xf32> -> vector<2x4x8xf32>
    %78 = vector.extract_strided_slice %7 {offsets = [8, 0], sizes = [8, 32], strides = [1, 1]} : vector<32x32xf32> to vector<8x32xf32>
    %79 = vector.shape_cast %78 : vector<8x32xf32> to vector<1x8x32xf32>
    %80 = vector.broadcast %79 : vector<1x8x32xf32> to vector<2x8x32xf32>
    %cst_56 = arith.constant dense<0.000000e+00> : vector<2x4x32xf32>
    %81 = tpu.matmul %77, %80, %cst_56 {dimension_numbers = #tpu.dot_dimension_numbers<[2], [1], [1], [2], [0, 0, 0, 1, 1, 2], [0], [0]>} : vector<2x4x8xf32>, vector<2x8x32xf32>, vector<2x4x32xf32> -> vector<2x4x32xf32>
    %82 = arith.addf %60, %81 : vector<2x4x32xf32>
    %83 = vector.extract_strided_slice %35 {offsets = [0, 0, 16], sizes = [2, 4, 8], strides = [1, 1, 1]} : vector<2x4x32xf32> to vector<2x4x8xf32>
    %84 = vector.extract_strided_slice %36 {offsets = [0, 0, 16], sizes = [2, 3, 8], strides = [1, 1, 1]} : vector<2x3x32xf32> to vector<2x3x8xf32>
    %85 = vector.extract_strided_slice %37 {offsets = [0, 0, 16], sizes = [2, 3, 8], strides = [1, 1, 1]} : vector<2x3x32xf32> to vector<2x3x8xf32>
    %cst_57 = arith.constant dense<0.000000e+00> : vector<2x4x3xf32>
    %86 = tpu.matmul %83, %84, %cst_57 {dimension_numbers = #tpu.dot_dimension_numbers<[2], [2], [1], [1], [0, 0, 0, 1, 1, 1], [0], [0]>} : vector<2x4x8xf32>, vector<2x3x8xf32>, vector<2x4x3xf32> -> vector<2x4x3xf32>
    %cst_58 = arith.constant 0.353553385 : f32
    %87 = vector.broadcast %cst_58 : f32 to vector<2x4x3xf32>
    %88 = arith.mulf %86, %87 : vector<2x4x3xf32>
    %cst_59 = arith.constant dense<0xFF800000> : vector<2x4xf32>
    %89 = vector.multi_reduction <maximumf>, %88, %cst_59 [2] : vector<2x4x3xf32> to vector<2x4xf32>
    %90 = vector.shape_cast %89 : vector<2x4xf32> to vector<2x4x1xf32>
    %91 = vector.broadcast %90 : vector<2x4x1xf32> to vector<2x4x3xf32>
    %92 = arith.subf %88, %91 : vector<2x4x3xf32>
    %93 = math.exp %92 : vector<2x4x3xf32>
    %cst_60 = arith.constant dense<0.000000e+00> : vector<2x4xf32>
    %94 = vector.multi_reduction <add>, %93, %cst_60 [2] : vector<2x4x3xf32> to vector<2x4xf32>
    %95 = vector.shape_cast %94 : vector<2x4xf32> to vector<2x4x1xf32>
    %96 = tpu.reciprocal %95 {approx = true} : vector<2x4x1xf32> -> vector<2x4x1xf32>
    %97 = vector.broadcast %96 : vector<2x4x1xf32> to vector<2x4x3xf32>
    %98 = arith.mulf %93, %97 : vector<2x4x3xf32>
    %cst_61 = arith.constant dense<0.000000e+00> : vector<2x4x8xf32>
    %99 = tpu.matmul %98, %85, %cst_61 {dimension_numbers = #tpu.dot_dimension_numbers<[2], [1], [1], [2], [0, 0, 0, 1, 1, 2], [0], [0]>} : vector<2x4x3xf32>, vector<2x3x8xf32>, vector<2x4x8xf32> -> vector<2x4x8xf32>
    %100 = vector.extract_strided_slice %7 {offsets = [16, 0], sizes = [8, 32], strides = [1, 1]} : vector<32x32xf32> to vector<8x32xf32>
    %101 = vector.shape_cast %100 : vector<8x32xf32> to vector<1x8x32xf32>
    %102 = vector.broadcast %101 : vector<1x8x32xf32> to vector<2x8x32xf32>
    %cst_62 = arith.constant dense<0.000000e+00> : vector<2x4x32xf32>
    %103 = tpu.matmul %99, %102, %cst_62 {dimension_numbers = #tpu.dot_dimension_numbers<[2], [1], [1], [2], [0, 0, 0, 1, 1, 2], [0], [0]>} : vector<2x4x8xf32>, vector<2x8x32xf32>, vector<2x4x32xf32> -> vector<2x4x32xf32>
    %104 = arith.addf %82, %103 : vector<2x4x32xf32>
    %105 = vector.extract_strided_slice %35 {offsets = [0, 0, 24], sizes = [2, 4, 8], strides = [1, 1, 1]} : vector<2x4x32xf32> to vector<2x4x8xf32>
    %106 = vector.extract_strided_slice %36 {offsets = [0, 0, 24], sizes = [2, 3, 8], strides = [1, 1, 1]} : vector<2x3x32xf32> to vector<2x3x8xf32>
    %107 = vector.extract_strided_slice %37 {offsets = [0, 0, 24], sizes = [2, 3, 8], strides = [1, 1, 1]} : vector<2x3x32xf32> to vector<2x3x8xf32>
    %cst_63 = arith.constant dense<0.000000e+00> : vector<2x4x3xf32>
    %108 = tpu.matmul %105, %106, %cst_63 {dimension_numbers = #tpu.dot_dimension_numbers<[2], [2], [1], [1], [0, 0, 0, 1, 1, 1], [0], [0]>} : vector<2x4x8xf32>, vector<2x3x8xf32>, vector<2x4x3xf32> -> vector<2x4x3xf32>
    %cst_64 = arith.constant 0.353553385 : f32
    %109 = vector.broadcast %cst_64 : f32 to vector<2x4x3xf32>
    %110 = arith.mulf %108, %109 : vector<2x4x3xf32>
    %cst_65 = arith.constant dense<0xFF800000> : vector<2x4xf32>
    %111 = vector.multi_reduction <maximumf>, %110, %cst_65 [2] : vector<2x4x3xf32> to vector<2x4xf32>
    %112 = vector.shape_cast %111 : vector<2x4xf32> to vector<2x4x1xf32>
    %113 = vector.broadcast %112 : vector<2x4x1xf32> to vector<2x4x3xf32>
    %114 = arith.subf %110, %113 : vector<2x4x3xf32>
    %115 = math.exp %114 : vector<2x4x3xf32>
    %cst_66 = arith.constant dense<0.000000e+00> : vector<2x4xf32>
    %116 = vector.multi_reduction <add>, %115, %cst_66 [2] : vector<2x4x3xf32> to vector<2x4xf32>
    %117 = vector.shape_cast %116 : vector<2x4xf32> to vector<2x4x1xf32>
    %118 = tpu.reciprocal %117 {approx = true} : vector<2x4x1xf32> -> vector<2x4x1xf32>
    %119 = vector.broadcast %118 : vector<2x4x1xf32> to vector<2x4x3xf32>
    %120 = arith.mulf %115, %119 : vector<2x4x3xf32>
    %cst_67 = arith.constant dense<0.000000e+00> : vector<2x4x8xf32>
    %121 = tpu.matmul %120, %107, %cst_67 {dimension_numbers = #tpu.dot_dimension_numbers<[2], [1], [1], [2], [0, 0, 0, 1, 1, 2], [0], [0]>} : vector<2x4x3xf32>, vector<2x3x8xf32>, vector<2x4x8xf32> -> vector<2x4x8xf32>
    %122 = vector.extract_strided_slice %7 {offsets = [24, 0], sizes = [8, 32], strides = [1, 1]} : vector<32x32xf32> to vector<8x32xf32>
    %123 = vector.shape_cast %122 : vector<8x32xf32> to vector<1x8x32xf32>
    %124 = vector.broadcast %123 : vector<1x8x32xf32> to vector<2x8x32xf32>
    %cst_68 = arith.constant dense<0.000000e+00> : vector<2x4x32xf32>
    %125 = tpu.matmul %121, %124, %cst_68 {dimension_numbers = #tpu.dot_dimension_numbers<[2], [1], [1], [2], [0, 0, 0, 1, 1, 2], [0], [0]>} : vector<2x4x8xf32>, vector<2x8x32xf32>, vector<2x4x32xf32> -> vector<2x4x32xf32>
    %126 = arith.addf %104, %125 : vector<2x4x32xf32>
    %127 = vector.broadcast %6 : vector<1x1x32xf32> to vector<2x4x32xf32>
    %128 = arith.addf %126, %127 : vector<2x4x32xf32>
    %129 = arith.addf %24, %128 : vector<2x4x32xf32>
    %cst_69 = arith.constant dense<0.000000e+00> : vector<2x4xf32>
    %130 = vector.multi_reduction <add>, %129, %cst_69 [2] : vector<2x4x32xf32> to vector<2x4xf32>
    %131 = vector.shape_cast %130 : vector<2x4xf32> to vector<2x4x1xf32>
    %cst_70 = arith.constant 3.200000e+01 : f32
    %132 = vector.broadcast %cst_70 : f32 to vector<2x4x1xf32>
    %133 = arith.divf %131, %132 : vector<2x4x1xf32>
    %134 = vector.broadcast %133 : vector<2x4x1xf32> to vector<2x4x32xf32>
    %135 = arith.subf %129, %134 : vector<2x4x32xf32>
    %136 = arith.mulf %135, %135 : vector<2x4x32xf32>
    %cst_71 = arith.constant dense<0.000000e+00> : vector<2x4xf32>
    %137 = vector.multi_reduction <add>, %136, %cst_71 [2] : vector<2x4x32xf32> to vector<2x4xf32>
    %138 = vector.shape_cast %137 : vector<2x4xf32> to vector<2x4x1xf32>
    %cst_72 = arith.constant 3.200000e+01 : f32
    %139 = vector.broadcast %cst_72 : f32 to vector<2x4x1xf32>
    %140 = arith.divf %138, %139 : vector<2x4x1xf32>
    %141 = vector.broadcast %133 : vector<2x4x1xf32> to vector<2x4x32xf32>
    %142 = arith.subf %129, %141 : vector<2x4x32xf32>
    %cst_73 = arith.constant 9.99999974E-6 : f32
    %143 = vector.broadcast %cst_73 : f32 to vector<2x4x1xf32>
    %144 = arith.addf %140, %143 : vector<2x4x1xf32>
    %145 = math.rsqrt %144 : vector<2x4x1xf32>
    %146 = vector.broadcast %145 : vector<2x4x1xf32> to vector<2x4x32xf32>
    %147 = arith.mulf %142, %146 : vector<2x4x32xf32>
    %148 = vector.broadcast %1 : vector<1x1x32xf32> to vector<2x4x32xf32>
    %149 = arith.mulf %147, %148 : vector<2x4x32xf32>
    %150 = vector.broadcast %0 : vector<1x1x32xf32> to vector<2x4x32xf32>
    %151 = arith.addf %149, %150 : vector<2x4x32xf32>
    %152 = vector.shape_cast %5 : vector<32x32xf32> to vector<1x32x32xf32>
    %153 = vector.broadcast %152 : vector<1x32x32xf32> to vector<2x32x32xf32>
    %cst_74 = arith.constant dense<0.000000e+00> : vector<2x4x32xf32>
    %154 = tpu.matmul %151, %153, %cst_74 {dimension_numbers = #tpu.dot_dimension_numbers<[2], [1], [1], [2], [0, 0, 0, 1, 1, 2], [0], [0]>} : vector<2x4x32xf32>, vector<2x32x32xf32>, vector<2x4x32xf32> -> vector<2x4x32xf32>
    %155 = vector.broadcast %4 : vector<1x1x32xf32> to vector<2x4x32xf32>
    %156 = arith.addf %154, %155 : vector<2x4x32xf32>
    %cst_75 = arith.constant 0.000000e+00 : f32
    %157 = vector.broadcast %cst_75 : f32 to vector<2x4x32xf32>
    %158 = arith.maximumf %156, %157 : vector<2x4x32xf32>
    %159 = arith.addf %151, %158 : vector<2x4x32xf32>
    %cst_76 = arith.constant dense<0.000000e+00> : vector<2x4xf32>
    %160 = vector.multi_reduction <add>, %159, %cst_76 [2] : vector<2x4x32xf32> to vector<2x4xf32>
    %161 = vector.shape_cast %160 : vector<2x4xf32> to vector<2x4x1xf32>
    %cst_77 = arith.constant 3.200000e+01 : f32
    %162 = vector.broadcast %cst_77 : f32 to vector<2x4x1xf32>
    %163 = arith.divf %161, %162 : vector<2x4x1xf32>
    %164 = vector.broadcast %163 : vector<2x4x1xf32> to vector<2x4x32xf32>
    %165 = arith.subf %159, %164 : vector<2x4x32xf32>
    %166 = arith.mulf %165, %165 : vector<2x4x32xf32>
    %cst_78 = arith.constant dense<0.000000e+00> : vector<2x4xf32>
    %167 = vector.multi_reduction <add>, %166, %cst_78 [2] : vector<2x4x32xf32> to vector<2x4xf32>
    %168 = vector.shape_cast %167 : vector<2x4xf32> to vector<2x4x1xf32>
    %cst_79 = arith.constant 3.200000e+01 : f32
    %169 = vector.broadcast %cst_79 : f32 to vector<2x4x1xf32>
    %170 = arith.divf %168, %169 : vector<2x4x1xf32>
    %171 = vector.broadcast %163 : vector<2x4x1xf32> to vector<2x4x32xf32>
    %172 = arith.subf %159, %171 : vector<2x4x32xf32>
    %cst_80 = arith.constant 9.99999974E-6 : f32
    %173 = vector.broadcast %cst_80 : f32 to vector<2x4x1xf32>
    %174 = arith.addf %170, %173 : vector<2x4x1xf32>
    %175 = math.rsqrt %174 : vector<2x4x1xf32>
    %176 = vector.broadcast %175 : vector<2x4x1xf32> to vector<2x4x32xf32>
    %177 = arith.mulf %172, %176 : vector<2x4x32xf32>
    %178 = vector.broadcast %3 : vector<1x1x32xf32> to vector<2x4x32xf32>
    %179 = arith.mulf %177, %178 : vector<2x4x32xf32>
    %180 = vector.broadcast %2 : vector<1x1x32xf32> to vector<2x4x32xf32>
    %181 = arith.addf %179, %180 : vector<2x4x32xf32>
    %cst_81 = arith.constant 2.500000e-01 : f32
    %182 = vector.broadcast %cst_81 : f32 to vector<2x1x4xf32>
    %cst_82 = arith.constant dense<0.000000e+00> : vector<2x1x32xf32>
    %183 = tpu.matmul %182, %181, %cst_82 {dimension_numbers = #tpu.dot_dimension_numbers<[2], [1], [1], [2], [0, 0, 0, 1, 1, 2], [0], [0]>} : vector<2x1x4xf32>, vector<2x4x32xf32>, vector<2x1x32xf32> -> vector<2x1x32xf32>
    %184 = vector.shape_cast %14 : vector<32x1xf32> to vector<1x32x1xf32>
    %185 = vector.broadcast %184 : vector<1x32x1xf32> to vector<2x32x1xf32>
    %cst_83 = arith.constant dense<0.000000e+00> : vector<2x1x1xf32>
    %186 = tpu.matmul %183, %185, %cst_83 {dimension_numbers = #tpu.dot_dimension_numbers<[2], [1], [1], [2], [0, 0, 0, 1, 1, 2], [0], [0]>} : vector<2x1x32xf32>, vector<2x32x1xf32>, vector<2x1x1xf32> -> vector<2x1x1xf32>
    %187 = vector.broadcast %13 : vector<1x1x1xf32> to vector<2x1x1xf32>
    %188 = arith.addf %186, %187 : vector<2x1x1xf32>
    %c0_84 = arith.constant 0 : index
    %c0_85 = arith.constant 0 : index
    %c0_86 = arith.constant 0 : index
    %189 = vector.load %arg16[%c0_84, %c0_85, %c0_86] : memref<2x1x1xf32, #tpu.memory_space<vmem>>, vector<2x1x1xf32>
    tpu.vector_store %arg16[%c0_84, %c0_85, %c0_86], %188 {strides = array<i32>} : memref<2x1x1xf32, #tpu.memory_space<vmem>>, vector<2x1x1xf32>,
    return
  }
}

</mosaic_0001>

<bundles_post_ra>
// kernel: critic_forward.3
= control target key start
LH: loop header
LB: loop body
LE: loop exit
PB: predicated region body
PF: predicated region fallthrough
CT: control target
= control target key end

     0   :  { %vm90_vm0 = vcmask 261120   ;;  %s1321_s30 = smov 96   ;;  %vm214_vm1 = vcmask 64512   ;;  %vm267_vm2 = vcmask 19456   ;;  %vm296_vm3 = vcmask 1042432   ;;  %s1324_s17 = smov 56   ;;  %s1648_s12 = inlined_call_operand.vmem [shape: f32[32,32], index: 12, kind: input, shape index: {}]   ;;  %s1649_s10 = inlined_call_operand.vmem [shape: f32[32,96], index: 10, kind: input, shape index: {}]   ;;  %s1650_s11 = inlined_call_operand.vmem [shape: f32[1,1,32], index: 11, kind: input, shape index: {}]   ;;  %s1651_s0 = inlined_call_operand.vmem [shape: f32[2,3,32], index: 0, kind: input, shape index: {}]   ;;  %s1652_s9 = inlined_call_operand.vmem [shape: f32[1,1,96], index: 9, kind: input, shape index: {}]   ;;  %s1653_s13 = inlined_call_operand.vmem [shape: f32[4,32], index: 13, kind: input, shape index: {}]   ;;  %s1654_s8 = inlined_call_operand.vmem [shape: f32[32,32], index: 8, kind: input, shape index: {}]   ;;  %s1655_s7 = inlined_call_operand.vmem [shape: f32[1,1,32], index: 7, kind: input, shape index: {}]   ;;  %s1656_s2 = inlined_call_operand.vmem [shape: f32[1,1,32], index: 2, kind: input, shape index: {}]   ;;  %s1657_s1 = inlined_call_operand.vmem [shape: f32[1,1,32], index: 1, kind: input, shape index: {}]   ;;  %s1658_s5 = inlined_call_operand.vmem [shape: f32[1,1,32], index: 5, kind: input, shape index: {}]   ;;  %s1659_s6 = inlined_call_operand.vmem [shape: f32[32,32], index: 6, kind: input, shape index: {}]   ;;  %s1660_s4 = inlined_call_operand.vmem [shape: f32[1,1,32], index: 4, kind: input, shape index: {}]   ;;  %s1661_s3 = inlined_call_operand.vmem [shape: f32[1,1,32], index: 3, kind: input, shape index: {}]   ;;  %s1662_s15 = inlined_call_operand.vmem [shape: f32[32,1], index: 15, kind: input, shape index: {}]   ;;  %s1663_s14 = inlined_call_operand.<no memory space> [shape: f32[1,1,1], index: 14, kind: input, shape index: {}]   ;;  %s1664_s16 = inlined_call_operand.vmem [shape: f32[2,1,1], index: 16, kind: output, shape index: {}]  }
   0x1   :  { %1666 = sst [smem:[#allocation3_spill]] %s1648_s12  ;;  %v73_v3 = vld [vmem:[%s1649_s10 + $0x18] sm:$0xff]  ;;  %v86_v5 = vld [vmem:[%s1651_s0 + $0x4] sm:$0x7]  ;;  %v85_v6 = vld [vmem:[%s1651_s0] sm:$0x7] }
   0x2   :  { %s1667_s23 = sld [smem:[#allocation3_spill]]  ;;  %180 = vmatpush.msra.mxu3 %v73_v3  ;;  %157 = vmatpush.msra.mxu2 %v73_v3  ;;  %v72_v7 = vld [vmem:[%s1649_s10 + $0x10] sm:$0xff]  ;;  %v71_v8 = vld [vmem:[%s1649_s10 + $0x8] sm:$0xff]  ;;  %v70_v9 = vld [vmem:[%s1649_s10] sm:$0xff]  ;;  %s1323_s12 = smov 64   ;;  %vm292_vm4 = vcmask 23552  }
   0x3   :  { %v1453_v10 = vld [vmem:[%s1653_s13] sm:$0xf]  ;;  %s1325_s18 = smov 112   ;;  %s1326_s19 = smov 80   ;;  %v66_v63 = vld [vmem:[%s1654_s8 + $0x8] sm:$0xff]  ;;  %vm931_vm5 = vcmask 257024  }
   0x4   :  { %181 = vmatpush.msra.mxu3 %v72_v7  ;;  %158 = vmatpush.msra.mxu2 %v72_v7  ;;  %v1270_v11 = vld [vmem:[%s1650_s11] ss:$0 sm:$0xff]  ;;  %s1320_s11 = smov 88   ;;  %s1327_s20 = smov 48  }
   0x5   :  { %v1271_v18 = vld [vmem:[%s1652_s9] ss:$0 sm:$0xff]  ;;  %s1322_s9 = smov 120   ;;  %s1328_s0 = smov 72  }
   0x6   :  { %182 = vmatpush.msra.mxu3 %v71_v8  ;;  %159 = vmatpush.msra.mxu2 %v71_v8  ;;  %s1329_s25 = smov 104   ;;  %s1330_s28 = smov 40  }
   0x8   :  { %v78_v0 = vld [vmem:[%s1667_s23 + $0x18] sm:$0xff]  ;;  %v77_v1 = vld [vmem:[%s1667_s23 + $0x10] sm:$0xff]  ;;  %v76_v2 = vld [vmem:[%s1667_s23 + $0x8] sm:$0xff]  ;;  %183 = vmatpush.msra.mxu3 %v70_v9  ;;  %160 = vmatpush.msra.mxu2 %v70_v9 }
   0x9   :  { %129 = vmatpush.msra.mxu1 %v78_v0  ;;  %106 = vmatpush.msra.mxu0 %v78_v0  ;;  %v75_v4 = vld [vmem:[%s1667_s23] sm:$0xff] }
   0xb   :  { %130 = vmatpush.msra.mxu1 %v77_v1  ;;  %107 = vmatpush.msra.mxu0 %v77_v1 }
   0xd   :  { %131 = vmatpush.msra.mxu1 %v76_v2  ;;  %108 = vmatpush.msra.mxu0 %v76_v2 }
   0xf   :  { %132 = vmatpush.msra.mxu1 %v75_v4  ;;  %109 = vmatpush.msra.mxu0 %v75_v4 }
  0x10   :  { %1205 = vmatmul.msk.f32.vlgmr.msra.gmra.mxu1 %vm90_vm0, %v86_v5  ;;  %1204 = vmatmul.msk.f32.vlgmr.msra.gmra.mxu0 %vm90_vm0, %v85_v6 }
  0x11   :  { %203 = vmatpush.msrb.mxu0 %v73_v3 }
  0x13   :  { %204 = vmatpush.msrb.mxu0 %v72_v7 }
  0x15   :  { %205 = vmatpush.msrb.mxu0 %v71_v8  ;;  %v65_v8 = vld [vmem:[%s1654_s8] sm:$0xff] }
  0x17   :  { %206 = vmatpush.msrb.mxu0 %v70_v9 }
  0x18   :  { %1208 = vmatmul.msk.f32.vlgmr.msrb.gmra.mxu0 %vm90_vm0, %v1453_v10 }
  0x8d   :  { %v134_v12 = vpop.f32.mrf.mxu1  ;;  %v111_v13 = vpop.f32.mrf.mxu0 }
  0x8e   :  { %v135_v14 = vadd.f32 %v1270_v11, %v134_v12  ;;  %v112_v15 = vadd.f32 %v1270_v11, %v111_v13 }
  0x90   :  { %v138_v16 = vmax.f32 %v135_v14, 0.0  ;;  %v137_v17 = vmax.f32 %v112_v15, 0.0 }
  0x92   :  { %1207 = vmatmul.msk.f32.vlgmr.msra.gmra.mxu3 %vm90_vm0, %v138_v16  ;;  %1206 = vmatmul.msk.f32.vlgmr.msra.gmra.mxu2 %vm90_vm0, %v137_v17 }
  0x95   :  { %v208_v23 = vpop.f32.mrf.mxu0 }
  0x96   :  { %v1472_v24 = vadd.f32 %v1271_v18, %v208_v23 }
 0x115   :  { %v185_v19 = vpop.f32.mrf.mxu3  ;;  %v162_v20 = vpop.f32.mrf.mxu2 }
 0x116   :  { %v1465_v21 = vadd.f32 %v1271_v18, %v185_v19  ;;  %v1467_v22 = vadd.f32 %v1271_v18, %v162_v20 }
 0x118   :  { %374 = vrot.lane.b32.xlu1 %v1465_v21, %s1320_s11  ;;  %241 = vrot.lane.b32.xlu0 %v1465_v21, %s1321_s30 }
 0x119   :  { %348 = vrot.lane.b32.xlu2 %v1467_v22, %s1320_s11 }
 0x120   :  { %212 = vrot.lane.b32.xlu0 %v1467_v22, %s1321_s30  ;;  %346 = vrot.lane.b32.xlu1 %v1472_v24, %s1322_s9 }
 0x173   :  { %v349_v28 = vpop.permute.xlu2 %348 }
 0x18a   :  { %v375_v25 = vpop.permute.xlu1 %374  ;;  %v242_v26 = vpop.permute.xlu0 %241 }
 0x18b   :  { %1211 = vmatpush.xpose.msk.msrb.mxu2 %vm214_vm1, %v242_v26 }
 0x18e   :  { %1212 = vmatmul.msk.f32.vlgmr.msrb.gmra.mxu2 %vm214_vm1, %v1472_v24 }
 0x18f   :  { %1219 = vmatpush.xpose.msk.msra.mxu2 %vm214_vm1, %v375_v25 }
 0x192   :  { %v213_v27 = vpop.permute.xlu0 %212  ;;  %v347_v29 = vpop.permute.xlu1 %346 }
 0x193   :  { %1209 = vmatpush.xpose.msk.msrb.mxu1 %vm214_vm1, %v213_v27  ;;  %517 = vmatpush.msrb.mxu2 %v66_v63 }
 0x196   :  { %1210 = vmatmul.msk.f32.vlgmr.msrb.gmra.mxu1 %vm214_vm1, %v1472_v24  ;;  %1220 = vmatmul.msk.f32.vlgmr.msra.gmra.mxu2 %vm214_vm1, %v347_v29 }
 0x197   :  { %1217 = vmatpush.xpose.msk.msra.mxu1 %vm214_vm1, %v349_v28 }
 0x19b   :  { %494 = vmatpush.msrb.mxu1 %v66_v63 }
 0x19e   :  { %1218 = vmatmul.msk.f32.vlgmr.msra.gmra.mxu1 %vm214_vm1, %v347_v29 }
 0x211   :  { %v262_v30 = vpop.f32.mrf.mxu2 }
 0x212   :  { %v266_v31 = vmul.f32 0.35355338, %v262_v30 }
 0x213   :  { %v237_v32 = vpop.f32.mrf.mxu1 }
 0x214   :  { %v265_v33 = vmul.f32 0.35355338, %v237_v32  ;;  %v271_v34 = vsel %vm267_vm2, %v266_v31, -inf }
 0x215   :  { %272 = vmax.xlane.f32.xlu0 %v271_v34 }
 0x216   :  { %v268_v35 = vsel %vm267_vm2, %v265_v33, -inf }
 0x217   :  { %269 = vmax.xlane.f32.xlu2 %v268_v35 }
 0x219   :  { %v395_v36 = vpop.f32.mrf.mxu2 }
 0x21a   :  { %v399_v37 = vmul.f32 0.35355338, %v395_v36 }
 0x21b   :  { %v371_v38 = vpop.f32.mrf.mxu1 }
 0x21c   :  { %v398_v39 = vmul.f32 0.35355338, %v371_v38  ;;  %v403_v40 = vsel %vm267_vm2, %v399_v37, -inf }
 0x21e   :  { %v400_v41 = vsel %vm267_vm2, %v398_v39, -inf }
 0x21f   :  { %401 = vmax.xlane.f32.xlu1 %v400_v41  ;;  %404 = vmax.xlane.f32.xlu2 %v403_v40 }
 0x229   :  { %290 = vrot.lane.b32.xlu0 %v1467_v22, %s1323_s12 }
 0x288   :  { %v273_v42 = vpop.xlane.xlu0 %272 }
 0x289   :  { %v275_v43 = vsub.f32 %v266_v31, %v273_v42 }
 0x28a   :  { %v270_v44 = vpop.xlane.xlu2 %269 }
 0x28b   :  { %v278_v45 = vmul.f32 1.442695, %v275_v43  ;;  %v274_v46 = vsub.f32 %v265_v33, %v270_v44 }
 0x28d   :  { %1278 = vpow2.f32 %v278_v45  ;;  %v276_v47 = vmul.f32 1.442695, %v274_v46 }
 0x28f   :  { %1280 = vpow2.f32 %v276_v47 }
 0x292   :  { %v402_v48 = vpop.xlane.xlu1 %401  ;;  %v405_v49 = vpop.xlane.xlu2 %404 }
 0x293   :  { %v1279_v50 = vpop.eup %1278  ;;  %v406_v51 = vsub.f32 %v398_v39, %v402_v48  ;;  %v407_v52 = vsub.f32 %v399_v37, %v405_v49 }
 0x294   :  { %v283_v53 = vsel %vm267_vm2, %v1279_v50, 0.0 }
 0x295   :  { %v1281_v54 = vpop.eup %1280  ;;  %v408_v55 = vmul.f32 1.442695, %v406_v51  ;;  %v410_v56 = vmul.f32 1.442695, %v407_v52  ;;  %284 = vadd.xlane.f32.xlu0 %v283_v53 }
 0x296   :  { %v280_v57 = vsel %vm267_vm2, %v1281_v54, 0.0 }
 0x297   :  { %1282 = vpow2.f32 %v408_v55  ;;  %281 = vadd.xlane.f32.xlu2 %v280_v57  ;;  %v67_v55 = vld [vmem:[%s1654_s8 + $0x10] sm:$0xff] }
 0x298   :  { %1284 = vpow2.f32 %v410_v56 }
 0x29b   :  { %v291_v58 = vpop.permute.xlu0 %290 }
 0x29c   :  { %1213 = vmatpush.msk.msrb.mxu3 %vm296_vm3, %v291_v58 }
 0x29d   :  { %v1283_v59 = vpop.eup %1282 }
 0x29e   :  { %v1285_v60 = vpop.eup %1284  ;;  %v412_v61 = vsel %vm267_vm2, %v1283_v59, 0.0 }
 0x29f   :  { %413 = vadd.xlane.f32.xlu1 %v412_v61  ;;  %v415_v62 = vsel %vm267_vm2, %v1285_v60, 0.0 }
 0x2a0   :  { %416 = vadd.xlane.f32.xlu2 %v415_v62 }
 0x2a9   :  { %449 = vrot.lane.b32.xlu0 %v1465_v21, %s1324_s17 }
 0x2b1   :  { %568 = vrot.lane.b32.xlu0 %v1472_v24, %s1325_s18 }
 0x2b8   :  { %422 = vrot.lane.b32.xlu2 %v1467_v22, %s1324_s17  ;;  %319 = vrot.lane.b32.xlu1 %v1465_v21, %s1323_s12 }
 0x2c0   :  { %570 = vrot.lane.b32.xlu2 %v1467_v22, %s1326_s19  ;;  %596 = vrot.lane.b32.xlu1 %v1465_v21, %s1326_s19 }
 0x2c8   :  { %671 = vrot.lane.b32.xlu2 %v1465_v21, %s1327_s20 }
 0x308   :  { %v285_v9 = vpop.xlane.xlu0 %284 }
 0x30a   :  { %v282_v0 = vpop.xlane.xlu2 %281 }
 0x30b   :  { %1286 = vrcp.f32 %v282_v0 }
 0x311   :  { %v1287_v1 = vpop.eup %1286 }
 0x312   :  { %v414_v2 = vpop.xlane.xlu1 %413  ;;  %v288_v3 = vmul.f32 %v1287_v1, %v1281_v54 }
 0x313   :  { %1288 = vrcp.f32 %v414_v2  ;;  %v417_v4 = vpop.xlane.xlu2 %416 }
 0x314   :  { %1214 = vmatmul.msk.f32.vlgmr.msrb.gmra.mxu3 %vm292_vm4, %v288_v3  ;;  %1290 = vrcp.f32 %v285_v9 }
 0x315   :  { %1292 = vrcp.f32 %v417_v4 }
 0x319   :  { %v1289_v5 = vpop.eup %1288 }
 0x31a   :  { %v420_v6 = vmul.f32 %v1289_v5, %v1283_v59  ;;  %v1291_v12 = vpop.eup %1290 }
 0x31b   :  { %v423_v7 = vpop.permute.xlu2 %422  ;;  %v289_v13 = vmul.f32 %v1291_v12, %v1279_v50  ;;  %v450_v15 = vpop.permute.xlu0 %449 }
 0x31c   :  { %1221 = vmatpush.msk.msra.mxu3 %vm296_vm3, %v423_v7  ;;  %v1293_v16 = vpop.eup %1292 }
 0x31d   :  { %1222 = vmatmul.msk.f32.vlgmr.msra.gmra.mxu3 %vm292_vm4, %v420_v6  ;;  %v421_v17 = vmul.f32 %v1293_v16, %v1285_v60 }
 0x31e   :  { %540 = vmatpush.msrb.mxu3 %v65_v8 }
 0x323   :  { %v571_v11 = vpop.permute.xlu2 %570  ;;  %v569_v25 = vpop.permute.xlu0 %568 }
 0x324   :  { %1229 = vmatpush.xpose.msk.msra.mxu1 %vm214_vm1, %v571_v11 }
 0x32a   :  { %v320_v14 = vpop.permute.xlu1 %319 }
 0x32b   :  { %1215 = vmatpush.msk.msra.mxu0 %vm296_vm3, %v320_v14  ;;  %v672_v19 = vpop.permute.xlu2 %671 }
 0x32c   :  { %1216 = vmatmul.msk.f32.vlgmr.msra.gmra.mxu0 %vm292_vm4, %v289_v13 }
 0x32d   :  { %1223 = vmatpush.msk.msrb.mxu0 %vm296_vm3, %v450_v15 }
 0x32f   :  { %563 = vmatpush.msra.mxu0 %v65_v8 }
 0x332   :  { %v597_v18 = vpop.permute.xlu1 %596 }
 0x333   :  { %1231 = vmatpush.xpose.msk.msra.mxu2 %vm214_vm1, %v597_v18 }
 0x334   :  { %1224 = vmatmul.msk.f32.vlgmr.msrb.gmra.mxu0 %vm292_vm4, %v421_v17 }
 0x335   :  { %1235 = vmatpush.msk.msrb.mxu0 %vm296_vm3, %v672_v19 }
 0x397   :  { %v316_v20 = vpop.f32.mrf.mxu3 }
 0x398   :  { %1227 = vmatmul.msk.f32.vlgmr.msrb.gmra.mxu3 %vm214_vm1, %v316_v20 }
 0x3a0   :  { %v446_v23 = vpop.f32.mrf.mxu3 }
 0x3a1   :  { %1225 = vmatmul.msk.f32.vlgmr.msrb.gmra.mxu1 %vm214_vm1, %v446_v23 }
 0x3a2   :  { %716 = vmatpush.msrb.mxu1 %v67_v55 }
 0x3a9   :  { %1230 = vmatmul.msk.f32.vlgmr.msra.gmra.mxu1 %vm214_vm1, %v569_v25  ;;  %v343_v26 = vpop.f32.mrf.mxu0 }
 0x3aa   :  { %1228 = vmatmul.msk.f32.vlgmr.msra.gmra.mxu0 %vm214_vm1, %v343_v26 }
 0x3b1   :  { %v473_v27 = vpop.f32.mrf.mxu0 }
 0x3b2   :  { %1226 = vmatmul.msk.f32.vlgmr.msrb.gmra.mxu2 %vm214_vm1, %v473_v27 }
 0x3b3   :  { %739 = vmatpush.msrb.mxu2 %v67_v55 }
 0x3ba   :  { %1232 = vmatmul.msk.f32.vlgmr.msra.gmra.mxu2 %vm214_vm1, %v569_v25 }
 0x41b   :  { %v1551_v56 = vpop.f32.mrf.mxu3 }
 0x41e   :  { %v1528_v28 = vpop.f32.mrf.mxu1 }
 0x426   :  { %v593_v29 = vpop.f32.mrf.mxu1 }
 0x427   :  { %v620_v30 = vmul.f32 0.35355338, %v593_v29  ;;  %v565_v58 = vpop.f32.mrf.mxu0 }
 0x429   :  { %v622_v31 = vsel %vm267_vm2, %v620_v30, -inf }
 0x42a   :  { %623 = vmax.xlane.f32.xlu1 %v622_v31 }
 0x435   :  { %v1531_v32 = vpop.f32.mrf.mxu2 }
 0x436   :  { %v566_v27 = vadd.f32 %v565_v58, %v1531_v32  ;;  %v62_v58 = vld [vmem:[%s1659_s6 + $0x10] sm:$0xff] }
 0x43d   :  { %v617_v33 = vpop.f32.mrf.mxu2 }
 0x43e   :  { %v621_v34 = vmul.f32 0.35355338, %v617_v33 }
 0x440   :  { %v625_v35 = vsel %vm267_vm2, %v621_v34, -inf }
 0x441   :  { %626 = vmax.xlane.f32.xlu0 %v625_v35 }
 0x455   :  { %644 = vrot.lane.b32.xlu0 %v1467_v22, %s1327_s20 }
 0x45d   :  { %774 = vrot.lane.b32.xlu0 %v1465_v21, %s1328_s0 }
 0x49d   :  { %v624_v36 = vpop.xlane.xlu1 %623 }
 0x49e   :  { %v628_v37 = vsub.f32 %v620_v30, %v624_v36  ;;  %v1272_v30 = vld [vmem:[%s1655_s7] ss:$0 sm:$0xff] }
 0x4a0   :  { %v630_v38 = vmul.f32 1.442695, %v628_v37  ;;  %v543_v37 = vadd.f32 %v1551_v56, %v1528_v28 }
 0x4a2   :  { %1294 = vpow2.f32 %v630_v38 }
 0x4a8   :  { %v1295_v39 = vpop.eup %1294 }
 0x4a9   :  { %v634_v40 = vsel %vm267_vm2, %v1295_v39, 0.0 }
 0x4aa   :  { %635 = vadd.xlane.f32.xlu2 %v634_v40 }
 0x4b4   :  { %v627_v41 = vpop.xlane.xlu0 %626 }
 0x4b5   :  { %v629_v42 = vsub.f32 %v621_v34, %v627_v41 }
 0x4b7   :  { %v632_v43 = vmul.f32 1.442695, %v629_v42 }
 0x4b9   :  { %1296 = vpow2.f32 %v632_v43  ;;  %v1331_v43 = vmov 32.0  }
 0x4bf   :  { %v1297_v44 = vpop.eup %1296 }
 0x4c0   :  { %v637_v45 = vsel %vm267_vm2, %v1297_v44, 0.0 }
 0x4c1   :  { %638 = vadd.xlane.f32.xlu1 %v637_v45 }
 0x4c2   :  { %746 = vrot.lane.b32.xlu2 %v1472_v24, %s1329_s25 }
 0x4c7   :  { %v645_v46 = vpop.permute.xlu0 %644 }
 0x4c8   :  { %1233 = vmatpush.msk.msra.mxu3 %vm296_vm3, %v645_v46 }
 0x4cf   :  { %v775_v47 = vpop.permute.xlu0 %774 }
 0x4d0   :  { %1241 = vmatpush.xpose.msk.msra.mxu0 %vm214_vm1, %v775_v47 }
 0x4da   :  { %748 = vrot.lane.b32.xlu1 %v1467_v22, %s1328_s0 }
 0x51d   :  { %v636_v48 = vpop.xlane.xlu2 %635 }
 0x51e   :  { %1298 = vrcp.f32 %v636_v48 }
 0x524   :  { %v1299_v49 = vpop.eup %1298 }
 0x525   :  { %v642_v50 = vmul.f32 %v1299_v49, %v1295_v39  ;;  %v747_v24 = vpop.permute.xlu2 %746 }
 0x527   :  { %1234 = vmatmul.msk.f32.vlgmr.msra.gmra.mxu3 %vm292_vm4, %v642_v50 }
 0x534   :  { %v639_v51 = vpop.xlane.xlu1 %638 }
 0x535   :  { %1300 = vrcp.f32 %v639_v51 }
 0x53b   :  { %v1301_v52 = vpop.eup %1300 }
 0x53c   :  { %v643_v53 = vmul.f32 %v1301_v52, %v1297_v44 }
 0x53e   :  { %1236 = vmatmul.msk.f32.vlgmr.msrb.gmra.mxu0 %vm292_vm4, %v643_v53 }
 0x546   :  { %1242 = vmatmul.msk.f32.vlgmr.msra.gmra.mxu0 %vm214_vm1, %v747_v24 }
 0x54c   :  { %v749_v54 = vpop.permute.xlu1 %748 }
 0x54d   :  { %1239 = vmatpush.xpose.msk.msrb.mxu3 %vm214_vm1, %v749_v54 }
 0x550   :  { %1240 = vmatmul.msk.f32.vlgmr.msrb.gmra.mxu3 %vm214_vm1, %v747_v24 }
 0x5aa   :  { %v668_v57 = vpop.f32.mrf.mxu3 }
 0x5ab   :  { %1237 = vmatmul.msk.f32.vlgmr.msrb.gmra.mxu1 %vm214_vm1, %v668_v57  ;;  %v63_v57 = vld [vmem:[%s1659_s6 + $0x18] sm:$0xff] }
 0x5bb   :  { %v695_v59 = vpop.f32.mrf.mxu0 }
 0x5bc   :  { %1238 = vmatmul.msk.f32.vlgmr.msrb.gmra.mxu2 %vm214_vm1, %v695_v59  ;;  %v61_v59 = vld [vmem:[%s1659_s6 + $0x8] sm:$0xff] }
 0x5c3   :  { %v795_v60 = vpop.f32.mrf.mxu0 }
 0x5c4   :  { %v799_v61 = vmul.f32 0.35355338, %v795_v60  ;;  %v60_v60 = vld [vmem:[%s1659_s6] sm:$0xff] }
 0x5c6   :  { %v803_v62 = vsel %vm267_vm2, %v799_v61, -inf }
 0x5c7   :  { %804 = vmax.xlane.f32.xlu0 %v803_v62 }
 0x5d3   :  { %v771_v63 = vpop.f32.mrf.mxu3 }
 0x5d4   :  { %v798_v0 = vmul.f32 0.35355338, %v771_v63 }
 0x5d6   :  { %v800_v1 = vsel %vm267_vm2, %v798_v0, -inf }
 0x5d7   :  { %801 = vmax.xlane.f32.xlu1 %v800_v1 }
 0x5f0   :  { %849 = vrot.lane.b32.xlu1 %v1465_v21, %s1330_s28 }
 0x628   :  { %v718_v25 = vpop.f32.mrf.mxu1 }
 0x629   :  { %v744_v38 = vadd.f32 %v718_v25, %v543_v37 }
 0x63a   :  { %v805_v2 = vpop.xlane.xlu0 %804 }
 0x63b   :  { %v807_v3 = vsub.f32 %v799_v61, %v805_v2 }
 0x63d   :  { %v810_v4 = vmul.f32 1.442695, %v807_v3 }
 0x63f   :  { %1302 = vpow2.f32 %v810_v4  ;;  %v741_v20 = vpop.f32.mrf.mxu2 }
 0x640   :  { %v745_v29 = vadd.f32 %v741_v20, %v566_v27  ;;  %v1275_v27 = vld [vmem:[%s1658_s5] ss:$0 sm:$0xff] }
 0x645   :  { %v1303_v5 = vpop.eup %1302 }
 0x646   :  { %v815_v6 = vsel %vm267_vm2, %v1303_v5, 0.0 }
 0x647   :  { %816 = vadd.xlane.f32.xlu2 %v815_v6 }
 0x64a   :  { %v802_v7 = vpop.xlane.xlu1 %801 }
 0x64b   :  { %v806_v8 = vsub.f32 %v798_v0, %v802_v7 }
 0x64d   :  { %v808_v9 = vmul.f32 1.442695, %v806_v8 }
 0x64f   :  { %1304 = vpow2.f32 %v808_v9  ;;  %v1273_v9 = vld [vmem:[%s1656_s2] ss:$0 sm:$0xff] }
 0x655   :  { %v1305_v11 = vpop.eup %1304 }
 0x656   :  { %v812_v12 = vsel %vm267_vm2, %v1305_v11, 0.0  ;;  %vm1104_vm2 = vcmask 1043456  }
 0x657   :  { %813 = vadd.xlane.f32.xlu0 %v812_v12 }
 0x65f   :  { %822 = vrot.lane.b32.xlu2 %v1467_v22, %s1330_s28  ;;  %v68_v22 = vld [vmem:[%s1654_s8 + $0x18] sm:$0xff] }
 0x660   :  { %917 = vmatpush.msrb.mxu0 %v68_v22  ;;  %894 = vmatpush.msra.mxu3 %v68_v22 }
 0x662   :  { %v850_v13 = vpop.permute.xlu1 %849 }
 0x663   :  { %1245 = vmatpush.msk.msra.mxu2 %vm296_vm3, %v850_v13  ;;  %v1274_v13 = vld [vmem:[%s1657_s1] ss:$0 sm:$0xff] }
 0x665   :  { %1034 = vmatpush.msrb.mxu2 %v63_v57 }
 0x667   :  { %1035 = vmatpush.msrb.mxu2 %v62_v58 }
 0x669   :  { %1036 = vmatpush.msrb.mxu2 %v61_v59 }
 0x66b   :  { %1037 = vmatpush.msrb.mxu2 %v60_v60 }
 0x6ba   :  { %v817_v21 = vpop.xlane.xlu2 %816 }
 0x6bb   :  { %1306 = vrcp.f32 %v817_v21 }
 0x6c1   :  { %v1307_v14 = vpop.eup %1306 }
 0x6c2   :  { %v821_v15 = vmul.f32 %v1307_v14, %v1303_v5  ;;  %v823_v16 = vpop.permute.xlu2 %822 }
 0x6c3   :  { %1243 = vmatpush.msk.msra.mxu1 %vm296_vm3, %v823_v16  ;;  %vm1100_vm3 = vcmask 31744  }
 0x6c4   :  { %1246 = vmatmul.msk.f32.vlgmr.msra.gmra.mxu2 %vm292_vm4, %v821_v15 }
 0x6c5   :  { %1011 = vmatpush.msrb.mxu1 %v63_v57 }
 0x6c7   :  { %1012 = vmatpush.msrb.mxu1 %v62_v58 }
 0x6c9   :  { %1013 = vmatpush.msrb.mxu1 %v61_v59 }
 0x6ca   :  { %v814_v17 = vpop.xlane.xlu0 %813 }
 0x6cb   :  { %1308 = vrcp.f32 %v814_v17  ;;  %1014 = vmatpush.msrb.mxu1 %v60_v60 }
 0x6cc   :  { %1310 = vrcp.f32 %v1331_v43 }
 0x6d1   :  { %v1309_v18 = vpop.eup %1308 }
 0x6d2   :  { %v820_v19 = vmul.f32 %v1309_v18, %v1305_v11  ;;  %v1311_v44 = vpop.eup %1310 }
 0x6d3   :  { %v939_v45 = vmul.f32 32.0, %v1311_v44  ;;  %vm943_vm6 = vweird.f32 %v1311_v44 }
 0x6d4   :  { %1244 = vmatmul.msk.f32.vlgmr.msra.gmra.mxu1 %vm292_vm4, %v820_v19 }
 0x6d5   :  { %v940_v46 = vsub.f32 1.0, %v939_v45 }
 0x6d7   :  { %v941_v47 = vmul.f32 %v1311_v44, %v940_v46 }
 0x6d9   :  { %v942_v48 = vadd.f32 %v1311_v44, %v941_v47 }
 0x6db   :  { %v1580_v49 = vsel %vm943_vm6, %v1311_v44, %v942_v48  ;;  %vm1197_vm6 = vcmask 0  }
 0x747   :  { %v873_v23 = vpop.f32.mrf.mxu2 }
 0x748   :  { %1248 = vmatmul.msk.f32.vlgmr.msrb.gmra.mxu0 %vm214_vm1, %v873_v23 }
 0x751   :  { %v846_v26 = vpop.f32.mrf.mxu1 }
 0x752   :  { %1247 = vmatmul.msk.f32.vlgmr.msra.gmra.mxu3 %vm214_vm1, %v846_v26 }
 0x7c5   :  { %v919_v31 = vpop.f32.mrf.mxu0 }
 0x7c6   :  { %v923_v33 = vadd.f32 %v919_v31, %v745_v29 }
 0x7c8   :  { %v928_v34 = vadd.f32 %v1272_v30, %v923_v33 }
 0x7ca   :  { %v930_v35 = vadd.f32 %v928_v34, %v1453_v10 }
 0x7cc   :  { %v935_v36 = vsel %vm931_vm5, %v930_v35, 0.0 }
 0x7cd   :  { %936 = vadd.xlane.f32.xlu0 %v935_v36 }
 0x7d5   :  { %v896_v39 = vpop.f32.mrf.mxu3 }
 0x7d6   :  { %v922_v32 = vadd.f32 %v896_v39, %v744_v38 }
 0x7d8   :  { %v927_v40 = vadd.f32 %v1272_v30, %v922_v32 }
 0x7da   :  { %v929_v41 = vadd.f32 %v927_v40, %v1453_v10 }
 0x7dc   :  { %v932_v42 = vsel %vm931_vm5, %v929_v41, 0.0 }
 0x7dd   :  { %933 = vadd.xlane.f32.xlu0 %v932_v42 }
 0x840   :  { %v937_v28 = vpop.xlane.xlu0 %936 }
 0x841   :  { %v946_v50 = vmul.f32 %v1580_v49, %v937_v28 }
 0x843   :  { %v948_v51 = vsub.f32 %v930_v35, %v946_v50 }
 0x845   :  { %v950_v52 = vmul.f32 %v948_v51, %v948_v51 }
 0x847   :  { %v954_v10 = vsel %vm931_vm5, %v950_v52, 0.0  ;;  %v84_v52 = vld [vmem:[%s1662_s15 + $0x18] sm:$0xff] }
 0x848   :  { %955 = vadd.xlane.f32.xlu0 %v954_v10  ;;  %v83_v10 = vld [vmem:[%s1662_s15 + $0x10] sm:$0xff]  ;;  %1189 = vmatpush.msra.mxu2 %v84_v52 }
 0x849   :  { %1166 = vmatpush.msra.mxu1 %v84_v52 }
 0x84a   :  { %1190 = vmatpush.msra.mxu2 %v83_v10 }
 0x84b   :  { %1167 = vmatpush.msra.mxu1 %v83_v10 }
 0x850   :  { %v934_v53 = vpop.xlane.xlu0 %933 }
 0x851   :  { %v945_v24 = vmul.f32 %v1580_v49, %v934_v53 }
 0x853   :  { %v947_v54 = vsub.f32 %v929_v41, %v945_v24  ;;  %v82_v24 = vld [vmem:[%s1662_s15 + $0x8] sm:$0xff] }
 0x854   :  { %1191 = vmatpush.msra.mxu2 %v82_v24  ;;  %1168 = vmatpush.msra.mxu1 %v82_v24 }
 0x855   :  { %v949_v55 = vmul.f32 %v947_v54, %v947_v54 }
 0x857   :  { %v951_v56 = vsel %vm931_vm5, %v949_v55, 0.0  ;;  %v81_v55 = vld [vmem:[%s1662_s15] sm:$0xff] }
 0x858   :  { %952 = vadd.xlane.f32.xlu1 %v951_v56  ;;  %1192 = vmatpush.msra.mxu2 %v81_v55 }
 0x859   :  { %1169 = vmatpush.msra.mxu1 %v81_v55 }
 0x8bb   :  { %v956_v61 = vpop.xlane.xlu0 %955 }
 0x8bc   :  { %v958_v62 = vmul.f32 %v956_v61, %v1580_v49 }
 0x8be   :  { %v960_v63 = vadd.f32 1e-05, %v958_v62 }
 0x8c0   :  { %1312 = vrsqrt.f32 %v960_v63  ;;  %vm977_vm8 = vweird.f32 %v960_v63 }
 0x8c6   :  { %v1313_v0 = vpop.eup %1312 }
 0x8c7   :  { %v972_v1 = vmul.f32 %v1313_v0, %v960_v63  ;;  %vm978_vm7 = vweird.f32 %v1313_v0 }
 0x8c8   :  { %vm979_vm9 = vmor %vm977_vm8, %vm978_vm7 }
 0x8c9   :  { %v973_v2 = vmul.f32 %v1313_v0, %v972_v1 }
 0x8cb   :  { %v974_v3 = vmul.f32 0.5, %v973_v2  ;;  %v953_v4 = vpop.xlane.xlu1 %952 }
 0x8cc   :  { %v957_v5 = vmul.f32 %v953_v4, %v1580_v49  ;;  %v1277_v4 = vld [vmem:[%s1661_s3] ss:$0 sm:$0xff] }
 0x8cd   :  { %v975_v6 = vsub.f32 1.5, %v974_v3 }
 0x8ce   :  { %v959_v7 = vadd.f32 1e-05, %v957_v5 }
 0x8cf   :  { %v976_v8 = vmul.f32 %v1313_v0, %v975_v6 }
 0x8d0   :  { %1314 = vrsqrt.f32 %v959_v7  ;;  %vm967_vm11 = vweird.f32 %v959_v7 }
 0x8d1   :  { %v980_v11 = vsel %vm979_vm9, %v1313_v0, %v976_v8  ;;  %v1276_v0 = vld [vmem:[%s1660_s4] ss:$0 sm:$0xff] }
 0x8d2   :  { %v982_v12 = vmul.f32 %v980_v11, %v948_v51 }
 0x8d4   :  { %v987_v21 = vmul.f32 %v1273_v9, %v982_v12  ;;  %v1332_v12 = vmov 0.25  }
 0x8d6   :  { %v1315_v14 = vpop.eup %1314  ;;  %v992_v15 = vadd.f32 %v1274_v13, %v987_v21 }
 0x8d7   :  { %v962_v16 = vmul.f32 %v1315_v14, %v959_v7  ;;  %vm968_vm10 = vweird.f32 %v1315_v14 }
 0x8d8   :  { %1250 = vmatmul.msk.f32.vlgmr.msrb.gmra.mxu2 %vm90_vm0, %v992_v15  ;;  %vm969_vm12 = vmor %vm967_vm11, %vm968_vm10 }
 0x8d9   :  { %v963_v17 = vmul.f32 %v1315_v14, %v962_v16 }
 0x8db   :  { %v964_v18 = vmul.f32 0.5, %v963_v17 }
 0x8dd   :  { %v965_v19 = vsub.f32 1.5, %v964_v18 }
 0x8df   :  { %v966_v22 = vmul.f32 %v1315_v14, %v965_v19 }
 0x8e1   :  { %v970_v20 = vsel %vm969_vm12, %v1315_v14, %v966_v22 }
 0x8e2   :  { %v981_v23 = vmul.f32 %v970_v20, %v947_v54 }
 0x8e4   :  { %v986_v25 = vmul.f32 %v1273_v9, %v981_v23 }
 0x8e6   :  { %v991_v26 = vadd.f32 %v1274_v13, %v986_v25 }
 0x8e8   :  { %1249 = vmatmul.msk.f32.vlgmr.msrb.gmra.mxu1 %vm90_vm0, %v991_v26 }
 0x95b   :  { %v1039_v29 = vpop.f32.mrf.mxu2 }
 0x95c   :  { %v1040_v30 = vadd.f32 %v1275_v27, %v1039_v29 }
 0x95e   :  { %v1043_v31 = vmax.f32 %v1040_v30, 0.0 }
 0x960   :  { %v1045_v33 = vadd.f32 %v1043_v31, %v992_v15  ;;  %v21_v15 = vstv %s1663_s14 }
 0x961   :  { %22 = vst [vmem:[#allocation2] sm:$0x1] %v21_v15 }
 0x962   :  { %v1049_v34 = vsel %vm931_vm5, %v1045_v33, 0.0 }
 0x963   :  { %1050 = vadd.xlane.f32.xlu0 %v1049_v34 }
 0x965   :  { %v1016_v35 = vpop.f32.mrf.mxu1 }
 0x966   :  { %v1017_v36 = vadd.f32 %v1275_v27, %v1016_v35 }
 0x968   :  { %v1042_v37 = vmax.f32 %v1017_v36, 0.0  ;;  %v80_v18 = vld [vmem:[#allocation2] sm:$0x1] }
 0x96a   :  { %v1044_v38 = vadd.f32 %v1042_v37, %v991_v26 }
 0x96c   :  { %v1046_v39 = vsel %vm931_vm5, %v1044_v38, 0.0 }
 0x96d   :  { %1047 = vadd.xlane.f32.xlu2 %v1046_v39 }
 0x9d6   :  { %v1051_v32 = vpop.xlane.xlu0 %1050 }
 0x9d7   :  { %v1053_v42 = vmul.f32 %v1051_v32, %v1580_v49 }
 0x9d9   :  { %v1055_v45 = vsub.f32 %v1045_v33, %v1053_v42 }
 0x9db   :  { %v1057_v47 = vmul.f32 %v1055_v45, %v1055_v45 }
 0x9dd   :  { %v1061_v48 = vsel %vm931_vm5, %v1057_v47, 0.0 }
 0x9e0   :  { %v1048_v40 = vpop.xlane.xlu2 %1047 }
 0x9e1   :  { %v1052_v41 = vmul.f32 %v1048_v40, %v1580_v49 }
 0x9e3   :  { %v1054_v43 = vsub.f32 %v1044_v38, %v1052_v41 }
 0x9e5   :  { %v1056_v44 = vmul.f32 %v1054_v43, %v1054_v43 }
 0x9e7   :  { %v1058_v46 = vsel %vm931_vm5, %v1056_v44, 0.0 }
 0x9e8   :  { %1059 = vadd.xlane.f32.xlu0 %v1058_v46 }
 0x9f0   :  { %1062 = vadd.xlane.f32.xlu0 %v1061_v48 }
 0xa5b   :  { %v1060_v28 = vpop.xlane.xlu0 %1059 }
 0xa5c   :  { %v1064_v50 = vmul.f32 %v1060_v28, %v1580_v49 }
 0xa5e   :  { %v1066_v51 = vadd.f32 1e-05, %v1064_v50 }
 0xa60   :  { %1316 = vrsqrt.f32 %v1066_v51  ;;  %vm1074_vm14 = vweird.f32 %v1066_v51 }
 0xa63   :  { %v1063_v53 = vpop.xlane.xlu0 %1062 }
 0xa64   :  { %v1065_v54 = vmul.f32 %v1063_v53, %v1580_v49 }
 0xa66   :  { %v1317_v56 = vpop.eup %1316  ;;  %v1067_v57 = vadd.f32 1e-05, %v1065_v54 }
 0xa67   :  { %v1069_v58 = vmul.f32 %v1317_v56, %v1066_v51  ;;  %vm1075_vm13 = vweird.f32 %v1317_v56 }
 0xa68   :  { %1318 = vrsqrt.f32 %v1067_v57  ;;  %vm1076_vm15 = vmor %vm1074_vm14, %vm1075_vm13  ;;  %vm1084_vm4 = vweird.f32 %v1067_v57 }
 0xa69   :  { %v1070_v59 = vmul.f32 %v1317_v56, %v1069_v58 }
 0xa6b   :  { %v1071_v60 = vmul.f32 0.5, %v1070_v59 }
 0xa6d   :  { %v1072_v61 = vsub.f32 1.5, %v1071_v60 }
 0xa6e   :  { %v1319_v62 = vpop.eup %1318 }
 0xa6f   :  { %v1073_v49 = vmul.f32 %v1317_v56, %v1072_v61  ;;  %v1079_v63 = vmul.f32 %v1319_v62, %v1067_v57  ;;  %vm1085_vm1 = vweird.f32 %v1319_v62 }
 0xa70   :  { %vm1086_vm5 = vmor %vm1084_vm4, %vm1085_vm1 }
 0xa71   :  { %v1077_v1 = vsel %vm1076_vm15, %v1317_v56, %v1073_v49  ;;  %v1080_v2 = vmul.f32 %v1319_v62, %v1079_v63 }
 0xa72   :  { %v1088_v3 = vmul.f32 %v1077_v1, %v1054_v43 }
 0xa73   :  { %v1081_v5 = vmul.f32 0.5, %v1080_v2 }
 0xa74   :  { %v1093_v6 = vmul.f32 %v1276_v0, %v1088_v3 }
 0xa75   :  { %v1082_v7 = vsub.f32 1.5, %v1081_v5 }
 0xa76   :  { %v1098_v8 = vadd.f32 %v1277_v4, %v1093_v6 }
 0xa77   :  { %v1083_v9 = vmul.f32 %v1319_v62, %v1082_v7 }
 0xa78   :  { %1251 = vmatpush.msk.msrb.mxu3 %vm1104_vm2, %v1098_v8 }
 0xa79   :  { %v1087_v11 = vsel %vm1086_vm5, %v1319_v62, %v1083_v9  ;;  %1252 = vmatmul.msk.f32.vlgmr.msrb.gmra.mxu3 %vm1100_vm3, %v1332_v12 }
 0xa7a   :  { %v1089_v13 = vmul.f32 %v1087_v11, %v1055_v45 }
 0xa7c   :  { %v1094_v21 = vmul.f32 %v1276_v0, %v1089_v13 }
 0xa7e   :  { %v1099_v14 = vadd.f32 %v1277_v4, %v1094_v21 }
 0xa80   :  { %1253 = vmatpush.msk.msra.mxu0 %vm1104_vm2, %v1099_v14 }
 0xa81   :  { %1254 = vmatmul.msk.f32.vlgmr.msra.gmra.mxu0 %vm1100_vm3, %v1332_v12 }
 0xafc   :  { %v1125_v16 = vpop.f32.mrf.mxu3 }
 0xafd   :  { %1255 = vmatmul.msk.f32.vlgmr.msra.gmra.mxu1 %vm90_vm0, %v1125_v16 }
 0xafe   :  { %v1148_v17 = vpop.f32.mrf.mxu0 }
 0xaff   :  { %1256 = vmatmul.msk.f32.vlgmr.msra.gmra.mxu2 %vm90_vm0, %v1148_v17 }
 0xb7a   :  { %v1171_v19 = vpop.f32.mrf.mxu1 }
 0xb7b   :  { %v1172_v22 = vadd.f32 %v1171_v19, %v80_v18 }
 0xb7d   :  { %1198 = vst.msk [vmem:[%s1664_s16] sm:$0x1] %vm1197_vm6, %v1172_v22 }
 0xb82   :  { %v1194_v20 = vpop.f32.mrf.mxu2 }
 0xb83   :  { %v1195_v23 = vadd.f32 %v1194_v20, %v80_v18 }
 0xb85   :  { %1199 = vst.msk [vmem:[%s1664_s16 + $0x1] sm:$0x1] %vm1197_vm6, %v1195_v23 }

// kernel: critic_forward.2
= control target key start
LH: loop header
LB: loop body
LE: loop exit
PB: predicated region body
PF: predicated region fallthrough
CT: control target
= control target key end

     0   :  { %s8466_s6 = smov 1   ;;  %s8467_s10 = smov 2   ;;  %s10203_s0 = inlined_call_operand.smem [shape: u32[35], index: -1, kind: input, shape index: {}] }
   0x1   :  { %s8548_s5 = sld [smem:[%s10203_s0]]   ;;  %s8468_s14 = smov 3  }
   0x2   :  { %s8553_s9 = sld [smem:[%s10203_s0 + %s8466_s6]]   ;;  %s8469_s18 = smov 4  }
   0x3   :  { %s8558_s13 = sld [smem:[%s10203_s0 + %s8467_s10]]   ;;  %s8470_s22 = smov 5  }
   0x4   :  { %s8563_s17 = sld [smem:[%s10203_s0 + %s8468_s14]]   ;;  %s8471_s26 = smov 6  }
   0x5   :  { %s8568_s21 = sld [smem:[%s10203_s0 + %s8469_s18]]   ;;  %s8472_s30 = smov 7  }
   0x6   :  { %s8573_s25 = sld [smem:[%s10203_s0 + %s8470_s22]]   ;;  %s8473_s4 = smov 8  }
   0x7   :  { %10215 = sst [smem:[#allocation52_spill]] %s8548_s5  ;;  %s8474_s10 = smov 9  }
   0x8   :  { %10216 = sst [smem:[#allocation53_spill]] %s8553_s9  ;;  %s8475_s15 = smov 10  }
   0x9   :  { %10217 = sst [smem:[#allocation54_spill]] %s8558_s13  ;;  %s8476_s20 = smov 11  }
   0xa   :  { %10218 = sst [smem:[#allocation55_spill]] %s8563_s17  ;;  %s8478_s1 = smov 13  }
   0xb   :  { %10219 = sst [smem:[#allocation56_spill]] %s8568_s21  ;;  %s8479_s7 = smov 14  }
   0xc   :  { %10220 = sst [smem:[#allocation57_spill]] %s8573_s25  ;;  %s8481_s22 = smov 16  }
   0xd   :  { %s8578_s29 = sld [smem:[%s10203_s0 + %s8471_s26]]   ;;  %s8477_s26 = smov 12  }
   0xe   :  { %s8583_s3 = sld [smem:[%s10203_s0 + %s8472_s30]]   ;;  %s8482_s28 = smov 17  }
   0xf   :  { %s8588_s8 = sld [smem:[%s10203_s0 + %s8473_s4]]  }
  0x10   :  { %s8593_s14 = sld [smem:[%s10203_s0 + %s8474_s10]]  }
  0x11   :  { %s8598_s19 = sld [smem:[%s10203_s0 + %s8475_s15]]   ;;  %s8480_s15 = smov 15  }
  0x12   :  { %s8603_s24 = sld [smem:[%s10203_s0 + %s8476_s20]]  }
  0x13   :  { %10221 = sst [smem:[#allocation58_spill]] %s8578_s29 }
  0x14   :  { %10222 = sst [smem:[#allocation59_spill]] %s8583_s3 }
  0x15   :  { %10223 = sst [smem:[#allocation60_spill]] %s8588_s8 }
  0x16   :  { %s8608_s30 = sld [smem:[%s10203_s0 + %s8477_s26]]  }
  0x17   :  { %s8613_s6 = sld [smem:[%s10203_s0 + %s8478_s1]]  }
  0x18   :  { %s8618_s12 = sld [smem:[%s10203_s0 + %s8479_s7]]   ;;  %s8483_s7 = smov 18  }
  0x19   :  { %s8623_s20 = sld [smem:[%s10203_s0 + %s8480_s15]]   ;;  %s8484_s15 = smov 19  }
  0x1a   :  { %s8628_s27 = sld [smem:[%s10203_s0 + %s8481_s22]]   ;;  %s8485_s22 = smov 20  }
  0x1b   :  { %s8633_s4 = sld [smem:[%s10203_s0 + %s8482_s28]]   ;;  %s8486_s28 = smov 21  }
  0x1c   :  { %s8638_s17 = sld [smem:[%s10203_s0 + %s8483_s7]]   ;;  %s8487_s7 = smov 22  }
  0x1d   :  { %s8643_s3 = sld [smem:[%s10203_s0 + %s8484_s15]]   ;;  %s8488_s15 = smov 23  }
  0x1e   :  { %s8653_s8 = sld [smem:[%s10203_s0 + %s8486_s28]]   ;;  %s8490_s28 = smov 25  }
  0x1f   :  { %s8658_s21 = sld [smem:[%s10203_s0 + %s8487_s7]]   ;;  %s8491_s7 = smov 26  }
  0x20   :  { %10224 = sst [smem:[#allocation61_spill]] %s8628_s27 }
  0x21   :  { %s8648_s27 = sld [smem:[%s10203_s0 + %s8485_s22]]   ;;  %s8489_s22 = smov 24  }
  0x22   :  { %10225 = sst [smem:[#allocation62_spill]] %s8638_s17 }
  0x23   :  { %s8663_s9 = sld [smem:[%s10203_s0 + %s8488_s15]]   ;;  %s8492_s15 = smov 27  }
  0x24   :  { %s8668_s25 = sld [smem:[%s10203_s0 + %s8489_s22]]   ;;  %s8493_s22 = smov 28  }
  0x25   :  { %10227 = sst [smem:[#allocation64_spill]] %s8658_s21 }
  0x26   :  { %s8673_s29 = sld [smem:[%s10203_s0 + %s8490_s28]]   ;;  %s8494_s28 = smov 29  }
  0x27   :  { %10226 = sst [smem:[#allocation63_spill]] %s8648_s27 }
  0x28   :  { %s8678_s13 = sld [smem:[%s10203_s0 + %s8491_s7]]   ;;  %s8495_s7 = smov 30  }
  0x29   :  { %s8683_s5 = sld [smem:[%s10203_s0 + %s8492_s15]]   ;;  %s8496_s15 = smov 31  }
  0x2a   :  { %10228 = sst [smem:[#allocation65_spill]] %s8668_s25 }
  0x2b   :  { %s8688_s25 = sld [smem:[%s10203_s0 + %s8493_s22]]   ;;  %s8497_s22 = smov 32  }
  0x2c   :  { %s8693_s21 = sld [smem:[%s10203_s0 + %s8494_s28]]   ;;  %s8498_s28 = smov 33  }
  0x2d   :  { %s8703_s27 = sld [smem:[%s10203_s0 + %s8496_s15]]  }
  0x2e   :  { %10229 = sst [smem:[#allocation66_spill]] %s8678_s13 }
  0x2f   :  { %s8698_s13 = sld [smem:[%s10203_s0 + %s8495_s7]]   ;;  %s8499_s7 = smov 34  }
  0x30   :  { %s8713_s17 = sld [smem:[%s10203_s0 + %s8498_s28]]  }
  0x31   :  { %10230 = sst [smem:[#allocation67_spill]] %s8688_s25 }
  0x32   :  { %s8708_s25 = sld [smem:[%s10203_s0 + %s8497_s22]]  }
  0x35   :  { %10231 = sst [smem:[#allocation68_spill]] %s8698_s13 }
  0x36   :  { %s8718_s13 = sld [smem:[%s10203_s0 + %s8499_s7]]  }
  0x37   :  { %74 = vsyncpa [#allocation3], 0 }
  0x38   :  { %75 = vsyncpa [#allocation5], 0 }
  0x39   :  { %76 = vsyncpa [#allocation8], 0 }
  0x3a   :  { %77 = vsyncpa [#allocation11], 0 }
  0x3b   :  { %78 = vsyncpa [#allocation14], 0 }
  0x3c   :  { %79 = vsyncpa [#allocation17], 0 }
  0x3d   :  { %80 = vsyncpa [#allocation20], 0 }
  0x3e   :  { %81 = vsyncpa [#allocation23], 0 }
  0x3f   :  { %82 = vsyncpa [#allocation26], 0 }
  0x40   :  { %83 = vsyncpa [#allocation29], 0 }
  0x41   :  { %84 = vsyncpa [#allocation32], 0 }
  0x42   :  { %85 = vsyncpa [#allocation35], 0  ;;  %s121_s15 = sshll.u32 %s8598_s19, 4  ;;  %s122_s15 = int_to_ptr.hbm [resolvable:$true] %s121_s15 }
  0x43   :  { %86 = vsyncpa [#allocation38], 0  ;;  %s8500_s0 = smov [#allocation4]   ;;  %s143_s18 = sshll.u32 %s8608_s30, 4  ;;  %s144_s18 = int_to_ptr.hbm [resolvable:$true] %s143_s18 }
  0x44   :  { %s123_s16 = sshll.u32 %s8500_s0, 4  ;;  %s7864_s22 = sshra.s32 %s122_s15, 4  ;;  %s124_s16 = int_to_ptr.vmem [resolvable:$true] %s123_s16  ;;  %s7865_s22 = int_to_ptr.hbm [resolvable:$true] %s7864_s22 }
  0x45   :  { %s7866_s23 = scalar_lea.hbm %s7865_s22, 1  ;;  %s7868_s26 = scalar_lea.hbm %s8598_s19, 1 }
  0x46   :  { %p7867_p0 = scmp.ne.s32.totalorder %s7865_s22, %s7866_s23  ;;  %p7869_p1 = scmp.lt.s32.totalorder %s7865_s22, %s8598_s19 }
  0x47   :  { %p7870_p2 = scmp.lt.s32.totalorder %s7868_s26, %s7866_s23 }
  0x49   :  { %p7871_p3 = por %p7870_p2, %p7869_p1 }
  0x4b   :  { %p7872_p4 = pnand %p7871_p3, %p7867_p0 }
  0x4d   :  { %7875 = shalt.err (!%p7872_p4)
}
  0x4e   :  { %126 = dma.hbm_to_vmem [thread:$0]  %s122_s15, 16, %s124_s16, [#allocation5]  }
  0x4f   :  { %s8501_s28 = smov [#allocation7]   ;;  %s165_s2 = sshll.u32 %s8618_s12, 4  ;;  %s166_s2 = int_to_ptr.hbm [resolvable:$true] %s165_s2 }
  0x50   :  { %s145_s1 = sshll.u32 %s8501_s28, 4  ;;  %s7888_s7 = sshra.s32 %s144_s18, 4  ;;  %s146_s1 = int_to_ptr.vmem [resolvable:$true] %s145_s1  ;;  %s7889_s7 = int_to_ptr.hbm [resolvable:$true] %s7888_s7 }
  0x51   :  { %s7890_s10 = scalar_lea.hbm %s7889_s7, 1  ;;  %s7892_s11 = scalar_lea.hbm %s8608_s30, 1 }
  0x52   :  { %p7891_p5 = scmp.ne.s32.totalorder %s7889_s7, %s7890_s10  ;;  %p7893_p6 = scmp.lt.s32.totalorder %s7889_s7, %s8608_s30 }
  0x53   :  { %p7894_p7 = scmp.lt.s32.totalorder %s7892_s11, %s7890_s10 }
  0x55   :  { %p7895_p8 = por %p7894_p7, %p7893_p6 }
  0x57   :  { %p7896_p9 = pnand %p7895_p8, %p7891_p5 }
  0x59   :  { %7899 = shalt.err (!%p7896_p9)
}
  0x5a   :  { %148 = dma.hbm_to_vmem [thread:$0]  %s144_s18, 16, %s146_s1, [#allocation8]  }
  0x5b   :  { %s189_s19 = sshll.u32 %s8633_s4, 4  ;;  %s8502_s15 = smov [#allocation10]   ;;  %s190_s19 = int_to_ptr.hbm [resolvable:$true] %s189_s19 }
  0x5c   :  { %s167_s0 = sshll.u32 %s8502_s15, 4  ;;  %s7912_s16 = sshra.s32 %s166_s2, 4  ;;  %s168_s0 = int_to_ptr.vmem [resolvable:$true] %s167_s0  ;;  %s7913_s16 = int_to_ptr.hbm [resolvable:$true] %s7912_s16 }
  0x5d   :  { %s7914_s22 = scalar_lea.hbm %s7913_s16, 1  ;;  %s7916_s23 = scalar_lea.hbm %s8618_s12, 1 }
  0x5e   :  { %p7915_p10 = scmp.ne.s32.totalorder %s7913_s16, %s7914_s22  ;;  %p7917_p11 = scmp.lt.s32.totalorder %s7913_s16, %s8618_s12 }
  0x5f   :  { %p7918_p12 = scmp.lt.s32.totalorder %s7916_s23, %s7914_s22 }
  0x61   :  { %p7919_p13 = por %p7918_p12, %p7917_p11 }
  0x63   :  { %p7920_p0 = pnand %p7919_p13, %p7915_p10 }
  0x65   :  { %7923 = shalt.err (!%p7920_p0)
}
  0x66   :  { %170 = dma.hbm_to_vmem [thread:$0]  %s166_s2, 16, %s168_s0, [#allocation11]  }
  0x67   :  { %s8503_s30 = smov [#allocation13]   ;;  %s213_s26 = sshll.u32 %s8643_s3, 4  ;;  %s214_s26 = int_to_ptr.hbm [resolvable:$true] %s213_s26 }
  0x68   :  { %s191_s18 = sshll.u32 %s8503_s30, 4  ;;  %s7936_s28 = sshra.s32 %s190_s19, 4  ;;  %s192_s18 = int_to_ptr.vmem [resolvable:$true] %s191_s18  ;;  %s7937_s28 = int_to_ptr.hbm [resolvable:$true] %s7936_s28 }
  0x69   :  { %s7938_s1 = scalar_lea.hbm %s7937_s28, 1  ;;  %s7940_s7 = scalar_lea.hbm %s8633_s4, 1 }
  0x6a   :  { %p7939_p1 = scmp.ne.s32.totalorder %s7937_s28, %s7938_s1  ;;  %p7941_p2 = scmp.lt.s32.totalorder %s7937_s28, %s8633_s4 }
  0x6b   :  { %p7942_p3 = scmp.lt.s32.totalorder %s7940_s7, %s7938_s1 }
  0x6d   :  { %p7943_p4 = por %p7942_p3, %p7941_p2 }
  0x6f   :  { %p7944_p5 = pnand %p7943_p4, %p7939_p1 }
  0x71   :  { %7947 = shalt.err (!%p7944_p5)
}
  0x72   :  { %194 = dma.hbm_to_vmem [thread:$0]  %s190_s19, 16, %s192_s18, [#allocation14]  }
  0x73   :  { %s237_s12 = sshll.u32 %s8653_s8, 4  ;;  %s8504_s2 = smov [#allocation16]   ;;  %s238_s12 = int_to_ptr.hbm [resolvable:$true] %s237_s12 }
  0x74   :  { %s215_s10 = sshll.u32 %s8504_s2, 4  ;;  %s7960_s11 = sshra.s32 %s214_s26, 4  ;;  %s216_s10 = int_to_ptr.vmem [resolvable:$true] %s215_s10  ;;  %s7961_s11 = int_to_ptr.hbm [resolvable:$true] %s7960_s11 }
  0x75   :  { %s7962_s15 = scalar_lea.hbm %s7961_s11, 1  ;;  %s7964_s0 = scalar_lea.hbm %s8643_s3, 1 }
  0x76   :  { %p7963_p6 = scmp.ne.s32.totalorder %s7961_s11, %s7962_s15  ;;  %p7965_p7 = scmp.lt.s32.totalorder %s7961_s11, %s8643_s3 }
  0x77   :  { %p7966_p8 = scmp.lt.s32.totalorder %s7964_s0, %s7962_s15 }
  0x79   :  { %p7967_p9 = por %p7966_p8, %p7965_p7 }
  0x7b   :  { %p7968_p10 = pnand %p7967_p9, %p7963_p6 }
  0x7d   :  { %7971 = shalt.err (!%p7968_p10)
}
  0x7e   :  { %218 = dma.hbm_to_vmem [thread:$0]  %s214_s26, 16, %s216_s10, [#allocation17]  }
  0x7f   :  { %s8505_s4 = smov [#allocation19]   ;;  %s261_s16 = sshll.u32 %s8663_s9, 4  ;;  %s262_s16 = int_to_ptr.hbm [resolvable:$true] %s261_s16 }
  0x80   :  { %s239_s19 = sshll.u32 %s8505_s4, 4  ;;  %s7984_s22 = sshra.s32 %s238_s12, 4  ;;  %s240_s19 = int_to_ptr.vmem [resolvable:$true] %s239_s19  ;;  %s7985_s22 = int_to_ptr.hbm [resolvable:$true] %s7984_s22 }
  0x81   :  { %s7986_s23 = scalar_lea.hbm %s7985_s22, 1  ;;  %s7988_s30 = scalar_lea.hbm %s8653_s8, 1 }
  0x82   :  { %p7987_p11 = scmp.ne.s32.totalorder %s7985_s22, %s7986_s23  ;;  %p7989_p12 = scmp.lt.s32.totalorder %s7985_s22, %s8653_s8 }
  0x83   :  { %p7990_p13 = scmp.lt.s32.totalorder %s7988_s30, %s7986_s23 }
  0x85   :  { %p7991_p0 = por %p7990_p13, %p7989_p12 }
  0x87   :  { %p7992_p1 = pnand %p7991_p0, %p7987_p11 }
  0x89   :  { %7995 = shalt.err (!%p7992_p1)
}
  0x8a   :  { %242 = dma.hbm_to_vmem [thread:$0]  %s238_s12, 16, %s240_s19, [#allocation20]  }
  0x8b   :  { %s283_s3 = sshll.u32 %s8673_s29, 4  ;;  %s8506_s18 = smov [#allocation22]   ;;  %s284_s3 = int_to_ptr.hbm [resolvable:$true] %s283_s3 }
  0x8c   :  { %s263_s26 = sshll.u32 %s8506_s18, 4  ;;  %s8008_s28 = sshra.s32 %s262_s16, 4  ;;  %s264_s26 = int_to_ptr.vmem [resolvable:$true] %s263_s26  ;;  %s8009_s28 = int_to_ptr.hbm [resolvable:$true] %s8008_s28 }
  0x8d   :  { %s8010_s1 = scalar_lea.hbm %s8009_s28, 4  ;;  %s8012_s7 = scalar_lea.hbm %s8663_s9, 4 }
  0x8e   :  { %p8011_p2 = scmp.ne.s32.totalorder %s8009_s28, %s8010_s1  ;;  %p8013_p3 = scmp.lt.s32.totalorder %s8009_s28, %s8663_s9 }
  0x8f   :  { %p8014_p4 = scmp.lt.s32.totalorder %s8012_s7, %s8010_s1 }
  0x91   :  { %p8015_p5 = por %p8014_p4, %p8013_p3 }
  0x93   :  { %p8016_p6 = pnand %p8015_p5, %p8011_p2 }
  0x95   :  { %8019 = shalt.err (!%p8016_p6)
}
  0x96   :  { %266 = dma.hbm_to_vmem [thread:$0]  %s262_s16, 64, %s264_s26, [#allocation23]  }
  0x97   :  { %s8507_s8 = smov [#allocation25]   ;;  %s305_s2 = sshll.u32 %s8683_s5, 4  ;;  %s306_s2 = int_to_ptr.hbm [resolvable:$true] %s305_s2 }
  0x98   :  { %s285_s12 = sshll.u32 %s8507_s8, 4  ;;  %s8032_s10 = sshra.s32 %s284_s3, 4  ;;  %s286_s12 = int_to_ptr.vmem [resolvable:$true] %s285_s12  ;;  %s8033_s10 = int_to_ptr.hbm [resolvable:$true] %s8032_s10 }
  0x99   :  { %s8034_s11 = scalar_lea.hbm %s8033_s10, 1  ;;  %s8036_s15 = scalar_lea.hbm %s8673_s29, 1 }
  0x9a   :  { %p8035_p7 = scmp.ne.s32.totalorder %s8033_s10, %s8034_s11  ;;  %p8037_p8 = scmp.lt.s32.totalorder %s8033_s10, %s8673_s29 }
  0x9b   :  { %p8038_p9 = scmp.lt.s32.totalorder %s8036_s15, %s8034_s11 }
  0x9d   :  { %p8039_p10 = por %p8038_p9, %p8037_p8 }
  0x9f   :  { %p8040_p11 = pnand %p8039_p10, %p8035_p7 }
  0xa1   :  { %8043 = shalt.err (!%p8040_p11)
}
  0xa2   :  { %288 = dma.hbm_to_vmem [thread:$0]  %s284_s3, 16, %s286_s12, [#allocation26]  }
  0xa3   :  { %s8508_s9 = smov [#allocation28]   ;;  %s326_s4 = sshll.u32 %s8693_s21, 4  ;;  %s327_s4 = int_to_ptr.hbm [resolvable:$true] %s326_s4 }
  0xa4   :  { %s307_s0 = sshll.u32 %s8508_s9, 4  ;;  %s8056_s19 = sshra.s32 %s306_s2, 4  ;;  %s308_s0 = int_to_ptr.vmem [resolvable:$true] %s307_s0  ;;  %s8057_s19 = int_to_ptr.hbm [resolvable:$true] %s8056_s19 }
  0xa5   :  { %s8058_s16 = scalar_lea.hbm %s8057_s19, 1  ;;  %s8060_s22 = scalar_lea.hbm %s8683_s5, 1 }
  0xa6   :  { %p8059_p12 = scmp.ne.s32.totalorder %s8057_s19, %s8058_s16  ;;  %p8061_p13 = scmp.lt.s32.totalorder %s8057_s19, %s8683_s5 }
  0xa7   :  { %p8062_p0 = scmp.lt.s32.totalorder %s8060_s22, %s8058_s16 }
  0xa9   :  { %p8063_p1 = por %p8062_p0, %p8061_p13 }
  0xab   :  { %p8064_p2 = pnand %p8063_p1, %p8059_p12 }
  0xad   :  { %8067 = shalt.err (!%p8064_p2)
}
  0xae   :  { %310 = dma.hbm_to_vmem [thread:$0]  %s306_s2, 16, %s308_s0, [#allocation29]  }
  0xaf   :  { %s8509_s29 = smov [#allocation31]   ;;  %s350_s30 = sshll.u32 %s8703_s27, 4  ;;  %s8749_s30 = int_to_ptr.hbm [resolvable:$true] %s350_s30 }
  0xb0   :  { %s328_s23 = sshll.u32 %s8509_s29, 4  ;;  %s8080_s3 = sshra.s32 %s327_s4, 4  ;;  %s329_s23 = int_to_ptr.vmem [resolvable:$true] %s328_s23  ;;  %s8081_s3 = int_to_ptr.hbm [resolvable:$true] %s8080_s3 }
  0xb1   :  { %s8082_s18 = scalar_lea.hbm %s8081_s3, 32  ;;  %s8084_s5 = scalar_lea.hbm %s8693_s21, 32 }
  0xb2   :  { %p8083_p3 = scmp.ne.s32.totalorder %s8081_s3, %s8082_s18  ;;  %p8085_p4 = scmp.lt.s32.totalorder %s8081_s3, %s8693_s21 }
  0xb3   :  { %p8086_p5 = scmp.lt.s32.totalorder %s8084_s5, %s8082_s18 }
  0xb5   :  { %p8087_p6 = por %p8086_p5, %p8085_p4 }
  0xb7   :  { %p8088_p7 = pnand %p8087_p6, %p8083_p3 }
  0xb9   :  { %8091 = shalt.err (!%p8088_p7)
}
  0xba   :  { %s8510_s26 = smov 128   ;;  %s8511_s28 = smov 8  }
  0xbb   :  { %334 = dma.hbm_to_vmem [thread:$0]  %s327_s4, 512, %s329_s23, [#allocation32], %s8510_s26, %s8510_s26, %s8511_s28  }
  0xbc   :  { %s110_s1 = sshll.u32 %s8593_s14, 4  ;;  %s8512_s7 = smov [#allocation34]   ;;  %s111_s1 = int_to_ptr.hbm [resolvable:$true] %s110_s1 }
  0xbd   :  { %s352_s8 = sshll.u32 %s8512_s7, 4  ;;  %s8104_s21 = sshra.s32 %s8749_s30, 4  ;;  %s353_s8 = int_to_ptr.vmem [resolvable:$true] %s352_s8  ;;  %s8105_s21 = int_to_ptr.hbm [resolvable:$true] %s8104_s21 }
  0xbe   :  { %s8106_s12 = scalar_lea.hbm %s8105_s21, 32  ;;  %s8108_s2 = scalar_lea.hbm %s8703_s27, 32 }
  0xbf   :  { %p8107_p8 = scmp.ne.s32.totalorder %s8105_s21, %s8106_s12  ;;  %p8109_p9 = scmp.lt.s32.totalorder %s8105_s21, %s8703_s27 }
  0xc0   :  { %p8110_p10 = scmp.lt.s32.totalorder %s8108_s2, %s8106_s12 }
  0xc2   :  { %p8111_p11 = por %p8110_p10, %p8109_p9 }
  0xc4   :  { %p8112_p12 = pnand %p8111_p11, %p8107_p8 }
  0xc6   :  { %8115 = shalt.err (!%p8112_p12)
}
  0xc7   :  { %358 = dma.hbm_to_vmem [thread:$0]  %s8749_s30, 512, %s353_s8, [#allocation35], %s8510_s26, %s8510_s26, %s8511_s28  }
  0xc8   :  { %s8513_s10 = smov [#allocation2]   ;;  %s132_s15 = sshll.u32 %s8603_s24, 4  ;;  %s133_s15 = int_to_ptr.hbm [resolvable:$true] %s132_s15 }
  0xc9   :  { %s112_s11 = sshll.u32 %s8513_s10, 4  ;;  %s8128_s9 = sshra.s32 %s111_s1, 4  ;;  %s113_s11 = int_to_ptr.vmem [resolvable:$true] %s112_s11  ;;  %s8129_s9 = int_to_ptr.hbm [resolvable:$true] %s8128_s9 }
  0xca   :  { %s8130_s27 = scalar_lea.hbm %s8129_s9, 1  ;;  %s8132_s0 = scalar_lea.hbm %s8593_s14, 1 }
  0xcb   :  { %p8131_p13 = scmp.ne.s32.totalorder %s8129_s9, %s8130_s27  ;;  %p8133_p0 = scmp.lt.s32.totalorder %s8129_s9, %s8593_s14 }
  0xcc   :  { %p8134_p1 = scmp.lt.s32.totalorder %s8132_s0, %s8130_s27 }
  0xce   :  { %p8135_p2 = por %p8134_p1, %p8133_p0 }
  0xd0   :  { %p8136_p3 = pnand %p8135_p2, %p8131_p13 }
  0xd2   :  { %8139 = shalt.err (!%p8136_p3)
}
  0xd3   :  { %115 = dma.hbm_to_vmem [thread:$0]  %s111_s1, 16, %s113_s11, [#allocation3]  }
  0xd4   :  { %s154_s4 = sshll.u32 %s8613_s6, 4  ;;  %s8514_s19 = smov [#allocation6]   ;;  %s155_s4 = int_to_ptr.hbm [resolvable:$true] %s154_s4 }
  0xd5   :  { %s134_s16 = sshll.u32 %s8514_s19, 4  ;;  %s8152_s22 = sshra.s32 %s133_s15, 4  ;;  %s135_s16 = int_to_ptr.vmem [resolvable:$true] %s134_s16  ;;  %s8153_s22 = int_to_ptr.hbm [resolvable:$true] %s8152_s22 }
  0xd6   :  { %s8154_s29 = scalar_lea.hbm %s8153_s22, 1  ;;  %s8156_s23 = scalar_lea.hbm %s8603_s24, 1 }
  0xd7   :  { %p8155_p4 = scmp.ne.s32.totalorder %s8153_s22, %s8154_s29  ;;  %p8157_p5 = scmp.lt.s32.totalorder %s8153_s22, %s8603_s24 }
  0xd8   :  { %p8158_p6 = scmp.lt.s32.totalorder %s8156_s23, %s8154_s29 }
  0xda   :  { %p8159_p7 = por %p8158_p6, %p8157_p5 }
  0xdc   :  { %p8160_p8 = pnand %p8159_p7, %p8155_p4 }
  0xde   :  { %8163 = shalt.err (!%p8160_p8)
}
  0xdf   :  { %137 = dma.hbm_to_vmem [thread:$0]  %s133_s15, 16, %s135_s16, [#allocation5]  }
  0xe0   :  { %s8515_s14 = smov [#allocation9]   ;;  %s176_s3 = sshll.u32 %s8623_s20, 4  ;;  %s177_s3 = int_to_ptr.hbm [resolvable:$true] %s176_s3 }
  0xe1   :  { %s156_s30 = sshll.u32 %s8515_s14, 4  ;;  %s8176_s18 = sshra.s32 %s155_s4, 4  ;;  %s157_s30 = int_to_ptr.vmem [resolvable:$true] %s156_s30  ;;  %s8177_s18 = int_to_ptr.hbm [resolvable:$true] %s8176_s18 }
  0xe2   :  { %s8178_s5 = scalar_lea.hbm %s8177_s18, 1  ;;  %s8180_s1 = scalar_lea.hbm %s8613_s6, 1 }
  0xe3   :  { %p8179_p9 = scmp.ne.s32.totalorder %s8177_s18, %s8178_s5  ;;  %p8181_p10 = scmp.lt.s32.totalorder %s8177_s18, %s8613_s6 }
  0xe4   :  { %p8182_p11 = scmp.lt.s32.totalorder %s8180_s1, %s8178_s5 }
  0xe6   :  { %p8183_p12 = por %p8182_p11, %p8181_p10 }
  0xe8   :  { %p8184_p13 = pnand %p8183_p12, %p8179_p9 }
  0xea   :  { %8187 = shalt.err (!%p8184_p13)
}
  0xeb   :  { %159 = dma.hbm_to_vmem [thread:$0]  %s155_s4, 16, %s157_s30, [#allocation8]  }
  0xec   :  { %s10232_s24 = sld [smem:[#allocation62_spill]]  ;;  %s8516_s8 = smov [#allocation12]  }
  0xed   :  { %s178_s21 = sshll.u32 %s8516_s8, 4  ;;  %s8200_s12 = sshra.s32 %s177_s3, 4  ;;  %s179_s21 = int_to_ptr.vmem [resolvable:$true] %s178_s21  ;;  %s8201_s12 = int_to_ptr.hbm [resolvable:$true] %s8200_s12 }
  0xee   :  { %s8202_s2 = scalar_lea.hbm %s8201_s12, 1  ;;  %s8204_s10 = scalar_lea.hbm %s8623_s20, 1 }
  0xef   :  { %p8203_p0 = scmp.ne.s32.totalorder %s8201_s12, %s8202_s2  ;;  %p8205_p1 = scmp.lt.s32.totalorder %s8201_s12, %s8623_s20 }
  0xf0   :  { %p8206_p2 = scmp.lt.s32.totalorder %s8204_s10, %s8202_s2 }
  0xf2   :  { %s199_s7 = sshll.u32 %s10232_s24, 4  ;;  %p8207_p3 = por %p8206_p2, %p8205_p1  ;;  %s8774_s7 = int_to_ptr.hbm [resolvable:$true] %s199_s7 }
  0xf4   :  { %p8208_p4 = pnand %p8207_p3, %p8203_p0 }
  0xf6   :  { %8211 = shalt.err (!%p8208_p4)
}
  0xf7   :  { %181 = dma.hbm_to_vmem [thread:$0]  %s177_s3, 16, %s179_s21, [#allocation11]  }
  0xf8   :  { %s10233_s6 = sld [smem:[#allocation63_spill]]  ;;  %s8517_s11 = smov [#allocation15]  }
  0xf9   :  { %s201_s15 = sshll.u32 %s8517_s11, 4  ;;  %s8224_s27 = sshra.s32 %s8774_s7, 4  ;;  %s202_s15 = int_to_ptr.vmem [resolvable:$true] %s201_s15  ;;  %s8225_s27 = int_to_ptr.hbm [resolvable:$true] %s8224_s27 }
  0xfa   :  { %s8226_s0 = scalar_lea.hbm %s8225_s27, 32  ;;  %s8228_s20 = scalar_lea.hbm %s10232_s24, 32 }
  0xfb   :  { %p8227_p5 = scmp.ne.s32.totalorder %s8225_s27, %s8226_s0  ;;  %p8229_p6 = scmp.lt.s32.totalorder %s8225_s27, %s10232_s24 }
  0xfc   :  { %p8230_p7 = scmp.lt.s32.totalorder %s8228_s20, %s8226_s0 }
  0xfe   :  { %s223_s9 = sshll.u32 %s10233_s6, 4  ;;  %p8231_p8 = por %p8230_p7, %p8229_p6  ;;  %s8779_s9 = int_to_ptr.hbm [resolvable:$true] %s223_s9 }
 0x100   :  { %p8232_p9 = pnand %p8231_p8, %p8227_p5 }
 0x102   :  { %8235 = shalt.err (!%p8232_p9)
}
 0x103   :  { %s10234_s4 = sld [smem:[#allocation64_spill]]  ;;  %s8518_s16 = smov [#allocation18]  }
 0x104   :  { %207 = dma.hbm_to_vmem [thread:$0]  %s8774_s7, 512, %s202_s15, [#allocation14], %s8510_s26, %s8510_s26, %s8511_s28  }
 0x105   :  { %s225_s22 = sshll.u32 %s8518_s16, 4  ;;  %s8248_s29 = sshra.s32 %s8779_s9, 4  ;;  %s226_s22 = int_to_ptr.vmem [resolvable:$true] %s225_s22  ;;  %s8249_s29 = int_to_ptr.hbm [resolvable:$true] %s8248_s29 }
 0x106   :  { %s8250_s23 = scalar_lea.hbm %s8249_s29, 32  ;;  %s8252_s14 = scalar_lea.hbm %s10233_s6, 32 }
 0x107   :  { %p8251_p10 = scmp.ne.s32.totalorder %s8249_s29, %s8250_s23  ;;  %p8253_p11 = scmp.lt.s32.totalorder %s8249_s29, %s10233_s6 }
 0x108   :  { %p8254_p12 = scmp.lt.s32.totalorder %s8252_s14, %s8250_s23 }
 0x109   :  { %s247_s19 = sshll.u32 %s10234_s4, 4  ;;  %s8789_s19 = int_to_ptr.hbm [resolvable:$true] %s247_s19 }
 0x10a   :  { %p8255_p13 = por %p8254_p12, %p8253_p11 }
 0x10c   :  { %p8256_p0 = pnand %p8255_p13, %p8251_p10 }
 0x10e   :  { %8259 = shalt.err (!%p8256_p0)
}
 0x10f   :  { %s10235_s30 = sld [smem:[#allocation65_spill]]  ;;  %s8519_s3 = smov [#allocation21]  }
 0x110   :  { %231 = dma.hbm_to_vmem [thread:$0]  %s8779_s9, 512, %s226_s22, [#allocation17], %s8510_s26, %s8510_s26, %s8511_s28  }
 0x111   :  { %s249_s18 = sshll.u32 %s8519_s3, 4  ;;  %s8272_s1 = sshra.s32 %s8789_s19, 4  ;;  %s250_s18 = int_to_ptr.vmem [resolvable:$true] %s249_s18  ;;  %s8273_s1 = int_to_ptr.hbm [resolvable:$true] %s8272_s1 }
 0x112   :  { %s8274_s24 = scalar_lea.hbm %s8273_s1, 32  ;;  %s8276_s7 = scalar_lea.hbm %s10234_s4, 32 }
 0x113   :  { %p8275_p1 = scmp.ne.s32.totalorder %s8273_s1, %s8274_s24  ;;  %p8277_p2 = scmp.lt.s32.totalorder %s8273_s1, %s10234_s4 }
 0x114   :  { %p8278_p3 = scmp.lt.s32.totalorder %s8276_s7, %s8274_s24 }
 0x115   :  { %s272_s5 = sshll.u32 %s10235_s30, 4  ;;  %s273_s5 = int_to_ptr.hbm [resolvable:$true] %s272_s5 }
 0x116   :  { %p8279_p4 = por %p8278_p3, %p8277_p2 }
 0x118   :  { %p8280_p5 = pnand %p8279_p4, %p8275_p1 }
 0x11a   :  { %8283 = shalt.err (!%p8280_p5)
}
 0x11b   :  { %s10236_s8 = sld [smem:[#allocation66_spill]]  ;;  %s8520_s12 = smov [#allocation24]  }
 0x11c   :  { %255 = dma.hbm_to_vmem [thread:$0]  %s8789_s19, 512, %s250_s18, [#allocation20], %s8510_s26, %s8510_s26, %s8511_s28  }
 0x11d   :  { %s274_s2 = sshll.u32 %s8520_s12, 4  ;;  %s8296_s10 = sshra.s32 %s273_s5, 4  ;;  %s275_s2 = int_to_ptr.vmem [resolvable:$true] %s274_s2  ;;  %s8297_s10 = int_to_ptr.hbm [resolvable:$true] %s8296_s10 }
 0x11e   :  { %s8298_s6 = scalar_lea.hbm %s8297_s10, 1  ;;  %s8300_s11 = scalar_lea.hbm %s10235_s30, 1 }
 0x11f   :  { %p8299_p6 = scmp.ne.s32.totalorder %s8297_s10, %s8298_s6  ;;  %p8301_p7 = scmp.lt.s32.totalorder %s8297_s10, %s10235_s30 }
 0x120   :  { %p8302_p8 = scmp.lt.s32.totalorder %s8300_s11, %s8298_s6 }
 0x121   :  { %s294_s21 = sshll.u32 %s10236_s8, 4  ;;  %s295_s21 = int_to_ptr.hbm [resolvable:$true] %s294_s21 }
 0x122   :  { %p8303_p9 = por %p8302_p8, %p8301_p7 }
 0x124   :  { %p8304_p10 = pnand %p8303_p9, %p8299_p6 }
 0x126   :  { %8307 = shalt.err (!%p8304_p10)
}
 0x127   :  { %277 = dma.hbm_to_vmem [thread:$0]  %s273_s5, 16, %s275_s2, [#allocation23]  }
 0x128   :  { %s10237_s15 = sld [smem:[#allocation67_spill]]  ;;  %s8521_s9 = smov [#allocation27]  }
 0x129   :  { %s296_s27 = sshll.u32 %s8521_s9, 4  ;;  %s8320_s20 = sshra.s32 %s295_s21, 4  ;;  %s297_s27 = int_to_ptr.vmem [resolvable:$true] %s296_s27  ;;  %s8321_s20 = int_to_ptr.hbm [resolvable:$true] %s8320_s20 }
 0x12a   :  { %s8322_s4 = scalar_lea.hbm %s8321_s20, 1  ;;  %s8324_s19 = scalar_lea.hbm %s10236_s8, 1 }
 0x12b   :  { %p8323_p11 = scmp.ne.s32.totalorder %s8321_s20, %s8322_s4  ;;  %p8325_p12 = scmp.lt.s32.totalorder %s8321_s20, %s10236_s8 }
 0x12c   :  { %p8326_p13 = scmp.lt.s32.totalorder %s8324_s19, %s8322_s4 }
 0x12e   :  { %s316_s0 = sshll.u32 %s10237_s15, 4  ;;  %p8327_p0 = por %p8326_p13, %p8325_p12  ;;  %s317_s0 = int_to_ptr.hbm [resolvable:$true] %s316_s0 }
 0x130   :  { %p8328_p1 = pnand %p8327_p0, %p8323_p11 }
 0x132   :  { %8331 = shalt.err (!%p8328_p1)
}
 0x133   :  { %299 = dma.hbm_to_vmem [thread:$0]  %s295_s21, 16, %s297_s27, [#allocation26]  }
 0x134   :  { %s10238_s16 = sld [smem:[#allocation68_spill]]  ;;  %s8522_s29 = smov [#allocation30]  }
 0x135   :  { %s318_s23 = sshll.u32 %s8522_s29, 4  ;;  %s8344_s14 = sshra.s32 %s317_s0, 4  ;;  %s319_s23 = int_to_ptr.vmem [resolvable:$true] %s318_s23  ;;  %s8345_s14 = int_to_ptr.hbm [resolvable:$true] %s8344_s14 }
 0x136   :  { %s8346_s30 = scalar_lea.hbm %s8345_s14, 1  ;;  %s8348_s3 = scalar_lea.hbm %s10237_s15, 1 }
 0x137   :  { %p8347_p2 = scmp.ne.s32.totalorder %s8345_s14, %s8346_s30  ;;  %p8349_p3 = scmp.lt.s32.totalorder %s8345_s14, %s10237_s15 }
 0x138   :  { %p8350_p4 = scmp.lt.s32.totalorder %s8348_s3, %s8346_s30 }
 0x13a   :  { %s340_s22 = sshll.u32 %s10238_s16, 4  ;;  %p8351_p5 = por %p8350_p4, %p8349_p3  ;;  %s341_s22 = int_to_ptr.hbm [resolvable:$true] %s340_s22 }
 0x13c   :  { %p8352_p6 = pnand %p8351_p5, %p8347_p2 }
 0x13e   :  { %8355 = shalt.err (!%p8352_p6)
}
 0x13f   :  { %321 = dma.hbm_to_vmem [thread:$0]  %s317_s0, 16, %s319_s23, [#allocation29]  }
 0x140   :  { %s8523_s18 = smov [#allocation33]   ;;  %s364_s1 = sshll.u32 %s8708_s25, 4  ;;  %s365_s1 = int_to_ptr.hbm [resolvable:$true] %s364_s1 }
 0x141   :  { %s342_s5 = sshll.u32 %s8523_s18, 4  ;;  %s8368_s24 = sshra.s32 %s341_s22, 4  ;;  %s343_s5 = int_to_ptr.vmem [resolvable:$true] %s342_s5  ;;  %s8369_s24 = int_to_ptr.hbm [resolvable:$true] %s8368_s24 }
 0x142   :  { %s8370_s7 = scalar_lea.hbm %s8369_s24, 1  ;;  %s8372_s8 = scalar_lea.hbm %s10238_s16, 1 }
 0x143   :  { %p8371_p7 = scmp.ne.s32.totalorder %s8369_s24, %s8370_s7  ;;  %p8373_p8 = scmp.lt.s32.totalorder %s8369_s24, %s10238_s16 }
 0x144   :  { %p8374_p9 = scmp.lt.s32.totalorder %s8372_s8, %s8370_s7 }
 0x146   :  { %p8375_p10 = por %p8374_p9, %p8373_p8 }
 0x148   :  { %p8376_p11 = pnand %p8375_p10, %p8371_p7 }
 0x14a   :  { %8379 = shalt.err (!%p8376_p11)
}
 0x14b   :  { %345 = dma.hbm_to_vmem [thread:$0]  %s341_s22, 16, %s343_s5, [#allocation32]  }
 0x14c   :  { %s374_s21 = sshll.u32 %s8713_s17, 4  ;;  %s8524_s12 = smov [#allocation36]   ;;  %s8819_s21 = int_to_ptr.hbm [resolvable:$true] %s374_s21 }
 0x14d   :  { %s366_s2 = sshll.u32 %s8524_s12, 4  ;;  %s8392_s10 = sshra.s32 %s365_s1, 4  ;;  %s367_s2 = int_to_ptr.vmem [resolvable:$true] %s366_s2  ;;  %s8393_s10 = int_to_ptr.hbm [resolvable:$true] %s8392_s10 }
 0x14e   :  { %s8394_s6 = scalar_lea.hbm %s8393_s10, 1  ;;  %s8396_s11 = scalar_lea.hbm %s8708_s25, 1 }
 0x14f   :  { %p8395_p12 = scmp.ne.s32.totalorder %s8393_s10, %s8394_s6  ;;  %p8397_p13 = scmp.lt.s32.totalorder %s8393_s10, %s8708_s25 }
 0x150   :  { %p8398_p0 = scmp.lt.s32.totalorder %s8396_s11, %s8394_s6 }
 0x152   :  { %p8399_p1 = por %p8398_p0, %p8397_p13 }
 0x154   :  { %p8400_p2 = pnand %p8399_p1, %p8395_p12 }
 0x156   :  { %8403 = shalt.err (!%p8400_p2)
}
 0x157   :  { %369 = dma.hbm_to_vmem [thread:$0]  %s365_s1, 16, %s367_s2, [#allocation35]  }
 0x158   :  { %s8525_s15 = smov [#allocation37]   ;;  %s8416_s27 = sshra.s32 %s8819_s21, 4  ;;  %s8417_s27 = int_to_ptr.hbm [resolvable:$true] %s8416_s27 }
 0x159   :  { %s376_s9 = sshll.u32 %s8525_s15, 4  ;;  %s8418_s0 = scalar_lea.hbm %s8417_s27, 32  ;;  %s377_s9 = int_to_ptr.vmem [resolvable:$true] %s376_s9 }
 0x15a   :  { %p8419_p3 = scmp.ne.s32.totalorder %s8417_s27, %s8418_s0  ;;  %s8420_s20 = scalar_lea.hbm %s8713_s17, 32 }
 0x15b   :  { %p8421_p4 = scmp.lt.s32.totalorder %s8417_s27, %s8713_s17  ;;  %p8422_p5 = scmp.lt.s32.totalorder %s8420_s20, %s8418_s0 }
 0x15d   :  { %p8423_p6 = por %p8422_p5, %p8421_p4 }
 0x15f   :  { %p8424_p7 = pnand %p8423_p6, %p8419_p3 }
 0x161   :  { %8427 = shalt.err (!%p8424_p7)
}
 0x162   :  { %382 = dma.hbm_to_vmem [thread:$0]  %s8819_s21, 512, %s377_s9, [#allocation38], %s8510_s26, %s8510_s26, %s8511_s28  }
 0x163   :  { %8440 = dma.done.wait [#allocation3], 16  }
 0x164   :  { %8441 = vsyncadd [#allocation3], 4294967280 }
 0x165   :  { %8442 = dma.done.wait [#allocation5], 32  }
 0x166   :  { %8443 = vsyncadd [#allocation5], 4294967264 }
 0x167   :  { %8444 = dma.done.wait [#allocation8], 32  }
 0x168   :  { %8445 = vsyncadd [#allocation8], 4294967264 }
 0x169   :  { %8446 = dma.done.wait [#allocation11], 32  }
 0x16a   :  { %8447 = vsyncadd [#allocation11], 4294967264 }
 0x16b   :  { %8448 = dma.done.wait [#allocation14], 528  }
 0x16c   :  { %8449 = vsyncadd [#allocation14], 4294966768 }
 0x16d   :  { %8450 = dma.done.wait [#allocation17], 528  }
 0x16e   :  { %8451 = vsyncadd [#allocation17], 4294966768 }
 0x16f   :  { %8452 = dma.done.wait [#allocation20], 528  }
 0x170   :  { %8453 = vsyncadd [#allocation20], 4294966768 }
 0x171   :  { %8454 = dma.done.wait [#allocation23], 80  }
 0x172   :  { %8455 = vsyncadd [#allocation23], 4294967216 }
 0x173   :  { %8456 = dma.done.wait [#allocation26], 32  }
 0x174   :  { %8457 = vsyncadd [#allocation26], 4294967264 }
 0x175   :  { %8458 = dma.done.wait [#allocation29], 32  }
 0x176   :  { %8459 = vsyncadd [#allocation29], 4294967264 }
 0x177   :  { %8460 = dma.done.wait [#allocation32], 528  }
 0x178   :  { %8461 = vsyncadd [#allocation32], 4294966768 }
 0x179   :  { %8462 = dma.done.wait [#allocation35], 528  }
 0x17a   :  { %8463 = vsyncadd [#allocation35], 4294966768 }
 0x17b   :  { %8464 = dma.done.wait [#allocation38], 512  }
 0x17c   :  { %8465 = vsyncadd [#allocation38], 4294966784  ;;  %s10239_s17 = sld [smem:[#allocation52_spill]]  ;;  %vm543_vm0 = vcmask 97280   ;;  %v8526_v12 = vmov 12.0   ;;  %vm707_vm2 = vcmask 1043456  }
 0x17d   :  { %7583 = vrcp.f32 %v8526_v12  ;;  %s10240_s25 = sld [smem:[#allocation54_spill]]  ;;  %s8528_s23 = smov 96  }
 0x17e   :  { %s10241_s26 = sld [smem:[#allocation58_spill]]  ;;  %s8529_s14 = smov 64  }
 0x17f   :  { %s10242_s28 = sld [smem:[#allocation57_spill]]  ;;  %s8530_s30 = smov 88  }
 0x180   :  { %s10247_s4 = sld [smem:[#allocation53_spill]]  ;;  %s8531_s3 = smov 120  }
 0x181   :  { %s10248_s19 = sld [smem:[#allocation56_spill]]  ;;  %s8532_s18 = smov 56  }
 0x182   :  { %v541_v0 = vld [vmem:[%s10239_s17 + $0x20] sm:$0xff]  ;;  %v539_v1 = vld [vmem:[%s10239_s17 + $0x10] sm:$0xff]  ;;  %v542_v6 = vld [vmem:[%s10239_s17 + $0x28] sm:$0xff]  ;;  %s10249_s16 = sld [smem:[#allocation60_spill]]  ;;  %s8533_s5 = smov 80  }
 0x183   :  { %v537_v2 = vld [vmem:[%s10239_s17] sm:$0xff]  ;;  %v556_v3 = vsel %vm543_vm0, %v541_v0, 0.0  ;;  %v550_v4 = vsel %vm543_vm0, %v539_v1, 0.0  ;;  %v540_v7 = vld [vmem:[%s10239_s17 + $0x18] sm:$0xff]  ;;  %v538_v8 = vld [vmem:[%s10239_s17 + $0x8] sm:$0xff]  ;;  %v559_v9 = vsel %vm543_vm0, %v542_v6, 0.0  ;;  %v7584_v13 = vpop.eup %7583 }
 0x184   :  { %v544_v5 = vsel %vm543_vm0, %v537_v2, 0.0  ;;  %557 = vadd.xlane.f32.xlu2 %v556_v3  ;;  %551 = vadd.xlane.f32.xlu1 %v550_v4  ;;  %v553_v10 = vsel %vm543_vm0, %v540_v7, 0.0  ;;  %v547_v11 = vsel %vm543_vm0, %v538_v8, 0.0  ;;  %v563_v14 = vmul.f32 12.0, %v7584_v13  ;;  %v481_v49 = vld [vmem:[%s10240_s25 + $0x8] sm:$0xf] }
 0x185   :  { %545 = vadd.xlane.f32.xlu0 %v544_v5  ;;  %vm567_vm1 = vweird.f32 %v7584_v13  ;;  %7113 = vmatpush.msk.msra.mxu0 %vm707_vm2, %v481_v49  ;;  %v480_v50 = vld [vmem:[%s10240_s25] sm:$0xff]  ;;  %s10250_s22 = sld [smem:[#allocation59_spill]]  ;;  %s8534_s1 = smov 112  }
 0x186   :  { %v564_v15 = vsub.f32 1.0, %v563_v14  ;;  %7117 = vmatpush.msk.msra.mxu2 %vm707_vm2, %v481_v49  ;;  %7115 = vmatpush.msk.msra.mxu1 %vm707_vm2, %v481_v49  ;;  %s10251_s29 = sld [smem:[#allocation55_spill]]  ;;  %s8535_s24 = smov 48  }
 0x187   :  { %7119 = vmatpush.msk.msra.mxu3 %vm707_vm2, %v481_v49  ;;  %726 = vmatpush.msra.mxu0 %v480_v50  ;;  %s8536_s7 = smov 72   ;;  %s8537_s8 = smov 104  }
 0x188   :  { %v565_v16 = vmul.f32 %v7584_v13, %v564_v15  ;;  %772 = vmatpush.msra.mxu2 %v480_v50  ;;  %749 = vmatpush.msra.mxu1 %v480_v50  ;;  %s8538_s21 = smov 40   ;;  %s10252_s12 = sld [smem:[#allocation61_spill]] }
 0x189   :  { %795 = vmatpush.msra.mxu3 %v480_v50  ;;  %7121 = vmatpush.msk.msrb.mxu0 %vm707_vm2, %v481_v49 }
 0x18a   :  { %v566_v17 = vadd.f32 %v7584_v13, %v565_v16  ;;  %7123 = vmatpush.msk.msrb.mxu1 %vm707_vm2, %v481_v49 }
 0x18b   :  { %818 = vmatpush.msrb.mxu0 %v480_v50 }
 0x18c   :  { %560 = vadd.xlane.f32.xlu2 %v559_v9  ;;  %554 = vadd.xlane.f32.xlu1 %v553_v10  ;;  %v8842_v18 = vsel %vm567_vm1, %v7584_v13, %v566_v17 }
 0x18d   :  { %548 = vadd.xlane.f32.xlu0 %v547_v11  ;;  %841 = vmatpush.msrb.mxu1 %v480_v50 }
 0x1f7   :  { %v558_v19 = vpop.xlane.xlu2 %557  ;;  %v552_v20 = vpop.xlane.xlu1 %551 }
 0x1f8   :  { %v571_v21 = vmul.f32 %v8842_v18, %v552_v20  ;;  %v546_v22 = vpop.xlane.xlu0 %545  ;;  %v573_v35 = vmul.f32 %v8842_v18, %v558_v19 }
 0x1f9   :  { %v569_v23 = vmul.f32 %v8842_v18, %v546_v22 }
 0x1fa   :  { %v8846_v24 = vsub.f32 %v539_v1, %v571_v21  ;;  %v8870_v42 = vsub.f32 %v541_v0, %v573_v35 }
 0x1fb   :  { %v8848_v25 = vsub.f32 %v537_v2, %v569_v23 }
 0x1fc   :  { %v583_v26 = vmul.f32 %v8846_v24, %v8846_v24  ;;  %v585_v47 = vmul.f32 %v8870_v42, %v8870_v42 }
 0x1fd   :  { %v581_v27 = vmul.f32 %v8848_v25, %v8848_v25 }
 0x1fe   :  { %v593_v28 = vsel %vm543_vm0, %v583_v26, 0.0  ;;  %v599_v48 = vsel %vm543_vm0, %v585_v47, 0.0 }
 0x1ff   :  { %v561_v29 = vpop.xlane.xlu2 %560  ;;  %594 = vadd.xlane.f32.xlu2 %v593_v28  ;;  %v555_v30 = vpop.xlane.xlu1 %554  ;;  %v587_v31 = vsel %vm543_vm0, %v581_v27, 0.0  ;;  %v7560_v27 = vld [vmem:[%s10241_s26] ss:$0 sm:$0xff] }
 0x200   :  { %v574_v32 = vmul.f32 %v8842_v18, %v561_v29  ;;  %v572_v33 = vmul.f32 %v8842_v18, %v555_v30  ;;  %588 = vadd.xlane.f32.xlu0 %v587_v31  ;;  %v549_v34 = vpop.xlane.xlu0 %548 }
 0x201   :  { %v570_v36 = vmul.f32 %v8842_v18, %v549_v34  ;;  %v7561_v34 = vld [vmem:[%s10242_s28] ss:$0 sm:$0xff] }
 0x202   :  { %v8860_v37 = vsub.f32 %v542_v6, %v574_v32  ;;  %v8862_v38 = vsub.f32 %v540_v7, %v572_v33 }
 0x203   :  { %v8864_v39 = vsub.f32 %v538_v8, %v570_v36 }
 0x204   :  { %v586_v40 = vmul.f32 %v8860_v37, %v8860_v37  ;;  %v584_v41 = vmul.f32 %v8862_v38, %v8862_v38 }
 0x205   :  { %v582_v43 = vmul.f32 %v8864_v39, %v8864_v39 }
 0x206   :  { %v602_v44 = vsel %vm543_vm0, %v586_v40, 0.0  ;;  %v596_v45 = vsel %vm543_vm0, %v584_v41, 0.0 }
 0x207   :  { %603 = vadd.xlane.f32.xlu2 %v602_v44  ;;  %v590_v46 = vsel %vm543_vm0, %v582_v43, 0.0 }
 0x208   :  { %597 = vadd.xlane.f32.xlu0 %v596_v45  ;;  %591 = vadd.xlane.f32.xlu1 %v590_v46 }
 0x210   :  { %600 = vadd.xlane.f32.xlu1 %v599_v48 }
 0x272   :  { %v595_v51 = vpop.xlane.xlu2 %594 }
 0x273   :  { %v607_v52 = vmul.f32 %v595_v51, %v8842_v18  ;;  %v589_v53 = vpop.xlane.xlu0 %588 }
 0x274   :  { %v605_v54 = vmul.f32 %v589_v53, %v8842_v18 }
 0x275   :  { %v613_v55 = vadd.f32 1e-05, %v607_v52 }
 0x276   :  { %v611_v56 = vadd.f32 1e-05, %v605_v54 }
 0x277   :  { %7585 = vrsqrt.f32 %v613_v55  ;;  %vm643_vm3 = vweird.f32 %v613_v55 }
 0x278   :  { %7587 = vrsqrt.f32 %v611_v56  ;;  %vm623_vm7 = vweird.f32 %v611_v56 }
 0x27a   :  { %v604_v57 = vpop.xlane.xlu2 %603 }
 0x27b   :  { %v610_v58 = vmul.f32 %v604_v57, %v8842_v18  ;;  %v592_v59 = vpop.xlane.xlu1 %591  ;;  %v598_v60 = vpop.xlane.xlu0 %597 }
 0x27c   :  { %v606_v61 = vmul.f32 %v592_v59, %v8842_v18  ;;  %v608_v62 = vmul.f32 %v598_v60, %v8842_v18 }
 0x27d   :  { %v7586_v63 = vpop.eup %7585  ;;  %v616_v0 = vadd.f32 1e-05, %v610_v58 }
 0x27e   :  { %v7588_v1 = vpop.eup %7587  ;;  %v638_v2 = vmul.f32 %v7586_v63, %v613_v55  ;;  %v612_v3 = vadd.f32 1e-05, %v606_v61  ;;  %v8893_v4 = vadd.f32 1e-05, %v608_v62  ;;  %vm644_vm4 = vweird.f32 %v7586_v63 }
 0x27f   :  { %v618_v5 = vmul.f32 %v7588_v1, %v611_v56  ;;  %7589 = vrsqrt.f32 %v616_v0  ;;  %vm624_vm5 = vweird.f32 %v7588_v1  ;;  %vm8897_vm6 = vmor %vm643_vm3, %vm644_vm4  ;;  %vm673_vm9 = vweird.f32 %v616_v0 }
 0x280   :  { %v639_v6 = vmul.f32 %v7586_v63, %v638_v2  ;;  %7591 = vrsqrt.f32 %v612_v3  ;;  %vm625_vm8 = vmor %vm623_vm7, %vm624_vm5  ;;  %vm653_vm12 = vweird.f32 %v8893_v4  ;;  %vm633_vm15 = vweird.f32 %v612_v3 }
 0x281   :  { %v619_v7 = vmul.f32 %v7588_v1, %v618_v5  ;;  %7593 = vrsqrt.f32 %v8893_v4  ;;  %vm852_vm7 = vcmask 261120  }
 0x282   :  { %v640_v8 = vmul.f32 0.5, %v639_v6 }
 0x283   :  { %v620_v9 = vmul.f32 0.5, %v619_v7  ;;  %v601_v10 = vpop.xlane.xlu1 %600 }
 0x284   :  { %v641_v11 = vsub.f32 1.5, %v640_v8  ;;  %v609_v12 = vmul.f32 %v601_v10, %v8842_v18 }
 0x285   :  { %v7590_v13 = vpop.eup %7589  ;;  %v621_v14 = vsub.f32 1.5, %v620_v9 }
 0x286   :  { %v7592_v15 = vpop.eup %7591  ;;  %v642_v16 = vmul.f32 %v7586_v63, %v641_v11  ;;  %v668_v17 = vmul.f32 %v7590_v13, %v616_v0  ;;  %v615_v19 = vadd.f32 1e-05, %v609_v12  ;;  %vm674_vm10 = vweird.f32 %v7590_v13 }
 0x287   :  { %v7594_v20 = vpop.eup %7593  ;;  %v622_v22 = vmul.f32 %v7588_v1, %v621_v14  ;;  %v628_v23 = vmul.f32 %v7592_v15, %v612_v3  ;;  %vm634_vm11 = vweird.f32 %v7592_v15  ;;  %vm8911_vm14 = vmor %vm673_vm9, %vm674_vm10 }
 0x288   :  { %v669_v26 = vmul.f32 %v7590_v13, %v668_v17  ;;  %v648_v18 = vmul.f32 %v7594_v20, %v8893_v4  ;;  %7595 = vrsqrt.f32 %v615_v19  ;;  %v646_v30 = vsel %vm8897_vm6, %v7586_v63, %v642_v16  ;;  %vm635_vm1 = vmor %vm633_vm15, %vm634_vm11 }
 0x289   :  { %v629_v28 = vmul.f32 %v7592_v15, %v628_v23  ;;  %v626_v29 = vsel %vm625_vm8, %v7588_v1, %v622_v22  ;;  %v679_v35 = vmul.f32 %v646_v30, %v8846_v24  ;;  %vm654_vm13 = vweird.f32 %v7594_v20 }
 0x28a   :  { %v670_v31 = vmul.f32 0.5, %v669_v26  ;;  %v649_v32 = vmul.f32 %v7594_v20, %v648_v18  ;;  %v677_v33 = vmul.f32 %v626_v29, %v8848_v25  ;;  %vm655_vm3 = vmor %vm653_vm12, %vm654_vm13  ;;  %vm663_vm5 = vweird.f32 %v615_v19 }
 0x28b   :  { %v630_v36 = vmul.f32 0.5, %v629_v28  ;;  %v688_v44 = vmul.f32 %v7560_v27, %v679_v35 }
 0x28c   :  { %v671_v40 = vsub.f32 1.5, %v670_v31  ;;  %v650_v41 = vmul.f32 0.5, %v649_v32  ;;  %v686_v43 = vmul.f32 %v7560_v27, %v677_v33  ;;  %v8527_v32 = vmov 32.0  }
 0x28d   :  { %v631_v45 = vsub.f32 1.5, %v630_v36  ;;  %v697_v49 = vadd.f32 %v7561_v34, %v688_v44  ;;  %7597 = vrcp.f32 %v8527_v32  ;;  %v8984_v32 = vld [vmem:[%s10249_s16] ss:$0 sm:$0xff] }
 0x28e   :  { %v7596_v46 = vpop.eup %7595  ;;  %v651_v47 = vsub.f32 1.5, %v650_v41  ;;  %v695_v48 = vadd.f32 %v7561_v34, %v686_v43  ;;  %v672_v25 = vmul.f32 %v7590_v13, %v671_v40 }
 0x28f   :  { %v632_v50 = vmul.f32 %v7592_v15, %v631_v45  ;;  %v658_v51 = vmul.f32 %v7596_v46, %v615_v19  ;;  %7118 = vmatmul.msk.f32.vlgmr.msra.gmra.mxu2 %vm543_vm0, %v697_v49  ;;  %vm664_vm4 = vweird.f32 %v7596_v46 }
 0x290   :  { %v652_v52 = vmul.f32 %v7594_v20, %v651_v47  ;;  %7114 = vmatmul.msk.f32.vlgmr.msra.gmra.mxu0 %vm543_vm0, %v695_v48  ;;  %v676_v57 = vsel %vm8911_vm14, %v7590_v13, %v672_v25  ;;  %vm665_vm6 = vmor %vm663_vm5, %vm664_vm4 }
 0x291   :  { %v659_v53 = vmul.f32 %v7596_v46, %v658_v51  ;;  %v636_v54 = vsel %vm635_vm1, %v7592_v15, %v632_v50  ;;  %v682_v63 = vmul.f32 %v676_v57, %v8860_v37  ;;  %v7562_v37 = vld [vmem:[%s10247_s4] ss:$0 sm:$0xff] }
 0x292   :  { %v678_v55 = vmul.f32 %v636_v54, %v8864_v39  ;;  %v656_v56 = vsel %vm655_vm3, %v7594_v20, %v652_v52 }
 0x293   :  { %v660_v58 = vmul.f32 0.5, %v659_v53  ;;  %v680_v59 = vmul.f32 %v656_v56, %v8862_v38  ;;  %v691_v38 = vmul.f32 %v7560_v27, %v682_v63  ;;  %v7598_v33 = vpop.eup %7597 }
 0x294   :  { %v687_v60 = vmul.f32 %v7560_v27, %v678_v55 }
 0x295   :  { %v661_v61 = vsub.f32 1.5, %v660_v58  ;;  %v689_v62 = vmul.f32 %v7560_v27, %v680_v59  ;;  %v700_v6 = vadd.f32 %v7561_v34, %v691_v38 }
 0x296   :  { %v696_v0 = vadd.f32 %v7561_v34, %v687_v60 }
 0x297   :  { %v662_v1 = vmul.f32 %v7596_v46, %v661_v61  ;;  %v698_v2 = vadd.f32 %v7561_v34, %v689_v62 }
 0x298   :  { %7116 = vmatmul.msk.f32.vlgmr.msra.gmra.mxu1 %vm543_vm0, %v696_v0 }
 0x299   :  { %v666_v39 = vsel %vm665_vm6, %v7596_v46, %v662_v1  ;;  %7120 = vmatmul.msk.f32.vlgmr.msra.gmra.mxu3 %vm543_vm0, %v698_v2 }
 0x29a   :  { %v681_v3 = vmul.f32 %v666_v39, %v8870_v42 }
 0x29c   :  { %v690_v4 = vmul.f32 %v7560_v27, %v681_v3 }
 0x29e   :  { %v699_v5 = vadd.f32 %v7561_v34, %v690_v4  ;;  %v872_v34 = vmul.f32 32.0, %v7598_v33 }
 0x2a0   :  { %7122 = vmatmul.msk.f32.vlgmr.msrb.gmra.mxu0 %vm543_vm0, %v699_v5  ;;  %7124 = vmatmul.msk.f32.vlgmr.msrb.gmra.mxu1 %vm543_vm0, %v700_v6  ;;  %v873_v35 = vsub.f32 1.0, %v872_v34  ;;  %vm876_vm0 = vweird.f32 %v7598_v33  ;;  %v486_v5 = vld [vmem:[%s10248_s19 + $0x18] sm:$0xff]  ;;  %v485_v6 = vld [vmem:[%s10248_s19 + $0x10] sm:$0xff] }
 0x2a1   :  { %1028 = vmatpush.msrb.mxu2 %v486_v5  ;;  %1051 = vmatpush.msrb.mxu3 %v486_v5 }
 0x2a2   :  { %v874_v36 = vmul.f32 %v7598_v33, %v873_v35  ;;  %1074 = vmatpush.msra.mxu0 %v486_v5  ;;  %1097 = vmatpush.msra.mxu1 %v486_v5 }
 0x2a3   :  { %1029 = vmatpush.msrb.mxu2 %v485_v6  ;;  %1052 = vmatpush.msrb.mxu3 %v485_v6 }
 0x2a4   :  { %v875_v40 = vadd.f32 %v7598_v33, %v874_v36  ;;  %1075 = vmatpush.msra.mxu0 %v485_v6  ;;  %1098 = vmatpush.msra.mxu1 %v485_v6  ;;  %v8988_v36 = vld [vmem:[%s10250_s22] ss:$0 sm:$0xff] }
 0x2a6   :  { %v8936_v41 = vsel %vm876_vm0, %v7598_v33, %v875_v40 }
 0x30d   :  { %v728_v7 = vpop.f32.mrf.mxu0 }
 0x30e   :  { %v729_v8 = vadd.f32 %v7562_v37, %v728_v7  ;;  %v483_v7 = vld [vmem:[%s10248_s19] sm:$0xff] }
 0x310   :  { %v846_v9 = vmax.f32 %v729_v8, 0.0 }
 0x312   :  { %v853_v10 = vsel %vm852_vm7, %v846_v9, 0.0  ;;  %v774_v13 = vpop.f32.mrf.mxu2 }
 0x313   :  { %854 = vadd.xlane.f32.xlu0 %v853_v10  ;;  %v775_v14 = vadd.f32 %v7562_v37, %v774_v13 }
 0x315   :  { %v751_v11 = vpop.f32.mrf.mxu1  ;;  %v848_v19 = vmax.f32 %v775_v14, 0.0 }
 0x316   :  { %v752_v12 = vadd.f32 %v7562_v37, %v751_v11 }
 0x317   :  { %v859_v28 = vsel %vm852_vm7, %v848_v19, 0.0 }
 0x318   :  { %v847_v42 = vmax.f32 %v752_v12, 0.0 }
 0x31a   :  { %v856_v15 = vsel %vm852_vm7, %v847_v42, 0.0 }
 0x31b   :  { %857 = vadd.xlane.f32.xlu1 %v856_v15 }
 0x31c   :  { %v797_v22 = vpop.f32.mrf.mxu3 }
 0x31d   :  { %v820_v16 = vpop.f32.mrf.mxu0  ;;  %v843_v17 = vpop.f32.mrf.mxu1  ;;  %v798_v18 = vadd.f32 %v7562_v37, %v797_v22 }
 0x31e   :  { %v821_v20 = vadd.f32 %v7562_v37, %v820_v16  ;;  %v844_v21 = vadd.f32 %v7562_v37, %v843_v17  ;;  %v484_v37 = vld [vmem:[%s10248_s19 + $0x8] sm:$0xff] }
 0x31f   :  { %v849_v30 = vmax.f32 %v798_v18, 0.0  ;;  %1030 = vmatpush.msrb.mxu2 %v484_v37  ;;  %1053 = vmatpush.msrb.mxu3 %v484_v37 }
 0x320   :  { %v850_v23 = vmax.f32 %v821_v20, 0.0  ;;  %v851_v26 = vmax.f32 %v844_v21, 0.0  ;;  %1076 = vmatpush.msra.mxu0 %v484_v37  ;;  %1099 = vmatpush.msra.mxu1 %v484_v37 }
 0x321   :  { %v862_v31 = vsel %vm852_vm7, %v849_v30, 0.0  ;;  %1031 = vmatpush.msrb.mxu2 %v483_v7  ;;  %1054 = vmatpush.msrb.mxu3 %v483_v7 }
 0x322   :  { %v865_v27 = vsel %vm852_vm7, %v850_v23, 0.0  ;;  %v868_v29 = vsel %vm852_vm7, %v851_v26, 0.0  ;;  %1077 = vmatpush.msra.mxu0 %v483_v7  ;;  %1100 = vmatpush.msra.mxu1 %v483_v7 }
 0x323   :  { %866 = vadd.xlane.f32.xlu2 %v865_v27  ;;  %860 = vadd.xlane.f32.xlu1 %v859_v28 }
 0x324   :  { %869 = vadd.xlane.f32.xlu0 %v868_v29  ;;  %1120 = vmatpush.msra.mxu2 %v486_v5 }
 0x325   :  { %1143 = vmatpush.msra.mxu3 %v486_v5 }
 0x326   :  { %1121 = vmatpush.msra.mxu2 %v485_v6 }
 0x327   :  { %1144 = vmatpush.msra.mxu3 %v485_v6 }
 0x328   :  { %1122 = vmatpush.msra.mxu2 %v484_v37 }
 0x329   :  { %1145 = vmatpush.msra.mxu3 %v484_v37 }
 0x32a   :  { %1123 = vmatpush.msra.mxu2 %v483_v7 }
 0x32b   :  { %863 = vadd.xlane.f32.xlu2 %v862_v31  ;;  %1146 = vmatpush.msra.mxu3 %v483_v7 }
 0x386   :  { %v855_v43 = vpop.xlane.xlu0 %854 }
 0x387   :  { %v878_v44 = vmul.f32 %v8936_v41, %v855_v43 }
 0x389   :  { %v8939_v45 = vsub.f32 %v846_v9, %v878_v44 }
 0x38b   :  { %v890_v46 = vmul.f32 %v8939_v45, %v8939_v45 }
 0x38d   :  { %v896_v47 = vsel %vm852_vm7, %v890_v46, 0.0 }
 0x38e   :  { %v858_v48 = vpop.xlane.xlu1 %857  ;;  %897 = vadd.xlane.f32.xlu0 %v896_v47 }
 0x38f   :  { %v879_v49 = vmul.f32 %v8936_v41, %v858_v48 }
 0x391   :  { %v8945_v25 = vsub.f32 %v847_v42, %v879_v49 }
 0x393   :  { %v891_v24 = vmul.f32 %v8945_v25, %v8945_v25 }
 0x395   :  { %v899_v50 = vsel %vm852_vm7, %v891_v24, 0.0 }
 0x396   :  { %v867_v51 = vpop.xlane.xlu2 %866  ;;  %900 = vadd.xlane.f32.xlu1 %v899_v50  ;;  %v861_v52 = vpop.xlane.xlu1 %860 }
 0x397   :  { %v882_v53 = vmul.f32 %v8936_v41, %v867_v51  ;;  %v880_v54 = vmul.f32 %v8936_v41, %v861_v52  ;;  %v870_v55 = vpop.xlane.xlu0 %869 }
 0x398   :  { %v883_v56 = vmul.f32 %v8936_v41, %v870_v55 }
 0x399   :  { %v8953_v57 = vsub.f32 %v850_v23, %v882_v53  ;;  %v8955_v58 = vsub.f32 %v848_v19, %v880_v54 }
 0x39a   :  { %v8957_v59 = vsub.f32 %v851_v26, %v883_v56 }
 0x39b   :  { %v894_v60 = vmul.f32 %v8953_v57, %v8953_v57  ;;  %v892_v61 = vmul.f32 %v8955_v58, %v8955_v58 }
 0x39c   :  { %v895_v62 = vmul.f32 %v8957_v59, %v8957_v59 }
 0x39d   :  { %v908_v63 = vsel %vm852_vm7, %v894_v60, 0.0  ;;  %v902_v0 = vsel %vm852_vm7, %v892_v61, 0.0 }
 0x39e   :  { %909 = vadd.xlane.f32.xlu2 %v908_v63  ;;  %v864_v1 = vpop.xlane.xlu2 %863  ;;  %903 = vadd.xlane.f32.xlu1 %v902_v0  ;;  %v911_v2 = vsel %vm852_vm7, %v895_v62, 0.0 }
 0x39f   :  { %v881_v39 = vmul.f32 %v8936_v41, %v864_v1  ;;  %912 = vadd.xlane.f32.xlu0 %v911_v2 }
 0x3a1   :  { %v8969_v3 = vsub.f32 %v849_v30, %v881_v39 }
 0x3a3   :  { %v893_v38 = vmul.f32 %v8969_v3, %v8969_v3 }
 0x3a5   :  { %v905_v4 = vsel %vm852_vm7, %v893_v38, 0.0 }
 0x3a6   :  { %906 = vadd.xlane.f32.xlu2 %v905_v4 }
 0x401   :  { %v898_v8 = vpop.xlane.xlu0 %897 }
 0x402   :  { %v914_v9 = vmul.f32 %v898_v8, %v8936_v41 }
 0x404   :  { %v920_v10 = vadd.f32 1e-05, %v914_v9 }
 0x406   :  { %7599 = vrsqrt.f32 %v920_v10  ;;  %vm932_vm9 = vweird.f32 %v920_v10 }
 0x409   :  { %v901_v11 = vpop.xlane.xlu1 %900 }
 0x40a   :  { %v915_v12 = vmul.f32 %v901_v11, %v8936_v41 }
 0x40c   :  { %v7600_v13 = vpop.eup %7599  ;;  %v921_v42 = vadd.f32 1e-05, %v915_v12 }
 0x40d   :  { %v927_v14 = vmul.f32 %v7600_v13, %v920_v10  ;;  %vm933_vm8 = vweird.f32 %v7600_v13 }
 0x40e   :  { %7601 = vrsqrt.f32 %v921_v42  ;;  %vm934_vm10 = vmor %vm932_vm9, %vm933_vm8  ;;  %vm942_vm12 = vweird.f32 %v921_v42 }
 0x40f   :  { %v928_v15 = vmul.f32 %v7600_v13, %v927_v14 }
 0x411   :  { %v929_v16 = vmul.f32 0.5, %v928_v15  ;;  %v910_v17 = vpop.xlane.xlu2 %909  ;;  %v904_v19 = vpop.xlane.xlu1 %903 }
 0x412   :  { %v918_v20 = vmul.f32 %v910_v17, %v8936_v41  ;;  %v916_v21 = vmul.f32 %v904_v19, %v8936_v41  ;;  %v913_v22 = vpop.xlane.xlu0 %912 }
 0x413   :  { %v930_v23 = vsub.f32 1.5, %v929_v16  ;;  %v919_v26 = vmul.f32 %v913_v22, %v8936_v41 }
 0x414   :  { %v7602_v18 = vpop.eup %7601  ;;  %v924_v27 = vadd.f32 1e-05, %v918_v20  ;;  %v922_v28 = vadd.f32 1e-05, %v916_v21 }
 0x415   :  { %v931_v29 = vmul.f32 %v7600_v13, %v930_v23  ;;  %v937_v30 = vmul.f32 %v7602_v18, %v921_v42  ;;  %v925_v31 = vadd.f32 1e-05, %v919_v26  ;;  %vm943_vm11 = vweird.f32 %v7602_v18 }
 0x416   :  { %7603 = vrsqrt.f32 %v924_v27  ;;  %vm944_vm13 = vmor %vm942_vm12, %vm943_vm11  ;;  %vm972_vm15 = vweird.f32 %v924_v27  ;;  %vm952_vm5 = vweird.f32 %v922_v28 }
 0x417   :  { %v935_v33 = vsel %vm934_vm10, %v7600_v13, %v931_v29  ;;  %v938_v34 = vmul.f32 %v7602_v18, %v937_v30  ;;  %7605 = vrsqrt.f32 %v922_v28  ;;  %vm982_vm0 = vweird.f32 %v925_v31 }
 0x418   :  { %v986_v35 = vmul.f32 %v935_v33, %v8939_v45  ;;  %7607 = vrsqrt.f32 %v925_v31 }
 0x419   :  { %v939_v40 = vmul.f32 0.5, %v938_v34  ;;  %v907_v43 = vpop.xlane.xlu2 %906 }
 0x41a   :  { %v917_v44 = vmul.f32 %v907_v43, %v8936_v41  ;;  %v995_v46 = vmul.f32 %v8984_v32, %v986_v35 }
 0x41b   :  { %v940_v47 = vsub.f32 1.5, %v939_v40 }
 0x41c   :  { %v7604_v48 = vpop.eup %7603  ;;  %v923_v49 = vadd.f32 1e-05, %v917_v44  ;;  %v1004_v24 = vadd.f32 %v8988_v36, %v995_v46 }
 0x41d   :  { %v7606_v50 = vpop.eup %7605  ;;  %v941_v51 = vmul.f32 %v7602_v18, %v940_v47  ;;  %v967_v52 = vmul.f32 %v7604_v48, %v924_v27  ;;  %vm973_vm14 = vweird.f32 %v7604_v48  ;;  %v7565_v27 = vld [vmem:[%s10251_s29] ss:$0 sm:$0xff] }
 0x41e   :  { %v7608_v45 = vpop.eup %7607  ;;  %v947_v53 = vmul.f32 %v7606_v50, %v922_v28  ;;  %7609 = vrsqrt.f32 %v923_v49  ;;  %7125 = vmatmul.msk.f32.vlgmr.msrb.gmra.mxu2 %vm852_vm7, %v1004_v24  ;;  %vm953_vm1 = vweird.f32 %v7606_v50  ;;  %vm974_vm4 = vmor %vm972_vm15, %vm973_vm14  ;;  %vm962_vm10 = vweird.f32 %v923_v49 }
 0x41f   :  { %v945_v54 = vsel %vm944_vm13, %v7602_v18, %v941_v51  ;;  %v968_v55 = vmul.f32 %v7604_v48, %v967_v52  ;;  %v977_v56 = vmul.f32 %v7608_v45, %v925_v31  ;;  %vm983_vm3 = vweird.f32 %v7608_v45  ;;  %vm954_vm6 = vmor %vm952_vm5, %vm953_vm1 }
 0x420   :  { %v987_v60 = vmul.f32 %v945_v54, %v8945_v25  ;;  %v948_v61 = vmul.f32 %v7606_v50, %v947_v53  ;;  %vm984_vm8 = vmor %vm982_vm0, %vm983_vm3 }
 0x421   :  { %v969_v62 = vmul.f32 0.5, %v968_v55  ;;  %v978_v63 = vmul.f32 %v7608_v45, %v977_v56 }
 0x422   :  { %v949_v0 = vmul.f32 0.5, %v948_v61  ;;  %v996_v1 = vmul.f32 %v8984_v32, %v987_v60 }
 0x423   :  { %v970_v2 = vsub.f32 1.5, %v969_v62  ;;  %v979_v39 = vmul.f32 0.5, %v978_v63 }
 0x424   :  { %v7610_v38 = vpop.eup %7609  ;;  %v950_v4 = vsub.f32 1.5, %v949_v0  ;;  %v1005_v5 = vadd.f32 %v8988_v36, %v996_v1 }
 0x425   :  { %v971_v6 = vmul.f32 %v7604_v48, %v970_v2  ;;  %v980_v37 = vsub.f32 1.5, %v979_v39  ;;  %v957_v7 = vmul.f32 %v7610_v38, %v923_v49  ;;  %vm963_vm9 = vweird.f32 %v7610_v38 }
 0x426   :  { %v951_v25 = vmul.f32 %v7606_v50, %v950_v4  ;;  %7126 = vmatmul.msk.f32.vlgmr.msrb.gmra.mxu3 %vm852_vm7, %v1005_v5  ;;  %vm964_vm11 = vmor %vm962_vm10, %vm963_vm9 }
 0x427   :  { %v975_v8 = vsel %vm974_vm4, %v7604_v48, %v971_v6  ;;  %v981_v9 = vmul.f32 %v7608_v45, %v980_v37  ;;  %v958_v10 = vmul.f32 %v7610_v38, %v957_v7 }
 0x428   :  { %v990_v11 = vmul.f32 %v975_v8, %v8953_v57  ;;  %v955_v12 = vsel %vm954_vm6, %v7606_v50, %v951_v25 }
 0x429   :  { %v988_v13 = vmul.f32 %v955_v12, %v8955_v58  ;;  %v985_v42 = vsel %vm984_vm8, %v7608_v45, %v981_v9  ;;  %v959_v14 = vmul.f32 0.5, %v958_v10 }
 0x42a   :  { %v999_v15 = vmul.f32 %v8984_v32, %v990_v11  ;;  %v991_v16 = vmul.f32 %v985_v42, %v8957_v59 }
 0x42b   :  { %v997_v17 = vmul.f32 %v8984_v32, %v988_v13  ;;  %v960_v19 = vsub.f32 1.5, %v959_v14 }
 0x42c   :  { %v1000_v20 = vmul.f32 %v8984_v32, %v991_v16  ;;  %v1008_v21 = vadd.f32 %v8988_v36, %v999_v15 }
 0x42d   :  { %v961_v57 = vmul.f32 %v7610_v38, %v960_v19  ;;  %v1006_v22 = vadd.f32 %v8988_v36, %v997_v17 }
 0x42e   :  { %7129 = vmatmul.msk.f32.vlgmr.msra.gmra.mxu2 %vm852_vm7, %v1008_v21  ;;  %v1009_v58 = vadd.f32 %v8988_v36, %v1000_v20  ;;  %v536_v21 = vld [vmem:[#allocation37 + $0x18] sm:$0xff] }
 0x42f   :  { %v965_v23 = vsel %vm964_vm11, %v7610_v38, %v961_v57  ;;  %7127 = vmatmul.msk.f32.vlgmr.msra.gmra.mxu0 %vm852_vm7, %v1006_v22  ;;  %1348 = vmatpush.msrb.mxu1 %v536_v21  ;;  %v535_v57 = vld [vmem:[#allocation37 + $0x10] sm:$0xff]  ;;  %v534_v22 = vld [vmem:[#allocation37 + $0x8] sm:$0xff] }
 0x430   :  { %v989_v59 = vmul.f32 %v965_v23, %v8969_v3  ;;  %7130 = vmatmul.msk.f32.vlgmr.msra.gmra.mxu3 %vm852_vm7, %v1009_v58  ;;  %1325 = vmatpush.msrb.mxu0 %v536_v21  ;;  %v533_v58 = vld [vmem:[#allocation37] sm:$0xff] }
 0x431   :  { %1371 = vmatpush.msrb.mxu2 %v536_v21  ;;  %1394 = vmatpush.msrb.mxu3 %v536_v21 }
 0x432   :  { %v998_v26 = vmul.f32 %v8984_v32, %v989_v59  ;;  %1326 = vmatpush.msrb.mxu0 %v535_v57  ;;  %1349 = vmatpush.msrb.mxu1 %v535_v57 }
 0x433   :  { %1372 = vmatpush.msrb.mxu2 %v535_v57  ;;  %1395 = vmatpush.msrb.mxu3 %v535_v57 }
 0x434   :  { %v1007_v18 = vadd.f32 %v8988_v36, %v998_v26  ;;  %1327 = vmatpush.msrb.mxu0 %v534_v22  ;;  %1350 = vmatpush.msrb.mxu1 %v534_v22 }
 0x435   :  { %1373 = vmatpush.msrb.mxu2 %v534_v22  ;;  %1396 = vmatpush.msrb.mxu3 %v534_v22 }
 0x436   :  { %7128 = vmatmul.msk.f32.vlgmr.msra.gmra.mxu1 %vm852_vm7, %v1007_v18  ;;  %1328 = vmatpush.msrb.mxu0 %v533_v58 }
 0x437   :  { %1351 = vmatpush.msrb.mxu1 %v533_v58  ;;  %1374 = vmatpush.msrb.mxu2 %v533_v58 }
 0x438   :  { %1417 = vmatpush.msra.mxu0 %v536_v21  ;;  %1397 = vmatpush.msrb.mxu3 %v533_v58 }
 0x439   :  { %1440 = vmatpush.msra.mxu1 %v536_v21 }
 0x43a   :  { %1418 = vmatpush.msra.mxu0 %v535_v57 }
 0x43b   :  { %1441 = vmatpush.msra.mxu1 %v535_v57 }
 0x43c   :  { %1419 = vmatpush.msra.mxu0 %v534_v22 }
 0x43d   :  { %1442 = vmatpush.msra.mxu1 %v534_v22 }
 0x43e   :  { %1420 = vmatpush.msra.mxu0 %v533_v58 }
 0x43f   :  { %1443 = vmatpush.msra.mxu1 %v533_v58 }
 0x4a1   :  { %v1033_v28 = vpop.f32.mrf.mxu2 }
 0x4a2   :  { %v1034_v29 = vadd.f32 %v7565_v27, %v1033_v28 }
 0x4a4   :  { %v1151_v30 = vmax.f32 %v1034_v29, 0.0 }
 0x4a6   :  { %v1157_v31 = vsel %vm852_vm7, %v1151_v30, 0.0 }
 0x4a7   :  { %1158 = vadd.xlane.f32.xlu0 %v1157_v31 }
 0x4a9   :  { %v1056_v33 = vpop.f32.mrf.mxu3 }
 0x4aa   :  { %v1057_v34 = vadd.f32 %v7565_v27, %v1056_v33 }
 0x4ac   :  { %v1152_v35 = vmax.f32 %v1057_v34, 0.0  ;;  %v1079_v40 = vpop.f32.mrf.mxu0 }
 0x4ad   :  { %v1080_v3 = vadd.f32 %v7565_v27, %v1079_v40 }
 0x4ae   :  { %v1160_v43 = vsel %vm852_vm7, %v1152_v35, 0.0 }
 0x4af   :  { %v1153_v44 = vmax.f32 %v1080_v3, 0.0  ;;  %1161 = vadd.xlane.f32.xlu1 %v1160_v43 }
 0x4b1   :  { %v1163_v32 = vsel %vm852_vm7, %v1153_v44, 0.0  ;;  %v1125_v36 = vpop.f32.mrf.mxu2 }
 0x4b2   :  { %1164 = vadd.xlane.f32.xlu2 %v1163_v32  ;;  %v1126_v46 = vadd.f32 %v7565_v27, %v1125_v36 }
 0x4b3   :  { %v1148_v47 = vpop.f32.mrf.mxu3  ;;  %v1102_v48 = vpop.f32.mrf.mxu1 }
 0x4b4   :  { %v1155_v49 = vmax.f32 %v1126_v46, 0.0  ;;  %v1149_v24 = vadd.f32 %v7565_v27, %v1148_v47  ;;  %v1103_v50 = vadd.f32 %v7565_v27, %v1102_v48 }
 0x4b6   :  { %v1156_v51 = vmax.f32 %v1149_v24, 0.0  ;;  %v1154_v52 = vmax.f32 %v1103_v50, 0.0  ;;  %v1169_v45 = vsel %vm852_vm7, %v1155_v49, 0.0 }
 0x4b7   :  { %1170 = vadd.xlane.f32.xlu1 %v1169_v45 }
 0x4b8   :  { %v1166_v53 = vsel %vm852_vm7, %v1154_v52, 0.0  ;;  %v1172_v54 = vsel %vm852_vm7, %v1156_v51, 0.0 }
 0x4b9   :  { %1167 = vadd.xlane.f32.xlu0 %v1166_v53 }
 0x4ba   :  { %1173 = vadd.xlane.f32.xlu2 %v1172_v54 }
 0x51a   :  { %v1159_v55 = vpop.xlane.xlu0 %1158 }
 0x51b   :  { %v1175_v56 = vmul.f32 %v1159_v55, %v8936_v41 }
 0x51d   :  { %v9022_v60 = vsub.f32 %v1151_v30, %v1175_v56 }
 0x51f   :  { %v1187_v61 = vmul.f32 %v9022_v60, %v9022_v60 }
 0x521   :  { %v1193_v62 = vsel %vm852_vm7, %v1187_v61, 0.0 }
 0x522   :  { %v1162_v63 = vpop.xlane.xlu1 %1161  ;;  %1194 = vadd.xlane.f32.xlu0 %v1193_v62  ;;  %v9066_v62 = vld [vmem:[#allocation2] ss:$0 sm:$0xff] }
 0x523   :  { %v1176_v0 = vmul.f32 %v1162_v63, %v8936_v41 }
 0x525   :  { %v9028_v1 = vsub.f32 %v1152_v35, %v1176_v0  ;;  %v1165_v2 = vpop.xlane.xlu2 %1164 }
 0x526   :  { %v1177_v39 = vmul.f32 %v1165_v2, %v8936_v41 }
 0x527   :  { %v1188_v38 = vmul.f32 %v9028_v1, %v9028_v1 }
 0x528   :  { %v9033_v4 = vsub.f32 %v1153_v44, %v1177_v39 }
 0x529   :  { %v1196_v5 = vsel %vm852_vm7, %v1188_v38, 0.0 }
 0x52a   :  { %1197 = vadd.xlane.f32.xlu1 %v1196_v5  ;;  %v1171_v6 = vpop.xlane.xlu1 %1170  ;;  %v1189_v37 = vmul.f32 %v9033_v4, %v9033_v4 }
 0x52b   :  { %v1179_v7 = vmul.f32 %v1171_v6, %v8936_v41 }
 0x52c   :  { %v1199_v25 = vsel %vm852_vm7, %v1189_v37, 0.0  ;;  %v1168_v8 = vpop.xlane.xlu0 %1167 }
 0x52d   :  { %v9040_v9 = vsub.f32 %v1155_v49, %v1179_v7  ;;  %1200 = vadd.xlane.f32.xlu2 %v1199_v25  ;;  %v1174_v10 = vpop.xlane.xlu2 %1173  ;;  %v1178_v11 = vmul.f32 %v1168_v8, %v8936_v41 }
 0x52e   :  { %v1180_v12 = vmul.f32 %v1174_v10, %v8936_v41 }
 0x52f   :  { %v9044_v13 = vsub.f32 %v1154_v52, %v1178_v11  ;;  %v1191_v42 = vmul.f32 %v9040_v9, %v9040_v9 }
 0x530   :  { %v9048_v14 = vsub.f32 %v1156_v51, %v1180_v12  ;;  %v9063_v51 = vld [vmem:[#allocation4] ss:$0 sm:$0xff] }
 0x531   :  { %v1205_v15 = vsel %vm852_vm7, %v1191_v42, 0.0  ;;  %v1190_v16 = vmul.f32 %v9044_v13, %v9044_v13 }
 0x532   :  { %1206 = vadd.xlane.f32.xlu1 %v1205_v15  ;;  %v1192_v17 = vmul.f32 %v9048_v14, %v9048_v14 }
 0x533   :  { %v1202_v19 = vsel %vm852_vm7, %v1190_v16, 0.0 }
 0x534   :  { %v1208_v20 = vsel %vm852_vm7, %v1192_v17, 0.0  ;;  %1203 = vadd.xlane.f32.xlu0 %v1202_v19 }
 0x535   :  { %1209 = vadd.xlane.f32.xlu2 %v1208_v20 }
 0x595   :  { %v1195_v23 = vpop.xlane.xlu0 %1194 }
 0x596   :  { %v1211_v59 = vmul.f32 %v1195_v23, %v8936_v41 }
 0x598   :  { %v1217_v26 = vadd.f32 1e-05, %v1211_v59 }
 0x59a   :  { %7611 = vrsqrt.f32 %v1217_v26  ;;  %vm1229_vm13 = vweird.f32 %v1217_v26 }
 0x59d   :  { %v1198_v18 = vpop.xlane.xlu1 %1197 }
 0x59e   :  { %v1212_v27 = vmul.f32 %v1198_v18, %v8936_v41 }
 0x5a0   :  { %v7612_v28 = vpop.eup %7611  ;;  %v1218_v29 = vadd.f32 1e-05, %v1212_v27  ;;  %v1201_v30 = vpop.xlane.xlu2 %1200 }
 0x5a1   :  { %v1224_v31 = vmul.f32 %v7612_v28, %v1217_v26  ;;  %v1213_v33 = vmul.f32 %v1201_v30, %v8936_v41  ;;  %vm1230_vm12 = vweird.f32 %v7612_v28 }
 0x5a2   :  { %7613 = vrsqrt.f32 %v1218_v29  ;;  %vm1231_vm14 = vmor %vm1229_vm13, %vm1230_vm12  ;;  %vm1239_vm1 = vweird.f32 %v1218_v29 }
 0x5a3   :  { %v1225_v34 = vmul.f32 %v7612_v28, %v1224_v31  ;;  %v1219_v35 = vadd.f32 1e-05, %v1213_v33 }
 0x5a5   :  { %v1226_v40 = vmul.f32 0.5, %v1225_v34  ;;  %7615 = vrsqrt.f32 %v1219_v35  ;;  %v1207_v3 = vpop.xlane.xlu1 %1206  ;;  %vm1249_vm5 = vweird.f32 %v1219_v35 }
 0x5a6   :  { %v1215_v43 = vmul.f32 %v1207_v3, %v8936_v41 }
 0x5a7   :  { %v1227_v44 = vsub.f32 1.5, %v1226_v40  ;;  %v1204_v32 = vpop.xlane.xlu0 %1203 }
 0x5a8   :  { %v7614_v36 = vpop.eup %7613  ;;  %v1221_v46 = vadd.f32 1e-05, %v1215_v43  ;;  %v1210_v47 = vpop.xlane.xlu2 %1209  ;;  %v1214_v48 = vmul.f32 %v1204_v32, %v8936_v41 }
 0x5a9   :  { %v1228_v49 = vmul.f32 %v7612_v28, %v1227_v44  ;;  %v1234_v24 = vmul.f32 %v7614_v36, %v1218_v29  ;;  %v1216_v50 = vmul.f32 %v1210_v47, %v8936_v41  ;;  %vm1240_vm15 = vweird.f32 %v7614_v36 }
 0x5aa   :  { %7617 = vrsqrt.f32 %v1221_v46  ;;  %v1220_v52 = vadd.f32 1e-05, %v1214_v48  ;;  %vm1241_vm3 = vmor %vm1239_vm1, %vm1240_vm15  ;;  %vm1269_vm8 = vweird.f32 %v1221_v46  ;;  %vm1451_vm1 = vcmask 64512  }
 0x5ab   :  { %v7616_v45 = vpop.eup %7615  ;;  %v1232_v53 = vsel %vm1231_vm14, %v7612_v28, %v1228_v49  ;;  %v1235_v54 = vmul.f32 %v7614_v36, %v1234_v24  ;;  %v1222_v55 = vadd.f32 1e-05, %v1216_v50 }
 0x5ac   :  { %v1283_v56 = vmul.f32 %v1232_v53, %v9022_v60  ;;  %v1244_v61 = vmul.f32 %v7616_v45, %v1219_v35  ;;  %7619 = vrsqrt.f32 %v1220_v52  ;;  %vm1250_vm4 = vweird.f32 %v7616_v45 }
 0x5ad   :  { %v1236_v63 = vmul.f32 0.5, %v1235_v54  ;;  %7621 = vrsqrt.f32 %v1222_v55  ;;  %vm1251_vm6 = vmor %vm1249_vm5, %vm1250_vm4  ;;  %vm1259_vm12 = vweird.f32 %v1220_v52  ;;  %vm1279_vm13 = vweird.f32 %v1222_v55 }
 0x5ae   :  { %v1292_v0 = vmul.f32 %v9063_v51, %v1283_v56  ;;  %v1245_v2 = vmul.f32 %v7616_v45, %v1244_v61 }
 0x5af   :  { %v1237_v39 = vsub.f32 1.5, %v1236_v63 }
 0x5b0   :  { %v7618_v38 = vpop.eup %7617  ;;  %v1246_v5 = vmul.f32 0.5, %v1245_v2  ;;  %v9070_v6 = vadd.f32 %v9066_v62, %v1292_v0 }
 0x5b1   :  { %v1238_v37 = vmul.f32 %v7614_v36, %v1237_v39  ;;  %v1264_v7 = vmul.f32 %v7618_v38, %v1221_v46  ;;  %vm1270_vm0 = vweird.f32 %v7618_v38 }
 0x5b2   :  { %v7620_v60 = vpop.eup %7619  ;;  %v1247_v25 = vsub.f32 1.5, %v1246_v5  ;;  %7131 = vmatmul.msk.f32.vlgmr.msrb.gmra.mxu0 %vm852_vm7, %v9070_v6  ;;  %vm1271_vm10 = vmor %vm1269_vm8, %vm1270_vm0 }
 0x5b3   :  { %v7622_v8 = vpop.eup %7621  ;;  %v1242_v10 = vsel %vm1241_vm3, %v7614_v36, %v1238_v37  ;;  %v1265_v11 = vmul.f32 %v7618_v38, %v1264_v7  ;;  %v1254_v12 = vmul.f32 %v7620_v60, %v1220_v52  ;;  %vm1260_vm9 = vweird.f32 %v7620_v60 }
 0x5b4   :  { %v1284_v42 = vmul.f32 %v1242_v10, %v9028_v1  ;;  %v1248_v15 = vmul.f32 %v7616_v45, %v1247_v25  ;;  %v1274_v16 = vmul.f32 %v7622_v8, %v1222_v55  ;;  %vm1280_vm11 = vweird.f32 %v7622_v8  ;;  %vm1261_vm14 = vmor %vm1259_vm12, %vm1260_vm9 }
 0x5b5   :  { %v1266_v17 = vmul.f32 0.5, %v1265_v11  ;;  %v1255_v19 = vmul.f32 %v7620_v60, %v1254_v12  ;;  %vm1281_vm15 = vmor %vm1279_vm13, %vm1280_vm11 }
 0x5b6   :  { %v1293_v20 = vmul.f32 %v9063_v51, %v1284_v42  ;;  %v1252_v21 = vsel %vm1251_vm6, %v7616_v45, %v1248_v15  ;;  %v1275_v57 = vmul.f32 %v7622_v8, %v1274_v16 }
 0x5b7   :  { %v1285_v22 = vmul.f32 %v1252_v21, %v9033_v4  ;;  %v1267_v58 = vsub.f32 1.5, %v1266_v17  ;;  %v1256_v23 = vmul.f32 0.5, %v1255_v19 }
 0x5b8   :  { %v1276_v59 = vmul.f32 0.5, %v1275_v57  ;;  %v9078_v26 = vadd.f32 %v9066_v62, %v1293_v20 }
 0x5b9   :  { %v1294_v1 = vmul.f32 %v9063_v51, %v1285_v22  ;;  %v1268_v18 = vmul.f32 %v7618_v38, %v1267_v58  ;;  %v1257_v27 = vsub.f32 1.5, %v1256_v23 }
 0x5ba   :  { %v1277_v28 = vsub.f32 1.5, %v1276_v59  ;;  %7132 = vmatmul.msk.f32.vlgmr.msrb.gmra.mxu1 %vm852_vm7, %v9078_v26 }
 0x5bb   :  { %v1272_v4 = vsel %vm1271_vm10, %v7618_v38, %v1268_v18  ;;  %v1258_v29 = vmul.f32 %v7620_v60, %v1257_v27  ;;  %v9084_v30 = vadd.f32 %v9066_v62, %v1294_v1 }
 0x5bc   :  { %v1287_v31 = vmul.f32 %v1272_v4, %v9040_v9  ;;  %v1278_v33 = vmul.f32 %v7622_v8, %v1277_v28 }
 0x5bd   :  { %v1262_v34 = vsel %vm1261_vm14, %v7620_v60, %v1258_v29  ;;  %7133 = vmatmul.msk.f32.vlgmr.msrb.gmra.mxu2 %vm852_vm7, %v9084_v30 }
 0x5be   :  { %v1296_v35 = vmul.f32 %v9063_v51, %v1287_v31  ;;  %v1282_v40 = vsel %vm1281_vm15, %v7622_v8, %v1278_v33  ;;  %v1286_v3 = vmul.f32 %v1262_v34, %v9044_v13  ;;  %v7568_v13 = vld [vmem:[#allocation36] ss:$0 sm:$0xff] }
 0x5bf   :  { %v1288_v43 = vmul.f32 %v1282_v40, %v9048_v14 }
 0x5c0   :  { %v1295_v44 = vmul.f32 %v9063_v51, %v1286_v3  ;;  %v9094_v32 = vadd.f32 %v9066_v62, %v1296_v35 }
 0x5c1   :  { %v1297_v9 = vmul.f32 %v9063_v51, %v1288_v43 }
 0x5c2   :  { %7135 = vmatmul.msk.f32.vlgmr.msra.gmra.mxu0 %vm852_vm7, %v9094_v32  ;;  %v9100_v36 = vadd.f32 %v9066_v62, %v1295_v44 }
 0x5c3   :  { %v9103_v46 = vadd.f32 %v9066_v62, %v1297_v9 }
 0x5c4   :  { %7134 = vmatmul.msk.f32.vlgmr.msrb.gmra.mxu3 %vm852_vm7, %v9100_v36 }
 0x5c5   :  { %7136 = vmatmul.msk.f32.vlgmr.msra.gmra.mxu1 %vm852_vm7, %v9103_v46 }
 0x62f   :  { %v1330_v14 = vpop.f32.mrf.mxu0 }
 0x630   :  { %v9109_v47 = vadd.f32 %v7568_v13, %v1330_v14 }
 0x632   :  { %1449 = vrot.lane.b32.xlu0 %v9109_v47, %s8528_s23 }
 0x637   :  { %v1353_v48 = vpop.f32.mrf.mxu1 }
 0x638   :  { %v9113_v49 = vadd.f32 %v7568_v13, %v1353_v48 }
 0x63a   :  { %1477 = vrot.lane.b32.xlu1 %v9113_v49, %s8528_s23  ;;  %v9135_v56 = vpack.i.bf16 %v9113_v49, %v9109_v47 }
 0x63f   :  { %v1422_v24 = vpop.f32.mrf.mxu0 }
 0x640   :  { %v9117_v50 = vadd.f32 %v7568_v13, %v1422_v24  ;;  %v1376_v45 = vpop.f32.mrf.mxu2 }
 0x641   :  { %v9125_v54 = vadd.f32 %v7568_v13, %v1376_v45 }
 0x642   :  { %v1445_v51 = vpop.f32.mrf.mxu1  ;;  %1558 = vrot.lane.b32.xlu2 %v9117_v50, %s8528_s23 }
 0x643   :  { %v9121_v52 = vadd.f32 %v7568_v13, %v1445_v51 }
 0x645   :  { %1585 = vrot.lane.b32.xlu0 %v9121_v52, %s8528_s23  ;;  %v9151_v62 = vpack.i.bf16 %v9121_v52, %v9117_v50 }
 0x647   :  { %v1399_v53 = vpop.f32.mrf.mxu3 }
 0x648   :  { %v9127_v55 = vadd.f32 %v7568_v13, %v1399_v53 }
 0x64a   :  { %1504 = vrot.lane.b32.xlu2 %v9125_v54, %s8528_s23  ;;  %1531 = vrot.lane.b32.xlu1 %v9127_v55, %s8528_s23  ;;  %v9141_v61 = vpack.i.bf16 %v9127_v55, %v9125_v54 }
 0x64d   :  { %7441 = vrot.lane.b32.xlu0 %v9135_v56, %s8529_s14 }
 0x652   :  { %7446 = vrot.lane.b32.xlu2 %v9141_v61, %s8529_s14  ;;  %1925 = vrot.lane.b32.xlu1 %v9127_v55, %s8530_s30 }
 0x655   :  { %1841 = vrot.lane.b32.xlu0 %v9109_v47, %s8530_s30 }
 0x65a   :  { %1869 = vrot.lane.b32.xlu2 %v9113_v49, %s8530_s30  ;;  %7451 = vrot.lane.b32.xlu1 %v9151_v62, %s8529_s14 }
 0x65d   :  { %1897 = vrot.lane.b32.xlu0 %v9125_v54, %s8530_s30 }
 0x662   :  { %1839 = vrot.lane.b32.xlu2 %v9109_v47, %s8531_s3 }
 0x665   :  { %1867 = vrot.lane.b32.xlu0 %v9113_v49, %s8531_s3 }
 0x69c   :  { %v1559_v63 = vpop.permute.xlu2 %1558 }
 0x6a4   :  { %v1505_v0 = vpop.permute.xlu2 %1504  ;;  %v1450_v2 = vpop.permute.xlu0 %1449 }
 0x6a5   :  { %7137 = vmatpush.xpose.msk.msra.mxu2 %vm1451_vm1, %v1450_v2  ;;  %7141 = vmatpush.xpose.msk.msrb.mxu0 %vm1451_vm1, %v1505_v0 }
 0x6a8   :  { %7138 = vmatmul.msk.f32.vlgmr.msra.gmra.mxu2 %vm1451_vm1, %v9109_v47  ;;  %7142 = vmatmul.msk.f32.vlgmr.msrb.gmra.mxu0 %vm1451_vm1, %v9125_v54 }
 0x6a9   :  { %7145 = vmatpush.xpose.msk.msrb.mxu2 %vm1451_vm1, %v1559_v63 }
 0x6ac   :  { %v1478_v39 = vpop.permute.xlu1 %1477  ;;  %v7447_v38 = vpop.permute.xlu2 %7446 }
 0x6ad   :  { %v7448_v5 = vunpack.i.l.bf16 %v7447_v38  ;;  %7139 = vmatpush.xpose.msk.msra.mxu3 %vm1451_vm1, %v1478_v39  ;;  %v7449_v37 = vunpack.i.h.bf16 %v7447_v38 }
 0x6af   :  { %1756 = vmatpush.msra.mxu2 %v7448_v5 }
 0x6b0   :  { %7140 = vmatmul.msk.f32.vlgmr.msra.gmra.mxu3 %vm1451_vm1, %v9113_v49  ;;  %7146 = vmatmul.msk.f32.vlgmr.msrb.gmra.mxu2 %vm1451_vm1, %v9117_v50 }
 0x6b4   :  { %v1870_v60 = vpop.permute.xlu2 %1869 }
 0x6b7   :  { %v1586_v7 = vpop.permute.xlu0 %1585 }
 0x6b8   :  { %7147 = vmatpush.xpose.msk.msrb.mxu3 %vm1451_vm1, %v1586_v7 }
 0x6bb   :  { %7148 = vmatmul.msk.f32.vlgmr.msrb.gmra.mxu3 %vm1451_vm1, %v9121_v52 }
 0x6bc   :  { %1782 = vmatpush.msra.mxu3 %v7449_v37  ;;  %v1532_v25 = vpop.permute.xlu1 %1531  ;;  %v1840_v13 = vpop.permute.xlu2 %1839 }
 0x6bd   :  { %7143 = vmatpush.xpose.msk.msrb.mxu1 %vm1451_vm1, %v1532_v25 }
 0x6be   :  { %7157 = vmatpush.xpose.msk.msrb.mxu3 %vm1451_vm1, %v1870_v60 }
 0x6bf   :  { %v7442_v8 = vpop.permute.xlu0 %7441 }
 0x6c0   :  { %v7444_v10 = vunpack.i.h.bf16 %v7442_v8  ;;  %v7443_v11 = vunpack.i.l.bf16 %v7442_v8  ;;  %7144 = vmatmul.msk.f32.vlgmr.msrb.gmra.mxu1 %vm1451_vm1, %v9127_v55 }
 0x6c2   :  { %1704 = vmatpush.msra.mxu0 %v7443_v11  ;;  %1730 = vmatpush.msra.mxu1 %v7444_v10 }
 0x6c4   :  { %v9182_v12 = vpop.permute.xlu1 %1925 }
 0x6c7   :  { %v1842_v42 = vpop.permute.xlu0 %1841 }
 0x6c8   :  { %7155 = vmatpush.xpose.msk.msrb.mxu2 %vm1451_vm1, %v1842_v42 }
 0x6cc   :  { %v7452_v15 = vpop.permute.xlu1 %7451 }
 0x6cd   :  { %v7454_v16 = vunpack.i.h.bf16 %v7452_v15  ;;  %v7453_v17 = vunpack.i.l.bf16 %v7452_v15 }
 0x6cf   :  { %1808 = vmatpush.msrb.mxu0 %v7453_v17  ;;  %1834 = vmatpush.msrb.mxu1 %v7454_v16  ;;  %v9197_v40 = vpop.permute.xlu0 %1897 }
 0x6d7   :  { %v9199_v3 = vpop.permute.xlu0 %1867 }
 0x725   :  { %v1527_v19 = vpop.f32.mrf.mxu0 }
 0x726   :  { %v1613_v20 = vmul.f32 0.35355338, %v1527_v19 }
 0x728   :  { %v1623_v21 = vsel %vm1451_vm1, %v1613_v20, -inf }
 0x729   :  { %1624 = vmax.xlane.f32.xlu1 %v1623_v21 }
 0x72b   :  { %v1473_v57 = vpop.f32.mrf.mxu2 }
 0x72c   :  { %v1611_v22 = vmul.f32 0.35355338, %v1473_v57 }
 0x72e   :  { %v1617_v58 = vsel %vm1451_vm1, %v1611_v22, -inf }
 0x72f   :  { %1618 = vmax.xlane.f32.xlu0 %v1617_v58 }
 0x733   :  { %v1500_v23 = vpop.f32.mrf.mxu3  ;;  %v1581_v18 = vpop.f32.mrf.mxu2 }
 0x734   :  { %v1612_v59 = vmul.f32 0.35355338, %v1500_v23  ;;  %v1615_v27 = vmul.f32 0.35355338, %v1581_v18 }
 0x736   :  { %v1620_v1 = vsel %vm1451_vm1, %v1612_v59, -inf  ;;  %v1629_v31 = vsel %vm1451_vm1, %v1615_v27, -inf }
 0x737   :  { %1621 = vmax.xlane.f32.xlu2 %v1620_v1 }
 0x73d   :  { %v1554_v28 = vpop.f32.mrf.mxu1 }
 0x73e   :  { %v1614_v4 = vmul.f32 0.35355338, %v1554_v28  ;;  %v1608_v29 = vpop.f32.mrf.mxu3 }
 0x73f   :  { %v1616_v33 = vmul.f32 0.35355338, %v1608_v29  ;;  %1630 = vmax.xlane.f32.xlu2 %v1629_v31 }
 0x740   :  { %v1626_v34 = vsel %vm1451_vm1, %v1614_v4, -inf }
 0x741   :  { %1627 = vmax.xlane.f32.xlu0 %v1626_v34  ;;  %v1632_v35 = vsel %vm1451_vm1, %v1616_v33, -inf }
 0x742   :  { %1633 = vmax.xlane.f32.xlu1 %v1632_v35 }
 0x755   :  { %1953 = vrot.lane.b32.xlu0 %v9117_v50, %s8530_s30 }
 0x757   :  { %1923 = vrot.lane.b32.xlu2 %v9127_v55, %s8531_s3 }
 0x75b   :  { %1895 = vrot.lane.b32.xlu1 %v9125_v54, %s8531_s3 }
 0x79c   :  { %v1625_v43 = vpop.xlane.xlu1 %1624 }
 0x79d   :  { %v1637_v44 = vsub.f32 %v1613_v20, %v1625_v43 }
 0x79f   :  { %v1645_v9 = vmul.f32 1.442695, %v1637_v44 }
 0x7a1   :  { %7623 = vpow2.f32 %v1645_v9 }
 0x7a2   :  { %v1619_v14 = vpop.xlane.xlu0 %1618 }
 0x7a3   :  { %v1635_v48 = vsub.f32 %v1611_v22, %v1619_v14 }
 0x7a5   :  { %v1641_v24 = vmul.f32 1.442695, %v1635_v48 }
 0x7a7   :  { %v7624_v51 = vpop.eup %7623  ;;  %7625 = vpow2.f32 %v1641_v24 }
 0x7a8   :  { %v1659_v45 = vsel %vm1451_vm1, %v7624_v51, 0.0 }
 0x7a9   :  { %1660 = vadd.xlane.f32.xlu1 %v1659_v45 }
 0x7aa   :  { %v1622_v53 = vpop.xlane.xlu2 %1621 }
 0x7ab   :  { %v1636_v63 = vsub.f32 %v1612_v59, %v1622_v53 }
 0x7ad   :  { %v7626_v0 = vpop.eup %7625  ;;  %v1643_v2 = vmul.f32 1.442695, %v1636_v63 }
 0x7ae   :  { %v1653_v39 = vsel %vm1451_vm1, %v7626_v0, 0.0 }
 0x7af   :  { %7627 = vpow2.f32 %v1643_v2  ;;  %1654 = vadd.xlane.f32.xlu0 %v1653_v39 }
 0x7b2   :  { %v1631_v38 = vpop.xlane.xlu2 %1630 }
 0x7b3   :  { %v1639_v5 = vsub.f32 %v1615_v27, %v1631_v38 }
 0x7b4   :  { %v1628_v37 = vpop.xlane.xlu0 %1627 }
 0x7b5   :  { %v7628_v7 = vpop.eup %7627  ;;  %v1649_v60 = vmul.f32 1.442695, %v1639_v5  ;;  %v1634_v25 = vpop.xlane.xlu1 %1633  ;;  %v1638_v8 = vsub.f32 %v1614_v4, %v1628_v37 }
 0x7b6   :  { %v1640_v10 = vsub.f32 %v1616_v33, %v1634_v25  ;;  %v1656_v11 = vsel %vm1451_vm1, %v7628_v7, 0.0 }
 0x7b7   :  { %7629 = vpow2.f32 %v1649_v60  ;;  %v1647_v42 = vmul.f32 1.442695, %v1638_v8  ;;  %1657 = vadd.xlane.f32.xlu2 %v1656_v11 }
 0x7b8   :  { %v1651_v15 = vmul.f32 1.442695, %v1640_v10 }
 0x7b9   :  { %7631 = vpow2.f32 %v1647_v42 }
 0x7ba   :  { %7633 = vpow2.f32 %v1651_v15  ;;  %v1924_v59 = vpop.permute.xlu2 %1923 }
 0x7bd   :  { %v7630_v16 = vpop.eup %7629 }
 0x7be   :  { %v1665_v17 = vsel %vm1451_vm1, %v7630_v16, 0.0 }
 0x7bf   :  { %v7632_v19 = vpop.eup %7631  ;;  %1666 = vadd.xlane.f32.xlu2 %v1665_v17 }
 0x7c0   :  { %v7634_v20 = vpop.eup %7633  ;;  %v1662_v21 = vsel %vm1451_vm1, %v7632_v19, 0.0 }
 0x7c1   :  { %v1668_v57 = vsel %vm1451_vm1, %v7634_v20, 0.0  ;;  %1663 = vadd.xlane.f32.xlu0 %v1662_v21 }
 0x7c2   :  { %1669 = vadd.xlane.f32.xlu1 %v1668_v57 }
 0x7c7   :  { %v1954_v58 = vpop.permute.xlu0 %1953 }
 0x7cd   :  { %v1896_v22 = vpop.permute.xlu1 %1895 }
 0x7d5   :  { %1979 = vrot.lane.b32.xlu0 %v9121_v52, %s8531_s3 }
 0x7d7   :  { %1951 = vrot.lane.b32.xlu2 %v9117_v50, %s8531_s3 }
 0x7db   :  { %1981 = vrot.lane.b32.xlu1 %v9121_v52, %s8530_s30 }
 0x81c   :  { %v1661_v23 = vpop.xlane.xlu1 %1660 }
 0x81d   :  { %7635 = vrcp.f32 %v1661_v23 }
 0x822   :  { %v1655_v1 = vpop.xlane.xlu0 %1654 }
 0x823   :  { %v7636_v18 = vpop.eup %7635  ;;  %7637 = vrcp.f32 %v1655_v1 }
 0x824   :  { %v1679_v27 = vmul.f32 %v7636_v18, %v7624_v51 }
 0x826   :  { %7151 = vmatmul.msk.f32.vlgmr.msra.gmra.mxu2 %vm1451_vm1, %v1679_v27 }
 0x827   :  { %7163 = vmatpush.xpose.msk.msra.mxu2 %vm1451_vm1, %v1954_v58 }
 0x829   :  { %v7638_v28 = vpop.eup %7637 }
 0x82a   :  { %v1677_v4 = vmul.f32 %v7638_v28, %v7626_v0  ;;  %v1658_v29 = vpop.xlane.xlu2 %1657 }
 0x82b   :  { %7639 = vrcp.f32 %v1658_v29 }
 0x82c   :  { %7149 = vmatmul.msk.f32.vlgmr.msra.gmra.mxu0 %vm1451_vm1, %v1677_v4 }
 0x82d   :  { %7159 = vmatpush.xpose.msk.msra.mxu0 %vm1451_vm1, %v9197_v40 }
 0x82e   :  { %7156 = vmatmul.msk.f32.vlgmr.msrb.gmra.mxu2 %vm1451_vm1, %v1840_v13 }
 0x831   :  { %v7640_v31 = vpop.eup %7639 }
 0x832   :  { %v1678_v33 = vmul.f32 %v7640_v31, %v7628_v7  ;;  %v1667_v34 = vpop.xlane.xlu2 %1666 }
 0x833   :  { %7641 = vrcp.f32 %v1667_v34 }
 0x834   :  { %v1664_v35 = vpop.xlane.xlu0 %1663  ;;  %7150 = vmatmul.msk.f32.vlgmr.msra.gmra.mxu1 %vm1451_vm1, %v1678_v33 }
 0x835   :  { %v1670_v43 = vpop.xlane.xlu1 %1669  ;;  %7643 = vrcp.f32 %v1664_v35  ;;  %7161 = vmatpush.xpose.msk.msra.mxu1 %vm1451_vm1, %v9182_v12 }
 0x836   :  { %7645 = vrcp.f32 %v1670_v43 }
 0x839   :  { %v7642_v44 = vpop.eup %7641 }
 0x83a   :  { %v1681_v9 = vmul.f32 %v7642_v44, %v7630_v16  ;;  %v1952_v14 = vpop.permute.xlu2 %1951 }
 0x83b   :  { %v7644_v48 = vpop.eup %7643  ;;  %7164 = vmatmul.msk.f32.vlgmr.msra.gmra.mxu2 %vm1451_vm1, %v1952_v14 }
 0x83c   :  { %v7646_v40 = vpop.eup %7645  ;;  %v1680_v13 = vmul.f32 %v7644_v48, %v7632_v19  ;;  %7153 = vmatmul.msk.f32.vlgmr.msrb.gmra.mxu0 %vm1451_vm1, %v1681_v9 }
 0x83d   :  { %v1682_v24 = vmul.f32 %v7646_v40, %v7634_v20 }
 0x83e   :  { %7152 = vmatmul.msk.f32.vlgmr.msra.gmra.mxu3 %vm1451_vm1, %v1680_v13 }
 0x83f   :  { %7154 = vmatmul.msk.f32.vlgmr.msrb.gmra.mxu1 %vm1451_vm1, %v1682_v24 }
 0x844   :  { %7160 = vmatmul.msk.f32.vlgmr.msra.gmra.mxu0 %vm1451_vm1, %v1896_v22 }
 0x846   :  { %7158 = vmatmul.msk.f32.vlgmr.msrb.gmra.mxu3 %vm1451_vm1, %v9199_v3 }
 0x847   :  { %7162 = vmatmul.msk.f32.vlgmr.msra.gmra.mxu1 %vm1451_vm1, %v1924_v59  ;;  %v1980_v51 = vpop.permute.xlu0 %1979 }
 0x84d   :  { %v1982_v12 = vpop.permute.xlu1 %1981 }
 0x84e   :  { %7165 = vmatpush.xpose.msk.msra.mxu3 %vm1451_vm1, %v1982_v12 }
 0x851   :  { %7166 = vmatmul.msk.f32.vlgmr.msra.gmra.mxu3 %vm1451_vm1, %v1980_v51 }
 0x8a9   :  { %v9232_v45 = vpop.f32.mrf.mxu2  ;;  %v9234_v53 = vpop.f32.mrf.mxu0 }
 0x8b1   :  { %v1864_v63 = vpop.f32.mrf.mxu2  ;;  %v9236_v2 = vpop.f32.mrf.mxu1 }
 0x8b2   :  { %v2007_v0 = vmul.f32 0.35355338, %v1864_v63 }
 0x8b4   :  { %v2013_v39 = vsel %vm1451_vm1, %v2007_v0, -inf }
 0x8b5   :  { %2014 = vmax.xlane.f32.xlu0 %v2013_v39 }
 0x8b9   :  { %v9239_v3 = vpop.f32.mrf.mxu0 }
 0x8bc   :  { %v9241_v38 = vpop.f32.mrf.mxu1 }
 0x8be   :  { %v1976_v11 = vpop.f32.mrf.mxu2 }
 0x8bf   :  { %v2011_v16 = vmul.f32 0.35355338, %v1976_v11 }
 0x8c1   :  { %v9243_v5 = vpop.f32.mrf.mxu3  ;;  %v1920_v37 = vpop.f32.mrf.mxu0  ;;  %v2025_v19 = vsel %vm1451_vm1, %v2011_v16, -inf }
 0x8c2   :  { %v2009_v7 = vmul.f32 0.35355338, %v1920_v37 }
 0x8c4   :  { %v1948_v60 = vpop.f32.mrf.mxu1  ;;  %v2019_v25 = vsel %vm1451_vm1, %v2009_v7, -inf }
 0x8c5   :  { %v2010_v8 = vmul.f32 0.35355338, %v1948_v60  ;;  %2020 = vmax.xlane.f32.xlu1 %v2019_v25 }
 0x8c7   :  { %v2022_v10 = vsel %vm1451_vm1, %v2010_v8, -inf }
 0x8c8   :  { %2023 = vmax.xlane.f32.xlu2 %v2022_v10 }
 0x8c9   :  { %v1892_v42 = vpop.f32.mrf.mxu3 }
 0x8ca   :  { %v2008_v15 = vmul.f32 0.35355338, %v1892_v42 }
 0x8cc   :  { %v2016_v17 = vsel %vm1451_vm1, %v2008_v15, -inf }
 0x8cd   :  { %2017 = vmax.xlane.f32.xlu1 %v2016_v17 }
 0x8d0   :  { %2026 = vmax.xlane.f32.xlu2 %v2025_v19 }
 0x8d4   :  { %v2004_v20 = vpop.f32.mrf.mxu3 }
 0x8d5   :  { %v2012_v21 = vmul.f32 0.35355338, %v2004_v20 }
 0x8d7   :  { %v2028_v57 = vsel %vm1451_vm1, %v2012_v21, -inf }
 0x8d8   :  { %2029 = vmax.xlane.f32.xlu0 %v2028_v57 }
 0x928   :  { %v2015_v22 = vpop.xlane.xlu0 %2014 }
 0x929   :  { %v2031_v58 = vsub.f32 %v2007_v0, %v2015_v22 }
 0x92b   :  { %v2037_v23 = vmul.f32 1.442695, %v2031_v58 }
 0x92d   :  { %7647 = vpow2.f32 %v2037_v23 }
 0x933   :  { %v9250_v59 = vpop.eup %7647 }
 0x934   :  { %v2049_v1 = vsel %vm1451_vm1, %v9250_v59, 0.0 }
 0x935   :  { %2050 = vadd.xlane.f32.xlu0 %v2049_v1 }
 0x938   :  { %v2021_v18 = vpop.xlane.xlu1 %2020 }
 0x939   :  { %v2033_v33 = vsub.f32 %v2009_v7, %v2021_v18 }
 0x93b   :  { %v2024_v27 = vpop.xlane.xlu2 %2023  ;;  %v2041_v14 = vmul.f32 1.442695, %v2033_v33 }
 0x93c   :  { %v2034_v28 = vsub.f32 %v2010_v8, %v2024_v27 }
 0x93e   :  { %v2043_v4 = vmul.f32 1.442695, %v2034_v28 }
 0x940   :  { %7649 = vpow2.f32 %v2043_v4  ;;  %v2018_v29 = vpop.xlane.xlu1 %2017 }
 0x941   :  { %v2032_v31 = vsub.f32 %v2008_v15, %v2018_v29 }
 0x943   :  { %v2039_v34 = vmul.f32 1.442695, %v2032_v31  ;;  %v2027_v35 = vpop.xlane.xlu2 %2026 }
 0x944   :  { %v2035_v43 = vsub.f32 %v2011_v16, %v2027_v35 }
 0x945   :  { %7651 = vpow2.f32 %v2039_v34 }
 0x946   :  { %v7650_v44 = vpop.eup %7649  ;;  %v2045_v9 = vmul.f32 1.442695, %v2035_v43 }
 0x947   :  { %v2058_v48 = vsel %vm1451_vm1, %v7650_v44, 0.0 }
 0x948   :  { %7653 = vpow2.f32 %v2045_v9  ;;  %2059 = vadd.xlane.f32.xlu2 %v2058_v48  ;;  %v528_v9 = vld [vmem:[#allocation34] sm:$0xff] }
 0x949   :  { %7655 = vpow2.f32 %v2041_v14 }
 0x94b   :  { %v7652_v40 = vpop.eup %7651  ;;  %v2030_v13 = vpop.xlane.xlu0 %2029 }
 0x94c   :  { %v2036_v24 = vsub.f32 %v2012_v21, %v2030_v13  ;;  %v2052_v12 = vsel %vm1451_vm1, %v7652_v40, 0.0 }
 0x94d   :  { %2053 = vadd.xlane.f32.xlu1 %v2052_v12 }
 0x94e   :  { %v9256_v51 = vpop.eup %7653  ;;  %v2047_v63 = vmul.f32 1.442695, %v2036_v24 }
 0x94f   :  { %v2061_v0 = vsel %vm1451_vm1, %v9256_v51, 0.0  ;;  %v7656_v39 = vpop.eup %7655 }
 0x950   :  { %2062 = vadd.xlane.f32.xlu0 %v2061_v0  ;;  %7657 = vpow2.f32 %v2047_v63  ;;  %v2055_v37 = vsel %vm1451_vm1, %v7656_v39, 0.0 }
 0x955   :  { %2056 = vadd.xlane.f32.xlu1 %v2055_v37 }
 0x956   :  { %v7658_v7 = vpop.eup %7657 }
 0x957   :  { %v2064_v60 = vsel %vm1451_vm1, %v7658_v7, 0.0 }
 0x95d   :  { %2065 = vadd.xlane.f32.xlu1 %v2064_v60 }
 0x960   :  { %7456 = vrot.lane.b32.xlu2 %v9141_v61, %s8532_s18 }
 0x964   :  { %7461 = vrot.lane.b32.xlu0 %v9135_v56, %s8532_s18 }
 0x968   :  { %2513 = vrot.lane.b32.xlu2 %v9109_v47, %s8533_s5 }
 0x96c   :  { %2541 = vrot.lane.b32.xlu0 %v9113_v49, %s8533_s5 }
 0x970   :  { %2569 = vrot.lane.b32.xlu2 %v9125_v54, %s8533_s5 }
 0x974   :  { %2511 = vrot.lane.b32.xlu0 %v9109_v47, %s8534_s1 }
 0x976   :  { %7466 = vrot.lane.b32.xlu1 %v9151_v62, %s8532_s18 }
 0x978   :  { %2539 = vrot.lane.b32.xlu2 %v9113_v49, %s8534_s1 }
 0x97c   :  { %2595 = vrot.lane.b32.xlu0 %v9127_v55, %s8534_s1 }
 0x97e   :  { %2597 = vrot.lane.b32.xlu1 %v9127_v55, %s8533_s5 }
 0x980   :  { %2625 = vrot.lane.b32.xlu2 %v9117_v50, %s8533_s5 }
 0x984   :  { %2623 = vrot.lane.b32.xlu0 %v9117_v50, %s8534_s1 }
 0x986   :  { %2567 = vrot.lane.b32.xlu1 %v9125_v54, %s8534_s1 }
 0x988   :  { %2651 = vrot.lane.b32.xlu2 %v9121_v52, %s8534_s1 }
 0x98e   :  { %2653 = vrot.lane.b32.xlu1 %v9121_v52, %s8533_s5 }
 0x9a8   :  { %v2051_v17 = vpop.xlane.xlu0 %2050 }
 0x9bb   :  { %v2060_v25 = vpop.xlane.xlu2 %2059 }
 0x9bc   :  { %7659 = vrcp.f32 %v2060_v25 }
 0x9c0   :  { %v2054_v8 = vpop.xlane.xlu1 %2053 }
 0x9c2   :  { %v7660_v10 = vpop.eup %7659 }
 0x9c3   :  { %v7457_v11 = vpop.permute.xlu2 %7456  ;;  %v2076_v16 = vmul.f32 %v7660_v10, %v7650_v44  ;;  %v2063_v20 = vpop.xlane.xlu0 %2062 }
 0x9c4   :  { %v7459_v42 = vunpack.i.h.bf16 %v7457_v11  ;;  %v7458_v15 = vunpack.i.l.bf16 %v7457_v11 }
 0x9c6   :  { %2152 = vmatpush.msrb.mxu2 %v7458_v15  ;;  %2178 = vmatpush.msrb.mxu3 %v7459_v42 }
 0x9c7   :  { %7170 = vmatmul.msk.f32.vlgmr.msrb.gmra.mxu3 %vm1451_vm1, %v2076_v16 }
 0x9c8   :  { %v2057_v19 = vpop.xlane.xlu1 %2056 }
 0x9c9   :  { %7661 = vrcp.f32 %v2057_v19 }
 0x9ca   :  { %7663 = vrcp.f32 %v2051_v17 }
 0x9cb   :  { %7665 = vrcp.f32 %v2054_v8  ;;  %v2514_v13 = vpop.permute.xlu2 %2513 }
 0x9cc   :  { %7667 = vrcp.f32 %v2063_v20 }
 0x9cf   :  { %v7662_v21 = vpop.eup %7661 }
 0x9d0   :  { %v2075_v57 = vmul.f32 %v7662_v21, %v7656_v39  ;;  %v7664_v22 = vpop.eup %7663  ;;  %v2066_v4 = vpop.xlane.xlu1 %2065 }
 0x9d1   :  { %v7666_v58 = vpop.eup %7665  ;;  %v2073_v27 = vmul.f32 %v7664_v22, %v9250_v59  ;;  %7669 = vrcp.f32 %v2066_v4  ;;  %v529_v59 = vld [vmem:[#allocation34 + $0x8] sm:$0xff] }
 0x9d2   :  { %7169 = vmatmul.msk.f32.vlgmr.msrb.gmra.mxu2 %vm1451_vm1, %v2075_v57  ;;  %v2074_v28 = vmul.f32 %v7666_v58, %v7652_v40  ;;  %v7668_v29 = vpop.eup %7667  ;;  %2276 = vmatpush.msra.mxu3 %v529_v59 }
 0x9d3   :  { %v2077_v43 = vmul.f32 %v7668_v29, %v9256_v51  ;;  %2253 = vmatpush.msra.mxu2 %v529_v59 }
 0x9d4   :  { %2368 = vmatpush.msrb.mxu3 %v529_v59 }
 0x9d5   :  { %2345 = vmatpush.msrb.mxu2 %v529_v59 }
 0x9d6   :  { %v7462_v23 = vpop.permute.xlu0 %7461 }
 0x9d7   :  { %v7464_v1 = vunpack.i.h.bf16 %v7462_v23  ;;  %v7463_v18 = vunpack.i.l.bf16 %v7462_v23  ;;  %v7670_v31 = vpop.eup %7669 }
 0x9d8   :  { %v2078_v44 = vmul.f32 %v7670_v31, %v7658_v7 }
 0x9d9   :  { %2100 = vmatpush.msrb.mxu0 %v7463_v18  ;;  %2126 = vmatpush.msrb.mxu1 %v7464_v1 }
 0x9da   :  { %7167 = vmatmul.msk.f32.vlgmr.msrb.gmra.mxu0 %vm1451_vm1, %v2073_v27  ;;  %7168 = vmatmul.msk.f32.vlgmr.msrb.gmra.mxu1 %vm1451_vm1, %v2074_v28 }
 0x9de   :  { %v2542_v48 = vpop.permute.xlu0 %2541 }
 0x9e6   :  { %v2512_v63 = vpop.permute.xlu0 %2511 }
 0x9e8   :  { %v7467_v33 = vpop.permute.xlu1 %7466 }
 0x9e9   :  { %v7469_v34 = vunpack.i.h.bf16 %v7467_v33  ;;  %v7468_v35 = vunpack.i.l.bf16 %v7467_v33 }
 0x9eb   :  { %2204 = vmatpush.msra.mxu0 %v7468_v35  ;;  %2230 = vmatpush.msra.mxu1 %v7469_v34 }
 0x9ec   :  { %7171 = vmatmul.msk.f32.vlgmr.msra.gmra.mxu0 %vm1451_vm1, %v2077_v43  ;;  %7172 = vmatmul.msk.f32.vlgmr.msra.gmra.mxu1 %vm1451_vm1, %v2078_v44 }
 0x9ed   :  { %2322 = vmatpush.msrb.mxu1 %v529_v59  ;;  %2299 = vmatpush.msrb.mxu0 %v529_v59 }
 0x9ee   :  { %v2596_v0 = vpop.permute.xlu0 %2595 }
 0x9ef   :  { %2414 = vmatpush.msra.mxu1 %v528_v9  ;;  %2391 = vmatpush.msra.mxu0 %v528_v9 }
 0x9f0   :  { %v2598_v40 = vpop.permute.xlu1 %2597 }
 0x9f6   :  { %v2624_v25 = vpop.permute.xlu0 %2623 }
 0x9f8   :  { %v2568_v37 = vpop.permute.xlu1 %2567 }
 0xa4a   :  { %v2180_v14 = vpop.f32.mrf.mxu3 }
 0xa4b   :  { %7176 = vmatmul.msk.f32.vlgmr.msrb.gmra.mxu1 %vm1451_vm1, %v2180_v14 }
 0xa4c   :  { %2506 = vmatpush.msrb.mxu1 %v528_v9 }
 0xa53   :  { %7180 = vmatmul.msk.f32.vlgmr.msra.gmra.mxu1 %vm1451_vm1, %v9236_v2  ;;  %v2570_v2 = vpop.permute.xlu2 %2569 }
 0xa54   :  { %7191 = vmatpush.xpose.msk.msra.mxu1 %vm1451_vm1, %v2598_v40 }
 0xa55   :  { %v2154_v24 = vpop.f32.mrf.mxu2 }
 0xa56   :  { %7175 = vmatmul.msk.f32.vlgmr.msrb.gmra.mxu0 %vm1451_vm1, %v2154_v24 }
 0xa57   :  { %v2102_v12 = vpop.f32.mrf.mxu0  ;;  %v2128_v51 = vpop.f32.mrf.mxu1  ;;  %2483 = vmatpush.msrb.mxu0 %v528_v9 }
 0xa58   :  { %7173 = vmatmul.msk.f32.vlgmr.msra.gmra.mxu2 %vm1451_vm1, %v2102_v12  ;;  %7174 = vmatmul.msk.f32.vlgmr.msra.gmra.mxu3 %vm1451_vm1, %v2128_v51 }
 0xa59   :  { %2437 = vmatpush.msra.mxu2 %v528_v9  ;;  %2460 = vmatpush.msra.mxu3 %v528_v9 }
 0xa5b   :  { %7184 = vmatmul.msk.f32.vlgmr.msrb.gmra.mxu1 %vm1451_vm1, %v9241_v38  ;;  %v2540_v39 = vpop.permute.xlu2 %2539  ;;  %v2654_v38 = vpop.permute.xlu1 %2653 }
 0xa5e   :  { %7179 = vmatmul.msk.f32.vlgmr.msra.gmra.mxu0 %vm1451_vm1, %v9234_v53 }
 0xa5f   :  { %7189 = vmatpush.xpose.msk.msra.mxu0 %vm1451_vm1, %v2570_v2 }
 0xa63   :  { %7192 = vmatmul.msk.f32.vlgmr.msra.gmra.mxu1 %vm1451_vm1, %v2596_v0  ;;  %v2626_v53 = vpop.permute.xlu2 %2625 }
 0xa66   :  { %7183 = vmatmul.msk.f32.vlgmr.msrb.gmra.mxu0 %vm1451_vm1, %v9239_v3 }
 0xa69   :  { %v2206_v7 = vpop.f32.mrf.mxu0  ;;  %v2232_v60 = vpop.f32.mrf.mxu1 }
 0xa6a   :  { %7177 = vmatmul.msk.f32.vlgmr.msrb.gmra.mxu2 %vm1451_vm1, %v2206_v7  ;;  %7178 = vmatmul.msk.f32.vlgmr.msrb.gmra.mxu3 %vm1451_vm1, %v2232_v60 }
 0xa6b   :  { %7185 = vmatpush.xpose.msk.msrb.mxu2 %vm1451_vm1, %v2514_v13  ;;  %7187 = vmatpush.xpose.msk.msrb.mxu3 %vm1451_vm1, %v2542_v48  ;;  %v2652_v3 = vpop.permute.xlu2 %2651 }
 0xa6e   :  { %7190 = vmatmul.msk.f32.vlgmr.msra.gmra.mxu0 %vm1451_vm1, %v2568_v37 }
 0xa72   :  { %7181 = vmatmul.msk.f32.vlgmr.msra.gmra.mxu2 %vm1451_vm1, %v9232_v45  ;;  %7182 = vmatmul.msk.f32.vlgmr.msra.gmra.mxu3 %vm1451_vm1, %v9243_v5 }
 0xa73   :  { %7193 = vmatpush.xpose.msk.msra.mxu2 %vm1451_vm1, %v2626_v53  ;;  %7195 = vmatpush.xpose.msk.msra.mxu3 %vm1451_vm1, %v2654_v38 }
 0xa7a   :  { %7186 = vmatmul.msk.f32.vlgmr.msrb.gmra.mxu2 %vm1451_vm1, %v2512_v63  ;;  %7188 = vmatmul.msk.f32.vlgmr.msrb.gmra.mxu3 %vm1451_vm1, %v2540_v39 }
 0xa82   :  { %7194 = vmatmul.msk.f32.vlgmr.msra.gmra.mxu2 %vm1451_vm1, %v2624_v25  ;;  %7196 = vmatmul.msk.f32.vlgmr.msra.gmra.mxu3 %vm1451_vm1, %v2652_v3 }
 0xac8   :  { %v9330_v8 = vpop.f32.mrf.mxu1 }
 0xad0   :  { %v9332_v45 = vpop.f32.mrf.mxu1 }
 0xad3   :  { %v9334_v10 = vpop.f32.mrf.mxu0 }
 0xad8   :  { %v9336_v5 = vpop.f32.mrf.mxu1 }
 0xadb   :  { %v9338_v11 = vpop.f32.mrf.mxu0  ;;  %v9343_v19 = vpop.f32.mrf.mxu2 }
 0xadc   :  { %v9345_v20 = vpop.f32.mrf.mxu3 }
 0xae0   :  { %v2620_v42 = vpop.f32.mrf.mxu1 }
 0xae1   :  { %v2682_v15 = vmul.f32 0.35355338, %v2620_v42 }
 0xae3   :  { %v2694_v16 = vsel %vm1451_vm1, %v2682_v15, -inf  ;;  %v9341_v17 = vpop.f32.mrf.mxu0 }
 0xae4   :  { %2695 = vmax.xlane.f32.xlu0 %v2694_v16 }
 0xaeb   :  { %v2592_v21 = vpop.f32.mrf.mxu0 }
 0xaec   :  { %v2681_v57 = vmul.f32 0.35355338, %v2592_v21 }
 0xaed   :  { %v9347_v22 = vpop.f32.mrf.mxu2  ;;  %v9349_v58 = vpop.f32.mrf.mxu3 }
 0xaee   :  { %v2691_v23 = vsel %vm1451_vm1, %v2681_v57, -inf }
 0xaef   :  { %2692 = vmax.xlane.f32.xlu1 %v2691_v23 }
 0xaf5   :  { %v9352_v1 = vpop.f32.mrf.mxu2  ;;  %v9354_v18 = vpop.f32.mrf.mxu3 }
 0xafd   :  { %v2536_v27 = vpop.f32.mrf.mxu2  ;;  %v2564_v28 = vpop.f32.mrf.mxu3 }
 0xafe   :  { %v2679_v4 = vmul.f32 0.35355338, %v2536_v27  ;;  %v2680_v29 = vmul.f32 0.35355338, %v2564_v28 }
 0xb00   :  { %v2685_v31 = vsel %vm1451_vm1, %v2679_v4, -inf  ;;  %v2688_v33 = vsel %vm1451_vm1, %v2680_v29, -inf }
 0xb01   :  { %2686 = vmax.xlane.f32.xlu2 %v2685_v31  ;;  %2689 = vmax.xlane.f32.xlu1 %v2688_v33 }
 0xb05   :  { %v2648_v34 = vpop.f32.mrf.mxu2  ;;  %v2676_v35 = vpop.f32.mrf.mxu3 }
 0xb06   :  { %v2683_v43 = vmul.f32 0.35355338, %v2648_v34  ;;  %v2684_v44 = vmul.f32 0.35355338, %v2676_v35 }
 0xb08   :  { %v2700_v59 = vsel %vm1451_vm1, %v2684_v44, -inf  ;;  %v2697_v9 = vsel %vm1451_vm1, %v2683_v43, -inf }
 0xb09   :  { %2701 = vmax.xlane.f32.xlu2 %v2700_v59  ;;  %2698 = vmax.xlane.f32.xlu0 %v2697_v9 }
 0xb57   :  { %v2696_v14 = vpop.xlane.xlu0 %2695 }
 0xb58   :  { %v2706_v48 = vsub.f32 %v2682_v15, %v2696_v14 }
 0xb5a   :  { %v2715_v40 = vmul.f32 1.442695, %v2706_v48 }
 0xb5c   :  { %7671 = vpow2.f32 %v2715_v40 }
 0xb62   :  { %v7672_v13 = vpop.eup %7671  ;;  %v2693_v12 = vpop.xlane.xlu1 %2692 }
 0xb63   :  { %v2730_v24 = vsel %vm1451_vm1, %v7672_v13, 0.0  ;;  %v2705_v7 = vsub.f32 %v2681_v57, %v2693_v12 }
 0xb64   :  { %2731 = vadd.xlane.f32.xlu0 %v2730_v24 }
 0xb65   :  { %v2713_v60 = vmul.f32 1.442695, %v2705_v7 }
 0xb74   :  { %v2687_v51 = vpop.xlane.xlu2 %2686  ;;  %v2690_v63 = vpop.xlane.xlu1 %2689 }
 0xb75   :  { %v2703_v2 = vsub.f32 %v2679_v4, %v2687_v51  ;;  %v2704_v0 = vsub.f32 %v2680_v29, %v2690_v63 }
 0xb77   :  { %v2709_v39 = vmul.f32 1.442695, %v2703_v2  ;;  %v2711_v37 = vmul.f32 1.442695, %v2704_v0 }
 0xb78   :  { %7471 = vrot.lane.b32.xlu0 %v9141_v61, %s8535_s24 }
 0xb79   :  { %7673 = vpow2.f32 %v2709_v39 }
 0xb7a   :  { %7675 = vpow2.f32 %v2711_v37 }
 0xb7b   :  { %7677 = vpow2.f32 %v2713_v60 }
 0xb7c   :  { %v2699_v53 = vpop.xlane.xlu0 %2698  ;;  %v2702_v38 = vpop.xlane.xlu2 %2701 }
 0xb7d   :  { %v2707_v3 = vsub.f32 %v2683_v43, %v2699_v53  ;;  %v2708_v16 = vsub.f32 %v2684_v44, %v2702_v38 }
 0xb7f   :  { %v9363_v25 = vpop.eup %7673  ;;  %v2717_v42 = vmul.f32 1.442695, %v2707_v3  ;;  %v2719_v23 = vmul.f32 1.442695, %v2708_v16 }
 0xb80   :  { %v9365_v15 = vpop.eup %7675  ;;  %3053 = vrot.lane.b32.xlu0 %v9109_v47, %s8536_s7  ;;  %v2721_v21 = vsel %vm1451_vm1, %v9363_v25, 0.0 }
 0xb81   :  { %2722 = vadd.xlane.f32.xlu2 %v2721_v21  ;;  %v2724_v57 = vsel %vm1451_vm1, %v9365_v15, 0.0  ;;  %7679 = vpow2.f32 %v2717_v42  ;;  %v7678_v27 = vpop.eup %7677 }
 0xb82   :  { %2725 = vadd.xlane.f32.xlu1 %v2724_v57  ;;  %7681 = vpow2.f32 %v2719_v23  ;;  %v2727_v29 = vsel %vm1451_vm1, %v7678_v27, 0.0 }
 0xb87   :  { %v9373_v28 = vpop.eup %7679 }
 0xb88   :  { %3081 = vrot.lane.b32.xlu0 %v9113_v49, %s8536_s7  ;;  %v2733_v4 = vsel %vm1451_vm1, %v9373_v28, 0.0  ;;  %v7682_v31 = vpop.eup %7681 }
 0xb89   :  { %2734 = vadd.xlane.f32.xlu2 %v2733_v4  ;;  %v2736_v33 = vsel %vm1451_vm1, %v7682_v31, 0.0 }
 0xb8a   :  { %2728 = vadd.xlane.f32.xlu1 %v2727_v29 }
 0xb90   :  { %3079 = vrot.lane.b32.xlu0 %v9113_v49, %s8537_s8 }
 0xb92   :  { %2737 = vadd.xlane.f32.xlu1 %v2736_v33 }
 0xb98   :  { %3165 = vrot.lane.b32.xlu0 %v9117_v50, %s8536_s7 }
 0xba0   :  { %3135 = vrot.lane.b32.xlu0 %v9127_v55, %s8537_s8 }
 0xba1   :  { %7476 = vrot.lane.b32.xlu2 %v9135_v56, %s8535_s24 }
 0xba9   :  { %3051 = vrot.lane.b32.xlu2 %v9109_v47, %s8537_s8 }
 0xbab   :  { %7481 = vrot.lane.b32.xlu1 %v9151_v62, %s8535_s24 }
 0xbb1   :  { %3137 = vrot.lane.b32.xlu2 %v9127_v55, %s8536_s7 }
 0xbb3   :  { %3109 = vrot.lane.b32.xlu1 %v9125_v54, %s8536_s7 }
 0xbb9   :  { %3107 = vrot.lane.b32.xlu2 %v9125_v54, %s8537_s8 }
 0xbbb   :  { %3193 = vrot.lane.b32.xlu1 %v9121_v52, %s8536_s7 }
 0xbc1   :  { %3191 = vrot.lane.b32.xlu2 %v9121_v52, %s8537_s8  ;;  %v530_v52 = vld [vmem:[#allocation34 + $0x10] sm:$0xff] }
 0xbc3   :  { %3163 = vrot.lane.b32.xlu1 %v9117_v50, %s8537_s8 }
 0xbd7   :  { %v2732_v47 = vpop.xlane.xlu0 %2731 }
 0xbd8   :  { %7683 = vrcp.f32 %v2732_v47 }
 0xbde   :  { %v7684_v49 = vpop.eup %7683 }
 0xbdf   :  { %v2748_v43 = vmul.f32 %v7684_v49, %v7672_v13 }
 0xbea   :  { %v7472_v34 = vpop.permute.xlu0 %7471 }
 0xbeb   :  { %v7474_v55 = vunpack.i.h.bf16 %v7472_v34  ;;  %v7473_v35 = vunpack.i.l.bf16 %v7472_v34 }
 0xbed   :  { %2824 = vmatpush.msrb.mxu2 %v7473_v35  ;;  %2850 = vmatpush.msrb.mxu3 %v7474_v55 }
 0xbee   :  { %7200 = vmatmul.msk.f32.vlgmr.msrb.gmra.mxu3 %vm1451_vm1, %v2748_v43 }
 0xbef   :  { %2925 = vmatpush.msra.mxu2 %v530_v52  ;;  %2948 = vmatpush.msra.mxu3 %v530_v52 }
 0xbf1   :  { %3040 = vmatpush.msrb.mxu3 %v530_v52 }
 0xbf2   :  { %v3054_v0 = vpop.permute.xlu0 %3053 }
 0xbf4   :  { %v2723_v54 = vpop.xlane.xlu2 %2722 }
 0xbf5   :  { %v2726_v44 = vpop.xlane.xlu1 %2725  ;;  %7685 = vrcp.f32 %v2723_v54 }
 0xbf6   :  { %7687 = vrcp.f32 %v2726_v44 }
 0xbfb   :  { %v7686_v50 = vpop.eup %7685 }
 0xbfc   :  { %v2735_v59 = vpop.xlane.xlu2 %2734  ;;  %v7688_v14 = vpop.eup %7687  ;;  %v2745_v51 = vmul.f32 %v7686_v50, %v9363_v25 }
 0xbfd   :  { %v2729_v9 = vpop.xlane.xlu1 %2728  ;;  %v2746_v63 = vmul.f32 %v7688_v14, %v9365_v15  ;;  %v3082_v25 = vpop.permute.xlu0 %3081 }
 0xbfe   :  { %7689 = vrcp.f32 %v2729_v9 }
 0xbff   :  { %7691 = vrcp.f32 %v2735_v59 }
 0xc04   :  { %v7690_v48 = vpop.eup %7689  ;;  %v7477_v40 = vpop.permute.xlu2 %7476 }
 0xc05   :  { %v2747_v13 = vmul.f32 %v7690_v48, %v7678_v27  ;;  %v7479_v24 = vunpack.i.h.bf16 %v7477_v40  ;;  %v7478_v12 = vunpack.i.l.bf16 %v7477_v40  ;;  %v2738_v2 = vpop.xlane.xlu1 %2737  ;;  %v7692_v39 = vpop.eup %7691 }
 0xc06   :  { %7693 = vrcp.f32 %v2738_v2  ;;  %v2749_v38 = vmul.f32 %v7692_v39, %v9373_v28  ;;  %v3080_v27 = vpop.permute.xlu0 %3079 }
 0xc07   :  { %7199 = vmatmul.msk.f32.vlgmr.msrb.gmra.mxu2 %vm1451_vm1, %v2747_v13  ;;  %2772 = vmatpush.msrb.mxu0 %v7478_v12 }
 0xc08   :  { %2798 = vmatpush.msrb.mxu1 %v7479_v24  ;;  %7197 = vmatmul.msk.f32.vlgmr.msrb.gmra.mxu0 %vm1451_vm1, %v2745_v51 }
 0xc09   :  { %7198 = vmatmul.msk.f32.vlgmr.msrb.gmra.mxu1 %vm1451_vm1, %v2746_v63  ;;  %3017 = vmatpush.msrb.mxu2 %v530_v52 }
 0xc0c   :  { %v7694_v37 = vpop.eup %7693  ;;  %v3052_v42 = vpop.permute.xlu2 %3051 }
 0xc0d   :  { %v2750_v3 = vmul.f32 %v7694_v37, %v7682_v31 }
 0xc0e   :  { %v3166_v33 = vpop.permute.xlu0 %3165 }
 0xc14   :  { %v3138_v16 = vpop.permute.xlu2 %3137 }
 0xc16   :  { %v3136_v55 = vpop.permute.xlu0 %3135 }
 0xc1c   :  { %v3108_v23 = vpop.permute.xlu2 %3107 }
 0xc1d   :  { %v7482_v7 = vpop.permute.xlu1 %7481 }
 0xc1e   :  { %v7484_v60 = vunpack.i.h.bf16 %v7482_v7  ;;  %v7483_v53 = vunpack.i.l.bf16 %v7482_v7 }
 0xc20   :  { %2876 = vmatpush.msra.mxu0 %v7483_v53  ;;  %2902 = vmatpush.msra.mxu1 %v7484_v60 }
 0xc21   :  { %7201 = vmatmul.msk.f32.vlgmr.msra.gmra.mxu0 %vm1451_vm1, %v2749_v38  ;;  %7202 = vmatmul.msk.f32.vlgmr.msra.gmra.mxu1 %vm1451_vm1, %v2750_v3 }
 0xc22   :  { %2971 = vmatpush.msrb.mxu0 %v530_v52  ;;  %2994 = vmatpush.msrb.mxu1 %v530_v52 }
 0xc24   :  { %7209 = vmatpush.xpose.msk.msra.mxu0 %vm1451_vm1, %v3054_v0  ;;  %7211 = vmatpush.xpose.msk.msra.mxu1 %vm1451_vm1, %v3082_v25  ;;  %v3192_v28 = vpop.permute.xlu2 %3191 }
 0xc25   :  { %v3110_v15 = vpop.permute.xlu1 %3109 }
 0xc2d   :  { %v3194_v57 = vpop.permute.xlu1 %3193 }
 0xc35   :  { %v3164_v47 = vpop.permute.xlu1 %3163 }
 0xc71   :  { %v2852_v21 = vpop.f32.mrf.mxu3 }
 0xc72   :  { %7206 = vmatmul.msk.f32.vlgmr.msrb.gmra.mxu1 %vm1451_vm1, %v2852_v21 }
 0xc73   :  { %7219 = vmatpush.xpose.msk.msrb.mxu1 %vm1451_vm1, %v3194_v57 }
 0xc7a   :  { %7212 = vmatmul.msk.f32.vlgmr.msra.gmra.mxu1 %vm1451_vm1, %v3080_v27 }
 0xc82   :  { %7220 = vmatmul.msk.f32.vlgmr.msrb.gmra.mxu1 %vm1451_vm1, %v3192_v28 }
 0xc85   :  { %v2774_v4 = vpop.f32.mrf.mxu0 }
 0xc86   :  { %v2800_v29 = vpop.f32.mrf.mxu1  ;;  %7203 = vmatmul.msk.f32.vlgmr.msra.gmra.mxu2 %vm1451_vm1, %v2774_v4 }
 0xc87   :  { %7204 = vmatmul.msk.f32.vlgmr.msra.gmra.mxu3 %vm1451_vm1, %v2800_v29  ;;  %7213 = vmatpush.xpose.msk.msra.mxu2 %vm1451_vm1, %v3110_v15 }
 0xc88   :  { %7215 = vmatpush.xpose.msk.msra.mxu3 %vm1451_vm1, %v3138_v16 }
 0xc8a   :  { %v2826_v31 = vpop.f32.mrf.mxu2 }
 0xc8b   :  { %7205 = vmatmul.msk.f32.vlgmr.msrb.gmra.mxu0 %vm1451_vm1, %v2826_v31 }
 0xc8c   :  { %7217 = vmatpush.xpose.msk.msrb.mxu0 %vm1451_vm1, %v3166_v33 }
 0xc93   :  { %7210 = vmatmul.msk.f32.vlgmr.msra.gmra.mxu0 %vm1451_vm1, %v3052_v42 }
 0xc9b   :  { %7218 = vmatmul.msk.f32.vlgmr.msrb.gmra.mxu0 %vm1451_vm1, %v3164_v47 }
 0xc9e   :  { %v2878_v49 = vpop.f32.mrf.mxu0  ;;  %v2904_v34 = vpop.f32.mrf.mxu1 }
 0xc9f   :  { %7207 = vmatmul.msk.f32.vlgmr.msrb.gmra.mxu2 %vm1451_vm1, %v2878_v49  ;;  %7208 = vmatmul.msk.f32.vlgmr.msrb.gmra.mxu3 %vm1451_vm1, %v2904_v34 }
 0xca7   :  { %7214 = vmatmul.msk.f32.vlgmr.msra.gmra.mxu2 %vm1451_vm1, %v3108_v23  ;;  %7216 = vmatmul.msk.f32.vlgmr.msra.gmra.mxu3 %vm1451_vm1, %v3136_v55 }
 0xcef   :  { %v9432_v35 = vpop.f32.mrf.mxu1 }
 0xcf7   :  { %v3104_v43 = vpop.f32.mrf.mxu1 }
 0xcf8   :  { %v3220_v54 = vmul.f32 0.35355338, %v3104_v43 }
 0xcfa   :  { %v3228_v44 = vsel %vm1451_vm1, %v3220_v54, -inf }
 0xcfb   :  { %3229 = vmax.xlane.f32.xlu1 %v3228_v44 }
 0xcff   :  { %v3216_v14 = vpop.f32.mrf.mxu1 }
 0xd00   :  { %v3224_v48 = vmul.f32 0.35355338, %v3216_v14 }
 0xd02   :  { %v3240_v51 = vsel %vm1451_vm1, %v3224_v48, -inf }
 0xd08   :  { %v9435_v59 = vpop.f32.mrf.mxu0 }
 0xd09   :  { %v9438_v13 = vpop.f32.mrf.mxu2 }
 0xd0a   :  { %v9440_v24 = vpop.f32.mrf.mxu3 }
 0xd10   :  { %v3076_v9 = vpop.f32.mrf.mxu0 }
 0xd11   :  { %v3219_v52 = vmul.f32 0.35355338, %v3076_v9 }
 0xd13   :  { %v3225_v50 = vsel %vm1451_vm1, %v3219_v52, -inf }
 0xd14   :  { %3226 = vmax.xlane.f32.xlu0 %v3225_v50 }
 0xd18   :  { %v3188_v40 = vpop.f32.mrf.mxu0 }
 0xd19   :  { %v3223_v12 = vmul.f32 0.35355338, %v3188_v40 }
 0xd1b   :  { %v3237_v63 = vsel %vm1451_vm1, %v3223_v12, -inf }
 0xd1c   :  { %3241 = vmax.xlane.f32.xlu0 %v3240_v51  ;;  %3238 = vmax.xlane.f32.xlu2 %v3237_v63 }
 0xd22   :  { %v9444_v2 = vpop.f32.mrf.mxu2  ;;  %v9446_v0 = vpop.f32.mrf.mxu3 }
 0xd2a   :  { %v3132_v39 = vpop.f32.mrf.mxu2  ;;  %v3160_v37 = vpop.f32.mrf.mxu3 }
 0xd2b   :  { %v3221_v7 = vmul.f32 0.35355338, %v3132_v39  ;;  %v3222_v60 = vmul.f32 0.35355338, %v3160_v37 }
 0xd2d   :  { %v3231_v53 = vsel %vm1451_vm1, %v3221_v7, -inf  ;;  %v3234_v38 = vsel %vm1451_vm1, %v3222_v60, -inf }
 0xd2e   :  { %3232 = vmax.xlane.f32.xlu1 %v3231_v53  ;;  %3235 = vmax.xlane.f32.xlu2 %v3234_v38 }
 0xd6e   :  { %v3230_v3 = vpop.xlane.xlu1 %3229 }
 0xd6f   :  { %v3244_v25 = vsub.f32 %v3220_v54, %v3230_v3 }
 0xd71   :  { %v3251_v42 = vmul.f32 1.442695, %v3244_v25 }
 0xd73   :  { %7695 = vpow2.f32 %v3251_v42 }
 0xd79   :  { %v7696_v15 = vpop.eup %7695 }
 0xd7a   :  { %v3264_v16 = vsel %vm1451_vm1, %v7696_v15, 0.0 }
 0xd7b   :  { %3265 = vadd.xlane.f32.xlu1 %v3264_v16 }
 0xd87   :  { %v3227_v21 = vpop.xlane.xlu0 %3226 }
 0xd88   :  { %v3243_v57 = vsub.f32 %v3219_v52, %v3227_v21 }
 0xd8a   :  { %v3249_v23 = vmul.f32 1.442695, %v3243_v57 }
 0xd8c   :  { %7697 = vpow2.f32 %v3249_v23 }
 0xd8f   :  { %v3239_v4 = vpop.xlane.xlu2 %3238  ;;  %v3242_v33 = vpop.xlane.xlu0 %3241 }
 0xd90   :  { %v3247_v34 = vsub.f32 %v3223_v12, %v3239_v4  ;;  %v3248_v54 = vsub.f32 %v3224_v48, %v3242_v33 }
 0xd92   :  { %v7698_v27 = vpop.eup %7697  ;;  %v3257_v44 = vmul.f32 1.442695, %v3247_v34  ;;  %v3259_v9 = vmul.f32 1.442695, %v3248_v54 }
 0xd93   :  { %v3261_v28 = vsel %vm1451_vm1, %v7698_v27, 0.0 }
 0xd94   :  { %7486 = vrot.lane.b32.xlu1 %v9135_v56, %s8538_s21  ;;  %3262 = vadd.xlane.f32.xlu0 %v3261_v28 }
 0xda1   :  { %v3233_v29 = vpop.xlane.xlu1 %3232  ;;  %v3236_v31 = vpop.xlane.xlu2 %3235 }
 0xda2   :  { %v3245_v47 = vsub.f32 %v3221_v7, %v3233_v29  ;;  %v3246_v49 = vsub.f32 %v3222_v60, %v3236_v31 }
 0xda4   :  { %v3253_v55 = vmul.f32 1.442695, %v3245_v47  ;;  %v3255_v43 = vmul.f32 1.442695, %v3246_v49 }
 0xda6   :  { %7699 = vpow2.f32 %v3253_v55 }
 0xda7   :  { %7701 = vpow2.f32 %v3255_v43  ;;  %v531_v43 = vld [vmem:[#allocation34 + $0x18] sm:$0xff] }
 0xda8   :  { %7703 = vpow2.f32 %v3257_v44 }
 0xda9   :  { %7705 = vpow2.f32 %v3259_v9 }
 0xdac   :  { %v7700_v52 = vpop.eup %7699 }
 0xdad   :  { %v7702_v56 = vpop.eup %7701  ;;  %v3267_v50 = vsel %vm1451_vm1, %v7700_v52, 0.0 }
 0xdae   :  { %3268 = vadd.xlane.f32.xlu2 %v3267_v50  ;;  %v3270_v14 = vsel %vm1451_vm1, %v7702_v56, 0.0  ;;  %v7704_v40 = vpop.eup %7703 }
 0xdaf   :  { %3271 = vadd.xlane.f32.xlu0 %v3270_v14  ;;  %v7706_v51 = vpop.eup %7705  ;;  %v3273_v12 = vsel %vm1451_vm1, %v7704_v40, 0.0  ;;  %v2417_v14 = vadd.f32 %v9332_v45, %v9345_v20 }
 0xdb0   :  { %v3276_v48 = vsel %vm1451_vm1, %v7706_v51, 0.0 }
 0xdb6   :  { %3274 = vadd.xlane.f32.xlu2 %v3273_v12 }
 0xdb7   :  { %3277 = vadd.xlane.f32.xlu0 %v3276_v48 }
 0xdcb   :  { %7496 = vrot.lane.b32.xlu0 %v9141_v61, %s8538_s21 }
 0xdce   :  { %7491 = vrot.lane.b32.xlu2 %v9151_v62, %s8538_s21 }
 0xdee   :  { %v3266_v63 = vpop.xlane.xlu1 %3265 }
 0xdef   :  { %7707 = vrcp.f32 %v3266_v63 }
 0xdf5   :  { %v7708_v39 = vpop.eup %7707 }
 0xdf6   :  { %v3286_v53 = vmul.f32 %v7708_v39, %v7696_v15  ;;  %v2394_v39 = vadd.f32 %v9338_v11, %v9343_v19  ;;  %v2509_v11 = vadd.f32 %v9336_v5, %v9349_v58  ;;  %v2440_v5 = vadd.f32 %v9352_v1, %v9334_v10 }
 0xdf8   :  { %v3050_v19 = vadd.f32 %v9446_v0, %v2509_v11 }
 0xe06   :  { %v7487_v37 = vpop.permute.xlu1 %7486 }
 0xe07   :  { %v7489_v7 = vunpack.i.h.bf16 %v7487_v37  ;;  %v7488_v60 = vunpack.i.l.bf16 %v7487_v37  ;;  %v3263_v38 = vpop.xlane.xlu0 %3262 }
 0xe08   :  { %7709 = vrcp.f32 %v3263_v38 }
 0xe09   :  { %3312 = vmatpush.msrb.mxu2 %v7488_v60  ;;  %3338 = vmatpush.msrb.mxu3 %v7489_v7  ;;  %v3045_v7 = vadd.f32 %v9438_v13, %v2394_v39 }
 0xe0a   :  { %7222 = vmatmul.msk.f32.vlgmr.msrb.gmra.mxu3 %vm1451_vm1, %v3286_v53 }
 0xe0e   :  { %v7710_v3 = vpop.eup %7709 }
 0xe0f   :  { %v3285_v25 = vmul.f32 %v7710_v3, %v7698_v27 }
 0xe11   :  { %7221 = vmatmul.msk.f32.vlgmr.msrb.gmra.mxu2 %vm1451_vm1, %v3285_v25 }
 0xe21   :  { %v3269_v61 = vpop.xlane.xlu2 %3268 }
 0xe22   :  { %v3272_v42 = vpop.xlane.xlu0 %3271 }
 0xe29   :  { %v3275_v62 = vpop.xlane.xlu2 %3274 }
 0xe2a   :  { %v3278_v16 = vpop.xlane.xlu0 %3277  ;;  %7711 = vrcp.f32 %v3275_v62 }
 0xe2b   :  { %7713 = vrcp.f32 %v3278_v16 }
 0xe2c   :  { %7715 = vrcp.f32 %v3269_v61 }
 0xe2d   :  { %7717 = vrcp.f32 %v3272_v42 }
 0xe30   :  { %v7712_v21 = vpop.eup %7711 }
 0xe31   :  { %v7714_v57 = vpop.eup %7713  ;;  %v7492_v23 = vpop.permute.xlu2 %7491  ;;  %v3289_v29 = vmul.f32 %v7712_v21, %v7704_v40  ;;  %v3046_v40 = vadd.f32 %v9440_v24, %v2417_v14  ;;  %v2486_v24 = vadd.f32 %v9341_v17, %v9347_v22  ;;  %v2463_v22 = vadd.f32 %v9354_v18, %v9330_v8 }
 0xe32   :  { %v7494_v15 = vunpack.i.h.bf16 %v7492_v23  ;;  %v7493_v28 = vunpack.i.l.bf16 %v7492_v23  ;;  %v3290_v4 = vmul.f32 %v7714_v57, %v7706_v51  ;;  %v7716_v27 = vpop.eup %7715  ;;  %v7569_v51 = vld [vmem:[#allocation33] ss:$0 sm:$0xff] }
 0xe33   :  { %v7718_v31 = vpop.eup %7717  ;;  %v3287_v55 = vmul.f32 %v7716_v27, %v7700_v52  ;;  %v3048_v58 = vadd.f32 %v9432_v35, %v2463_v22 }
 0xe34   :  { %3416 = vmatpush.msra.mxu2 %v7493_v28  ;;  %3442 = vmatpush.msra.mxu3 %v7494_v15  ;;  %v3288_v34 = vmul.f32 %v7718_v31, %v7702_v56 }
 0xe35   :  { %7225 = vmatmul.msk.f32.vlgmr.msra.gmra.mxu2 %vm1451_vm1, %v3289_v29  ;;  %7226 = vmatmul.msk.f32.vlgmr.msra.gmra.mxu3 %vm1451_vm1, %v3290_v4 }
 0xe36   :  { %3511 = vmatpush.msrb.mxu2 %v531_v43  ;;  %3534 = vmatpush.msrb.mxu3 %v531_v43 }
 0xe3d   :  { %v7497_v33 = vpop.permute.xlu0 %7496 }
 0xe3e   :  { %v7499_v47 = vunpack.i.h.bf16 %v7497_v33  ;;  %v7498_v49 = vunpack.i.l.bf16 %v7497_v33 }
 0xe40   :  { %3364 = vmatpush.msra.mxu0 %v7498_v49  ;;  %3390 = vmatpush.msra.mxu1 %v7499_v47 }
 0xe41   :  { %7223 = vmatmul.msk.f32.vlgmr.msra.gmra.mxu0 %vm1451_vm1, %v3287_v55  ;;  %7224 = vmatmul.msk.f32.vlgmr.msra.gmra.mxu1 %vm1451_vm1, %v3288_v34 }
 0xe42   :  { %3488 = vmatpush.msrb.mxu1 %v531_v43  ;;  %3465 = vmatpush.msrb.mxu0 %v531_v43 }
 0xe44   :  { %3557 = vmatpush.msra.mxu0 %v531_v43  ;;  %3580 = vmatpush.msra.mxu1 %v531_v43 }
 0xe8d   :  { %v3340_v54 = vpop.f32.mrf.mxu3 }
 0xe8e   :  { %7228 = vmatmul.msk.f32.vlgmr.msrb.gmra.mxu1 %vm1451_vm1, %v3340_v54 }
 0xe94   :  { %v3314_v44 = vpop.f32.mrf.mxu2 }
 0xe95   :  { %7227 = vmatmul.msk.f32.vlgmr.msrb.gmra.mxu0 %vm1451_vm1, %v3314_v44 }
 0xeb8   :  { %v3418_v9 = vpop.f32.mrf.mxu2  ;;  %v3444_v52 = vpop.f32.mrf.mxu3 }
 0xeb9   :  { %7231 = vmatmul.msk.f32.vlgmr.msra.gmra.mxu0 %vm1451_vm1, %v3418_v9  ;;  %7232 = vmatmul.msk.f32.vlgmr.msra.gmra.mxu1 %vm1451_vm1, %v3444_v52 }
 0xebe   :  { %v3366_v56 = vpop.f32.mrf.mxu0  ;;  %v3392_v50 = vpop.f32.mrf.mxu1 }
 0xebf   :  { %7229 = vmatmul.msk.f32.vlgmr.msrb.gmra.mxu2 %vm1451_vm1, %v3366_v56  ;;  %7230 = vmatmul.msk.f32.vlgmr.msrb.gmra.mxu3 %vm1451_vm1, %v3392_v50 }
 0xf0b   :  { %v3490_v12 = vpop.f32.mrf.mxu1 }
 0xf0c   :  { %v3586_v48 = vadd.f32 %v3490_v12, %v3046_v40 }
 0xf0e   :  { %v3595_v63 = vadd.f32 %v7569_v51, %v3586_v48 }
 0xf10   :  { %v3601_v37 = vadd.f32 %v3595_v63, %v9078_v26  ;;  %v3049_v26 = vadd.f32 %v9444_v2, %v2486_v24  ;;  %v3047_v2 = vadd.f32 %v9435_v59, %v2440_v5 }
 0xf12   :  { %v3609_v60 = vsel %vm852_vm7, %v3601_v37, 0.0  ;;  %v3467_v53 = vpop.f32.mrf.mxu0 }
 0xf13   :  { %3610 = vadd.xlane.f32.xlu0 %v3609_v60  ;;  %v3585_v38 = vadd.f32 %v3467_v53, %v3045_v7  ;;  %v526_v53 = vld [vmem:[#allocation31 + $0x18] sm:$0xff] }
 0xf14   :  { %3797 = vmatpush.msra.mxu3 %v526_v53  ;;  %3774 = vmatpush.msra.mxu2 %v526_v53 }
 0xf15   :  { %v3594_v3 = vadd.f32 %v7569_v51, %v3585_v38  ;;  %v525_v38 = vld [vmem:[#allocation31 + $0x10] sm:$0xff]  ;;  %3820 = vmatpush.msrb.mxu0 %v526_v53  ;;  %3843 = vmatpush.msrb.mxu1 %v526_v53 }
 0xf16   :  { %3798 = vmatpush.msra.mxu3 %v525_v38  ;;  %3775 = vmatpush.msra.mxu2 %v525_v38 }
 0xf17   :  { %v3600_v45 = vadd.f32 %v3594_v3, %v9070_v6  ;;  %v524_v3 = vld [vmem:[#allocation31 + $0x8] sm:$0xff]  ;;  %3821 = vmatpush.msrb.mxu0 %v525_v38  ;;  %3844 = vmatpush.msrb.mxu1 %v525_v38 }
 0xf18   :  { %3799 = vmatpush.msra.mxu3 %v524_v3  ;;  %3776 = vmatpush.msra.mxu2 %v524_v3 }
 0xf19   :  { %v3606_v20 = vsel %vm852_vm7, %v3600_v45, 0.0  ;;  %3822 = vmatpush.msrb.mxu0 %v524_v3  ;;  %3845 = vmatpush.msrb.mxu1 %v524_v3 }
 0xf1a   :  { %3607 = vadd.xlane.f32.xlu1 %v3606_v20 }
 0xf36   :  { %v3559_v13 = vpop.f32.mrf.mxu0  ;;  %v3582_v25 = vpop.f32.mrf.mxu1 }
 0xf37   :  { %v3589_v61 = vadd.f32 %v3559_v13, %v3049_v26  ;;  %v3590_v42 = vadd.f32 %v3582_v25, %v3050_v19 }
 0xf39   :  { %v3598_v62 = vadd.f32 %v7569_v51, %v3589_v61  ;;  %v3599_v16 = vadd.f32 %v7569_v51, %v3590_v42 }
 0xf3b   :  { %v3604_v6 = vadd.f32 %v3598_v62, %v9094_v32  ;;  %v3605_v21 = vadd.f32 %v3599_v16, %v9103_v46 }
 0xf3d   :  { %v3618_v57 = vsel %vm852_vm7, %v3604_v6, 0.0  ;;  %v3621_v17 = vsel %vm852_vm7, %v3605_v21, 0.0 }
 0xf3e   :  { %3619 = vadd.xlane.f32.xlu2 %v3618_v57  ;;  %3622 = vadd.xlane.f32.xlu1 %v3621_v17  ;;  %v9542_v17 = vld [vmem:[#allocation25] ss:$0 sm:$0xff] }
 0xf42   :  { %v3513_v0 = vpop.f32.mrf.mxu2  ;;  %v3536_v32 = vpop.f32.mrf.mxu3 }
 0xf43   :  { %v3587_v23 = vadd.f32 %v3513_v0, %v3047_v2  ;;  %v3588_v46 = vadd.f32 %v3536_v32, %v3048_v58  ;;  %v9545_v2 = vld [vmem:[#allocation24] ss:$0 sm:$0xff] }
 0xf45   :  { %v3596_v15 = vadd.f32 %v7569_v51, %v3587_v23  ;;  %v3597_v28 = vadd.f32 %v7569_v51, %v3588_v46 }
 0xf47   :  { %v3603_v4 = vadd.f32 %v3597_v28, %v9100_v36  ;;  %v3602_v29 = vadd.f32 %v3596_v15, %v9084_v30 }
 0xf49   :  { %v3615_v27 = vsel %vm852_vm7, %v3603_v4, 0.0  ;;  %v3612_v10 = vsel %vm852_vm7, %v3602_v29, 0.0 }
 0xf4a   :  { %3616 = vadd.xlane.f32.xlu0 %v3615_v27  ;;  %3613 = vadd.xlane.f32.xlu2 %v3612_v10 }
 0xf86   :  { %v3611_v8 = vpop.xlane.xlu0 %3610 }
 0xf87   :  { %v3625_v1 = vmul.f32 %v3611_v8, %v8936_v41 }
 0xf89   :  { %v9505_v18 = vsub.f32 %v3601_v37, %v3625_v1 }
 0xf8b   :  { %v3637_v35 = vmul.f32 %v9505_v18, %v9505_v18 }
 0xf8d   :  { %v3645_v59 = vsel %vm852_vm7, %v3637_v35, 0.0  ;;  %v3608_v31 = vpop.xlane.xlu1 %3607 }
 0xf8e   :  { %3646 = vadd.xlane.f32.xlu2 %v3645_v59  ;;  %v3624_v30 = vmul.f32 %v3608_v31, %v8936_v41 }
 0xf90   :  { %v9511_v36 = vsub.f32 %v3600_v45, %v3624_v30  ;;  %v523_v45 = vld [vmem:[#allocation31] sm:$0xff] }
 0xf91   :  { %3800 = vmatpush.msra.mxu3 %v523_v45  ;;  %3777 = vmatpush.msra.mxu2 %v523_v45 }
 0xf92   :  { %v3636_v33 = vmul.f32 %v9511_v36, %v9511_v36  ;;  %3823 = vmatpush.msrb.mxu0 %v523_v45  ;;  %3846 = vmatpush.msrb.mxu1 %v523_v45 }
 0xf93   :  { %3866 = vmatpush.msrb.mxu2 %v526_v53  ;;  %3889 = vmatpush.msrb.mxu3 %v526_v53 }
 0xf94   :  { %v3642_v47 = vsel %vm852_vm7, %v3636_v33, 0.0 }
 0xf95   :  { %3643 = vadd.xlane.f32.xlu1 %v3642_v47  ;;  %3867 = vmatpush.msrb.mxu2 %v525_v38 }
 0xf96   :  { %3890 = vmatpush.msrb.mxu3 %v525_v38 }
 0xf97   :  { %3868 = vmatpush.msrb.mxu2 %v524_v3 }
 0xf98   :  { %3891 = vmatpush.msrb.mxu3 %v524_v3 }
 0xf99   :  { %3869 = vmatpush.msrb.mxu2 %v523_v45 }
 0xf9a   :  { %3892 = vmatpush.msrb.mxu3 %v523_v45 }
 0xfb1   :  { %v3620_v49 = vpop.xlane.xlu2 %3619  ;;  %v3623_v34 = vpop.xlane.xlu1 %3622 }
 0xfb2   :  { %v3628_v55 = vmul.f32 %v3620_v49, %v8936_v41  ;;  %v3629_v43 = vmul.f32 %v3623_v34, %v8936_v41 }
 0xfb4   :  { %v9518_v54 = vsub.f32 %v3604_v6, %v3628_v55  ;;  %v9520_v44 = vsub.f32 %v3605_v21, %v3629_v43 }
 0xfb6   :  { %v3640_v9 = vmul.f32 %v9518_v54, %v9518_v54  ;;  %v3641_v52 = vmul.f32 %v9520_v44, %v9520_v44 }
 0xfb8   :  { %v3654_v56 = vsel %vm852_vm7, %v3640_v9, 0.0  ;;  %v3657_v50 = vsel %vm852_vm7, %v3641_v52, 0.0 }
 0xfb9   :  { %3655 = vadd.xlane.f32.xlu0 %v3654_v56  ;;  %3658 = vadd.xlane.f32.xlu1 %v3657_v50 }
 0xfbd   :  { %v3617_v14 = vpop.xlane.xlu0 %3616  ;;  %v3614_v40 = vpop.xlane.xlu2 %3613 }
 0xfbe   :  { %v3627_v51 = vmul.f32 %v3617_v14, %v8936_v41  ;;  %v3626_v12 = vmul.f32 %v3614_v40, %v8936_v41 }
 0xfc0   :  { %v9530_v48 = vsub.f32 %v3603_v4, %v3627_v51  ;;  %v9532_v63 = vsub.f32 %v3602_v29, %v3626_v12 }
 0xfc2   :  { %v3639_v39 = vmul.f32 %v9530_v48, %v9530_v48  ;;  %v3638_v37 = vmul.f32 %v9532_v63, %v9532_v63 }
 0xfc4   :  { %v3651_v7 = vsel %vm852_vm7, %v3639_v39, 0.0  ;;  %v3648_v60 = vsel %vm852_vm7, %v3638_v37, 0.0 }
 0xfc5   :  { %3652 = vadd.xlane.f32.xlu0 %v3651_v7  ;;  %3649 = vadd.xlane.f32.xlu2 %v3648_v60 }
0x1001   :  { %v3647_v20 = vpop.xlane.xlu2 %3646 }
0x1002   :  { %v3661_v24 = vmul.f32 %v3647_v20, %v8936_v41 }
0x1004   :  { %v3667_v11 = vadd.f32 1e-05, %v3661_v24 }
0x1006   :  { %7719 = vrsqrt.f32 %v3667_v11  ;;  %vm3688_vm4 = vweird.f32 %v3667_v11 }
0x1008   :  { %v3644_v26 = vpop.xlane.xlu1 %3643 }
0x1009   :  { %v3660_v19 = vmul.f32 %v3644_v26, %v8936_v41 }
0x100b   :  { %v3666_v25 = vadd.f32 1e-05, %v3660_v19 }
0x100c   :  { %v7720_v13 = vpop.eup %7719 }
0x100d   :  { %v3683_v61 = vmul.f32 %v7720_v13, %v3667_v11  ;;  %7721 = vrsqrt.f32 %v3666_v25  ;;  %vm3689_vm3 = vweird.f32 %v7720_v13  ;;  %vm3678_vm0 = vweird.f32 %v3666_v25 }
0x100e   :  { %vm3690_vm5 = vmor %vm3688_vm4, %vm3689_vm3 }
0x100f   :  { %v3684_v42 = vmul.f32 %v7720_v13, %v3683_v61 }
0x1011   :  { %v3685_v62 = vmul.f32 0.5, %v3684_v42 }
0x1013   :  { %v3686_v16 = vsub.f32 1.5, %v3685_v62  ;;  %v7722_v6 = vpop.eup %7721 }
0x1014   :  { %v3673_v57 = vmul.f32 %v7722_v6, %v3666_v25  ;;  %vm3679_vm6 = vweird.f32 %v7722_v6 }
0x1015   :  { %v3687_v21 = vmul.f32 %v7720_v13, %v3686_v16  ;;  %vm3680_vm8 = vmor %vm3678_vm0, %vm3679_vm6 }
0x1016   :  { %v3674_v22 = vmul.f32 %v7722_v6, %v3673_v57 }
0x1017   :  { %v3691_v5 = vsel %vm3690_vm5, %v7720_v13, %v3687_v21 }
0x1018   :  { %v3733_v58 = vmul.f32 %v3691_v5, %v9505_v18  ;;  %v3675_v0 = vmul.f32 0.5, %v3674_v22 }
0x101a   :  { %v3742_v32 = vmul.f32 %v9542_v17, %v3733_v58  ;;  %v3676_v23 = vsub.f32 1.5, %v3675_v0 }
0x101c   :  { %v9549_v46 = vadd.f32 %v9545_v2, %v3742_v32  ;;  %v3677_v15 = vmul.f32 %v7722_v6, %v3676_v23  ;;  %v7572_v23 = vld [vmem:[#allocation30] ss:$0 sm:$0xff] }
0x101e   :  { %7234 = vmatmul.msk.f32.vlgmr.msra.gmra.mxu3 %vm852_vm7, %v9549_v46  ;;  %v3681_v28 = vsel %vm3680_vm8, %v7722_v6, %v3677_v15 }
0x101f   :  { %v3732_v4 = vmul.f32 %v3681_v28, %v9511_v36 }
0x1021   :  { %v3741_v29 = vmul.f32 %v9542_v17, %v3732_v4 }
0x1023   :  { %v9556_v27 = vadd.f32 %v9545_v2, %v3741_v29 }
0x1025   :  { %7233 = vmatmul.msk.f32.vlgmr.msra.gmra.mxu2 %vm852_vm7, %v9556_v27 }
0x102c   :  { %v3656_v10 = vpop.xlane.xlu0 %3655  ;;  %v3659_v8 = vpop.xlane.xlu1 %3658 }
0x102d   :  { %v3664_v1 = vmul.f32 %v3656_v10, %v8936_v41  ;;  %v3665_v18 = vmul.f32 %v3659_v8, %v8936_v41 }
0x102f   :  { %v3670_v35 = vadd.f32 1e-05, %v3664_v1  ;;  %v3671_v59 = vadd.f32 1e-05, %v3665_v18 }
0x1031   :  { %7723 = vrsqrt.f32 %v3670_v35  ;;  %vm3718_vm11 = vweird.f32 %v3670_v35  ;;  %vm3728_vm13 = vweird.f32 %v3671_v59 }
0x1032   :  { %7725 = vrsqrt.f32 %v3671_v59 }
0x1037   :  { %v7724_v31 = vpop.eup %7723 }
0x1038   :  { %v7726_v30 = vpop.eup %7725  ;;  %v3713_v36 = vmul.f32 %v7724_v31, %v3670_v35  ;;  %v3653_v33 = vpop.xlane.xlu0 %3652  ;;  %vm3719_vm9 = vweird.f32 %v7724_v31 }
0x1039   :  { %v3650_v47 = vpop.xlane.xlu2 %3649  ;;  %v3723_v49 = vmul.f32 %v7726_v30, %v3671_v59  ;;  %v3663_v34 = vmul.f32 %v3653_v33, %v8936_v41  ;;  %vm3729_vm10 = vweird.f32 %v7726_v30  ;;  %vm3720_vm12 = vmor %vm3718_vm11, %vm3719_vm9 }
0x103a   :  { %v3662_v55 = vmul.f32 %v3650_v47, %v8936_v41  ;;  %v3714_v43 = vmul.f32 %v7724_v31, %v3713_v36  ;;  %vm3730_vm14 = vmor %vm3728_vm13, %vm3729_vm10 }
0x103b   :  { %v3724_v9 = vmul.f32 %v7726_v30, %v3723_v49  ;;  %v3669_v52 = vadd.f32 1e-05, %v3663_v34 }
0x103c   :  { %v3668_v56 = vadd.f32 1e-05, %v3662_v55  ;;  %v3715_v50 = vmul.f32 0.5, %v3714_v43 }
0x103d   :  { %v3725_v14 = vmul.f32 0.5, %v3724_v9  ;;  %7727 = vrsqrt.f32 %v3669_v52  ;;  %vm3708_vm4 = vweird.f32 %v3669_v52 }
0x103e   :  { %v3716_v40 = vsub.f32 1.5, %v3715_v50  ;;  %7729 = vrsqrt.f32 %v3668_v56  ;;  %vm3698_vm6 = vweird.f32 %v3668_v56 }
0x103f   :  { %v3726_v51 = vsub.f32 1.5, %v3725_v14 }
0x1040   :  { %v3717_v12 = vmul.f32 %v7724_v31, %v3716_v40 }
0x1041   :  { %v3727_v39 = vmul.f32 %v7726_v30, %v3726_v51 }
0x1042   :  { %v3721_v37 = vsel %vm3720_vm12, %v7724_v31, %v3717_v12 }
0x1043   :  { %v7728_v7 = vpop.eup %7727  ;;  %v3736_v60 = vmul.f32 %v3721_v37, %v9518_v54  ;;  %v3731_v53 = vsel %vm3730_vm14, %v7726_v30, %v3727_v39 }
0x1044   :  { %v7730_v38 = vpop.eup %7729  ;;  %v3737_v3 = vmul.f32 %v3731_v53, %v9520_v44  ;;  %v3703_v45 = vmul.f32 %v7728_v7, %v3669_v52  ;;  %vm3709_vm15 = vweird.f32 %v7728_v7 }
0x1045   :  { %v3745_v20 = vmul.f32 %v9542_v17, %v3736_v60  ;;  %v3693_v24 = vmul.f32 %v7730_v38, %v3668_v56  ;;  %vm3699_vm3 = vweird.f32 %v7730_v38  ;;  %vm3710_vm5 = vmor %vm3708_vm4, %vm3709_vm15 }
0x1046   :  { %v3746_v11 = vmul.f32 %v9542_v17, %v3737_v3  ;;  %v3704_v26 = vmul.f32 %v7728_v7, %v3703_v45  ;;  %vm3700_vm0 = vmor %vm3698_vm6, %vm3699_vm3 }
0x1047   :  { %v3694_v19 = vmul.f32 %v7730_v38, %v3693_v24  ;;  %v3754_v13 = vadd.f32 %v9545_v2, %v3745_v20 }
0x1048   :  { %v3705_v25 = vmul.f32 0.5, %v3704_v26  ;;  %v3755_v61 = vadd.f32 %v9545_v2, %v3746_v11 }
0x1049   :  { %v3695_v42 = vmul.f32 0.5, %v3694_v19  ;;  %7237 = vmatmul.msk.f32.vlgmr.msrb.gmra.mxu2 %vm852_vm7, %v3754_v13 }
0x104a   :  { %v3706_v54 = vsub.f32 1.5, %v3705_v25  ;;  %7238 = vmatmul.msk.f32.vlgmr.msrb.gmra.mxu3 %vm852_vm7, %v3755_v61 }
0x104b   :  { %v3696_v44 = vsub.f32 1.5, %v3695_v42 }
0x104c   :  { %v3707_v62 = vmul.f32 %v7728_v7, %v3706_v54 }
0x104d   :  { %v3697_v16 = vmul.f32 %v7730_v38, %v3696_v44 }
0x104e   :  { %v3711_v6 = vsel %vm3710_vm5, %v7728_v7, %v3707_v62 }
0x104f   :  { %v3735_v21 = vmul.f32 %v3711_v6, %v9530_v48  ;;  %v3701_v57 = vsel %vm3700_vm0, %v7730_v38, %v3697_v16 }
0x1050   :  { %v3734_v5 = vmul.f32 %v3701_v57, %v9532_v63 }
0x1051   :  { %v3744_v22 = vmul.f32 %v9542_v17, %v3735_v21 }
0x1052   :  { %v3743_v58 = vmul.f32 %v9542_v17, %v3734_v5 }
0x1053   :  { %v3753_v0 = vadd.f32 %v9545_v2, %v3744_v22 }
0x1054   :  { %v3752_v32 = vadd.f32 %v9545_v2, %v3743_v58 }
0x1055   :  { %7236 = vmatmul.msk.f32.vlgmr.msrb.gmra.mxu1 %vm852_vm7, %v3753_v0 }
0x1056   :  { %7235 = vmatmul.msk.f32.vlgmr.msrb.gmra.mxu0 %vm852_vm7, %v3752_v32 }
0x10a1   :  { %v3802_v15 = vpop.f32.mrf.mxu3 }
0x10a2   :  { %v3803_v28 = vadd.f32 %v7572_v23, %v3802_v15  ;;  %v513_v15 = vld [vmem:[#allocation21] sm:$0xff] }
0x10a4   :  { %v3898_v4 = vmax.f32 %v3803_v28, 0.0 }
0x10a6   :  { %v3904_v48 = vadd.f32 %v3898_v4, %v9549_v46 }
0x10a8   :  { %v3912_v63 = vsel %vm852_vm7, %v3904_v48, 0.0  ;;  %v3779_v29 = vpop.f32.mrf.mxu2 }
0x10a9   :  { %3913 = vadd.xlane.f32.xlu2 %v3912_v63  ;;  %v3780_v10 = vadd.f32 %v7572_v23, %v3779_v29 }
0x10ab   :  { %v3897_v17 = vmax.f32 %v3780_v10, 0.0 }
0x10ad   :  { %v3903_v8 = vadd.f32 %v3897_v17, %v9556_v27 }
0x10af   :  { %v3909_v2 = vsel %vm852_vm7, %v3903_v8, 0.0 }
0x10b0   :  { %3910 = vadd.xlane.f32.xlu1 %v3909_v2 }
0x10cc   :  { %v3871_v1 = vpop.f32.mrf.mxu2 }
0x10cd   :  { %v3872_v18 = vadd.f32 %v7572_v23, %v3871_v1  ;;  %v3894_v30 = vpop.f32.mrf.mxu3 }
0x10ce   :  { %v3895_v34 = vadd.f32 %v7572_v23, %v3894_v30  ;;  %v9626_v30 = vld [vmem:[#allocation28] ss:$0 sm:$0xff] }
0x10cf   :  { %v3901_v35 = vmax.f32 %v3872_v18, 0.0 }
0x10d0   :  { %v3902_v52 = vmax.f32 %v3895_v34, 0.0 }
0x10d1   :  { %v3907_v59 = vadd.f32 %v3901_v35, %v3754_v13 }
0x10d2   :  { %v3848_v31 = vpop.f32.mrf.mxu1  ;;  %v3908_v50 = vadd.f32 %v3902_v52, %v3755_v61 }
0x10d3   :  { %v3825_v36 = vpop.f32.mrf.mxu0  ;;  %v3849_v33 = vadd.f32 %v7572_v23, %v3848_v31  ;;  %v3921_v46 = vsel %vm852_vm7, %v3907_v59, 0.0 }
0x10d4   :  { %v3826_v47 = vadd.f32 %v7572_v23, %v3825_v36  ;;  %3922 = vadd.xlane.f32.xlu2 %v3921_v46  ;;  %v3924_v14 = vsel %vm852_vm7, %v3908_v50, 0.0  ;;  %v514_v23 = vld [vmem:[#allocation21 + $0x8] sm:$0xff] }
0x10d5   :  { %v3900_v49 = vmax.f32 %v3849_v33, 0.0  ;;  %v9628_v46 = vld [vmem:[#allocation27] ss:$0 sm:$0xff] }
0x10d6   :  { %v3899_v55 = vmax.f32 %v3826_v47, 0.0 }
0x10d7   :  { %v3906_v43 = vadd.f32 %v3900_v49, %v3753_v0  ;;  %v516_v0 = vld [vmem:[#allocation21 + $0x18] sm:$0xff] }
0x10d8   :  { %v3905_v27 = vadd.f32 %v3899_v55, %v3752_v32  ;;  %4100 = vmatpush.msra.mxu1 %v516_v0  ;;  %4077 = vmatpush.msra.mxu0 %v516_v0  ;;  %v515_v32 = vld [vmem:[#allocation21 + $0x10] sm:$0xff] }
0x10d9   :  { %v3918_v9 = vsel %vm852_vm7, %v3906_v43, 0.0  ;;  %4123 = vmatpush.msra.mxu2 %v516_v0  ;;  %4146 = vmatpush.msra.mxu3 %v516_v0 }
0x10da   :  { %v3915_v56 = vsel %vm852_vm7, %v3905_v27, 0.0  ;;  %3919 = vadd.xlane.f32.xlu1 %v3918_v9  ;;  %4101 = vmatpush.msra.mxu1 %v515_v32 }
0x10db   :  { %3916 = vadd.xlane.f32.xlu0 %v3915_v56  ;;  %4078 = vmatpush.msra.mxu0 %v515_v32 }
0x10dc   :  { %4124 = vmatpush.msra.mxu2 %v515_v32  ;;  %4147 = vmatpush.msra.mxu3 %v515_v32 }
0x10dd   :  { %4102 = vmatpush.msra.mxu1 %v514_v23  ;;  %4079 = vmatpush.msra.mxu0 %v514_v23 }
0x10de   :  { %4125 = vmatpush.msra.mxu2 %v514_v23  ;;  %4148 = vmatpush.msra.mxu3 %v514_v23 }
0x10df   :  { %4103 = vmatpush.msra.mxu1 %v513_v15  ;;  %4080 = vmatpush.msra.mxu0 %v513_v15 }
0x10e0   :  { %4126 = vmatpush.msra.mxu2 %v513_v15  ;;  %4149 = vmatpush.msra.mxu3 %v513_v15 }
0x10e1   :  { %4169 = vmatpush.msrb.mxu0 %v516_v0  ;;  %4192 = vmatpush.msrb.mxu1 %v516_v0 }
0x10e3   :  { %3925 = vadd.xlane.f32.xlu0 %v3924_v14  ;;  %4170 = vmatpush.msrb.mxu0 %v515_v32 }
0x10e4   :  { %4193 = vmatpush.msrb.mxu1 %v515_v32 }
0x10e5   :  { %4171 = vmatpush.msrb.mxu0 %v514_v23 }
0x10e6   :  { %4194 = vmatpush.msrb.mxu1 %v514_v23 }
0x10e7   :  { %4172 = vmatpush.msrb.mxu0 %v513_v15 }
0x10e8   :  { %4195 = vmatpush.msrb.mxu1 %v513_v15 }
0x111c   :  { %v3914_v40 = vpop.xlane.xlu2 %3913 }
0x111d   :  { %v3928_v51 = vmul.f32 %v3914_v40, %v8936_v41 }
0x111f   :  { %v9589_v12 = vsub.f32 %v3904_v48, %v3928_v51 }
0x1121   :  { %v3940_v39 = vmul.f32 %v9589_v12, %v9589_v12 }
0x1123   :  { %v3948_v37 = vsel %vm852_vm7, %v3940_v39, 0.0  ;;  %v3911_v7 = vpop.xlane.xlu1 %3910 }
0x1124   :  { %3949 = vadd.xlane.f32.xlu2 %v3948_v37  ;;  %v3927_v60 = vmul.f32 %v3911_v7, %v8936_v41 }
0x1126   :  { %v9595_v53 = vsub.f32 %v3903_v8, %v3927_v60 }
0x1128   :  { %v3939_v38 = vmul.f32 %v9595_v53, %v9595_v53 }
0x112a   :  { %v3945_v3 = vsel %vm852_vm7, %v3939_v38, 0.0 }
0x112b   :  { %3946 = vadd.xlane.f32.xlu1 %v3945_v3 }
0x1147   :  { %v3923_v45 = vpop.xlane.xlu2 %3922 }
0x1148   :  { %v3931_v20 = vmul.f32 %v3923_v45, %v8936_v41  ;;  %v9641_v45 = vld [vmem:[#allocation18 + $0x18] sm:$0xff] }
0x1149   :  { %4247 = vmatpush.msrb.mxu3 %v9641_v45  ;;  %4224 = vmatpush.msrb.mxu2 %v9641_v45 }
0x114a   :  { %v9601_v24 = vsub.f32 %v3907_v59, %v3931_v20 }
0x114c   :  { %v3943_v11 = vmul.f32 %v9601_v24, %v9601_v24 }
0x114d   :  { %v3920_v26 = vpop.xlane.xlu1 %3919 }
0x114e   :  { %v3917_v19 = vpop.xlane.xlu0 %3916  ;;  %v3930_v13 = vmul.f32 %v3920_v26, %v8936_v41  ;;  %v3957_v25 = vsel %vm852_vm7, %v3943_v11, 0.0 }
0x114f   :  { %v3929_v61 = vmul.f32 %v3917_v19, %v8936_v41  ;;  %3958 = vadd.xlane.f32.xlu2 %v3957_v25 }
0x1150   :  { %v9608_v42 = vsub.f32 %v3906_v43, %v3930_v13 }
0x1151   :  { %v9610_v54 = vsub.f32 %v3905_v27, %v3929_v61 }
0x1152   :  { %v3942_v44 = vmul.f32 %v9608_v42, %v9608_v42 }
0x1153   :  { %v3941_v62 = vmul.f32 %v9610_v54, %v9610_v54 }
0x1154   :  { %v3954_v16 = vsel %vm852_vm7, %v3942_v44, 0.0 }
0x1155   :  { %v3951_v6 = vsel %vm852_vm7, %v3941_v62, 0.0  ;;  %3955 = vadd.xlane.f32.xlu1 %v3954_v16 }
0x1156   :  { %3952 = vadd.xlane.f32.xlu0 %v3951_v6  ;;  %v3926_v21 = vpop.xlane.xlu0 %3925 }
0x1157   :  { %v3932_v57 = vmul.f32 %v3926_v21, %v8936_v41 }
0x1159   :  { %v9619_v5 = vsub.f32 %v3908_v50, %v3932_v57 }
0x115b   :  { %v3944_v22 = vmul.f32 %v9619_v5, %v9619_v5 }
0x115d   :  { %v3960_v58 = vsel %vm852_vm7, %v3944_v22, 0.0 }
0x115e   :  { %3961 = vadd.xlane.f32.xlu0 %v3960_v58 }
0x1197   :  { %v3950_v28 = vpop.xlane.xlu2 %3949 }
0x1198   :  { %v3964_v4 = vmul.f32 %v3950_v28, %v8936_v41 }
0x119a   :  { %v3970_v48 = vadd.f32 1e-05, %v3964_v4 }
0x119c   :  { %7731 = vrsqrt.f32 %v3970_v48  ;;  %vm3991_vm9 = vweird.f32 %v3970_v48 }
0x119e   :  { %v3947_v63 = vpop.xlane.xlu1 %3946 }
0x119f   :  { %v3963_v29 = vmul.f32 %v3947_v63, %v8936_v41 }
0x11a1   :  { %v3969_v17 = vadd.f32 1e-05, %v3963_v29 }
0x11a2   :  { %v7732_v10 = vpop.eup %7731 }
0x11a3   :  { %v3986_v8 = vmul.f32 %v7732_v10, %v3970_v48  ;;  %7733 = vrsqrt.f32 %v3969_v17  ;;  %vm3992_vm8 = vweird.f32 %v7732_v10  ;;  %vm3981_vm12 = vweird.f32 %v3969_v17 }
0x11a4   :  { %vm3993_vm10 = vmor %vm3991_vm9, %vm3992_vm8 }
0x11a5   :  { %v3987_v2 = vmul.f32 %v7732_v10, %v3986_v8 }
0x11a7   :  { %v3988_v1 = vmul.f32 0.5, %v3987_v2 }
0x11a9   :  { %v3989_v18 = vsub.f32 1.5, %v3988_v1  ;;  %v7734_v35 = vpop.eup %7733 }
0x11aa   :  { %v3976_v31 = vmul.f32 %v7734_v35, %v3969_v17  ;;  %vm3982_vm11 = vweird.f32 %v7734_v35 }
0x11ab   :  { %v3990_v59 = vmul.f32 %v7732_v10, %v3989_v18  ;;  %vm3983_vm13 = vmor %vm3981_vm12, %vm3982_vm11 }
0x11ac   :  { %v3977_v33 = vmul.f32 %v7734_v35, %v3976_v31 }
0x11ad   :  { %v3994_v36 = vsel %vm3993_vm10, %v7732_v10, %v3990_v59 }
0x11ae   :  { %v4036_v47 = vmul.f32 %v3994_v36, %v9589_v12  ;;  %v3978_v49 = vmul.f32 0.5, %v3977_v33 }
0x11b0   :  { %v4045_v34 = vmul.f32 %v9626_v30, %v4036_v47  ;;  %v3979_v55 = vsub.f32 1.5, %v3978_v49 }
0x11b2   :  { %v4054_v43 = vadd.f32 %v9628_v46, %v4045_v34  ;;  %v3980_v27 = vmul.f32 %v7734_v35, %v3979_v55  ;;  %v510_v55 = vld [vmem:[#allocation18 + $0x10] sm:$0xff] }
0x11b3   :  { %4248 = vmatpush.msrb.mxu3 %v510_v55  ;;  %4225 = vmatpush.msrb.mxu2 %v510_v55 }
0x11b4   :  { %7240 = vmatmul.msk.f32.vlgmr.msra.gmra.mxu1 %vm852_vm7, %v4054_v43  ;;  %v3984_v9 = vsel %vm3983_vm13, %v7734_v35, %v3980_v27  ;;  %v509_v43 = vld [vmem:[#allocation18 + $0x8] sm:$0xff]  ;;  %v508_v27 = vld [vmem:[#allocation18] sm:$0xff]  ;;  %vm4529_vm13 = vcmask 60416  }
0x11b5   :  { %v4035_v52 = vmul.f32 %v3984_v9, %v9595_v53  ;;  %4293 = vmatpush.msra.mxu1 %v9641_v45  ;;  %4249 = vmatpush.msrb.mxu3 %v509_v43 }
0x11b6   :  { %4226 = vmatpush.msrb.mxu2 %v509_v43 }
0x11b7   :  { %v4044_v56 = vmul.f32 %v9626_v30, %v4035_v52  ;;  %4294 = vmatpush.msra.mxu1 %v510_v55  ;;  %4250 = vmatpush.msrb.mxu3 %v508_v27 }
0x11b8   :  { %4227 = vmatpush.msrb.mxu2 %v508_v27 }
0x11b9   :  { %v4053_v50 = vadd.f32 %v9628_v46, %v4044_v56  ;;  %4295 = vmatpush.msra.mxu1 %v509_v43 }
0x11bb   :  { %7239 = vmatmul.msk.f32.vlgmr.msra.gmra.mxu0 %vm852_vm7, %v4053_v50  ;;  %4296 = vmatpush.msra.mxu1 %v508_v27 }
0x11bc   :  { %4270 = vmatpush.msra.mxu0 %v9641_v45 }
0x11be   :  { %4271 = vmatpush.msra.mxu0 %v510_v55 }
0x11c0   :  { %4272 = vmatpush.msra.mxu0 %v509_v43 }
0x11c2   :  { %v3959_v14 = vpop.xlane.xlu2 %3958  ;;  %4273 = vmatpush.msra.mxu0 %v508_v27 }
0x11c3   :  { %v3967_v40 = vmul.f32 %v3959_v14, %v8936_v41 }
0x11c5   :  { %v3973_v51 = vadd.f32 1e-05, %v3967_v40 }
0x11c7   :  { %7735 = vrsqrt.f32 %v3973_v51  ;;  %vm4021_vm15 = vweird.f32 %v3973_v51 }
0x11c8   :  { %v3956_v12 = vpop.xlane.xlu1 %3955 }
0x11c9   :  { %v3953_v39 = vpop.xlane.xlu0 %3952  ;;  %v3966_v37 = vmul.f32 %v3956_v12, %v8936_v41 }
0x11ca   :  { %v3965_v7 = vmul.f32 %v3953_v39, %v8936_v41 }
0x11cb   :  { %v3972_v60 = vadd.f32 1e-05, %v3966_v37 }
0x11cc   :  { %v3971_v38 = vadd.f32 1e-05, %v3965_v7 }
0x11cd   :  { %v7736_v53 = vpop.eup %7735  ;;  %7737 = vrsqrt.f32 %v3972_v60  ;;  %vm4011_vm6 = vweird.f32 %v3972_v60 }
0x11ce   :  { %v4016_v3 = vmul.f32 %v7736_v53, %v3973_v51  ;;  %7739 = vrsqrt.f32 %v3971_v38  ;;  %vm4022_vm14 = vweird.f32 %v7736_v53  ;;  %vm4001_vm0 = vweird.f32 %v3971_v38 }
0x11cf   :  { %vm4023_vm3 = vmor %vm4021_vm15, %vm4022_vm14  ;;  %vm6459_vm14 = vcmask 257024  }
0x11d0   :  { %v4017_v20 = vmul.f32 %v7736_v53, %v4016_v3 }
0x11d1   :  { %v3962_v11 = vpop.xlane.xlu0 %3961 }
0x11d2   :  { %v4018_v26 = vmul.f32 0.5, %v4017_v20  ;;  %v3968_v19 = vmul.f32 %v3962_v11, %v8936_v41  ;;  %v517_v20 = vld [vmem:[#allocation22] sm:$0xf]  ;;  %v7576_v11 = vld [vmem:[#allocation16] ss:$0 sm:$0xff] }
0x11d3   :  { %v7738_v13 = vpop.eup %7737 }
0x11d4   :  { %v7740_v25 = vpop.eup %7739  ;;  %v4019_v61 = vsub.f32 1.5, %v4018_v26  ;;  %v4006_v44 = vmul.f32 %v7738_v13, %v3972_v60  ;;  %v3974_v62 = vadd.f32 1e-05, %v3968_v19  ;;  %vm4012_vm4 = vweird.f32 %v7738_v13 }
0x11d5   :  { %v3996_v16 = vmul.f32 %v7740_v25, %v3971_v38  ;;  %vm4002_vm5 = vweird.f32 %v7740_v25  ;;  %vm4013_vm8 = vmor %vm4011_vm6, %vm4012_vm4 }
0x11d6   :  { %v4020_v6 = vmul.f32 %v7736_v53, %v4019_v61  ;;  %v4007_v21 = vmul.f32 %v7738_v13, %v4006_v44  ;;  %7741 = vrsqrt.f32 %v3974_v62  ;;  %vm4003_vm9 = vmor %vm4001_vm0, %vm4002_vm5  ;;  %vm4031_vm11 = vweird.f32 %v3974_v62 }
0x11d7   :  { %v3997_v57 = vmul.f32 %v7740_v25, %v3996_v16 }
0x11d8   :  { %v4024_v22 = vsel %vm4023_vm3, %v7736_v53, %v4020_v6  ;;  %v4008_v58 = vmul.f32 0.5, %v4007_v21 }
0x11d9   :  { %v4039_v0 = vmul.f32 %v4024_v22, %v9601_v24  ;;  %v3998_v32 = vmul.f32 0.5, %v3997_v57 }
0x11da   :  { %v4009_v23 = vsub.f32 1.5, %v4008_v58 }
0x11db   :  { %v4048_v15 = vmul.f32 %v9626_v30, %v4039_v0  ;;  %v3999_v28 = vsub.f32 1.5, %v3998_v32 }
0x11dc   :  { %v7742_v4 = vpop.eup %7741  ;;  %v4010_v48 = vmul.f32 %v7738_v13, %v4009_v23 }
0x11dd   :  { %v4057_v63 = vadd.f32 %v9628_v46, %v4048_v15  ;;  %v4000_v29 = vmul.f32 %v7740_v25, %v3999_v28  ;;  %v4026_v10 = vmul.f32 %v7742_v4, %v3974_v62  ;;  %vm4032_vm10 = vweird.f32 %v7742_v4 }
0x11de   :  { %v4014_v17 = vsel %vm4013_vm8, %v7738_v13, %v4010_v48  ;;  %vm4033_vm12 = vmor %vm4031_vm11, %vm4032_vm10 }
0x11df   :  { %v4004_v8 = vsel %vm4003_vm9, %v7740_v25, %v4000_v29  ;;  %v4038_v24 = vmul.f32 %v4014_v17, %v9608_v42  ;;  %v4027_v2 = vmul.f32 %v7742_v4, %v4026_v10  ;;  %7243 = vmatmul.msk.f32.vlgmr.msrb.gmra.mxu0 %vm852_vm7, %v4057_v63 }
0x11e0   :  { %v4037_v1 = vmul.f32 %v4004_v8, %v9610_v54  ;;  %4362 = vmatpush.msrb.mxu0 %v9641_v45 }
0x11e1   :  { %v4047_v18 = vmul.f32 %v9626_v30, %v4038_v24  ;;  %v4028_v35 = vmul.f32 0.5, %v4027_v2 }
0x11e2   :  { %v4046_v59 = vmul.f32 %v9626_v30, %v4037_v1  ;;  %4363 = vmatpush.msrb.mxu0 %v510_v55 }
0x11e3   :  { %v4056_v31 = vadd.f32 %v9628_v46, %v4047_v18  ;;  %v4029_v36 = vsub.f32 1.5, %v4028_v35 }
0x11e4   :  { %v4055_v33 = vadd.f32 %v9628_v46, %v4046_v59  ;;  %4364 = vmatpush.msrb.mxu0 %v509_v43 }
0x11e5   :  { %v4030_v47 = vmul.f32 %v7742_v4, %v4029_v36  ;;  %7242 = vmatmul.msk.f32.vlgmr.msra.gmra.mxu3 %vm852_vm7, %v4056_v31 }
0x11e6   :  { %7241 = vmatmul.msk.f32.vlgmr.msra.gmra.mxu2 %vm852_vm7, %v4055_v33  ;;  %4339 = vmatpush.msra.mxu3 %v9641_v45 }
0x11e7   :  { %v4034_v42 = vsel %vm4033_vm12, %v7742_v4, %v4030_v47  ;;  %4316 = vmatpush.msra.mxu2 %v9641_v45  ;;  %4365 = vmatpush.msrb.mxu0 %v508_v27 }
0x11e8   :  { %v4040_v54 = vmul.f32 %v4034_v42, %v9619_v5  ;;  %4340 = vmatpush.msra.mxu3 %v510_v55  ;;  %v7575_v5 = vld [vmem:[#allocation19] ss:$0 sm:$0xff] }
0x11e9   :  { %4317 = vmatpush.msra.mxu2 %v510_v55 }
0x11ea   :  { %v4049_v49 = vmul.f32 %v9626_v30, %v4040_v54  ;;  %4341 = vmatpush.msra.mxu3 %v509_v43 }
0x11eb   :  { %4318 = vmatpush.msra.mxu2 %v509_v43 }
0x11ec   :  { %v4058_v34 = vadd.f32 %v9628_v46, %v4049_v49  ;;  %4342 = vmatpush.msra.mxu3 %v508_v27 }
0x11ed   :  { %4319 = vmatpush.msra.mxu2 %v508_v27 }
0x11ee   :  { %7244 = vmatmul.msk.f32.vlgmr.msrb.gmra.mxu1 %vm852_vm7, %v4058_v34 }
0x1231   :  { %v4105_v30 = vpop.f32.mrf.mxu1 }
0x1232   :  { %v4106_v46 = vadd.f32 %v7575_v5, %v4105_v30 }
0x1234   :  { %v4201_v9 = vmax.f32 %v4106_v46, 0.0 }
0x1236   :  { %7246 = vmatmul.msk.f32.vlgmr.msrb.gmra.mxu3 %vm852_vm7, %v4201_v9 }
0x1238   :  { %v4082_v52 = vpop.f32.mrf.mxu0 }
0x1239   :  { %v4083_v56 = vadd.f32 %v7575_v5, %v4082_v52 }
0x123b   :  { %v4200_v50 = vmax.f32 %v4083_v56, 0.0 }
0x123d   :  { %7245 = vmatmul.msk.f32.vlgmr.msrb.gmra.mxu2 %vm852_vm7, %v4200_v50 }
0x125c   :  { %v4174_v14 = vpop.f32.mrf.mxu0 }
0x125d   :  { %v4175_v40 = vadd.f32 %v7575_v5, %v4174_v14 }
0x125f   :  { %v4204_v51 = vmax.f32 %v4175_v40, 0.0 }
0x1261   :  { %7249 = vmatmul.msk.f32.vlgmr.msra.gmra.mxu2 %vm852_vm7, %v4204_v51 }
0x1268   :  { %v4151_v12 = vpop.f32.mrf.mxu3 }
0x1269   :  { %v4128_v39 = vpop.f32.mrf.mxu2  ;;  %v4152_v37 = vadd.f32 %v7575_v5, %v4151_v12 }
0x126a   :  { %v4129_v7 = vadd.f32 %v7575_v5, %v4128_v39 }
0x126b   :  { %v4203_v60 = vmax.f32 %v4152_v37, 0.0  ;;  %v4197_v38 = vpop.f32.mrf.mxu1 }
0x126c   :  { %v4202_v53 = vmax.f32 %v4129_v7, 0.0  ;;  %v4198_v3 = vadd.f32 %v7575_v5, %v4197_v38 }
0x126d   :  { %7248 = vmatmul.msk.f32.vlgmr.msra.gmra.mxu1 %vm852_vm7, %v4203_v60 }
0x126e   :  { %v4205_v45 = vmax.f32 %v4198_v3, 0.0  ;;  %7247 = vmatmul.msk.f32.vlgmr.msra.gmra.mxu0 %vm852_vm7, %v4202_v53 }
0x1270   :  { %7250 = vmatmul.msk.f32.vlgmr.msra.gmra.mxu3 %vm852_vm7, %v4205_v45 }
0x1276   :  { %7251 = vmatmul.msk.f32.vlgmr.msrb.gmra.mxu0 %vm852_vm7, %v517_v20 }
0x12b9   :  { %v4252_v26 = vpop.f32.mrf.mxu3 }
0x12ba   :  { %v9674_v19 = vadd.f32 %v7576_v11, %v4252_v26 }
0x12bc   :  { %4399 = vrot.lane.b32.xlu2 %v9674_v19, %s8528_s23 }
0x12c0   :  { %v4229_v13 = vpop.f32.mrf.mxu2 }
0x12c1   :  { %v9678_v25 = vadd.f32 %v7576_v11, %v4229_v13 }
0x12c3   :  { %4371 = vrot.lane.b32.xlu1 %v9678_v25, %s8528_s23  ;;  %v9700_v58 = vpack.i.bf16 %v9674_v19, %v9678_v25 }
0x12e4   :  { %v4321_v6 = vpop.f32.mrf.mxu2 }
0x12e5   :  { %v9690_v57 = vadd.f32 %v7576_v11, %v4321_v6 }
0x12ea   :  { %v4298_v61 = vpop.f32.mrf.mxu1 }
0x12eb   :  { %v4275_v44 = vpop.f32.mrf.mxu0  ;;  %v9682_v62 = vadd.f32 %v7576_v11, %v4298_v61 }
0x12ec   :  { %v9684_v16 = vadd.f32 %v7576_v11, %v4275_v44 }
0x12ed   :  { %4449 = vrot.lane.b32.xlu1 %v9682_v62, %s8528_s23  ;;  %v7505_v0 = vpack.i.bf16 %v9690_v57, %v9682_v62 }
0x12ee   :  { %4424 = vrot.lane.b32.xlu0 %v9684_v16, %s8528_s23 }
0x12f3   :  { %v4344_v21 = vpop.f32.mrf.mxu3  ;;  %v4367_v32 = vpop.f32.mrf.mxu0 }
0x12f4   :  { %v9692_v22 = vadd.f32 %v7576_v11, %v4344_v21  ;;  %v9707_v15 = vadd.f32 %v7576_v11, %v4367_v32 }
0x12f6   :  { %4474 = vrot.lane.b32.xlu0 %v9690_v57, %s8528_s23  ;;  %4499 = vrot.lane.b32.xlu2 %v9692_v22, %s8528_s23  ;;  %v7510_v52 = vpack.i.bf16 %v9692_v22, %v9684_v16 }
0x12fe   :  { %7501 = vrot.lane.b32.xlu0 %v9700_v58, %s8529_s14  ;;  %7506 = vrot.lane.b32.xlu2 %v7505_v0, %s8529_s14 }
0x1316   :  { %v4400_v23 = vpop.permute.xlu2 %4399 }
0x1317   :  { %7254 = vmatpush.xpose.msk.msrb.mxu2 %vm1451_vm1, %v4400_v23 }
0x131a   :  { %7255 = vmatmul.msk.f32.vlgmr.msrb.gmra.mxu2 %vm1451_vm1, %v9707_v15 }
0x1335   :  { %v4372_v28 = vpop.permute.xlu1 %4371 }
0x1336   :  { %7252 = vmatpush.xpose.msk.msrb.mxu1 %vm1451_vm1, %v4372_v28 }
0x1339   :  { %7253 = vmatmul.msk.f32.vlgmr.msrb.gmra.mxu1 %vm1451_vm1, %v9707_v15 }
0x1350   :  { %v4500_v4 = vpop.permute.xlu2 %4499 }
0x1351   :  { %7262 = vmatpush.xpose.msk.msra.mxu2 %vm1451_vm1, %v4500_v4 }
0x1354   :  { %7263 = vmatmul.msk.f32.vlgmr.msra.gmra.mxu2 %vm1451_vm1, %v9707_v15 }
0x1358   :  { %v7507_v48 = vpop.permute.xlu2 %7506 }
0x1359   :  { %v7508_v63 = vunpack.i.l.bf16 %v7507_v48  ;;  %v7509_v1 = vunpack.i.h.bf16 %v7507_v48 }
0x135b   :  { %4695 = vmatpush.msrb.mxu2 %v7508_v63 }
0x135f   :  { %v4450_v29 = vpop.permute.xlu1 %4449 }
0x1360   :  { %v4425_v10 = vpop.permute.xlu0 %4424  ;;  %7258 = vmatpush.xpose.msk.msra.mxu0 %vm1451_vm1, %v4450_v29 }
0x1361   :  { %7256 = vmatpush.xpose.msk.msrb.mxu3 %vm1451_vm1, %v4425_v10 }
0x1363   :  { %7259 = vmatmul.msk.f32.vlgmr.msra.gmra.mxu0 %vm1451_vm1, %v9707_v15 }
0x1364   :  { %7257 = vmatmul.msk.f32.vlgmr.msrb.gmra.mxu3 %vm1451_vm1, %v9707_v15 }
0x1368   :  { %v4475_v17 = vpop.permute.xlu0 %4474 }
0x1369   :  { %7260 = vmatpush.xpose.msk.msra.mxu1 %vm1451_vm1, %v4475_v17 }
0x136c   :  { %7261 = vmatmul.msk.f32.vlgmr.msra.gmra.mxu1 %vm1451_vm1, %v9707_v15 }
0x1370   :  { %v7502_v8 = vpop.permute.xlu0 %7501 }
0x1371   :  { %v7504_v24 = vunpack.i.h.bf16 %v7502_v8  ;;  %v7503_v2 = vunpack.i.l.bf16 %v7502_v8 }
0x1373   :  { %4617 = vmatpush.msra.mxu3 %v7503_v2  ;;  %4643 = vmatpush.msrb.mxu0 %v7504_v24 }
0x1375   :  { %4721 = vmatpush.msrb.mxu3 %v7509_v1 }
0x139d   :  { %v4420_v18 = vpop.f32.mrf.mxu2 }
0x139e   :  { %v4524_v35 = vmul.f32 0.35355338, %v4420_v18 }
0x13a0   :  { %v4533_v59 = vsel %vm4529_vm13, %v4524_v35, -inf }
0x13a1   :  { %4534 = vmax.xlane.f32.xlu0 %v4533_v59 }
0x13b6   :  { %v4395_v31 = vpop.f32.mrf.mxu1 }
0x13b7   :  { %v4523_v36 = vmul.f32 0.35355338, %v4395_v31 }
0x13b9   :  { %v4530_v33 = vsel %vm4529_vm13, %v4523_v36, -inf }
0x13ba   :  { %4531 = vmax.xlane.f32.xlu1 %v4530_v33 }
0x13d7   :  { %v4520_v49 = vpop.f32.mrf.mxu2 }
0x13d8   :  { %v4528_v55 = vmul.f32 0.35355338, %v4520_v49 }
0x13da   :  { %v4545_v46 = vsel %vm4529_vm13, %v4528_v55, -inf }
0x13e0   :  { %v4470_v47 = vpop.f32.mrf.mxu0 }
0x13e1   :  { %v4526_v42 = vmul.f32 0.35355338, %v4470_v47 }
0x13e3   :  { %v4539_v54 = vsel %vm4529_vm13, %v4526_v42, -inf }
0x13e4   :  { %4540 = vmax.xlane.f32.xlu2 %v4539_v54 }
0x13e7   :  { %v4445_v34 = vpop.f32.mrf.mxu3 }
0x13e8   :  { %v4525_v43 = vmul.f32 0.35355338, %v4445_v34 }
0x13e9   :  { %v4495_v27 = vpop.f32.mrf.mxu1 }
0x13ea   :  { %v4527_v5 = vmul.f32 0.35355338, %v4495_v27  ;;  %v4536_v30 = vsel %vm4529_vm13, %v4525_v43, -inf }
0x13eb   :  { %4537 = vmax.xlane.f32.xlu0 %v4536_v30 }
0x13ec   :  { %v4542_v9 = vsel %vm4529_vm13, %v4527_v5, -inf  ;;  %4546 = vmax.xlane.f32.xlu2 %v4545_v46 }
0x13ed   :  { %4543 = vmax.xlane.f32.xlu1 %v4542_v9 }
0x13ff   :  { %4780 = vrot.lane.b32.xlu0 %v9674_v19, %s8530_s30 }
0x1404   :  { %4752 = vrot.lane.b32.xlu2 %v9707_v15, %s8531_s3 }
0x1406   :  { %7511 = vrot.lane.b32.xlu1 %v7510_v52, %s8529_s14 }
0x1407   :  { %4804 = vrot.lane.b32.xlu0 %v9684_v16, %s8530_s30 }
0x140f   :  { %4754 = vrot.lane.b32.xlu0 %v9678_v25, %s8530_s30 }
0x1414   :  { %v4535_v56 = vpop.xlane.xlu0 %4534 }
0x1415   :  { %v4549_v50 = vsub.f32 %v4524_v35, %v4535_v56 }
0x1417   :  { %v4556_v14 = vmul.f32 1.442695, %v4549_v50 }
0x1419   :  { %7743 = vpow2.f32 %v4556_v14 }
0x141f   :  { %v7744_v39 = vpop.eup %7743 }
0x1420   :  { %v4569_v37 = vsel %vm4529_vm13, %v7744_v39, 0.0 }
0x142d   :  { %v4532_v40 = vpop.xlane.xlu1 %4531 }
0x142e   :  { %v4548_v51 = vsub.f32 %v4523_v36, %v4532_v40 }
0x1430   :  { %v4554_v12 = vmul.f32 1.442695, %v4548_v51 }
0x1432   :  { %7745 = vpow2.f32 %v4554_v12 }
0x1438   :  { %v7746_v7 = vpop.eup %7745 }
0x1439   :  { %4570 = vadd.xlane.f32.xlu0 %v4569_v37  ;;  %v4566_v60 = vsel %vm4529_vm13, %v7746_v7, 0.0 }
0x143a   :  { %4567 = vadd.xlane.f32.xlu1 %v4566_v60 }
0x144d   :  { %4852 = vrot.lane.b32.xlu0 %v9690_v57, %s8530_s30 }
0x1457   :  { %v4541_v38 = vpop.xlane.xlu2 %4540 }
0x1458   :  { %v4551_v53 = vsub.f32 %v4526_v42, %v4541_v38 }
0x145a   :  { %v4560_v3 = vmul.f32 1.442695, %v4551_v53 }
0x145c   :  { %7747 = vpow2.f32 %v4560_v3 }
0x145e   :  { %v4538_v45 = vpop.xlane.xlu0 %4537 }
0x145f   :  { %v4550_v20 = vsub.f32 %v4525_v43, %v4538_v45  ;;  %v4547_v11 = vpop.xlane.xlu2 %4546 }
0x1460   :  { %v4544_v26 = vpop.xlane.xlu1 %4543  ;;  %v4553_v6 = vsub.f32 %v4528_v55, %v4547_v11 }
0x1461   :  { %v4558_v13 = vmul.f32 1.442695, %v4550_v20  ;;  %v4552_v61 = vsub.f32 %v4527_v5, %v4544_v26 }
0x1462   :  { %v7748_v44 = vpop.eup %7747  ;;  %v4564_v32 = vmul.f32 1.442695, %v4553_v6 }
0x1463   :  { %7749 = vpow2.f32 %v4558_v13  ;;  %v4562_v21 = vmul.f32 1.442695, %v4552_v61  ;;  %v4575_v0 = vsel %vm4529_vm13, %v7748_v44, 0.0 }
0x1464   :  { %4576 = vadd.xlane.f32.xlu2 %v4575_v0 }
0x1465   :  { %7751 = vpow2.f32 %v4562_v21 }
0x1466   :  { %7753 = vpow2.f32 %v4564_v32 }
0x1467   :  { %v4753_v47 = vpop.permute.xlu2 %4752 }
0x1469   :  { %v7750_v23 = vpop.eup %7749 }
0x146a   :  { %v4572_v4 = vsel %vm4529_vm13, %v7750_v23, 0.0 }
0x146b   :  { %v7752_v28 = vpop.eup %7751 }
0x146c   :  { %4573 = vadd.xlane.f32.xlu2 %v4572_v4  ;;  %v4578_v48 = vsel %vm4529_vm13, %v7752_v28, 0.0  ;;  %v7754_v63 = vpop.eup %7753 }
0x146d   :  { %4579 = vadd.xlane.f32.xlu1 %v4578_v48  ;;  %v4581_v10 = vsel %vm4529_vm13, %v7754_v63, 0.0 }
0x1471   :  { %v4781_v29 = vpop.permute.xlu0 %4780 }
0x1472   :  { %7272 = vmatpush.xpose.msk.msra.mxu2 %vm1451_vm1, %v4781_v29 }
0x1475   :  { %4582 = vadd.xlane.f32.xlu1 %v4581_v10 }
0x1478   :  { %v7512_v17 = vpop.permute.xlu1 %7511 }
0x1479   :  { %v7514_v8 = vunpack.i.h.bf16 %v7512_v17  ;;  %v7513_v24 = vunpack.i.l.bf16 %v7512_v17  ;;  %v4805_v2 = vpop.permute.xlu0 %4804 }
0x147b   :  { %4669 = vmatpush.msrb.mxu1 %v7513_v24  ;;  %4747 = vmatpush.msra.mxu0 %v7514_v8 }
0x1481   :  { %v4755_v1 = vpop.permute.xlu0 %4754 }
0x1482   :  { %7270 = vmatpush.xpose.msk.msra.mxu1 %vm1451_vm1, %v4755_v1 }
0x1484   :  { %4876 = vrot.lane.b32.xlu2 %v9692_v22, %s8530_s30 }
0x148e   :  { %4828 = vrot.lane.b32.xlu1 %v9682_v62, %s8530_s30 }
0x14ac   :  { %v4571_v18 = vpop.xlane.xlu0 %4570 }
0x14ad   :  { %7755 = vrcp.f32 %v4571_v18  ;;  %v4568_v35 = vpop.xlane.xlu1 %4567 }
0x14ae   :  { %7757 = vrcp.f32 %v4568_v35 }
0x14b3   :  { %v7756_v59 = vpop.eup %7755 }
0x14b4   :  { %v4591_v31 = vmul.f32 %v7756_v59, %v7744_v39  ;;  %v7758_v36 = vpop.eup %7757 }
0x14b5   :  { %v4590_v33 = vmul.f32 %v7758_v36, %v7746_v7 }
0x14b6   :  { %7265 = vmatmul.msk.f32.vlgmr.msrb.gmra.mxu0 %vm1451_vm1, %v4591_v31 }
0x14b7   :  { %7264 = vmatmul.msk.f32.vlgmr.msra.gmra.mxu3 %vm1451_vm1, %v4590_v33 }
0x14b8   :  { %7274 = vmatpush.xpose.msk.msra.mxu3 %vm1451_vm1, %v4805_v2 }
0x14bf   :  { %v4853_v52 = vpop.permute.xlu0 %4852 }
0x14d7   :  { %v4577_v42 = vpop.xlane.xlu2 %4576 }
0x14d8   :  { %7759 = vrcp.f32 %v4577_v42 }
0x14de   :  { %v7760_v54 = vpop.eup %7759 }
0x14df   :  { %v4593_v49 = vmul.f32 %v7760_v54, %v7748_v44  ;;  %v4574_v34 = vpop.xlane.xlu2 %4573 }
0x14e0   :  { %7761 = vrcp.f32 %v4574_v34  ;;  %v4580_v55 = vpop.xlane.xlu1 %4579 }
0x14e1   :  { %7763 = vrcp.f32 %v4580_v55  ;;  %7267 = vmatmul.msk.f32.vlgmr.msrb.gmra.mxu2 %vm1451_vm1, %v4593_v49 }
0x14e6   :  { %v7762_v43 = vpop.eup %7761 }
0x14e7   :  { %v7764_v27 = vpop.eup %7763  ;;  %v4592_v5 = vmul.f32 %v7762_v43, %v7750_v23  ;;  %v4877_v30 = vpop.permute.xlu2 %4876 }
0x14e8   :  { %v4594_v46 = vmul.f32 %v7764_v27, %v7752_v28  ;;  %v4583_v9 = vpop.xlane.xlu1 %4582  ;;  %7280 = vmatpush.xpose.msk.msrb.mxu2 %vm1451_vm1, %v4877_v30 }
0x14e9   :  { %7765 = vrcp.f32 %v4583_v9  ;;  %7266 = vmatmul.msk.f32.vlgmr.msrb.gmra.mxu1 %vm1451_vm1, %v4592_v5  ;;  %7273 = vmatmul.msk.f32.vlgmr.msra.gmra.mxu2 %vm1451_vm1, %v4753_v47 }
0x14ea   :  { %7268 = vmatmul.msk.f32.vlgmr.msrb.gmra.mxu3 %vm1451_vm1, %v4594_v46  ;;  %7278 = vmatpush.xpose.msk.msrb.mxu1 %vm1451_vm1, %v4853_v52 }
0x14ef   :  { %v7766_v56 = vpop.eup %7765 }
0x14f0   :  { %v4595_v50 = vmul.f32 %v7766_v56, %v7754_v63 }
0x14f1   :  { %7271 = vmatmul.msk.f32.vlgmr.msra.gmra.mxu1 %vm1451_vm1, %v4753_v47  ;;  %7281 = vmatmul.msk.f32.vlgmr.msrb.gmra.mxu2 %vm1451_vm1, %v4753_v47 }
0x14f2   :  { %7269 = vmatmul.msk.f32.vlgmr.msra.gmra.mxu0 %vm1451_vm1, %v4595_v50  ;;  %7275 = vmatmul.msk.f32.vlgmr.msra.gmra.mxu3 %vm1451_vm1, %v4753_v47 }
0x14f9   :  { %7279 = vmatmul.msk.f32.vlgmr.msrb.gmra.mxu1 %vm1451_vm1, %v4753_v47 }
0x1500   :  { %v4829_v14 = vpop.permute.xlu1 %4828 }
0x1501   :  { %7276 = vmatpush.xpose.msk.msrb.mxu0 %vm1451_vm1, %v4829_v14  ;;  %v9809_v14 = vpack.i.bf16 %v9682_v62, %v9684_v16 }
0x1504   :  { %7277 = vmatmul.msk.f32.vlgmr.msrb.gmra.mxu0 %vm1451_vm1, %v4753_v47 }
0x1533   :  { %v9783_v3 = vpop.f32.mrf.mxu0 }
0x153a   :  { %v9776_v51 = vpop.f32.mrf.mxu3 }
0x1564   :  { %v9774_v40 = vpop.f32.mrf.mxu2 }
0x1566   :  { %v9778_v12 = vpop.f32.mrf.mxu1 }
0x156c   :  { %v4801_v39 = vpop.f32.mrf.mxu2 }
0x156d   :  { %v9780_v37 = vpop.f32.mrf.mxu3  ;;  %v4901_v7 = vmul.f32 0.35355338, %v4801_v39  ;;  %v9815_v39 = vpack.i.bf16 %v9692_v22, %v9690_v57 }
0x156e   :  { %v4777_v60 = vpop.f32.mrf.mxu1 }
0x156f   :  { %v4900_v38 = vmul.f32 0.35355338, %v4777_v60  ;;  %v4909_v53 = vsel %vm4529_vm13, %v4901_v7, -inf  ;;  %v9787_v44 = vpop.f32.mrf.mxu0 }
0x1570   :  { %4910 = vmax.xlane.f32.xlu2 %v4909_v53 }
0x1571   :  { %v4906_v45 = vsel %vm4529_vm13, %v4900_v38, -inf }
0x1572   :  { %4907 = vmax.xlane.f32.xlu1 %v4906_v45 }
0x1574   :  { %v4897_v6 = vpop.f32.mrf.mxu2 }
0x1575   :  { %v4825_v20 = vpop.f32.mrf.mxu3  ;;  %v4905_v0 = vmul.f32 0.35355338, %v4897_v6 }
0x1576   :  { %v4902_v11 = vmul.f32 0.35355338, %v4825_v20  ;;  %v4873_v26 = vpop.f32.mrf.mxu1 }
0x1577   :  { %v4904_v13 = vmul.f32 0.35355338, %v4873_v26  ;;  %v4921_v32 = vsel %vm4529_vm13, %v4905_v0, -inf }
0x1578   :  { %v4912_v61 = vsel %vm4529_vm13, %v4902_v11, -inf }
0x1579   :  { %4913 = vmax.xlane.f32.xlu0 %v4912_v61  ;;  %v4918_v21 = vsel %vm4529_vm13, %v4904_v13, -inf }
0x157a   :  { %4919 = vmax.xlane.f32.xlu2 %v4918_v21 }
0x1581   :  { %4922 = vmax.xlane.f32.xlu0 %v4921_v32  ;;  %v4849_v23 = vpop.f32.mrf.mxu0 }
0x1582   :  { %v4903_v28 = vmul.f32 0.35355338, %v4849_v23 }
0x1584   :  { %v4915_v4 = vsel %vm4529_vm13, %v4903_v28, -inf }
0x1585   :  { %4916 = vmax.xlane.f32.xlu1 %v4915_v4 }
0x15e3   :  { %v4911_v48 = vpop.xlane.xlu2 %4910 }
0x15e4   :  { %v4925_v63 = vsub.f32 %v4901_v7, %v4911_v48 }
0x15e5   :  { %v4908_v29 = vpop.xlane.xlu1 %4907 }
0x15e6   :  { %v4932_v10 = vmul.f32 1.442695, %v4925_v63  ;;  %v4924_v17 = vsub.f32 %v4900_v38, %v4908_v29 }
0x15e8   :  { %7767 = vpow2.f32 %v4932_v10  ;;  %v4930_v8 = vmul.f32 1.442695, %v4924_v17 }
0x15ea   :  { %7769 = vpow2.f32 %v4930_v8 }
0x15ec   :  { %v4914_v24 = vpop.xlane.xlu0 %4913 }
0x15ed   :  { %v4926_v2 = vsub.f32 %v4902_v11, %v4914_v24  ;;  %v4920_v1 = vpop.xlane.xlu2 %4919 }
0x15ee   :  { %v9792_v18 = vpop.eup %7767  ;;  %v4928_v35 = vsub.f32 %v4904_v13, %v4920_v1 }
0x15ef   :  { %v4934_v59 = vmul.f32 1.442695, %v4926_v2  ;;  %v4945_v31 = vsel %vm4529_vm13, %v9792_v18, 0.0 }
0x15f0   :  { %v9796_v36 = vpop.eup %7769  ;;  %v4938_v33 = vmul.f32 1.442695, %v4928_v35  ;;  %4946 = vadd.xlane.f32.xlu2 %v4945_v31 }
0x15f1   :  { %7771 = vpow2.f32 %v4934_v59  ;;  %v4942_v47 = vsel %vm4529_vm13, %v9796_v36, 0.0  ;;  %v503_v59 = vld [vmem:[#allocation15] sm:$0xff] }
0x15f2   :  { %7773 = vpow2.f32 %v4938_v33  ;;  %4943 = vadd.xlane.f32.xlu1 %v4942_v47 }
0x15f4   :  { %v4923_v42 = vpop.xlane.xlu0 %4922 }
0x15f5   :  { %v4929_v54 = vsub.f32 %v4905_v0, %v4923_v42 }
0x15f7   :  { %v7772_v49 = vpop.eup %7771  ;;  %v4940_v34 = vmul.f32 1.442695, %v4929_v54 }
0x15f8   :  { %v9800_v55 = vpop.eup %7773  ;;  %v4917_v43 = vpop.xlane.xlu1 %4916  ;;  %v4948_v27 = vsel %vm4529_vm13, %v7772_v49, 0.0 }
0x15f9   :  { %7775 = vpow2.f32 %v4940_v34  ;;  %v4927_v5 = vsub.f32 %v4903_v28, %v4917_v43  ;;  %4949 = vadd.xlane.f32.xlu0 %v4948_v27  ;;  %v4954_v30 = vsel %vm4529_vm13, %v9800_v55, 0.0 }
0x15fa   :  { %4955 = vadd.xlane.f32.xlu2 %v4954_v30 }
0x15fb   :  { %v4936_v46 = vmul.f32 1.442695, %v4927_v5 }
0x15fd   :  { %7777 = vpow2.f32 %v4936_v46 }
0x15ff   :  { %v7776_v9 = vpop.eup %7775 }
0x1600   :  { %v4957_v52 = vsel %vm4529_vm13, %v7776_v9, 0.0 }
0x1601   :  { %4958 = vadd.xlane.f32.xlu0 %v4957_v52 }
0x1603   :  { %v7778_v56 = vpop.eup %7777 }
0x1604   :  { %v4951_v50 = vsel %vm4529_vm13, %v7778_v56, 0.0 }
0x1605   :  { %4952 = vadd.xlane.f32.xlu1 %v4951_v50 }
0x1612   :  { %7521 = vrot.lane.b32.xlu2 %v9809_v14, %s8532_s18 }
0x1615   :  { %7526 = vrot.lane.b32.xlu0 %v9815_v39, %s8532_s18 }
0x161a   :  { %5404 = vrot.lane.b32.xlu2 %v9707_v15, %s8534_s1 }
0x161d   :  { %5432 = vrot.lane.b32.xlu0 %v9674_v19, %s8533_s5 }
0x161e   :  { %7516 = vrot.lane.b32.xlu1 %v9700_v58, %s8532_s18 }
0x1622   :  { %5528 = vrot.lane.b32.xlu2 %v9692_v22, %s8533_s5 }
0x1625   :  { %5406 = vrot.lane.b32.xlu0 %v9678_v25, %s8533_s5 }
0x1626   :  { %5456 = vrot.lane.b32.xlu1 %v9684_v16, %s8533_s5 }
0x162d   :  { %5504 = vrot.lane.b32.xlu0 %v9690_v57, %s8533_s5 }
0x162e   :  { %5480 = vrot.lane.b32.xlu1 %v9682_v62, %s8533_s5 }
0x1663   :  { %v4947_v7 = vpop.xlane.xlu2 %4946 }
0x1665   :  { %v4944_v53 = vpop.xlane.xlu1 %4943 }
0x166c   :  { %v4950_v60 = vpop.xlane.xlu0 %4949 }
0x166d   :  { %v4956_v38 = vpop.xlane.xlu2 %4955  ;;  %7779 = vrcp.f32 %v4950_v60 }
0x1673   :  { %v7780_v45 = vpop.eup %7779 }
0x1674   :  { %v4968_v13 = vmul.f32 %v7780_v45, %v7772_v49  ;;  %v4959_v0 = vpop.xlane.xlu0 %4958 }
0x1675   :  { %v7522_v20 = vpop.permute.xlu2 %7521 }
0x1676   :  { %v7524_v11 = vunpack.i.h.bf16 %v7522_v20  ;;  %v7523_v26 = vunpack.i.l.bf16 %v7522_v20 }
0x1678   :  { %v4953_v61 = vpop.xlane.xlu1 %4952  ;;  %5045 = vmatpush.msra.mxu1 %v7523_v26  ;;  %5071 = vmatpush.msra.mxu2 %v7524_v11 }
0x1679   :  { %7781 = vrcp.f32 %v4953_v61  ;;  %7284 = vmatmul.msk.f32.vlgmr.msra.gmra.mxu1 %vm1451_vm1, %v4968_v13 }
0x167a   :  { %7783 = vrcp.f32 %v4947_v7 }
0x167b   :  { %7785 = vrcp.f32 %v4944_v53 }
0x167c   :  { %7787 = vrcp.f32 %v4956_v38 }
0x167d   :  { %7789 = vrcp.f32 %v4959_v0  ;;  %v5405_v47 = vpop.permute.xlu2 %5404 }
0x167f   :  { %v7782_v6 = vpop.eup %7781 }
0x1680   :  { %v4969_v21 = vmul.f32 %v7782_v6, %v7778_v56  ;;  %v7784_v32 = vpop.eup %7783 }
0x1681   :  { %v7786_v23 = vpop.eup %7785  ;;  %v4967_v29 = vmul.f32 %v7784_v32, %v9792_v18  ;;  %v504_v18 = vld [vmem:[#allocation15 + $0x8] sm:$0xff] }
0x1682   :  { %7285 = vmatmul.msk.f32.vlgmr.msra.gmra.mxu2 %vm1451_vm1, %v4969_v21  ;;  %v4966_v10 = vmul.f32 %v7786_v23, %v9796_v36  ;;  %v7788_v24 = vpop.eup %7787  ;;  %5146 = vmatpush.msrb.mxu1 %v504_v18 }
0x1683   :  { %v7790_v2 = vpop.eup %7789  ;;  %v4970_v1 = vmul.f32 %v7788_v24, %v9800_v55  ;;  %5169 = vmatpush.msrb.mxu2 %v504_v18 }
0x1684   :  { %v4971_v35 = vmul.f32 %v7790_v2, %v7776_v9  ;;  %5238 = vmatpush.msra.mxu1 %v504_v18 }
0x1685   :  { %5261 = vmatpush.msra.mxu2 %v504_v18  ;;  %v5529_v55 = vpop.permute.xlu2 %5528 }
0x1687   :  { %v7527_v28 = vpop.permute.xlu0 %7526 }
0x1688   :  { %v7529_v17 = vunpack.i.h.bf16 %v7527_v28  ;;  %v7528_v8 = vunpack.i.l.bf16 %v7527_v28 }
0x1690   :  { %v7517_v4 = vpop.permute.xlu1 %7516 }
0x1691   :  { %v7519_v48 = vunpack.i.h.bf16 %v7517_v4  ;;  %v7518_v63 = vunpack.i.l.bf16 %v7517_v4 }
0x1693   :  { %4993 = vmatpush.msrb.mxu3 %v7518_v63  ;;  %5019 = vmatpush.msra.mxu0 %v7519_v48 }
0x1694   :  { %7282 = vmatmul.msk.f32.vlgmr.msrb.gmra.mxu3 %vm1451_vm1, %v4966_v10  ;;  %7283 = vmatmul.msk.f32.vlgmr.msra.gmra.mxu0 %vm1451_vm1, %v4967_v29 }
0x1695   :  { %5097 = vmatpush.msra.mxu3 %v7528_v8  ;;  %5123 = vmatpush.msrb.mxu0 %v7529_v17 }
0x1697   :  { %5192 = vmatpush.msrb.mxu3 %v504_v18  ;;  %5215 = vmatpush.msra.mxu0 %v504_v18 }
0x1698   :  { %v5457_v36 = vpop.permute.xlu1 %5456 }
0x169c   :  { %7286 = vmatmul.msk.f32.vlgmr.msra.gmra.mxu3 %vm1451_vm1, %v4970_v1  ;;  %7287 = vmatmul.msk.f32.vlgmr.msrb.gmra.mxu0 %vm1451_vm1, %v4971_v35 }
0x169d   :  { %5284 = vmatpush.msra.mxu3 %v503_v59  ;;  %5307 = vmatpush.msrb.mxu0 %v503_v59 }
0x16a0   :  { %v5481_v42 = vpop.permute.xlu1 %5480 }
0x16f6   :  { %v5047_v31 = vpop.f32.mrf.mxu1 }
0x16f7   :  { %7290 = vmatmul.msk.f32.vlgmr.msrb.gmra.mxu3 %vm1451_vm1, %v5047_v31 }
0x16f8   :  { %5376 = vmatpush.msrb.mxu3 %v503_v59 }
0x16ff   :  { %7294 = vmatmul.msk.f32.vlgmr.msra.gmra.mxu3 %vm1451_vm1, %v9776_v51  ;;  %v5433_v51 = vpop.permute.xlu0 %5432 }
0x1700   :  { %7304 = vmatpush.xpose.msk.msra.mxu3 %vm1451_vm1, %v5457_v36 }
0x1705   :  { %v5073_v33 = vpop.f32.mrf.mxu2 }
0x1706   :  { %7291 = vmatmul.msk.f32.vlgmr.msra.gmra.mxu0 %vm1451_vm1, %v5073_v33 }
0x1707   :  { %7298 = vmatmul.msk.f32.vlgmr.msrb.gmra.mxu3 %vm1451_vm1, %v9780_v37  ;;  %5399 = vmatpush.msra.mxu0 %v503_v59 }
0x170e   :  { %7295 = vmatmul.msk.f32.vlgmr.msrb.gmra.mxu0 %vm1451_vm1, %v9783_v3  ;;  %v5407_v3 = vpop.permute.xlu0 %5406 }
0x170f   :  { %7306 = vmatpush.xpose.msk.msrb.mxu0 %vm1451_vm1, %v5481_v42  ;;  %7305 = vmatmul.msk.f32.vlgmr.msra.gmra.mxu3 %vm1451_vm1, %v5405_v47 }
0x1711   :  { %v5021_v54 = vpop.f32.mrf.mxu0 }
0x1712   :  { %7289 = vmatmul.msk.f32.vlgmr.msrb.gmra.mxu2 %vm1451_vm1, %v5021_v54 }
0x1713   :  { %5353 = vmatpush.msrb.mxu2 %v503_v59 }
0x1716   :  { %7299 = vmatmul.msk.f32.vlgmr.msra.gmra.mxu0 %vm1451_vm1, %v9787_v44  ;;  %v5505_v44 = vpop.permute.xlu0 %5504 }
0x1717   :  { %v4995_v49 = vpop.f32.mrf.mxu3 }
0x1718   :  { %7288 = vmatmul.msk.f32.vlgmr.msrb.gmra.mxu1 %vm1451_vm1, %v4995_v49 }
0x1719   :  { %v5125_v37 = vpop.f32.mrf.mxu0  ;;  %5330 = vmatpush.msrb.mxu1 %v503_v59 }
0x171a   :  { %7293 = vmatmul.msk.f32.vlgmr.msra.gmra.mxu2 %vm1451_vm1, %v5125_v37 }
0x171b   :  { %7302 = vmatpush.xpose.msk.msra.mxu2 %vm1451_vm1, %v5433_v51 }
0x171e   :  { %7307 = vmatmul.msk.f32.vlgmr.msrb.gmra.mxu0 %vm1451_vm1, %v5405_v47 }
0x171f   :  { %v5099_v34 = vpop.f32.mrf.mxu3 }
0x1720   :  { %7292 = vmatmul.msk.f32.vlgmr.msra.gmra.mxu1 %vm1451_vm1, %v5099_v34 }
0x1721   :  { %7300 = vmatpush.xpose.msk.msra.mxu1 %vm1451_vm1, %v5407_v3 }
0x1722   :  { %7297 = vmatmul.msk.f32.vlgmr.msrb.gmra.mxu2 %vm1451_vm1, %v9774_v40 }
0x1723   :  { %7310 = vmatpush.xpose.msk.msrb.mxu2 %vm1451_vm1, %v5529_v55 }
0x1728   :  { %7296 = vmatmul.msk.f32.vlgmr.msrb.gmra.mxu1 %vm1451_vm1, %v9778_v12 }
0x1729   :  { %7308 = vmatpush.xpose.msk.msrb.mxu1 %vm1451_vm1, %v5505_v44 }
0x172a   :  { %7303 = vmatmul.msk.f32.vlgmr.msra.gmra.mxu2 %vm1451_vm1, %v5405_v47 }
0x1730   :  { %7301 = vmatmul.msk.f32.vlgmr.msra.gmra.mxu1 %vm1451_vm1, %v5405_v47 }
0x1732   :  { %7311 = vmatmul.msk.f32.vlgmr.msrb.gmra.mxu2 %vm1451_vm1, %v5405_v47 }
0x1738   :  { %7309 = vmatmul.msk.f32.vlgmr.msrb.gmra.mxu1 %vm1451_vm1, %v5405_v47 }
0x177a   :  { %v5194_v43 = vpop.f32.mrf.mxu3 }
0x1782   :  { %v5286_v27 = vpop.f32.mrf.mxu3 }
0x1783   :  { %v5217_v5 = vpop.f32.mrf.mxu0 }
0x178a   :  { %v5378_v40 = vpop.f32.mrf.mxu3 }
0x178b   :  { %v5309_v30 = vpop.f32.mrf.mxu0 }
0x1792   :  { %v5477_v46 = vpop.f32.mrf.mxu3 }
0x1793   :  { %v5554_v9 = vmul.f32 0.35355338, %v5477_v46  ;;  %v5401_v60 = vpop.f32.mrf.mxu0 }
0x1795   :  { %v5148_v52 = vpop.f32.mrf.mxu1  ;;  %v5171_v56 = vpop.f32.mrf.mxu2  ;;  %v5564_v12 = vsel %vm4529_vm13, %v5554_v9, -inf }
0x1796   :  { %v9875_v50 = vadd.f32 %v5286_v27, %v5148_v52  ;;  %v9877_v7 = vadd.f32 %v5309_v30, %v5171_v56  ;;  %5565 = vmax.xlane.f32.xlu0 %v5564_v12 }
0x179b   :  { %v5501_v4 = vpop.f32.mrf.mxu0 }
0x179c   :  { %v5555_v48 = vmul.f32 0.35355338, %v5501_v4 }
0x179d   :  { %v5240_v38 = vpop.f32.mrf.mxu1  ;;  %v5263_v53 = vpop.f32.mrf.mxu2 }
0x179e   :  { %v9879_v45 = vadd.f32 %v5378_v40, %v5240_v38  ;;  %v9881_v20 = vadd.f32 %v5401_v60, %v5263_v53  ;;  %v5567_v24 = vsel %vm4529_vm13, %v5555_v48, -inf }
0x17a5   :  { %v5332_v11 = vpop.f32.mrf.mxu1  ;;  %v5355_v26 = vpop.f32.mrf.mxu2 }
0x17a6   :  { %v9883_v13 = vadd.f32 %v5332_v11, %v5194_v43  ;;  %v9885_v61 = vadd.f32 %v5355_v26, %v5217_v5 }
0x17ad   :  { %v5429_v6 = vpop.f32.mrf.mxu1  ;;  %v5453_v21 = vpop.f32.mrf.mxu2 }
0x17ae   :  { %v5552_v0 = vmul.f32 0.35355338, %v5429_v6  ;;  %v5553_v32 = vmul.f32 0.35355338, %v5453_v21 }
0x17b0   :  { %v5561_v23 = vsel %vm4529_vm13, %v5553_v32, -inf  ;;  %v5558_v28 = vsel %vm4529_vm13, %v5552_v0, -inf }
0x17b1   :  { %5562 = vmax.xlane.f32.xlu2 %v5561_v23  ;;  %5559 = vmax.xlane.f32.xlu1 %v5558_v28 }
0x17b5   :  { %v5525_v63 = vpop.f32.mrf.mxu1  ;;  %v5549_v29 = vpop.f32.mrf.mxu2 }
0x17b6   :  { %v5556_v10 = vmul.f32 0.35355338, %v5525_v63  ;;  %v5557_v17 = vmul.f32 0.35355338, %v5549_v29 }
0x17b8   :  { %v5573_v8 = vsel %vm4529_vm13, %v5557_v17, -inf  ;;  %v5570_v2 = vsel %vm4529_vm13, %v5556_v10, -inf }
0x17b9   :  { %5574 = vmax.xlane.f32.xlu0 %v5573_v8  ;;  %5568 = vmax.xlane.f32.xlu1 %v5567_v24 }
0x17ba   :  { %5571 = vmax.xlane.f32.xlu2 %v5570_v2 }
0x1809   :  { %v5566_v1 = vpop.xlane.xlu0 %5565 }
0x180a   :  { %v5578_v35 = vsub.f32 %v5554_v9, %v5566_v1 }
0x180c   :  { %v5586_v18 = vmul.f32 1.442695, %v5578_v35 }
0x180e   :  { %7791 = vpow2.f32 %v5586_v18 }
0x1814   :  { %v7792_v59 = vpop.eup %7791 }
0x1815   :  { %v5600_v31 = vsel %vm4529_vm13, %v7792_v59, 0.0 }
0x1816   :  { %5601 = vadd.xlane.f32.xlu0 %v5600_v31 }
0x1824   :  { %v5563_v36 = vpop.xlane.xlu2 %5562  ;;  %v5560_v33 = vpop.xlane.xlu1 %5559 }
0x1825   :  { %v5577_v47 = vsub.f32 %v5553_v32, %v5563_v36  ;;  %v5576_v42 = vsub.f32 %v5552_v0, %v5560_v33 }
0x1827   :  { %v5584_v54 = vmul.f32 1.442695, %v5577_v47  ;;  %v5582_v51 = vmul.f32 1.442695, %v5576_v42 }
0x1829   :  { %7793 = vpow2.f32 %v5584_v54 }
0x182a   :  { %7795 = vpow2.f32 %v5582_v51 }
0x182c   :  { %v5575_v49 = vpop.xlane.xlu0 %5574  ;;  %v5569_v37 = vpop.xlane.xlu1 %5568 }
0x182d   :  { %v5581_v3 = vsub.f32 %v5557_v17, %v5575_v49  ;;  %v5579_v34 = vsub.f32 %v5555_v48, %v5569_v37  ;;  %v5572_v55 = vpop.xlane.xlu2 %5571 }
0x182e   :  { %v5580_v44 = vsub.f32 %v5556_v10, %v5572_v55 }
0x182f   :  { %v9893_v43 = vpop.eup %7793  ;;  %v5592_v27 = vmul.f32 1.442695, %v5581_v3  ;;  %v5588_v5 = vmul.f32 1.442695, %v5579_v34 }
0x1830   :  { %v7796_v40 = vpop.eup %7795  ;;  %v5590_v30 = vmul.f32 1.442695, %v5580_v44  ;;  %v5597_v46 = vsel %vm4529_vm13, %v9893_v43, 0.0 }
0x1831   :  { %7797 = vpow2.f32 %v5592_v27  ;;  %v5594_v9 = vsel %vm4529_vm13, %v7796_v40, 0.0  ;;  %5598 = vadd.xlane.f32.xlu2 %v5597_v46 }
0x1832   :  { %7799 = vpow2.f32 %v5588_v5  ;;  %5595 = vadd.xlane.f32.xlu1 %v5594_v9 }
0x1833   :  { %7801 = vpow2.f32 %v5590_v30 }
0x1837   :  { %v9898_v52 = vpop.eup %7797 }
0x1838   :  { %v7800_v56 = vpop.eup %7799  ;;  %v5609_v12 = vsel %vm4529_vm13, %v9898_v52, 0.0 }
0x1839   :  { %v9902_v60 = vpop.eup %7801  ;;  %5610 = vadd.xlane.f32.xlu0 %v5609_v12  ;;  %v5603_v38 = vsel %vm4529_vm13, %v7800_v56, 0.0 }
0x183a   :  { %5604 = vadd.xlane.f32.xlu1 %v5603_v38  ;;  %v5606_v53 = vsel %vm4529_vm13, %v9902_v60, 0.0 }
0x183b   :  { %5607 = vadd.xlane.f32.xlu2 %v5606_v53 }
0x184d   :  { %7541 = vrot.lane.b32.xlu0 %v9815_v39, %s8535_s24 }
0x1853   :  { %7536 = vrot.lane.b32.xlu2 %v9809_v14, %s8535_s24  ;;  %7531 = vrot.lane.b32.xlu1 %v9700_v58, %s8535_s24 }
0x1855   :  { %5952 = vrot.lane.b32.xlu0 %v9674_v19, %s8536_s7 }
0x185b   :  { %5926 = vrot.lane.b32.xlu2 %v9678_v25, %s8536_s7  ;;  %5924 = vrot.lane.b32.xlu1 %v9707_v15, %s8537_s8 }
0x185d   :  { %5976 = vrot.lane.b32.xlu0 %v9684_v16, %s8536_s7 }
0x1863   :  { %6000 = vrot.lane.b32.xlu2 %v9682_v62, %s8536_s7  ;;  %6024 = vrot.lane.b32.xlu1 %v9690_v57, %s8536_s7  ;;  %v505_v57 = vld [vmem:[#allocation15 + $0x10] sm:$0xff] }
0x186b   :  { %6048 = vrot.lane.b32.xlu2 %v9692_v22, %s8536_s7 }
0x1889   :  { %v5602_v26 = vpop.xlane.xlu0 %5601 }
0x188a   :  { %7803 = vrcp.f32 %v5602_v26 }
0x1890   :  { %v7804_v15 = vpop.eup %7803 }
0x1891   :  { %v5620_v23 = vmul.f32 %v7804_v15, %v7792_v59 }
0x18a4   :  { %v5599_v11 = vpop.xlane.xlu2 %5598 }
0x18a5   :  { %v5596_v19 = vpop.xlane.xlu1 %5595 }
0x18ac   :  { %v5611_v22 = vpop.xlane.xlu0 %5610 }
0x18ad   :  { %v5605_v6 = vpop.xlane.xlu1 %5604 }
0x18ae   :  { %v5608_v25 = vpop.xlane.xlu2 %5607  ;;  %7805 = vrcp.f32 %v5605_v6 }
0x18af   :  { %7807 = vrcp.f32 %v5599_v11 }
0x18b0   :  { %7809 = vrcp.f32 %v5596_v19 }
0x18b1   :  { %7811 = vrcp.f32 %v5611_v22 }
0x18b2   :  { %7813 = vrcp.f32 %v5608_v25 }
0x18b4   :  { %v7806_v21 = vpop.eup %7805 }
0x18b5   :  { %v5621_v62 = vmul.f32 %v7806_v21, %v7800_v56  ;;  %v7808_v28 = vpop.eup %7807 }
0x18b6   :  { %v7537_v0 = vpop.permute.xlu2 %7536  ;;  %v7810_v4 = vpop.eup %7809  ;;  %v5619_v8 = vmul.f32 %v7808_v28, %v9893_v43 }
0x18b7   :  { %v7539_v16 = vunpack.i.h.bf16 %v7537_v0  ;;  %v7538_v32 = vunpack.i.l.bf16 %v7537_v0  ;;  %v5618_v17 = vmul.f32 %v7810_v4, %v7796_v40  ;;  %v7812_v1 = vpop.eup %7811 }
0x18b8   :  { %v7814_v35 = vpop.eup %7813  ;;  %v5623_v18 = vmul.f32 %v7812_v1, %v9898_v52 }
0x18b9   :  { %5697 = vmatpush.msra.mxu1 %v7538_v32  ;;  %5723 = vmatpush.msra.mxu2 %v7539_v16  ;;  %v5622_v59 = vmul.f32 %v7814_v35, %v9902_v60 }
0x18ba   :  { %7314 = vmatmul.msk.f32.vlgmr.msra.gmra.mxu1 %vm1451_vm1, %v5620_v23  ;;  %7315 = vmatmul.msk.f32.vlgmr.msra.gmra.mxu2 %vm1451_vm1, %v5621_v62 }
0x18bb   :  { %5821 = vmatpush.msrb.mxu2 %v505_v57  ;;  %5798 = vmatpush.msrb.mxu1 %v505_v57 }
0x18bd   :  { %5913 = vmatpush.msra.mxu2 %v505_v57  ;;  %5890 = vmatpush.msra.mxu1 %v505_v57 }
0x18be   :  { %v5927_v31 = vpop.permute.xlu2 %5926 }
0x18bf   :  { %v7542_v48 = vpop.permute.xlu0 %7541 }
0x18c0   :  { %v7544_v24 = vunpack.i.h.bf16 %v7542_v48  ;;  %v7543_v2 = vunpack.i.l.bf16 %v7542_v48 }
0x18c5   :  { %v7532_v63 = vpop.permute.xlu1 %7531 }
0x18c6   :  { %v7534_v29 = vunpack.i.h.bf16 %v7532_v63  ;;  %v7533_v10 = vunpack.i.l.bf16 %v7532_v63  ;;  %v6001_v47 = vpop.permute.xlu2 %6000 }
0x18c7   :  { %v5953_v36 = vpop.permute.xlu0 %5952 }
0x18c8   :  { %5645 = vmatpush.msrb.mxu3 %v7533_v10  ;;  %5671 = vmatpush.msra.mxu0 %v7534_v29 }
0x18c9   :  { %7312 = vmatmul.msk.f32.vlgmr.msrb.gmra.mxu3 %vm1451_vm1, %v5618_v17  ;;  %7313 = vmatmul.msk.f32.vlgmr.msra.gmra.mxu0 %vm1451_vm1, %v5619_v8 }
0x18ca   :  { %5749 = vmatpush.msra.mxu3 %v7543_v2  ;;  %5775 = vmatpush.msrb.mxu0 %v7544_v24 }
0x18cc   :  { %5844 = vmatpush.msrb.mxu3 %v505_v57  ;;  %5867 = vmatpush.msra.mxu0 %v505_v57 }
0x18cd   :  { %v5925_v33 = vpop.permute.xlu1 %5924 }
0x18ce   :  { %v6049_v49 = vpop.permute.xlu2 %6048 }
0x18cf   :  { %v5977_v34 = vpop.permute.xlu0 %5976 }
0x18d1   :  { %7316 = vmatmul.msk.f32.vlgmr.msra.gmra.mxu3 %vm1451_vm1, %v5622_v59  ;;  %7317 = vmatmul.msk.f32.vlgmr.msrb.gmra.mxu0 %vm1451_vm1, %v5623_v18 }
0x18d2   :  { %7324 = vmatpush.xpose.msk.msra.mxu3 %vm1451_vm1, %v5927_v31  ;;  %7326 = vmatpush.xpose.msk.msrb.mxu0 %vm1451_vm1, %v5953_v36 }
0x18d5   :  { %v6025_v54 = vpop.permute.xlu1 %6024 }
0x1937   :  { %v5699_v42 = vpop.f32.mrf.mxu1 }
0x1938   :  { %7320 = vmatmul.msk.f32.vlgmr.msrb.gmra.mxu3 %vm1451_vm1, %v5699_v42 }
0x1939   :  { %7332 = vmatpush.xpose.msk.msrb.mxu3 %vm1451_vm1, %v6025_v54 }
0x193d   :  { %v5725_v51 = vpop.f32.mrf.mxu2 }
0x193e   :  { %7321 = vmatmul.msk.f32.vlgmr.msra.gmra.mxu0 %vm1451_vm1, %v5725_v51 }
0x193f   :  { %7334 = vmatpush.xpose.msk.msra.mxu0 %vm1451_vm1, %v6049_v49 }
0x1940   :  { %7325 = vmatmul.msk.f32.vlgmr.msra.gmra.mxu3 %vm1451_vm1, %v5925_v33 }
0x1946   :  { %7327 = vmatmul.msk.f32.vlgmr.msrb.gmra.mxu0 %vm1451_vm1, %v5925_v33  ;;  %v5673_v37 = vpop.f32.mrf.mxu0 }
0x1947   :  { %7319 = vmatmul.msk.f32.vlgmr.msrb.gmra.mxu2 %vm1451_vm1, %v5673_v37 }
0x1948   :  { %7330 = vmatpush.xpose.msk.msrb.mxu2 %vm1451_vm1, %v6001_v47  ;;  %7333 = vmatmul.msk.f32.vlgmr.msrb.gmra.mxu3 %vm1451_vm1, %v5925_v33 }
0x194c   :  { %v5647_v3 = vpop.f32.mrf.mxu3 }
0x194d   :  { %7318 = vmatmul.msk.f32.vlgmr.msrb.gmra.mxu1 %vm1451_vm1, %v5647_v3 }
0x194e   :  { %7328 = vmatpush.xpose.msk.msrb.mxu1 %vm1451_vm1, %v5977_v34  ;;  %7335 = vmatmul.msk.f32.vlgmr.msra.gmra.mxu0 %vm1451_vm1, %v5925_v33  ;;  %v5777_v55 = vpop.f32.mrf.mxu0 }
0x194f   :  { %7323 = vmatmul.msk.f32.vlgmr.msra.gmra.mxu2 %vm1451_vm1, %v5777_v55 }
0x1954   :  { %v5751_v44 = vpop.f32.mrf.mxu3 }
0x1955   :  { %7322 = vmatmul.msk.f32.vlgmr.msra.gmra.mxu1 %vm1451_vm1, %v5751_v44 }
0x1957   :  { %7331 = vmatmul.msk.f32.vlgmr.msrb.gmra.mxu2 %vm1451_vm1, %v5925_v33 }
0x195d   :  { %7329 = vmatmul.msk.f32.vlgmr.msrb.gmra.mxu1 %vm1451_vm1, %v5925_v33 }
0x19bb   :  { %v5846_v43 = vpop.f32.mrf.mxu3  ;;  %v5869_v27 = vpop.f32.mrf.mxu0 }
0x19bc   :  { %v9955_v5 = vadd.f32 %v5846_v43, %v9883_v13  ;;  %v9958_v40 = vadd.f32 %v5869_v27, %v9885_v61 }
0x19c3   :  { %v5949_v30 = vpop.f32.mrf.mxu3  ;;  %v5973_v46 = vpop.f32.mrf.mxu0 }
0x19c4   :  { %v6072_v9 = vmul.f32 0.35355338, %v5949_v30  ;;  %v6073_v52 = vmul.f32 0.35355338, %v5973_v46 }
0x19c6   :  { %v6081_v56 = vsel %vm4529_vm13, %v6073_v52, -inf  ;;  %v6078_v12 = vsel %vm4529_vm13, %v6072_v9, -inf }
0x19c7   :  { %6082 = vmax.xlane.f32.xlu0 %v6081_v56  ;;  %6079 = vmax.xlane.f32.xlu1 %v6078_v12 }
0x19ca   :  { %v5800_v60 = vpop.f32.mrf.mxu1  ;;  %v5823_v38 = vpop.f32.mrf.mxu2 }
0x19cb   :  { %v9963_v53 = vadd.f32 %v5800_v60, %v9875_v50  ;;  %v9966_v13 = vadd.f32 %v5823_v38, %v9877_v7  ;;  %v6045_v61 = vpop.f32.mrf.mxu3  ;;  %v6069_v23 = vpop.f32.mrf.mxu0 }
0x19cc   :  { %v6076_v11 = vmul.f32 0.35355338, %v6045_v61  ;;  %v6077_v62 = vmul.f32 0.35355338, %v6069_v23 }
0x19ce   :  { %v6090_v19 = vsel %vm4529_vm13, %v6076_v11, -inf  ;;  %v6093_v57 = vsel %vm4529_vm13, %v6077_v62, -inf }
0x19cf   :  { %6091 = vmax.xlane.f32.xlu0 %v6090_v19 }
0x19d2   :  { %v5892_v26 = vpop.f32.mrf.mxu1  ;;  %v5915_v6 = vpop.f32.mrf.mxu2 }
0x19d3   :  { %v9970_v25 = vadd.f32 %v5892_v26, %v9879_v45  ;;  %v9973_v15 = vadd.f32 %v5915_v6, %v9881_v20 }
0x19da   :  { %v5997_v21 = vpop.f32.mrf.mxu1  ;;  %v6021_v0 = vpop.f32.mrf.mxu2 }
0x19db   :  { %v6074_v50 = vmul.f32 0.35355338, %v5997_v21  ;;  %v6075_v16 = vmul.f32 0.35355338, %v6021_v0 }
0x19dd   :  { %v6087_v7 = vsel %vm4529_vm13, %v6075_v16, -inf  ;;  %v6084_v32 = vsel %vm4529_vm13, %v6074_v50, -inf }
0x19de   :  { %6088 = vmax.xlane.f32.xlu1 %v6087_v7  ;;  %6085 = vmax.xlane.f32.xlu2 %v6084_v32 }
0x19e6   :  { %6094 = vmax.xlane.f32.xlu2 %v6093_v57 }
0x1a3a   :  { %v6083_v45 = vpop.xlane.xlu0 %6082  ;;  %v6080_v22 = vpop.xlane.xlu1 %6079 }
0x1a3b   :  { %v6097_v28 = vsub.f32 %v6073_v52, %v6083_v45  ;;  %v6096_v20 = vsub.f32 %v6072_v9, %v6080_v22  ;;  %v506_v45 = vld [vmem:[#allocation15 + $0x18] sm:$0xff] }
0x1a3d   :  { %v6104_v4 = vmul.f32 1.442695, %v6097_v28  ;;  %v6102_v48 = vmul.f32 1.442695, %v6096_v20 }
0x1a3f   :  { %7815 = vpow2.f32 %v6104_v4 }
0x1a40   :  { %7817 = vpow2.f32 %v6102_v48 }
0x1a42   :  { %v6092_v63 = vpop.xlane.xlu0 %6091 }
0x1a43   :  { %v6100_v29 = vsub.f32 %v6076_v11, %v6092_v63 }
0x1a45   :  { %v9978_v10 = vpop.eup %7815  ;;  %v6110_v17 = vmul.f32 1.442695, %v6100_v29  ;;  %v7577_v29 = vld [vmem:[#allocation13] ss:$0 sm:$0xff] }
0x1a46   :  { %v7818_v8 = vpop.eup %7817  ;;  %v6117_v24 = vsel %vm4529_vm13, %v9978_v10, 0.0 }
0x1a47   :  { %7819 = vpow2.f32 %v6110_v17  ;;  %v6114_v2 = vsel %vm4529_vm13, %v7818_v8, 0.0  ;;  %6118 = vadd.xlane.f32.xlu0 %v6117_v24  ;;  %v7863_v24 = vld [vmem:[#allocation22] sm:$0xf] }
0x1a48   :  { %6115 = vadd.xlane.f32.xlu1 %v6114_v2 }
0x1a4d   :  { %v9983_v1 = vpop.eup %7819 }
0x1a4e   :  { %v6126_v35 = vsel %vm4529_vm13, %v9983_v1, 0.0 }
0x1a4f   :  { %6127 = vadd.xlane.f32.xlu0 %v6126_v35 }
0x1a51   :  { %v6089_v18 = vpop.xlane.xlu1 %6088  ;;  %v6086_v59 = vpop.xlane.xlu2 %6085 }
0x1a52   :  { %v6099_v31 = vsub.f32 %v6075_v16, %v6089_v18  ;;  %v6098_v36 = vsub.f32 %v6074_v50, %v6086_v59 }
0x1a54   :  { %v6108_v33 = vmul.f32 1.442695, %v6099_v31  ;;  %v6106_v47 = vmul.f32 1.442695, %v6098_v36 }
0x1a56   :  { %7821 = vpow2.f32 %v6108_v33 }
0x1a57   :  { %7823 = vpow2.f32 %v6106_v47 }
0x1a59   :  { %v6095_v42 = vpop.xlane.xlu2 %6094 }
0x1a5a   :  { %v6101_v54 = vsub.f32 %v6077_v62, %v6095_v42 }
0x1a5c   :  { %v7822_v51 = vpop.eup %7821  ;;  %v6112_v49 = vmul.f32 1.442695, %v6101_v54 }
0x1a5d   :  { %v7824_v37 = vpop.eup %7823  ;;  %v6123_v3 = vsel %vm4529_vm13, %v7822_v51, 0.0 }
0x1a5e   :  { %7825 = vpow2.f32 %v6112_v49  ;;  %6124 = vadd.xlane.f32.xlu1 %v6123_v3  ;;  %v6120_v34 = vsel %vm4529_vm13, %v7824_v37, 0.0 }
0x1a5f   :  { %6121 = vadd.xlane.f32.xlu2 %v6120_v34 }
0x1a63   :  { %7551 = vrot.lane.b32.xlu0 %v9809_v14, %s8538_s21 }
0x1a64   :  { %v7826_v55 = vpop.eup %7825 }
0x1a65   :  { %v6129_v44 = vsel %vm4529_vm13, %v7826_v55, 0.0 }
0x1a67   :  { %6130 = vadd.xlane.f32.xlu2 %v6129_v44 }
0x1a77   :  { %7546 = vrot.lane.b32.xlu1 %v9700_v58, %s8538_s21 }
0x1a7f   :  { %7556 = vrot.lane.b32.xlu2 %v9815_v39, %s8538_s21 }
0x1aba   :  { %v6119_v43 = vpop.xlane.xlu0 %6118 }
0x1abb   :  { %v6116_v27 = vpop.xlane.xlu1 %6115 }
0x1ac2   :  { %v6128_v30 = vpop.xlane.xlu0 %6127 }
0x1ad1   :  { %v6125_v46 = vpop.xlane.xlu1 %6124 }
0x1ad2   :  { %7827 = vrcp.f32 %v6125_v46  ;;  %v6122_v9 = vpop.xlane.xlu2 %6121 }
0x1ad3   :  { %7829 = vrcp.f32 %v6122_v9 }
0x1ad4   :  { %7831 = vrcp.f32 %v6119_v43 }
0x1ad5   :  { %v7552_v52 = vpop.permute.xlu0 %7551  ;;  %7833 = vrcp.f32 %v6116_v27 }
0x1ad6   :  { %v7554_v56 = vunpack.i.h.bf16 %v7552_v52  ;;  %v7553_v14 = vunpack.i.l.bf16 %v7552_v52  ;;  %7835 = vrcp.f32 %v6128_v30 }
0x1ad8   :  { %v7828_v12 = vpop.eup %7827  ;;  %6217 = vmatpush.msra.mxu3 %v7553_v14  ;;  %6243 = vmatpush.msrb.mxu0 %v7554_v56 }
0x1ad9   :  { %v7830_v60 = vpop.eup %7829  ;;  %v6141_v38 = vmul.f32 %v7828_v12, %v7822_v51 }
0x1ada   :  { %v6140_v61 = vmul.f32 %v7830_v60, %v7824_v37  ;;  %v6131_v58 = vpop.xlane.xlu2 %6130  ;;  %v7832_v39 = vpop.eup %7831  ;;  %6318 = vmatpush.msrb.mxu3 %v506_v45  ;;  %6341 = vmatpush.msra.mxu0 %v506_v45 }
0x1adb   :  { %7339 = vmatmul.msk.f32.vlgmr.msrb.gmra.mxu0 %vm1451_vm1, %v6141_v38  ;;  %v7834_v11 = vpop.eup %7833  ;;  %7837 = vrcp.f32 %v6131_v58  ;;  %v6139_v50 = vmul.f32 %v7832_v39, %v9978_v10 }
0x1adc   :  { %7338 = vmatmul.msk.f32.vlgmr.msra.gmra.mxu3 %vm1451_vm1, %v6140_v61  ;;  %v6138_v0 = vmul.f32 %v7834_v11, %v7818_v8  ;;  %v7836_v32 = vpop.eup %7835  ;;  %6433 = vmatpush.msrb.mxu0 %v506_v45 }
0x1add   :  { %v6142_v62 = vmul.f32 %v7836_v32, %v9983_v1  ;;  %6410 = vmatpush.msra.mxu3 %v506_v45 }
0x1ae1   :  { %v7838_v23 = vpop.eup %7837 }
0x1ae2   :  { %v7557_v19 = vpop.permute.xlu2 %7556  ;;  %v6143_v57 = vmul.f32 %v7838_v23, %v7826_v55 }
0x1ae3   :  { %v7559_v16 = vunpack.i.h.bf16 %v7557_v19  ;;  %v7558_v7 = vunpack.i.l.bf16 %v7557_v19 }
0x1ae9   :  { %v7547_v26 = vpop.permute.xlu1 %7546 }
0x1aea   :  { %v7549_v6 = vunpack.i.h.bf16 %v7547_v26  ;;  %v7548_v21 = vunpack.i.l.bf16 %v7547_v26 }
0x1aec   :  { %6165 = vmatpush.msra.mxu1 %v7548_v21  ;;  %6191 = vmatpush.msra.mxu2 %v7549_v6 }
0x1aed   :  { %7336 = vmatmul.msk.f32.vlgmr.msra.gmra.mxu1 %vm1451_vm1, %v6138_v0  ;;  %7337 = vmatmul.msk.f32.vlgmr.msra.gmra.mxu2 %vm1451_vm1, %v6139_v50 }
0x1aee   :  { %6269 = vmatpush.msrb.mxu1 %v7558_v7  ;;  %6295 = vmatpush.msrb.mxu2 %v7559_v16 }
0x1af0   :  { %6387 = vmatpush.msra.mxu2 %v506_v45  ;;  %6364 = vmatpush.msra.mxu1 %v506_v45 }
0x1af5   :  { %7340 = vmatmul.msk.f32.vlgmr.msrb.gmra.mxu1 %vm1451_vm1, %v6142_v62  ;;  %7341 = vmatmul.msk.f32.vlgmr.msrb.gmra.mxu2 %vm1451_vm1, %v6143_v57 }
0x1b58   :  { %v6245_v22 = vpop.f32.mrf.mxu0 }
0x1b59   :  { %7345 = vmatmul.msk.f32.vlgmr.msra.gmra.mxu2 %vm1451_vm1, %v6245_v22 }
0x1b5f   :  { %v6219_v28 = vpop.f32.mrf.mxu3 }
0x1b60   :  { %7344 = vmatmul.msk.f32.vlgmr.msra.gmra.mxu1 %vm1451_vm1, %v6219_v28 }
0x1b6a   :  { %v6167_v20 = vpop.f32.mrf.mxu1 }
0x1b6b   :  { %7342 = vmatmul.msk.f32.vlgmr.msrb.gmra.mxu3 %vm1451_vm1, %v6167_v20 }
0x1b70   :  { %v6193_v4 = vpop.f32.mrf.mxu2 }
0x1b71   :  { %7343 = vmatmul.msk.f32.vlgmr.msra.gmra.mxu0 %vm1451_vm1, %v6193_v4 }
0x1b72   :  { %v6271_v48 = vpop.f32.mrf.mxu1 }
0x1b73   :  { %7346 = vmatmul.msk.f32.vlgmr.msra.gmra.mxu3 %vm1451_vm1, %v6271_v48 }
0x1b78   :  { %v6297_v63 = vpop.f32.mrf.mxu2 }
0x1b79   :  { %7347 = vmatmul.msk.f32.vlgmr.msrb.gmra.mxu0 %vm1451_vm1, %v6297_v63  ;;  %v501_v63 = vld [vmem:[%s10252_s12 + $0x18] sm:$0xff] }
0x1b7a   :  { %6674 = vmatpush.msrb.mxu3 %v501_v63  ;;  %6628 = vmatpush.msrb.mxu1 %v501_v63 }
0x1b7b   :  { %6651 = vmatpush.msrb.mxu2 %v501_v63  ;;  %6697 = vmatpush.msra.mxu0 %v501_v63 }
0x1bdc   :  { %v6389_v35 = vpop.f32.mrf.mxu2 }
0x1bdd   :  { %v6366_v10 = vpop.f32.mrf.mxu1  ;;  %v6441_v33 = vadd.f32 %v6389_v35, %v9958_v40 }
0x1bde   :  { %v6440_v17 = vadd.f32 %v6366_v10, %v9955_v5  ;;  %v499_v10 = vld [vmem:[%s10252_s12 + $0x8] sm:$0xff] }
0x1bdf   :  { %v6450_v51 = vadd.f32 %v7577_v29, %v6441_v33 }
0x1be0   :  { %v6449_v8 = vadd.f32 %v7577_v29, %v6440_v17  ;;  %v498_v17 = vld [vmem:[%s10252_s12] sm:$0xff] }
0x1be1   :  { %v6456_v40 = vadd.f32 %v7863_v24, %v6450_v51 }
0x1be2   :  { %v6455_v2 = vadd.f32 %v7863_v24, %v6449_v8 }
0x1be3   :  { %v6469_v30 = vsel %vm6459_vm14, %v6456_v40, 0.0 }
0x1be4   :  { %v6466_v1 = vsel %vm6459_vm14, %v6455_v2, 0.0 }
0x1be5   :  { %6467 = vadd.xlane.f32.xlu2 %v6466_v1 }
0x1bee   :  { %v6320_v18 = vpop.f32.mrf.mxu3  ;;  %v6343_v59 = vpop.f32.mrf.mxu0 }
0x1bef   :  { %v6438_v31 = vadd.f32 %v6320_v18, %v9963_v53  ;;  %v6439_v36 = vadd.f32 %v6343_v59, %v9966_v13 }
0x1bf1   :  { %v6447_v47 = vadd.f32 %v7577_v29, %v6438_v31  ;;  %v6448_v42 = vadd.f32 %v7577_v29, %v6439_v36 }
0x1bf3   :  { %v6454_v54 = vadd.f32 %v7863_v24, %v6448_v42  ;;  %v6453_v5 = vadd.f32 %v7863_v24, %v6447_v47 }
0x1bf5   :  { %v6463_v49 = vsel %vm6459_vm14, %v6454_v54, 0.0  ;;  %v6460_v37 = vsel %vm6459_vm14, %v6453_v5, 0.0 }
0x1bf6   :  { %6464 = vadd.xlane.f32.xlu1 %v6463_v49  ;;  %6461 = vadd.xlane.f32.xlu0 %v6460_v37  ;;  %v6412_v3 = vpop.f32.mrf.mxu3  ;;  %v6435_v34 = vpop.f32.mrf.mxu0  ;;  %v10065_v49 = vld [vmem:[#allocation7] ss:$0 sm:$0xff] }
0x1bf7   :  { %v6442_v55 = vadd.f32 %v6412_v3, %v9970_v25  ;;  %v6443_v53 = vadd.f32 %v6435_v34, %v9973_v15  ;;  %v10067_v3 = vld [vmem:[#allocation6] ss:$0 sm:$0xff] }
0x1bf9   :  { %v6451_v13 = vadd.f32 %v7577_v29, %v6442_v55  ;;  %v6452_v44 = vadd.f32 %v7577_v29, %v6443_v53  ;;  %v500_v29 = vld [vmem:[%s10252_s12 + $0x10] sm:$0xff] }
0x1bfa   :  { %6675 = vmatpush.msrb.mxu3 %v500_v29  ;;  %6629 = vmatpush.msrb.mxu1 %v500_v29 }
0x1bfb   :  { %v6457_v43 = vadd.f32 %v7863_v24, %v6451_v13  ;;  %v6458_v27 = vadd.f32 %v7863_v24, %v6452_v44  ;;  %6652 = vmatpush.msrb.mxu2 %v500_v29  ;;  %6698 = vmatpush.msra.mxu0 %v500_v29 }
0x1bfc   :  { %6676 = vmatpush.msrb.mxu3 %v499_v10  ;;  %6630 = vmatpush.msrb.mxu1 %v499_v10 }
0x1bfd   :  { %v6472_v46 = vsel %vm6459_vm14, %v6457_v43, 0.0  ;;  %v6475_v9 = vsel %vm6459_vm14, %v6458_v27, 0.0  ;;  %6653 = vmatpush.msrb.mxu2 %v499_v10  ;;  %6699 = vmatpush.msra.mxu0 %v499_v10 }
0x1bfe   :  { %6470 = vadd.xlane.f32.xlu0 %v6469_v30  ;;  %6473 = vadd.xlane.f32.xlu1 %v6472_v46 }
0x1bff   :  { %6476 = vadd.xlane.f32.xlu2 %v6475_v9  ;;  %6677 = vmatpush.msrb.mxu3 %v498_v17 }
0x1c00   :  { %6631 = vmatpush.msrb.mxu1 %v498_v17  ;;  %6654 = vmatpush.msrb.mxu2 %v498_v17 }
0x1c01   :  { %6700 = vmatpush.msra.mxu0 %v498_v17 }
0x1c02   :  { %6720 = vmatpush.msra.mxu1 %v501_v63  ;;  %6743 = vmatpush.msra.mxu2 %v501_v63 }
0x1c04   :  { %6721 = vmatpush.msra.mxu1 %v500_v29  ;;  %6744 = vmatpush.msra.mxu2 %v500_v29 }
0x1c06   :  { %6722 = vmatpush.msra.mxu1 %v499_v10  ;;  %6745 = vmatpush.msra.mxu2 %v499_v10 }
0x1c08   :  { %6723 = vmatpush.msra.mxu1 %v498_v17  ;;  %6746 = vmatpush.msra.mxu2 %v498_v17 }
0x1c58   :  { %v6468_v52 = vpop.xlane.xlu2 %6467 }
0x1c59   :  { %v6480_v56 = vmul.f32 %v6468_v52, %v8936_v41 }
0x1c5b   :  { %v10023_v25 = vsub.f32 %v6455_v2, %v6480_v56 }
0x1c5d   :  { %v6492_v15 = vmul.f32 %v10023_v25, %v10023_v25 }
0x1c5f   :  { %v6502_v14 = vsel %vm6459_vm14, %v6492_v15, 0.0 }
0x1c60   :  { %6503 = vadd.xlane.f32.xlu2 %v6502_v14 }
0x1c69   :  { %v6465_v12 = vpop.xlane.xlu1 %6464  ;;  %v6462_v60 = vpop.xlane.xlu0 %6461 }
0x1c6a   :  { %v6479_v38 = vmul.f32 %v6465_v12, %v8936_v41  ;;  %v6478_v61 = vmul.f32 %v6462_v60, %v8936_v41 }
0x1c6c   :  { %v10030_v58 = vsub.f32 %v6454_v54, %v6479_v38  ;;  %v10032_v39 = vsub.f32 %v6453_v5, %v6478_v61 }
0x1c6e   :  { %v6490_v11 = vmul.f32 %v10032_v39, %v10032_v39  ;;  %v6491_v19 = vmul.f32 %v10030_v58, %v10030_v58 }
0x1c70   :  { %v6496_v26 = vsel %vm6459_vm14, %v6490_v11, 0.0  ;;  %v6499_v6 = vsel %vm6459_vm14, %v6491_v19, 0.0 }
0x1c71   :  { %6497 = vadd.xlane.f32.xlu0 %v6496_v26  ;;  %v6471_v21 = vpop.xlane.xlu0 %6470  ;;  %6500 = vadd.xlane.f32.xlu1 %v6499_v6  ;;  %v6474_v0 = vpop.xlane.xlu1 %6473 }
0x1c72   :  { %v6481_v50 = vmul.f32 %v6471_v21, %v8936_v41  ;;  %v6482_v16 = vmul.f32 %v6474_v0, %v8936_v41  ;;  %v6477_v7 = vpop.xlane.xlu2 %6476 }
0x1c73   :  { %v6483_v32 = vmul.f32 %v6477_v7, %v8936_v41 }
0x1c74   :  { %v10043_v23 = vsub.f32 %v6456_v40, %v6481_v50  ;;  %v10045_v62 = vsub.f32 %v6457_v43, %v6482_v16 }
0x1c75   :  { %v10047_v57 = vsub.f32 %v6458_v27, %v6483_v32 }
0x1c76   :  { %v6493_v45 = vmul.f32 %v10043_v23, %v10043_v23  ;;  %v6494_v22 = vmul.f32 %v10045_v62, %v10045_v62 }
0x1c77   :  { %v6495_v28 = vmul.f32 %v10047_v57, %v10047_v57 }
0x1c78   :  { %v6505_v20 = vsel %vm6459_vm14, %v6493_v45, 0.0  ;;  %v6508_v4 = vsel %vm6459_vm14, %v6494_v22, 0.0 }
0x1c79   :  { %6506 = vadd.xlane.f32.xlu0 %v6505_v20  ;;  %6509 = vadd.xlane.f32.xlu1 %v6508_v4  ;;  %v6511_v48 = vsel %vm6459_vm14, %v6495_v28, 0.0 }
0x1c7a   :  { %6512 = vadd.xlane.f32.xlu2 %v6511_v48 }
0x1cd3   :  { %v6504_v8 = vpop.xlane.xlu2 %6503 }
0x1cd4   :  { %v6516_v24 = vmul.f32 %v6504_v8, %v8936_v41 }
0x1cd6   :  { %v6522_v2 = vadd.f32 1e-05, %v6516_v24 }
0x1cd8   :  { %7839 = vrsqrt.f32 %v6522_v2  ;;  %vm6552_vm15 = vweird.f32 %v6522_v2 }
0x1cde   :  { %v7840_v1 = vpop.eup %7839 }
0x1cdf   :  { %v6547_v35 = vmul.f32 %v7840_v1, %v6522_v2  ;;  %vm6553_vm1 = vweird.f32 %v7840_v1 }
0x1ce0   :  { %vm6554_vm3 = vmor %vm6552_vm15, %vm6553_vm1 }
0x1ce1   :  { %v6548_v18 = vmul.f32 %v7840_v1, %v6547_v35 }
0x1ce3   :  { %v6549_v59 = vmul.f32 0.5, %v6548_v18 }
0x1ce4   :  { %v6498_v31 = vpop.xlane.xlu0 %6497  ;;  %v6501_v36 = vpop.xlane.xlu1 %6500 }
0x1ce5   :  { %v6550_v33 = vsub.f32 1.5, %v6549_v59  ;;  %v6514_v47 = vmul.f32 %v6498_v31, %v8936_v41  ;;  %v6515_v42 = vmul.f32 %v6501_v36, %v8936_v41 }
0x1ce7   :  { %v6551_v54 = vmul.f32 %v7840_v1, %v6550_v33  ;;  %v6520_v5 = vadd.f32 1e-05, %v6514_v47  ;;  %v6521_v51 = vadd.f32 1e-05, %v6515_v42 }
0x1ce9   :  { %v6555_v37 = vsel %vm6554_vm3, %v7840_v1, %v6551_v54  ;;  %7841 = vrsqrt.f32 %v6520_v5  ;;  %vm6532_vm6 = vweird.f32 %v6520_v5  ;;  %vm6542_vm8 = vweird.f32 %v6521_v51 }
0x1cea   :  { %v6588_v34 = vmul.f32 %v6555_v37, %v10023_v25  ;;  %7843 = vrsqrt.f32 %v6521_v51 }
0x1cec   :  { %v6597_v55 = vmul.f32 %v10065_v49, %v6588_v34  ;;  %v6507_v53 = vpop.xlane.xlu0 %6506  ;;  %v6510_v13 = vpop.xlane.xlu1 %6509 }
0x1ced   :  { %v6517_v44 = vmul.f32 %v6507_v53, %v8936_v41  ;;  %v6518_v40 = vmul.f32 %v6510_v13, %v8936_v41  ;;  %v6513_v43 = vpop.xlane.xlu2 %6512 }
0x1cee   :  { %v10074_v27 = vadd.f32 %v10067_v3, %v6597_v55  ;;  %v6519_v30 = vmul.f32 %v6513_v43, %v8936_v41 }
0x1cef   :  { %v7842_v46 = vpop.eup %7841  ;;  %v6523_v9 = vadd.f32 1e-05, %v6517_v44  ;;  %v6524_v52 = vadd.f32 1e-05, %v6518_v40 }
0x1cf0   :  { %v7844_v56 = vpop.eup %7843  ;;  %v6527_v25 = vmul.f32 %v7842_v46, %v6520_v5  ;;  %v6525_v15 = vadd.f32 1e-05, %v6519_v30  ;;  %7350 = vmatmul.msk.f32.vlgmr.msrb.gmra.mxu3 %vm852_vm7, %v10074_v27  ;;  %vm6533_vm4 = vweird.f32 %v7842_v46 }
0x1cf1   :  { %v6537_v14 = vmul.f32 %v7844_v56, %v6521_v51  ;;  %7845 = vrsqrt.f32 %v6523_v9  ;;  %vm6543_vm5 = vweird.f32 %v7844_v56  ;;  %vm6534_vm0 = vmor %vm6532_vm6, %vm6533_vm4  ;;  %vm6562_vm11 = vweird.f32 %v6523_v9 }
0x1cf2   :  { %v6528_v12 = vmul.f32 %v7842_v46, %v6527_v25  ;;  %7847 = vrsqrt.f32 %v6524_v52  ;;  %vm6544_vm9 = vmor %vm6542_vm8, %vm6543_vm5  ;;  %vm6572_vm15 = vweird.f32 %v6524_v52  ;;  %vm6582_vm4 = vweird.f32 %v6525_v15 }
0x1cf3   :  { %v6538_v60 = vmul.f32 %v7844_v56, %v6537_v14  ;;  %7849 = vrsqrt.f32 %v6525_v15 }
0x1cf4   :  { %v6529_v38 = vmul.f32 0.5, %v6528_v12 }
0x1cf5   :  { %v6539_v61 = vmul.f32 0.5, %v6538_v60 }
0x1cf6   :  { %v6530_v11 = vsub.f32 1.5, %v6529_v38 }
0x1cf7   :  { %v7846_v19 = vpop.eup %7845  ;;  %v6540_v26 = vsub.f32 1.5, %v6539_v61 }
0x1cf8   :  { %v7848_v6 = vpop.eup %7847  ;;  %v6531_v21 = vmul.f32 %v7842_v46, %v6530_v11  ;;  %v6557_v0 = vmul.f32 %v7846_v19, %v6523_v9  ;;  %vm6563_vm10 = vweird.f32 %v7846_v19 }
0x1cf9   :  { %v7850_v50 = vpop.eup %7849  ;;  %v6541_v16 = vmul.f32 %v7844_v56, %v6540_v26  ;;  %v6567_v7 = vmul.f32 %v7848_v6, %v6524_v52  ;;  %vm6573_vm12 = vweird.f32 %v7848_v6  ;;  %vm6564_vm1 = vmor %vm6562_vm11, %vm6563_vm10 }
0x1cfa   :  { %v6535_v32 = vsel %vm6534_vm0, %v7842_v46, %v6531_v21  ;;  %v6558_v45 = vmul.f32 %v7846_v19, %v6557_v0  ;;  %v6577_v22 = vmul.f32 %v7850_v50, %v6525_v15  ;;  %vm6583_vm13 = vweird.f32 %v7850_v50  ;;  %vm6574_vm3 = vmor %vm6572_vm15, %vm6573_vm12 }
0x1cfb   :  { %v6586_v28 = vmul.f32 %v6535_v32, %v10032_v39  ;;  %v6545_v20 = vsel %vm6544_vm9, %v7844_v56, %v6541_v16  ;;  %v6568_v4 = vmul.f32 %v7848_v6, %v6567_v7  ;;  %vm6584_vm5 = vmor %vm6582_vm4, %vm6583_vm13  ;;  %vm6913_vm0 = vcmask 31744  }
0x1cfc   :  { %v6587_v48 = vmul.f32 %v6545_v20, %v10030_v58  ;;  %v6559_v63 = vmul.f32 0.5, %v6558_v45  ;;  %v6578_v29 = vmul.f32 %v7850_v50, %v6577_v22 }
0x1cfd   :  { %v6595_v10 = vmul.f32 %v10065_v49, %v6586_v28  ;;  %v6569_v17 = vmul.f32 0.5, %v6568_v4 }
0x1cfe   :  { %v6596_v8 = vmul.f32 %v10065_v49, %v6587_v48  ;;  %v6560_v24 = vsub.f32 1.5, %v6559_v63  ;;  %v6579_v2 = vmul.f32 0.5, %v6578_v29 }
0x1cff   :  { %v6604_v1 = vadd.f32 %v10067_v3, %v6595_v10  ;;  %v6570_v35 = vsub.f32 1.5, %v6569_v17 }
0x1d00   :  { %v6605_v39 = vadd.f32 %v10067_v3, %v6596_v8  ;;  %v6561_v18 = vmul.f32 %v7846_v19, %v6560_v24  ;;  %v6580_v59 = vsub.f32 1.5, %v6579_v2 }
0x1d01   :  { %v6571_v58 = vmul.f32 %v7848_v6, %v6570_v35  ;;  %7348 = vmatmul.msk.f32.vlgmr.msrb.gmra.mxu1 %vm852_vm7, %v6604_v1 }
0x1d02   :  { %v6565_v31 = vsel %vm6564_vm1, %v7846_v19, %v6561_v18  ;;  %v6581_v36 = vmul.f32 %v7850_v50, %v6580_v59  ;;  %7349 = vmatmul.msk.f32.vlgmr.msrb.gmra.mxu2 %vm852_vm7, %v6605_v39 }
0x1d03   :  { %v6589_v33 = vmul.f32 %v6565_v31, %v10043_v23  ;;  %v6575_v47 = vsel %vm6574_vm3, %v7848_v6, %v6571_v58  ;;  %v7580_v23 = vld [vmem:[#allocation12] ss:$0 sm:$0xff] }
0x1d04   :  { %v6590_v42 = vmul.f32 %v6575_v47, %v10045_v62  ;;  %v6585_v54 = vsel %vm6584_vm5, %v7850_v50, %v6581_v36 }
0x1d05   :  { %v6598_v5 = vmul.f32 %v10065_v49, %v6589_v33  ;;  %v6591_v51 = vmul.f32 %v6585_v54, %v10047_v57 }
0x1d06   :  { %v6599_v37 = vmul.f32 %v10065_v49, %v6590_v42 }
0x1d07   :  { %v6607_v34 = vadd.f32 %v10067_v3, %v6598_v5  ;;  %v6600_v55 = vmul.f32 %v10065_v49, %v6591_v51 }
0x1d08   :  { %v6608_v53 = vadd.f32 %v10067_v3, %v6599_v37 }
0x1d09   :  { %v6609_v13 = vadd.f32 %v10067_v3, %v6600_v55  ;;  %7351 = vmatmul.msk.f32.vlgmr.msra.gmra.mxu0 %vm852_vm7, %v6607_v34 }
0x1d0a   :  { %7352 = vmatmul.msk.f32.vlgmr.msra.gmra.mxu1 %vm852_vm7, %v6608_v53 }
0x1d0b   :  { %7353 = vmatmul.msk.f32.vlgmr.msra.gmra.mxu2 %vm852_vm7, %v6609_v13 }
0x1d73   :  { %v6679_v43 = vpop.f32.mrf.mxu3 }
0x1d74   :  { %v6680_v56 = vadd.f32 %v7580_v23, %v6679_v43 }
0x1d76   :  { %v6753_v61 = vmax.f32 %v6680_v56, 0.0 }
0x1d78   :  { %v6759_v50 = vadd.f32 %v6753_v61, %v10074_v27 }
0x1d7a   :  { %v6769_v32 = vsel %vm6459_vm14, %v6759_v50, 0.0 }
0x1d7e   :  { %v6633_v62 = vpop.f32.mrf.mxu1 }
0x1d7f   :  { %v6634_v44 = vadd.f32 %v7580_v23, %v6633_v62 }
0x1d81   :  { %v6751_v57 = vmax.f32 %v6634_v44, 0.0 }
0x1d83   :  { %v6757_v40 = vadd.f32 %v6751_v57, %v6604_v1 }
0x1d85   :  { %v6656_v30 = vpop.f32.mrf.mxu2  ;;  %v6763_v46 = vsel %vm6459_vm14, %v6757_v40, 0.0 }
0x1d86   :  { %v6657_v49 = vadd.f32 %v7580_v23, %v6656_v30  ;;  %v6702_v9 = vpop.f32.mrf.mxu0  ;;  %6764 = vadd.xlane.f32.xlu0 %v6763_v46 }
0x1d87   :  { %v6703_v52 = vadd.f32 %v7580_v23, %v6702_v9  ;;  %v6725_v3 = vpop.f32.mrf.mxu1 }
0x1d88   :  { %v6752_v25 = vmax.f32 %v6657_v49, 0.0  ;;  %v6726_v15 = vadd.f32 %v7580_v23, %v6725_v3 }
0x1d89   :  { %v6754_v14 = vmax.f32 %v6703_v52, 0.0 }
0x1d8a   :  { %v6758_v12 = vadd.f32 %v6752_v25, %v6605_v39  ;;  %v6755_v60 = vmax.f32 %v6726_v15, 0.0 }
0x1d8b   :  { %v6760_v38 = vadd.f32 %v6754_v14, %v6607_v34 }
0x1d8c   :  { %v6761_v11 = vadd.f32 %v6755_v60, %v6608_v53  ;;  %v6766_v19 = vsel %vm6459_vm14, %v6758_v12, 0.0 }
0x1d8d   :  { %6767 = vadd.xlane.f32.xlu1 %v6766_v19  ;;  %v6772_v26 = vsel %vm6459_vm14, %v6760_v38, 0.0 }
0x1d8e   :  { %v6748_v6 = vpop.f32.mrf.mxu2  ;;  %v6775_v21 = vsel %vm6459_vm14, %v6761_v11, 0.0  ;;  %6773 = vadd.xlane.f32.xlu2 %v6772_v26 }
0x1d8f   :  { %v6749_v0 = vadd.f32 %v7580_v23, %v6748_v6  ;;  %6776 = vadd.xlane.f32.xlu0 %v6775_v21 }
0x1d91   :  { %v6756_v16 = vmax.f32 %v6749_v0, 0.0 }
0x1d93   :  { %v6762_v7 = vadd.f32 %v6756_v16, %v6609_v13  ;;  %v10156_v16 = vld [vmem:[#allocation10] ss:$0 sm:$0xff] }
0x1d95   :  { %6770 = vadd.xlane.f32.xlu1 %v6769_v32  ;;  %v6778_v45 = vsel %vm6459_vm14, %v6762_v7, 0.0 }
0x1d96   :  { %6779 = vadd.xlane.f32.xlu2 %v6778_v45 }
0x1df9   :  { %v6765_v22 = vpop.xlane.xlu0 %6764 }
0x1dfa   :  { %v6781_v28 = vmul.f32 %v6765_v22, %v8936_v41 }
0x1dfc   :  { %v10107_v20 = vsub.f32 %v6757_v40, %v6781_v28 }
0x1dfe   :  { %v6793_v4 = vmul.f32 %v10107_v20, %v10107_v20 }
0x1e00   :  { %v6768_v48 = vpop.xlane.xlu1 %6767  ;;  %v6799_v63 = vsel %vm6459_vm14, %v6793_v4, 0.0  ;;  %v10161_v4 = vld [vmem:[#allocation9] ss:$0 sm:$0xff] }
0x1e01   :  { %v6782_v27 = vmul.f32 %v6768_v48, %v8936_v41  ;;  %6800 = vadd.xlane.f32.xlu0 %v6799_v63  ;;  %v6774_v29 = vpop.xlane.xlu2 %6773 }
0x1e02   :  { %v6777_v10 = vpop.xlane.xlu0 %6776  ;;  %v6784_v17 = vmul.f32 %v6774_v29, %v8936_v41 }
0x1e03   :  { %v10114_v8 = vsub.f32 %v6758_v12, %v6782_v27  ;;  %v6785_v24 = vmul.f32 %v6777_v10, %v8936_v41 }
0x1e04   :  { %v10117_v2 = vsub.f32 %v6760_v38, %v6784_v17 }
0x1e05   :  { %v10119_v1 = vsub.f32 %v6761_v11, %v6785_v24  ;;  %v6794_v35 = vmul.f32 %v10114_v8, %v10114_v8 }
0x1e06   :  { %v6796_v39 = vmul.f32 %v10117_v2, %v10117_v2 }
0x1e07   :  { %v6802_v18 = vsel %vm6459_vm14, %v6794_v35, 0.0  ;;  %v6797_v59 = vmul.f32 %v10119_v1, %v10119_v1 }
0x1e08   :  { %6803 = vadd.xlane.f32.xlu1 %v6802_v18  ;;  %v6771_v58 = vpop.xlane.xlu1 %6770  ;;  %v6808_v31 = vsel %vm6459_vm14, %v6796_v39, 0.0 }
0x1e09   :  { %v6783_v36 = vmul.f32 %v6771_v58, %v8936_v41  ;;  %v6811_v33 = vsel %vm6459_vm14, %v6797_v59, 0.0  ;;  %6809 = vadd.xlane.f32.xlu2 %v6808_v31  ;;  %v6780_v47 = vpop.xlane.xlu2 %6779 }
0x1e0a   :  { %6812 = vadd.xlane.f32.xlu0 %v6811_v33  ;;  %v6786_v42 = vmul.f32 %v6780_v47, %v8936_v41 }
0x1e0b   :  { %v10132_v54 = vsub.f32 %v6759_v50, %v6783_v36 }
0x1e0c   :  { %v10134_v5 = vsub.f32 %v6762_v7, %v6786_v42 }
0x1e0d   :  { %v6795_v51 = vmul.f32 %v10132_v54, %v10132_v54 }
0x1e0e   :  { %v6798_v37 = vmul.f32 %v10134_v5, %v10134_v5 }
0x1e0f   :  { %v6805_v34 = vsel %vm6459_vm14, %v6795_v51, 0.0 }
0x1e10   :  { %6806 = vadd.xlane.f32.xlu1 %v6805_v34  ;;  %v6814_v55 = vsel %vm6459_vm14, %v6798_v37, 0.0  ;;  %v8539_v34 = vmov 0.25  }
0x1e11   :  { %6815 = vadd.xlane.f32.xlu2 %v6814_v55 }
0x1e74   :  { %v6801_v53 = vpop.xlane.xlu0 %6800 }
0x1e75   :  { %v6817_v13 = vmul.f32 %v6801_v53, %v8936_v41 }
0x1e77   :  { %v6823_v23 = vadd.f32 1e-05, %v6817_v13 }
0x1e79   :  { %7851 = vrsqrt.f32 %v6823_v23  ;;  %vm6835_vm14 = vweird.f32 %v6823_v23 }
0x1e7b   :  { %v6804_v62 = vpop.xlane.xlu1 %6803 }
0x1e7c   :  { %v6818_v44 = vmul.f32 %v6804_v62, %v8936_v41  ;;  %v6810_v57 = vpop.xlane.xlu2 %6809 }
0x1e7d   :  { %v6813_v40 = vpop.xlane.xlu0 %6812  ;;  %v6820_v43 = vmul.f32 %v6810_v57, %v8936_v41 }
0x1e7e   :  { %v6824_v30 = vadd.f32 1e-05, %v6818_v44  ;;  %v6821_v46 = vmul.f32 %v6813_v40, %v8936_v41 }
0x1e7f   :  { %v7852_v49 = vpop.eup %7851  ;;  %v6826_v9 = vadd.f32 1e-05, %v6820_v43 }
0x1e80   :  { %v6830_v52 = vmul.f32 %v7852_v49, %v6823_v23  ;;  %7853 = vrsqrt.f32 %v6824_v30  ;;  %v10146_v3 = vadd.f32 1e-05, %v6821_v46  ;;  %vm6836_vm7 = vweird.f32 %v7852_v49 }
0x1e81   :  { %7855 = vrsqrt.f32 %v6826_v9  ;;  %vm6837_vm6 = vmor %vm6835_vm14, %vm6836_vm7  ;;  %vm6845_vm9 = vweird.f32 %v6824_v30  ;;  %vm6865_vm11 = vweird.f32 %v6826_v9 }
0x1e82   :  { %v6831_v56 = vmul.f32 %v7852_v49, %v6830_v52  ;;  %7857 = vrsqrt.f32 %v10146_v3  ;;  %vm6875_vm1 = vweird.f32 %v10146_v3 }
0x1e83   :  { %v6807_v25 = vpop.xlane.xlu1 %6806 }
0x1e84   :  { %v6832_v15 = vmul.f32 0.5, %v6831_v56  ;;  %v6819_v14 = vmul.f32 %v6807_v25, %v8936_v41  ;;  %v6816_v12 = vpop.xlane.xlu2 %6815 }
0x1e85   :  { %v6822_v60 = vmul.f32 %v6816_v12, %v8936_v41 }
0x1e86   :  { %v7854_v38 = vpop.eup %7853  ;;  %v6833_v61 = vsub.f32 1.5, %v6832_v15  ;;  %v10151_v11 = vadd.f32 1e-05, %v6819_v14 }
0x1e87   :  { %v7856_v19 = vpop.eup %7855  ;;  %v6840_v26 = vmul.f32 %v7854_v38, %v6824_v30  ;;  %v10153_v6 = vadd.f32 1e-05, %v6822_v60  ;;  %vm6846_vm8 = vweird.f32 %v7854_v38 }
0x1e88   :  { %v6834_v21 = vmul.f32 %v7852_v49, %v6833_v61  ;;  %v6860_v0 = vmul.f32 %v7856_v19, %v6826_v9  ;;  %7859 = vrsqrt.f32 %v10151_v11  ;;  %v7858_v50 = vpop.eup %7857  ;;  %vm6866_vm10 = vweird.f32 %v7856_v19  ;;  %vm6847_vm12 = vmor %vm6845_vm9, %vm6846_vm8 }
0x1e89   :  { %v6841_v7 = vmul.f32 %v7854_v38, %v6840_v26  ;;  %7861 = vrsqrt.f32 %v10153_v6  ;;  %v6870_v32 = vmul.f32 %v7858_v50, %v10146_v3  ;;  %vm6876_vm13 = vweird.f32 %v7858_v50  ;;  %vm6867_vm15 = vmor %vm6865_vm11, %vm6866_vm10 }
0x1e8a   :  { %v6838_v41 = vsel %vm6837_vm6, %v7852_v49, %v6834_v21  ;;  %v6861_v45 = vmul.f32 %v7856_v19, %v6860_v0  ;;  %vm6877_vm3 = vmor %vm6875_vm1, %vm6876_vm13  ;;  %vm6855_vm7 = vweird.f32 %v10151_v11  ;;  %vm6885_vm6 = vweird.f32 %v10153_v6 }
0x1e8b   :  { %v6889_v22 = vmul.f32 %v6838_v41, %v10107_v20  ;;  %v6842_v28 = vmul.f32 0.5, %v6841_v7  ;;  %v6871_v48 = vmul.f32 %v7858_v50, %v6870_v32  ;;  %vm7055_vm9 = vcmask 253952  }
0x1e8c   :  { %v6862_v63 = vmul.f32 0.5, %v6861_v45 }
0x1e8d   :  { %v6898_v27 = vmul.f32 %v10156_v16, %v6889_v22  ;;  %v6843_v29 = vsub.f32 1.5, %v6842_v28  ;;  %v6872_v17 = vmul.f32 0.5, %v6871_v48 }
0x1e8e   :  { %v7860_v10 = vpop.eup %7859  ;;  %v6863_v24 = vsub.f32 1.5, %v6862_v63 }
0x1e8f   :  { %v7862_v35 = vpop.eup %7861  ;;  %v6844_v39 = vmul.f32 %v7854_v38, %v6843_v29  ;;  %v6850_v20 = vmul.f32 %v7860_v10, %v10151_v11  ;;  %v6907_v18 = vadd.f32 %v10161_v4, %v6898_v27  ;;  %v6873_v59 = vsub.f32 1.5, %v6872_v17 }
0x1e90   :  { %v6864_v58 = vmul.f32 %v7856_v19, %v6863_v24  ;;  %v6880_v31 = vmul.f32 %v7862_v35, %v10153_v6  ;;  %vm6856_vm4 = vweird.f32 %v7860_v10  ;;  %vm6886_vm5 = vweird.f32 %v7862_v35 }
0x1e91   :  { %v6848_v36 = vsel %vm6847_vm12, %v7854_v38, %v6844_v39  ;;  %v6851_v33 = vmul.f32 %v7860_v10, %v6850_v20  ;;  %7354 = vmatpush.msk.msra.mxu3 %vm707_vm2, %v6907_v18  ;;  %v6874_v42 = vmul.f32 %v7858_v50, %v6873_v59  ;;  %vm6857_vm14 = vmor %vm6855_vm7, %vm6856_vm4 }
0x1e92   :  { %v6890_v47 = vmul.f32 %v6848_v36, %v10114_v8  ;;  %v6868_v51 = vsel %vm6867_vm15, %v7856_v19, %v6864_v58  ;;  %v6881_v37 = vmul.f32 %v7862_v35, %v6880_v31  ;;  %7355 = vmatmul.msk.f32.vlgmr.msra.gmra.mxu3 %vm6913_vm0, %v8539_v34  ;;  %vm6887_vm8 = vmor %vm6885_vm6, %vm6886_vm5 }
0x1e93   :  { %v6892_v55 = vmul.f32 %v6868_v51, %v10117_v2  ;;  %v6852_v53 = vmul.f32 0.5, %v6851_v33  ;;  %v6878_v23 = vsel %vm6877_vm3, %v7858_v50, %v6874_v42 }
0x1e94   :  { %v6899_v13 = vmul.f32 %v10156_v16, %v6890_v47  ;;  %v6882_v62 = vmul.f32 0.5, %v6881_v37  ;;  %v6893_v44 = vmul.f32 %v6878_v23, %v10119_v1 }
0x1e95   :  { %v6901_v57 = vmul.f32 %v10156_v16, %v6892_v55  ;;  %v6853_v40 = vsub.f32 1.5, %v6852_v53 }
0x1e96   :  { %v6883_v8 = vsub.f32 1.5, %v6882_v62  ;;  %v6908_v43 = vadd.f32 %v10161_v4, %v6899_v13  ;;  %v6902_v30 = vmul.f32 %v10156_v16, %v6893_v44 }
0x1e97   :  { %v6854_v46 = vmul.f32 %v7860_v10, %v6853_v40  ;;  %v6910_v2 = vadd.f32 %v10161_v4, %v6901_v57 }
0x1e98   :  { %v6884_v49 = vmul.f32 %v7862_v35, %v6883_v8  ;;  %7356 = vmatpush.msk.msrb.mxu0 %vm707_vm2, %v6908_v43  ;;  %v6911_v9 = vadd.f32 %v10161_v4, %v6902_v30 }
0x1e99   :  { %v6858_v1 = vsel %vm6857_vm14, %v7860_v10, %v6854_v46  ;;  %7360 = vmatpush.msk.msrb.mxu2 %vm707_vm2, %v6910_v2  ;;  %7357 = vmatmul.msk.f32.vlgmr.msrb.gmra.mxu0 %vm6913_vm0, %v8539_v34 }
0x1e9a   :  { %v6891_v52 = vmul.f32 %v6858_v1, %v10132_v54  ;;  %v6888_v3 = vsel %vm6887_vm8, %v7862_v35, %v6884_v49  ;;  %7361 = vmatmul.msk.f32.vlgmr.msrb.gmra.mxu2 %vm6913_vm0, %v8539_v34  ;;  %7362 = vmatpush.msk.msrb.mxu3 %vm707_vm2, %v6911_v9 }
0x1e9b   :  { %v6894_v56 = vmul.f32 %v6888_v3, %v10134_v5  ;;  %7363 = vmatmul.msk.f32.vlgmr.msrb.gmra.mxu3 %vm6913_vm0, %v8539_v34 }
0x1e9c   :  { %v6900_v25 = vmul.f32 %v10156_v16, %v6891_v52 }
0x1e9d   :  { %v6903_v15 = vmul.f32 %v10156_v16, %v6894_v56 }
0x1e9e   :  { %v6909_v14 = vadd.f32 %v10161_v4, %v6900_v25 }
0x1e9f   :  { %v6912_v54 = vadd.f32 %v10161_v4, %v6903_v15 }
0x1ea0   :  { %7358 = vmatpush.msk.msrb.mxu1 %vm707_vm2, %v6909_v14 }
0x1ea1   :  { %7364 = vmatpush.msk.msra.mxu0 %vm707_vm2, %v6912_v54  ;;  %7359 = vmatmul.msk.f32.vlgmr.msrb.gmra.mxu1 %vm6913_vm0, %v8539_v34 }
0x1ea2   :  { %7365 = vmatmul.msk.f32.vlgmr.msra.gmra.mxu0 %vm6913_vm0, %v8539_v34 }
0x1f15   :  { %v6937_v5 = vpop.f32.mrf.mxu3 }
0x1f16   :  { %7056 = vst.msk [vmem:[%s8718_s13] sm:$0x1] %vm7055_vm9, %v6937_v5  ;;  %v6960_v12 = vpop.f32.mrf.mxu0 }
0x1f17   :  { %7057 = vst.msk [vmem:[%s8718_s13 + $0x1] sm:$0x1] %vm7055_vm9, %v6960_v12 }
0x1f1d   :  { %v7006_v60 = vpop.f32.mrf.mxu2 }
0x1f1e   :  { %v6983_v38 = vpop.f32.mrf.mxu1  ;;  %7059 = vst.msk [vmem:[%s8718_s13 + $0x3] sm:$0x1] %vm7055_vm9, %v7006_v60  ;;  %v7029_v61 = vpop.f32.mrf.mxu3 }
0x1f1f   :  { %7058 = vst.msk [vmem:[%s8718_s13 + $0x2] sm:$0x1] %vm7055_vm9, %v6983_v38  ;;  %v7052_v11 = vpop.f32.mrf.mxu0 }
0x1f20   :  { %7060 = vst.msk [vmem:[%s8718_s13 + $0x4] sm:$0x1] %vm7055_vm9, %v7029_v61 }
0x1f21   :  { %7061 = vst.msk [vmem:[%s8718_s13 + $0x5] sm:$0x1] %vm7055_vm9, %v7052_v11 }
0x1f22   :  { %7066 = vsyncpa [#allocation3], 1 }
0x1f23   :  { %7067 = vsyncpa [#allocation5], 1 }
0x1f24   :  { %7068 = vsyncpa [#allocation8], 1 }
0x1f25   :  { %7069 = vsyncpa [#allocation11], 1 }
0x1f26   :  { %7070 = vsyncpa [#allocation14], 1 }
0x1f27   :  { %7071 = vsyncpa [#allocation17], 1 }
0x1f28   :  { %7072 = vsyncpa [#allocation20], 1 }
0x1f29   :  { %7073 = vsyncpa [#allocation23], 1 }
0x1f2a   :  { %7074 = vsyncpa [#allocation26], 1 }
0x1f2b   :  { %7075 = vsyncpa [#allocation29], 1 }
0x1f2c   :  { %7076 = vsyncpa [#allocation32], 1 }
0x1f2d   :  { %7077 = vsyncpa [#allocation35], 1 }
0x1f2e   :  { %7078 = vsyncpa [#allocation38], 1 }

</bundles_post_ra>
